<compile_context>
chip_gen: v7x
topology: tpu7x:2x2x1
jax: 0.10.0
libtpu: 0.0.40
codegen_flags: <defaults>
</compile_context>

<pallas_src>
import functools

import jax
import jax.numpy as jnp
import numpy as np
from jax.experimental import pallas as pl
from jax.experimental.pallas import tpu as pltpu

_HIGH = jax.lax.Precision.HIGHEST


# ----------------------------------------------------------------------------
# Fused kernel (one batch element per grid step)
# ----------------------------------------------------------------------------
def fused_encoder_kernel(x_taps_ref, w1_ref, b1_ref, w2_ref, b2_ref,
                         w3_ref, b3_ref, w4_ref, b4_ref,
                         sw1_ref, sb1_ref, sw2_ref, sb2_ref,
                         o_ref, pad1_ref, pad2_ref, pad3_ref,
                         *, H, W, slope):
    """Full SwinEncoder forward for one image, activations kept in VMEM.

    x_taps_ref: (1, H*W, 9)        conv1 im2col slab (Cin=1 folded into K=9)
    w1_ref:     (9, Ch), b1_ref: (1, Ch)
    w2..w4_ref: (3, 3, Cin, Cout), b*_ref: (1, Cout)
    sw1/sw2:    SE 1x1-conv weights, sb1/sb2 biases
    o_ref:      (1, H4*W4, C)      final SE-scaled features (flattened spatial)
    pad1_ref:   (H+2,  W+2,  Ch)   VMEM scratch (padded conv1 output)
    pad2_ref:   (H2+2, W2+2, C)    VMEM scratch (padded conv2 output)
    pad3_ref:   (H2+2, W2+2, C)    VMEM scratch (padded conv3 output)
    """
    Ch = w1_ref.shape[1]
    C = w2_ref.shape[3]
    H2, W2 = H // 2, W // 2
    H4, W4 = H2 // 2, W2 // 2

    def lrelu(v):
        return jnp.maximum(v, slope * v)            # LeakyReLU(0.2), single vmax

    def dot(a, b):
        return jnp.dot(a, b, preferred_element_type=jnp.float32,
                       precision=_HIGH)

    # ---- conv1: Cin=1, 9 taps folded into a single K=9 MXU matmul ----------
    y1 = lrelu(dot(x_taps_ref[0], w1_ref[...]) + b1_ref[...])   # (H*W, Ch)

    # zero-pad (padding=1) into VMEM scratch
    pad1_ref[...] = jnp.zeros_like(pad1_ref)
    pad1_ref[1:H + 1, 1:W + 1, :] = y1.reshape(H, W, Ch)

    # ---- conv2: 3x3 stride 2 via space-to-depth phases (contiguous slices) -
    ph1 = pad1_ref[...].reshape((H + 2) // 2, 2, (W + 2) // 2, 2, Ch)
    acc2 = jnp.zeros((H2 * W2, C), jnp.float32)
    for ky in range(3):
        for kx in range(3):
            slab = ph1[:, ky % 2, :, kx % 2, :]                 # (H2+1, W2+1, Ch)
            patch = slab[ky // 2:ky // 2 + H2, kx // 2:kx // 2 + W2, :]
            acc2 = acc2 + dot(patch.reshape(H2 * W2, Ch), w2_ref[ky, kx])
    y2 = lrelu(acc2 + b2_ref[...])                              # (H2*W2, C)

    pad2_ref[...] = jnp.zeros_like(pad2_ref)
    pad2_ref[1:H2 + 1, 1:W2 + 1, :] = y2.reshape(H2, W2, C)

    # ---- conv3: 3x3 stride 1 (static contiguous tap slices) ----------------
    acc3 = jnp.zeros((H2 * W2, C), jnp.float32)
    for ky in range(3):
        for kx in range(3):
            patch = pad2_ref[ky:ky + H2, kx:kx + W2, :]
            acc3 = acc3 + dot(patch.reshape(H2 * W2, C), w3_ref[ky, kx])
    y3 = lrelu(acc3 + b3_ref[...])                              # (H2*W2, C)

    pad3_ref[...] = jnp.zeros_like(pad3_ref)
    pad3_ref[1:H2 + 1, 1:W2 + 1, :] = y3.reshape(H2, W2, C)

    # ---- conv4: 3x3 stride 2 via space-to-depth phases ---------------------
    ph3 = pad3_ref[...].reshape((H2 + 2) // 2, 2, (W2 + 2) // 2, 2, C)
    acc4 = jnp.zeros((H4 * W4, C), jnp.float32)
    for ky in range(3):
        for kx in range(3):
            slab = ph3[:, ky % 2, :, kx % 2, :]                 # (H4+1, W4+1, C)
            patch = slab[ky // 2:ky // 2 + H4, kx // 2:kx // 2 + W4, :]
            acc4 = acc4 + dot(patch.reshape(H4 * W4, C), w4_ref[ky, kx])
    y4 = lrelu(acc4 + b4_ref[...])                              # (H4*W4, C)

    # ---- SE block fused at the tail (no extra HBM pass) --------------------
    mean = jnp.mean(y4, axis=0, keepdims=True)                  # (1, C)
    h = jnp.maximum(dot(mean, sw1_ref[...]) + sb1_ref[...], 0.0)
    s = jax.nn.sigmoid(dot(h, sw2_ref[...]) + sb2_ref[...])     # (1, C)
    o_ref[0] = (y4 * s).astype(o_ref.dtype)                     # channel rescale


# ----------------------------------------------------------------------------
# Wrapper
# ----------------------------------------------------------------------------
def swin_encoder(x_nchw, p):
    """Full SwinEncoder forward. Input NCHW (Cin=1), output NCHW."""
    N, Cin, H, W = x_nchw.shape
    assert Cin == 1 and H % 4 == 0 and W % 4 == 0

    Ch = p["w1"].shape[-1]
    C = p["w2"].shape[-1]
    Cr = p["se_w1"].shape[-1]
    H2, W2, H4, W4 = H // 2, W // 2, H // 4, W // 4

    # conv1 im2col slab (cheap: Cin=1) and tap-folded conv1 weight (9, Ch)
    x = jnp.transpose(x_nchw, (0, 2, 3, 1))                      # NCHW -> NHWC
    xp = jnp.pad(x, ((0, 0), (1, 1), (1, 1), (0, 0)))
    taps = [xp[:, ky:ky + H, kx:kx + W, 0]
            for ky in range(3) for kx in range(3)]
    x_taps = jnp.stack(taps, axis=-1).reshape(N, H * W, 9)       # (N, H*W, 9)
    w1 = p["w1"].reshape(9, Ch)

    kernel = functools.partial(fused_encoder_kernel, H=H, W=W, slope=0.2)

    flops = 2 * N * (H * W * 9 * 1 * Ch + H2 * W2 * 9 * Ch * C
                     + H2 * W2 * 9 * C * C + H4 * W4 * 9 * C * C
                     + 2 * C * Cr)
    param_elems = int(9 * Ch + Ch + 9 * Ch * C + C + 2 * 9 * C * C + 2 * C
                      + C * Cr + Cr + Cr * C + C)
    bytes_accessed = 4 * int(N * H * W * 9 + param_elems + N * H4 * W4 * C)

    out = pl.pallas_call(
        kernel,
        out_shape=jax.ShapeDtypeStruct((N, H4 * W4, C), jnp.float32),
        grid=(N,),
        in_specs=[
            pl.BlockSpec((1, H * W, 9), lambda n: (n, 0, 0)),
            pl.BlockSpec((9, Ch), lambda n: (0, 0)),
            pl.BlockSpec((1, Ch), lambda n: (0, 0)),
            pl.BlockSpec((3, 3, Ch, C), lambda n: (0, 0, 0, 0)),
            pl.BlockSpec((1, C), lambda n: (0, 0)),
            pl.BlockSpec((3, 3, C, C), lambda n: (0, 0, 0, 0)),
            pl.BlockSpec((1, C), lambda n: (0, 0)),
            pl.BlockSpec((3, 3, C, C), lambda n: (0, 0, 0, 0)),
            pl.BlockSpec((1, C), lambda n: (0, 0)),
            pl.BlockSpec((C, Cr), lambda n: (0, 0)),
            pl.BlockSpec((1, Cr), lambda n: (0, 0)),
            pl.BlockSpec((Cr, C), lambda n: (0, 0)),
            pl.BlockSpec((1, C), lambda n: (0, 0)),
        ],
        out_specs=pl.BlockSpec((1, H4 * W4, C), lambda n: (n, 0, 0)),
        scratch_shapes=[
            pltpu.VMEM((H + 2, W + 2, Ch), jnp.float32),
            pltpu.VMEM((H2 + 2, W2 + 2, C), jnp.float32),
            pltpu.VMEM((H2 + 2, W2 + 2, C), jnp.float32),
        ],
        compiler_params=pltpu.CompilerParams(
            dimension_semantics=("parallel",)),
        cost_estimate=pl.CostEstimate(flops=flops,
                                      transcendentals=N * C,
                                      bytes_accessed=bytes_accessed),
    )(x_taps, w1, p["b1"], p["w2"], p["b2"], p["w3"], p["b3"],
      p["w4"], p["b4"], p["se_w1"], p["se_b1"], p["se_w2"], p["se_b2"])

    out = out.reshape(N, H4, W4, C)                              # free HBM reshape
    return jnp.transpose(out, (0, 3, 1, 2))                      # NHWC -> NCHW


# ----------------------------------------------------------------------------
# Deterministic parameter init (synthetic weights, shapes from the module)
# ----------------------------------------------------------------------------
def init_params(key, swin_dim):
    c_half = swin_dim // 2
    c_red = swin_dim // 8
    ks = jax.random.split(key, 12)

    def conv_w(k, cin, cout):
        scale = 1.0 / np.sqrt(9.0 * cin)
        return jax.random.normal(k, (3, 3, cin, cout), jnp.float32) * scale

    def lin_w(k, cin, cout):
        scale = 1.0 / np.sqrt(float(cin))
        return jax.random.normal(k, (cin, cout), jnp.float32) * scale

    return {
        "w1": conv_w(ks[0], 1, c_half),
        "b1": jax.random.normal(ks[1], (1, c_half), jnp.float32) * 0.01,
        "w2": conv_w(ks[2], c_half, swin_dim),
        "b2": jax.random.normal(ks[3], (1, swin_dim), jnp.float32) * 0.01,
        "w3": conv_w(ks[4], swin_dim, swin_dim),
        "b3": jax.random.normal(ks[5], (1, swin_dim), jnp.float32) * 0.01,
        "w4": conv_w(ks[6], swin_dim, swin_dim),
        "b4": jax.random.normal(ks[7], (1, swin_dim), jnp.float32) * 0.01,
        "se_w1": lin_w(ks[8], swin_dim, c_red),        # 1x1 conv C -> C//8
        "se_b1": jax.random.normal(ks[9], (1, c_red), jnp.float32) * 0.01,
        "se_w2": lin_w(ks[10], c_red, swin_dim),       # 1x1 conv C//8 -> C
        "se_b2": jax.random.normal(ks[11], (1, swin_dim), jnp.float32) * 0.01,
    }


# ----------------------------------------------------------------------------
# Pure-JAX reference (for a correctness sanity check)
# ----------------------------------------------------------------------------
def ref_forward(x_nchw, p, slope=0.2):
    x = jnp.transpose(x_nchw, (0, 2, 3, 1))

    def conv(x, w, b, s):
        y = jax.lax.conv_general_dilated(
            x, w, (s, s), ((1, 1), (1, 1)),
            dimension_numbers=("NHWC", "HWIO", "NHWC"),
            precision=_HIGH) + b.reshape(1, 1, 1, -1)
        return jnp.maximum(y, slope * y)

    x = conv(x, p["w1"], p["b1"], 1)
    x = conv(x, p["w2"], p["b2"], 2)
    x = conv(x, p["w3"], p["b3"], 1)
    x = conv(x, p["w4"], p["b4"], 2)
    m = jnp.mean(x, axis=(1, 2), keepdims=True)                  # (N,1,1,C)
    h = jnp.maximum(jnp.einsum("nijc,cd->nijd", m, p["se_w1"], precision=_HIGH)
                    + p["se_b1"].reshape(1, 1, 1, -1), 0.0)
    s = jax.nn.sigmoid(jnp.einsum("nijd,dc->nijc", h, p["se_w2"],
                                  precision=_HIGH)
                       + p["se_b2"].reshape(1, 1, 1, -1))
    x = x * s
    return jnp.transpose(x, (0, 3, 1, 2))


# ----------------------------------------------------------------------------
if __name__ == "__main__":
    key = jax.random.PRNGKey(0)
    k_x, k_p = jax.random.split(key)

    swin_dim = 32                                  # small stand-in for 128
    x = jax.random.normal(k_x, (2, 1, 16, 16), jnp.float32)   # NCHW, 1 channel
    params = init_params(k_p, swin_dim)

    fwd = jax.jit(swin_encoder)
    out = jax.block_until_ready(fwd(x, params))
    assert out.shape == (2, swin_dim, 4, 4), out.shape

    ref = jax.block_until_ready(ref_forward(x, params))
    np.testing.assert_allclose(np.asarray(out), np.asarray(ref),
                               rtol=2e-3, atol=2e-3)

    print("KERNEL_OK")
</pallas_src>

<mosaic_0001>
module attributes {stable_mosaic.version = 11 : i64} {
  func.func @fused_encoder_kernel(%arg0: i32, %arg1: memref<1x256x9xf32, #tpu.memory_space<vmem>>, %arg2: memref<9x16xf32, #tpu.memory_space<vmem>>, %arg3: memref<1x16xf32, #tpu.memory_space<vmem>>, %arg4: memref<3x3x16x32xf32, #tpu.memory_space<vmem>>, %arg5: memref<1x32xf32, #tpu.memory_space<vmem>>, %arg6: memref<3x3x32x32xf32, #tpu.memory_space<vmem>>, %arg7: memref<1x32xf32, #tpu.memory_space<vmem>>, %arg8: memref<3x3x32x32xf32, #tpu.memory_space<vmem>>, %arg9: memref<1x32xf32, #tpu.memory_space<vmem>>, %arg10: memref<32x4xf32, #tpu.memory_space<vmem>>, %arg11: memref<1x4xf32, #tpu.memory_space<vmem>>, %arg12: memref<4x32xf32, #tpu.memory_space<vmem>>, %arg13: memref<1x32xf32, #tpu.memory_space<vmem>>, %arg14: memref<1x16x32xf32, #tpu.memory_space<vmem>>, %arg15: memref<18x18x16xf32, #tpu.memory_space<vmem>>, %arg16: memref<10x10x32xf32, #tpu.memory_space<vmem>>, %arg17: memref<10x10x32xf32, #tpu.memory_space<vmem>>) attributes {dimension_semantics = [#tpu.dimension_semantics<parallel>], iteration_bounds = array<i64: 2>, scalar_prefetch = 0 : i64, scratch_operands = 3 : i64, tpu.core_type = #tpu.core_type<tc>, window_params = [{transform_indices = @transform_0, window_bounds = array<i64: 1, 256, 9>}, {pipeline_mode = #tpu.pipeline_mode<synchronous>, transform_indices = @transform_1, window_bounds = array<i64: 9, 16>}, {pipeline_mode = #tpu.pipeline_mode<synchronous>, transform_indices = @transform_2, window_bounds = array<i64: 1, 16>}, {pipeline_mode = #tpu.pipeline_mode<synchronous>, transform_indices = @transform_3, window_bounds = array<i64: 3, 3, 16, 32>}, {pipeline_mode = #tpu.pipeline_mode<synchronous>, transform_indices = @transform_4, window_bounds = array<i64: 1, 32>}, {pipeline_mode = #tpu.pipeline_mode<synchronous>, transform_indices = @transform_5, window_bounds = array<i64: 3, 3, 32, 32>}, {pipeline_mode = #tpu.pipeline_mode<synchronous>, transform_indices = @transform_6, window_bounds = array<i64: 1, 32>}, {pipeline_mode = #tpu.pipeline_mode<synchronous>, transform_indices = @transform_7, window_bounds = array<i64: 3, 3, 32, 32>}, {pipeline_mode = #tpu.pipeline_mode<synchronous>, transform_indices = @transform_8, window_bounds = array<i64: 1, 32>}, {pipeline_mode = #tpu.pipeline_mode<synchronous>, transform_indices = @transform_9, window_bounds = array<i64: 32, 4>}, {pipeline_mode = #tpu.pipeline_mode<synchronous>, transform_indices = @transform_10, window_bounds = array<i64: 1, 4>}, {pipeline_mode = #tpu.pipeline_mode<synchronous>, transform_indices = @transform_11, window_bounds = array<i64: 4, 32>}, {pipeline_mode = #tpu.pipeline_mode<synchronous>, transform_indices = @transform_12, window_bounds = array<i64: 1, 32>}, {transform_indices = @transform_13, window_bounds = array<i64: 1, 16, 32>}]} {
    %c0 = arith.constant 0 : index
    %c0_0 = arith.constant 0 : index
    %c0_1 = arith.constant 0 : index
    %0 = vector.load %arg1[%c0, %c0_0, %c0_1] : memref<1x256x9xf32, #tpu.memory_space<vmem>>, vector<1x256x9xf32>
    %1 = vector.shape_cast %0 : vector<1x256x9xf32> to vector<256x9xf32>
    %c0_2 = arith.constant 0 : index
    %c0_3 = arith.constant 0 : index
    %2 = vector.load %arg2[%c0_2, %c0_3] : memref<9x16xf32, #tpu.memory_space<vmem>>, vector<9x16xf32>
    %cst = arith.constant dense<0.000000e+00> : vector<256x16xf32>
    %3 = tpu.matmul %1, %2, %cst {dimension_numbers = #tpu.dot_dimension_numbers<[1], [0], [0], [1], [0, 0, 1, 1], [], []>, precision = #tpu.contract_precision<fp32>} : vector<256x9xf32>, vector<9x16xf32>, vector<256x16xf32> -> vector<256x16xf32>
    %c0_4 = arith.constant 0 : index
    %c0_5 = arith.constant 0 : index
    %4 = vector.load %arg3[%c0_4, %c0_5] : memref<1x16xf32, #tpu.memory_space<vmem>>, vector<1x16xf32>
    %5 = vector.broadcast %4 : vector<1x16xf32> to vector<256x16xf32>
    %6 = arith.addf %3, %5 : vector<256x16xf32>
    %cst_6 = arith.constant 2.000000e-01 : f32
    %7 = vector.broadcast %cst_6 : f32 to vector<256x16xf32>
    %8 = arith.mulf %7, %6 : vector<256x16xf32>
    %9 = arith.maximumf %6, %8 : vector<256x16xf32>
    %cst_7 = arith.constant 0.000000e+00 : f32
    %10 = vector.broadcast %cst_7 : f32 to vector<18x18x16xf32>
    %c0_8 = arith.constant 0 : index
    %c0_9 = arith.constant 0 : index
    %c0_10 = arith.constant 0 : index
    %11 = vector.load %arg15[%c0_8, %c0_9, %c0_10] : memref<18x18x16xf32, #tpu.memory_space<vmem>>, vector<18x18x16xf32>
    tpu.vector_store %arg15[%c0_8, %c0_9, %c0_10], %10 {strides = array<i32>} : memref<18x18x16xf32, #tpu.memory_space<vmem>>, vector<18x18x16xf32>,
    %12 = vector.shape_cast %9 : vector<256x16xf32> to vector<16x16x16xf32>
    %c1 = arith.constant 1 : index
    %c1_11 = arith.constant 1 : index
    %c0_12 = arith.constant 0 : index
    %13 = vector.load %arg15[%c1, %c1_11, %c0_12] : memref<18x18x16xf32, #tpu.memory_space<vmem>>, vector<16x16x16xf32>
    tpu.vector_store %arg15[%c1, %c1_11, %c0_12], %12 {strides = array<i32>} : memref<18x18x16xf32, #tpu.memory_space<vmem>>, vector<16x16x16xf32>,
    %c0_13 = arith.constant 0 : index
    %c0_14 = arith.constant 0 : index
    %c0_15 = arith.constant 0 : index
    %14 = vector.load %arg15[%c0_13, %c0_14, %c0_15] : memref<18x18x16xf32, #tpu.memory_space<vmem>>, vector<18x18x16xf32>
    %15 = vector.shape_cast %14 : vector<18x18x16xf32> to vector<9x2x9x2x16xf32>
    %cst_16 = arith.constant 0.000000e+00 : f32
    %16 = vector.broadcast %cst_16 : f32 to vector<64x32xf32>
    %17 = vector.extract_strided_slice %15 {offsets = [0, 0, 0, 0, 0], sizes = [9, 1, 9, 1, 16], strides = [1, 1, 1, 1, 1]} : vector<9x2x9x2x16xf32> to vector<9x1x9x1x16xf32>
    %18 = vector.shape_cast %17 : vector<9x1x9x1x16xf32> to vector<9x9x16xf32>
    %19 = vector.extract_strided_slice %18 {offsets = [0, 0, 0], sizes = [8, 8, 16], strides = [1, 1, 1]} : vector<9x9x16xf32> to vector<8x8x16xf32>
    %20 = vector.shape_cast %19 : vector<8x8x16xf32> to vector<64x16xf32>
    %c0_17 = arith.constant 0 : index
    %c0_18 = arith.constant 0 : index
    %c0_19 = arith.constant 0 : index
    %c0_20 = arith.constant 0 : index
    %21 = vector.load %arg4[%c0_17, %c0_18, %c0_19, %c0_20] : memref<3x3x16x32xf32, #tpu.memory_space<vmem>>, vector<1x1x16x32xf32>
    %22 = vector.shape_cast %21 : vector<1x1x16x32xf32> to vector<16x32xf32>
    %cst_21 = arith.constant dense<0.000000e+00> : vector<64x32xf32>
    %23 = tpu.matmul %20, %22, %cst_21 {dimension_numbers = #tpu.dot_dimension_numbers<[1], [0], [0], [1], [0, 0, 1, 1], [], []>, precision = #tpu.contract_precision<fp32>} : vector<64x16xf32>, vector<16x32xf32>, vector<64x32xf32> -> vector<64x32xf32>
    %24 = arith.addf %16, %23 : vector<64x32xf32>
    %25 = vector.extract_strided_slice %15 {offsets = [0, 0, 0, 1, 0], sizes = [9, 1, 9, 1, 16], strides = [1, 1, 1, 1, 1]} : vector<9x2x9x2x16xf32> to vector<9x1x9x1x16xf32>
    %26 = vector.shape_cast %25 : vector<9x1x9x1x16xf32> to vector<9x9x16xf32>
    %27 = vector.extract_strided_slice %26 {offsets = [0, 0, 0], sizes = [8, 8, 16], strides = [1, 1, 1]} : vector<9x9x16xf32> to vector<8x8x16xf32>
    %28 = vector.shape_cast %27 : vector<8x8x16xf32> to vector<64x16xf32>
    %c0_22 = arith.constant 0 : index
    %c1_23 = arith.constant 1 : index
    %c0_24 = arith.constant 0 : index
    %c0_25 = arith.constant 0 : index
    %29 = vector.load %arg4[%c0_22, %c1_23, %c0_24, %c0_25] : memref<3x3x16x32xf32, #tpu.memory_space<vmem>>, vector<1x1x16x32xf32>
    %30 = vector.shape_cast %29 : vector<1x1x16x32xf32> to vector<16x32xf32>
    %cst_26 = arith.constant dense<0.000000e+00> : vector<64x32xf32>
    %31 = tpu.matmul %28, %30, %cst_26 {dimension_numbers = #tpu.dot_dimension_numbers<[1], [0], [0], [1], [0, 0, 1, 1], [], []>, precision = #tpu.contract_precision<fp32>} : vector<64x16xf32>, vector<16x32xf32>, vector<64x32xf32> -> vector<64x32xf32>
    %32 = arith.addf %24, %31 : vector<64x32xf32>
    %33 = vector.extract_strided_slice %15 {offsets = [0, 0, 0, 0, 0], sizes = [9, 1, 9, 1, 16], strides = [1, 1, 1, 1, 1]} : vector<9x2x9x2x16xf32> to vector<9x1x9x1x16xf32>
    %34 = vector.shape_cast %33 : vector<9x1x9x1x16xf32> to vector<9x9x16xf32>
    %35 = vector.extract_strided_slice %34 {offsets = [0, 1, 0], sizes = [8, 8, 16], strides = [1, 1, 1]} : vector<9x9x16xf32> to vector<8x8x16xf32>
    %36 = vector.shape_cast %35 : vector<8x8x16xf32> to vector<64x16xf32>
    %c0_27 = arith.constant 0 : index
    %c2 = arith.constant 2 : index
    %c0_28 = arith.constant 0 : index
    %c0_29 = arith.constant 0 : index
    %37 = vector.load %arg4[%c0_27, %c2, %c0_28, %c0_29] : memref<3x3x16x32xf32, #tpu.memory_space<vmem>>, vector<1x1x16x32xf32>
    %38 = vector.shape_cast %37 : vector<1x1x16x32xf32> to vector<16x32xf32>
    %cst_30 = arith.constant dense<0.000000e+00> : vector<64x32xf32>
    %39 = tpu.matmul %36, %38, %cst_30 {dimension_numbers = #tpu.dot_dimension_numbers<[1], [0], [0], [1], [0, 0, 1, 1], [], []>, precision = #tpu.contract_precision<fp32>} : vector<64x16xf32>, vector<16x32xf32>, vector<64x32xf32> -> vector<64x32xf32>
    %40 = arith.addf %32, %39 : vector<64x32xf32>
    %41 = vector.extract_strided_slice %15 {offsets = [0, 1, 0, 0, 0], sizes = [9, 1, 9, 1, 16], strides = [1, 1, 1, 1, 1]} : vector<9x2x9x2x16xf32> to vector<9x1x9x1x16xf32>
    %42 = vector.shape_cast %41 : vector<9x1x9x1x16xf32> to vector<9x9x16xf32>
    %43 = vector.extract_strided_slice %42 {offsets = [0, 0, 0], sizes = [8, 8, 16], strides = [1, 1, 1]} : vector<9x9x16xf32> to vector<8x8x16xf32>
    %44 = vector.shape_cast %43 : vector<8x8x16xf32> to vector<64x16xf32>
    %c1_31 = arith.constant 1 : index
    %c0_32 = arith.constant 0 : index
    %c0_33 = arith.constant 0 : index
    %c0_34 = arith.constant 0 : index
    %45 = vector.load %arg4[%c1_31, %c0_32, %c0_33, %c0_34] : memref<3x3x16x32xf32, #tpu.memory_space<vmem>>, vector<1x1x16x32xf32>
    %46 = vector.shape_cast %45 : vector<1x1x16x32xf32> to vector<16x32xf32>
    %cst_35 = arith.constant dense<0.000000e+00> : vector<64x32xf32>
    %47 = tpu.matmul %44, %46, %cst_35 {dimension_numbers = #tpu.dot_dimension_numbers<[1], [0], [0], [1], [0, 0, 1, 1], [], []>, precision = #tpu.contract_precision<fp32>} : vector<64x16xf32>, vector<16x32xf32>, vector<64x32xf32> -> vector<64x32xf32>
    %48 = arith.addf %40, %47 : vector<64x32xf32>
    %49 = vector.extract_strided_slice %15 {offsets = [0, 1, 0, 1, 0], sizes = [9, 1, 9, 1, 16], strides = [1, 1, 1, 1, 1]} : vector<9x2x9x2x16xf32> to vector<9x1x9x1x16xf32>
    %50 = vector.shape_cast %49 : vector<9x1x9x1x16xf32> to vector<9x9x16xf32>
    %51 = vector.extract_strided_slice %50 {offsets = [0, 0, 0], sizes = [8, 8, 16], strides = [1, 1, 1]} : vector<9x9x16xf32> to vector<8x8x16xf32>
    %52 = vector.shape_cast %51 : vector<8x8x16xf32> to vector<64x16xf32>
    %c1_36 = arith.constant 1 : index
    %c1_37 = arith.constant 1 : index
    %c0_38 = arith.constant 0 : index
    %c0_39 = arith.constant 0 : index
    %53 = vector.load %arg4[%c1_36, %c1_37, %c0_38, %c0_39] : memref<3x3x16x32xf32, #tpu.memory_space<vmem>>, vector<1x1x16x32xf32>
    %54 = vector.shape_cast %53 : vector<1x1x16x32xf32> to vector<16x32xf32>
    %cst_40 = arith.constant dense<0.000000e+00> : vector<64x32xf32>
    %55 = tpu.matmul %52, %54, %cst_40 {dimension_numbers = #tpu.dot_dimension_numbers<[1], [0], [0], [1], [0, 0, 1, 1], [], []>, precision = #tpu.contract_precision<fp32>} : vector<64x16xf32>, vector<16x32xf32>, vector<64x32xf32> -> vector<64x32xf32>
    %56 = arith.addf %48, %55 : vector<64x32xf32>
    %57 = vector.extract_strided_slice %15 {offsets = [0, 1, 0, 0, 0], sizes = [9, 1, 9, 1, 16], strides = [1, 1, 1, 1, 1]} : vector<9x2x9x2x16xf32> to vector<9x1x9x1x16xf32>
    %58 = vector.shape_cast %57 : vector<9x1x9x1x16xf32> to vector<9x9x16xf32>
    %59 = vector.extract_strided_slice %58 {offsets = [0, 1, 0], sizes = [8, 8, 16], strides = [1, 1, 1]} : vector<9x9x16xf32> to vector<8x8x16xf32>
    %60 = vector.shape_cast %59 : vector<8x8x16xf32> to vector<64x16xf32>
    %c1_41 = arith.constant 1 : index
    %c2_42 = arith.constant 2 : index
    %c0_43 = arith.constant 0 : index
    %c0_44 = arith.constant 0 : index
    %61 = vector.load %arg4[%c1_41, %c2_42, %c0_43, %c0_44] : memref<3x3x16x32xf32, #tpu.memory_space<vmem>>, vector<1x1x16x32xf32>
    %62 = vector.shape_cast %61 : vector<1x1x16x32xf32> to vector<16x32xf32>
    %cst_45 = arith.constant dense<0.000000e+00> : vector<64x32xf32>
    %63 = tpu.matmul %60, %62, %cst_45 {dimension_numbers = #tpu.dot_dimension_numbers<[1], [0], [0], [1], [0, 0, 1, 1], [], []>, precision = #tpu.contract_precision<fp32>} : vector<64x16xf32>, vector<16x32xf32>, vector<64x32xf32> -> vector<64x32xf32>
    %64 = arith.addf %56, %63 : vector<64x32xf32>
    %65 = vector.extract_strided_slice %15 {offsets = [0, 0, 0, 0, 0], sizes = [9, 1, 9, 1, 16], strides = [1, 1, 1, 1, 1]} : vector<9x2x9x2x16xf32> to vector<9x1x9x1x16xf32>
    %66 = vector.shape_cast %65 : vector<9x1x9x1x16xf32> to vector<9x9x16xf32>
    %67 = vector.extract_strided_slice %66 {offsets = [1, 0, 0], sizes = [8, 8, 16], strides = [1, 1, 1]} : vector<9x9x16xf32> to vector<8x8x16xf32>
    %68 = vector.shape_cast %67 : vector<8x8x16xf32> to vector<64x16xf32>
    %c2_46 = arith.constant 2 : index
    %c0_47 = arith.constant 0 : index
    %c0_48 = arith.constant 0 : index
    %c0_49 = arith.constant 0 : index
    %69 = vector.load %arg4[%c2_46, %c0_47, %c0_48, %c0_49] : memref<3x3x16x32xf32, #tpu.memory_space<vmem>>, vector<1x1x16x32xf32>
    %70 = vector.shape_cast %69 : vector<1x1x16x32xf32> to vector<16x32xf32>
    %cst_50 = arith.constant dense<0.000000e+00> : vector<64x32xf32>
    %71 = tpu.matmul %68, %70, %cst_50 {dimension_numbers = #tpu.dot_dimension_numbers<[1], [0], [0], [1], [0, 0, 1, 1], [], []>, precision = #tpu.contract_precision<fp32>} : vector<64x16xf32>, vector<16x32xf32>, vector<64x32xf32> -> vector<64x32xf32>
    %72 = arith.addf %64, %71 : vector<64x32xf32>
    %73 = vector.extract_strided_slice %15 {offsets = [0, 0, 0, 1, 0], sizes = [9, 1, 9, 1, 16], strides = [1, 1, 1, 1, 1]} : vector<9x2x9x2x16xf32> to vector<9x1x9x1x16xf32>
    %74 = vector.shape_cast %73 : vector<9x1x9x1x16xf32> to vector<9x9x16xf32>
    %75 = vector.extract_strided_slice %74 {offsets = [1, 0, 0], sizes = [8, 8, 16], strides = [1, 1, 1]} : vector<9x9x16xf32> to vector<8x8x16xf32>
    %76 = vector.shape_cast %75 : vector<8x8x16xf32> to vector<64x16xf32>
    %c2_51 = arith.constant 2 : index
    %c1_52 = arith.constant 1 : index
    %c0_53 = arith.constant 0 : index
    %c0_54 = arith.constant 0 : index
    %77 = vector.load %arg4[%c2_51, %c1_52, %c0_53, %c0_54] : memref<3x3x16x32xf32, #tpu.memory_space<vmem>>, vector<1x1x16x32xf32>
    %78 = vector.shape_cast %77 : vector<1x1x16x32xf32> to vector<16x32xf32>
    %cst_55 = arith.constant dense<0.000000e+00> : vector<64x32xf32>
    %79 = tpu.matmul %76, %78, %cst_55 {dimension_numbers = #tpu.dot_dimension_numbers<[1], [0], [0], [1], [0, 0, 1, 1], [], []>, precision = #tpu.contract_precision<fp32>} : vector<64x16xf32>, vector<16x32xf32>, vector<64x32xf32> -> vector<64x32xf32>
    %80 = arith.addf %72, %79 : vector<64x32xf32>
    %81 = vector.extract_strided_slice %15 {offsets = [0, 0, 0, 0, 0], sizes = [9, 1, 9, 1, 16], strides = [1, 1, 1, 1, 1]} : vector<9x2x9x2x16xf32> to vector<9x1x9x1x16xf32>
    %82 = vector.shape_cast %81 : vector<9x1x9x1x16xf32> to vector<9x9x16xf32>
    %83 = vector.extract_strided_slice %82 {offsets = [1, 1, 0], sizes = [8, 8, 16], strides = [1, 1, 1]} : vector<9x9x16xf32> to vector<8x8x16xf32>
    %84 = vector.shape_cast %83 : vector<8x8x16xf32> to vector<64x16xf32>
    %c2_56 = arith.constant 2 : index
    %c2_57 = arith.constant 2 : index
    %c0_58 = arith.constant 0 : index
    %c0_59 = arith.constant 0 : index
    %85 = vector.load %arg4[%c2_56, %c2_57, %c0_58, %c0_59] : memref<3x3x16x32xf32, #tpu.memory_space<vmem>>, vector<1x1x16x32xf32>
    %86 = vector.shape_cast %85 : vector<1x1x16x32xf32> to vector<16x32xf32>
    %cst_60 = arith.constant dense<0.000000e+00> : vector<64x32xf32>
    %87 = tpu.matmul %84, %86, %cst_60 {dimension_numbers = #tpu.dot_dimension_numbers<[1], [0], [0], [1], [0, 0, 1, 1], [], []>, precision = #tpu.contract_precision<fp32>} : vector<64x16xf32>, vector<16x32xf32>, vector<64x32xf32> -> vector<64x32xf32>
    %88 = arith.addf %80, %87 : vector<64x32xf32>
    %c0_61 = arith.constant 0 : index
    %c0_62 = arith.constant 0 : index
    %89 = vector.load %arg5[%c0_61, %c0_62] : memref<1x32xf32, #tpu.memory_space<vmem>>, vector<1x32xf32>
    %90 = vector.broadcast %89 : vector<1x32xf32> to vector<64x32xf32>
    %91 = arith.addf %88, %90 : vector<64x32xf32>
    %cst_63 = arith.constant 2.000000e-01 : f32
    %92 = vector.broadcast %cst_63 : f32 to vector<64x32xf32>
    %93 = arith.mulf %92, %91 : vector<64x32xf32>
    %94 = arith.maximumf %91, %93 : vector<64x32xf32>
    %cst_64 = arith.constant 0.000000e+00 : f32
    %95 = vector.broadcast %cst_64 : f32 to vector<10x10x32xf32>
    %c0_65 = arith.constant 0 : index
    %c0_66 = arith.constant 0 : index
    %c0_67 = arith.constant 0 : index
    %96 = vector.load %arg16[%c0_65, %c0_66, %c0_67] : memref<10x10x32xf32, #tpu.memory_space<vmem>>, vector<10x10x32xf32>
    tpu.vector_store %arg16[%c0_65, %c0_66, %c0_67], %95 {strides = array<i32>} : memref<10x10x32xf32, #tpu.memory_space<vmem>>, vector<10x10x32xf32>,
    %97 = vector.shape_cast %94 : vector<64x32xf32> to vector<8x8x32xf32>
    %c1_68 = arith.constant 1 : index
    %c1_69 = arith.constant 1 : index
    %c0_70 = arith.constant 0 : index
    %98 = vector.load %arg16[%c1_68, %c1_69, %c0_70] : memref<10x10x32xf32, #tpu.memory_space<vmem>>, vector<8x8x32xf32>
    tpu.vector_store %arg16[%c1_68, %c1_69, %c0_70], %97 {strides = array<i32>} : memref<10x10x32xf32, #tpu.memory_space<vmem>>, vector<8x8x32xf32>,
    %cst_71 = arith.constant 0.000000e+00 : f32
    %99 = vector.broadcast %cst_71 : f32 to vector<64x32xf32>
    %c0_72 = arith.constant 0 : index
    %c0_73 = arith.constant 0 : index
    %c0_74 = arith.constant 0 : index
    %100 = vector.load %arg16[%c0_72, %c0_73, %c0_74] : memref<10x10x32xf32, #tpu.memory_space<vmem>>, vector<8x8x32xf32>
    %101 = vector.shape_cast %100 : vector<8x8x32xf32> to vector<64x32xf32>
    %c0_75 = arith.constant 0 : index
    %c0_76 = arith.constant 0 : index
    %c0_77 = arith.constant 0 : index
    %c0_78 = arith.constant 0 : index
    %102 = vector.load %arg6[%c0_75, %c0_76, %c0_77, %c0_78] : memref<3x3x32x32xf32, #tpu.memory_space<vmem>>, vector<1x1x32x32xf32>
    %103 = vector.shape_cast %102 : vector<1x1x32x32xf32> to vector<32x32xf32>
    %cst_79 = arith.constant dense<0.000000e+00> : vector<64x32xf32>
    %104 = tpu.matmul %101, %103, %cst_79 {dimension_numbers = #tpu.dot_dimension_numbers<[1], [0], [0], [1], [0, 0, 1, 1], [], []>, precision = #tpu.contract_precision<fp32>} : vector<64x32xf32>, vector<32x32xf32>, vector<64x32xf32> -> vector<64x32xf32>
    %105 = arith.addf %99, %104 : vector<64x32xf32>
    %c0_80 = arith.constant 0 : index
    %c1_81 = arith.constant 1 : index
    %c0_82 = arith.constant 0 : index
    %106 = vector.load %arg16[%c0_80, %c1_81, %c0_82] : memref<10x10x32xf32, #tpu.memory_space<vmem>>, vector<8x8x32xf32>
    %107 = vector.shape_cast %106 : vector<8x8x32xf32> to vector<64x32xf32>
    %c0_83 = arith.constant 0 : index
    %c1_84 = arith.constant 1 : index
    %c0_85 = arith.constant 0 : index
    %c0_86 = arith.constant 0 : index
    %108 = vector.load %arg6[%c0_83, %c1_84, %c0_85, %c0_86] : memref<3x3x32x32xf32, #tpu.memory_space<vmem>>, vector<1x1x32x32xf32>
    %109 = vector.shape_cast %108 : vector<1x1x32x32xf32> to vector<32x32xf32>
    %cst_87 = arith.constant dense<0.000000e+00> : vector<64x32xf32>
    %110 = tpu.matmul %107, %109, %cst_87 {dimension_numbers = #tpu.dot_dimension_numbers<[1], [0], [0], [1], [0, 0, 1, 1], [], []>, precision = #tpu.contract_precision<fp32>} : vector<64x32xf32>, vector<32x32xf32>, vector<64x32xf32> -> vector<64x32xf32>
    %111 = arith.addf %105, %110 : vector<64x32xf32>
    %c0_88 = arith.constant 0 : index
    %c2_89 = arith.constant 2 : index
    %c0_90 = arith.constant 0 : index
    %112 = vector.load %arg16[%c0_88, %c2_89, %c0_90] : memref<10x10x32xf32, #tpu.memory_space<vmem>>, vector<8x8x32xf32>
    %113 = vector.shape_cast %112 : vector<8x8x32xf32> to vector<64x32xf32>
    %c0_91 = arith.constant 0 : index
    %c2_92 = arith.constant 2 : index
    %c0_93 = arith.constant 0 : index
    %c0_94 = arith.constant 0 : index
    %114 = vector.load %arg6[%c0_91, %c2_92, %c0_93, %c0_94] : memref<3x3x32x32xf32, #tpu.memory_space<vmem>>, vector<1x1x32x32xf32>
    %115 = vector.shape_cast %114 : vector<1x1x32x32xf32> to vector<32x32xf32>
    %cst_95 = arith.constant dense<0.000000e+00> : vector<64x32xf32>
    %116 = tpu.matmul %113, %115, %cst_95 {dimension_numbers = #tpu.dot_dimension_numbers<[1], [0], [0], [1], [0, 0, 1, 1], [], []>, precision = #tpu.contract_precision<fp32>} : vector<64x32xf32>, vector<32x32xf32>, vector<64x32xf32> -> vector<64x32xf32>
    %117 = arith.addf %111, %116 : vector<64x32xf32>
    %c1_96 = arith.constant 1 : index
    %c0_97 = arith.constant 0 : index
    %c0_98 = arith.constant 0 : index
    %118 = vector.load %arg16[%c1_96, %c0_97, %c0_98] : memref<10x10x32xf32, #tpu.memory_space<vmem>>, vector<8x8x32xf32>
    %119 = vector.shape_cast %118 : vector<8x8x32xf32> to vector<64x32xf32>
    %c1_99 = arith.constant 1 : index
    %c0_100 = arith.constant 0 : index
    %c0_101 = arith.constant 0 : index
    %c0_102 = arith.constant 0 : index
    %120 = vector.load %arg6[%c1_99, %c0_100, %c0_101, %c0_102] : memref<3x3x32x32xf32, #tpu.memory_space<vmem>>, vector<1x1x32x32xf32>
    %121 = vector.shape_cast %120 : vector<1x1x32x32xf32> to vector<32x32xf32>
    %cst_103 = arith.constant dense<0.000000e+00> : vector<64x32xf32>
    %122 = tpu.matmul %119, %121, %cst_103 {dimension_numbers = #tpu.dot_dimension_numbers<[1], [0], [0], [1], [0, 0, 1, 1], [], []>, precision = #tpu.contract_precision<fp32>} : vector<64x32xf32>, vector<32x32xf32>, vector<64x32xf32> -> vector<64x32xf32>
    %123 = arith.addf %117, %122 : vector<64x32xf32>
    %c1_104 = arith.constant 1 : index
    %c1_105 = arith.constant 1 : index
    %c0_106 = arith.constant 0 : index
    %124 = vector.load %arg16[%c1_104, %c1_105, %c0_106] : memref<10x10x32xf32, #tpu.memory_space<vmem>>, vector<8x8x32xf32>
    %125 = vector.shape_cast %124 : vector<8x8x32xf32> to vector<64x32xf32>
    %c1_107 = arith.constant 1 : index
    %c1_108 = arith.constant 1 : index
    %c0_109 = arith.constant 0 : index
    %c0_110 = arith.constant 0 : index
    %126 = vector.load %arg6[%c1_107, %c1_108, %c0_109, %c0_110] : memref<3x3x32x32xf32, #tpu.memory_space<vmem>>, vector<1x1x32x32xf32>
    %127 = vector.shape_cast %126 : vector<1x1x32x32xf32> to vector<32x32xf32>
    %cst_111 = arith.constant dense<0.000000e+00> : vector<64x32xf32>
    %128 = tpu.matmul %125, %127, %cst_111 {dimension_numbers = #tpu.dot_dimension_numbers<[1], [0], [0], [1], [0, 0, 1, 1], [], []>, precision = #tpu.contract_precision<fp32>} : vector<64x32xf32>, vector<32x32xf32>, vector<64x32xf32> -> vector<64x32xf32>
    %129 = arith.addf %123, %128 : vector<64x32xf32>
    %c1_112 = arith.constant 1 : index
    %c2_113 = arith.constant 2 : index
    %c0_114 = arith.constant 0 : index
    %130 = vector.load %arg16[%c1_112, %c2_113, %c0_114] : memref<10x10x32xf32, #tpu.memory_space<vmem>>, vector<8x8x32xf32>
    %131 = vector.shape_cast %130 : vector<8x8x32xf32> to vector<64x32xf32>
    %c1_115 = arith.constant 1 : index
    %c2_116 = arith.constant 2 : index
    %c0_117 = arith.constant 0 : index
    %c0_118 = arith.constant 0 : index
    %132 = vector.load %arg6[%c1_115, %c2_116, %c0_117, %c0_118] : memref<3x3x32x32xf32, #tpu.memory_space<vmem>>, vector<1x1x32x32xf32>
    %133 = vector.shape_cast %132 : vector<1x1x32x32xf32> to vector<32x32xf32>
    %cst_119 = arith.constant dense<0.000000e+00> : vector<64x32xf32>
    %134 = tpu.matmul %131, %133, %cst_119 {dimension_numbers = #tpu.dot_dimension_numbers<[1], [0], [0], [1], [0, 0, 1, 1], [], []>, precision = #tpu.contract_precision<fp32>} : vector<64x32xf32>, vector<32x32xf32>, vector<64x32xf32> -> vector<64x32xf32>
    %135 = arith.addf %129, %134 : vector<64x32xf32>
    %c2_120 = arith.constant 2 : index
    %c0_121 = arith.constant 0 : index
    %c0_122 = arith.constant 0 : index
    %136 = vector.load %arg16[%c2_120, %c0_121, %c0_122] : memref<10x10x32xf32, #tpu.memory_space<vmem>>, vector<8x8x32xf32>
    %137 = vector.shape_cast %136 : vector<8x8x32xf32> to vector<64x32xf32>
    %c2_123 = arith.constant 2 : index
    %c0_124 = arith.constant 0 : index
    %c0_125 = arith.constant 0 : index
    %c0_126 = arith.constant 0 : index
    %138 = vector.load %arg6[%c2_123, %c0_124, %c0_125, %c0_126] : memref<3x3x32x32xf32, #tpu.memory_space<vmem>>, vector<1x1x32x32xf32>
    %139 = vector.shape_cast %138 : vector<1x1x32x32xf32> to vector<32x32xf32>
    %cst_127 = arith.constant dense<0.000000e+00> : vector<64x32xf32>
    %140 = tpu.matmul %137, %139, %cst_127 {dimension_numbers = #tpu.dot_dimension_numbers<[1], [0], [0], [1], [0, 0, 1, 1], [], []>, precision = #tpu.contract_precision<fp32>} : vector<64x32xf32>, vector<32x32xf32>, vector<64x32xf32> -> vector<64x32xf32>
    %141 = arith.addf %135, %140 : vector<64x32xf32>
    %c2_128 = arith.constant 2 : index
    %c1_129 = arith.constant 1 : index
    %c0_130 = arith.constant 0 : index
    %142 = vector.load %arg16[%c2_128, %c1_129, %c0_130] : memref<10x10x32xf32, #tpu.memory_space<vmem>>, vector<8x8x32xf32>
    %143 = vector.shape_cast %142 : vector<8x8x32xf32> to vector<64x32xf32>
    %c2_131 = arith.constant 2 : index
    %c1_132 = arith.constant 1 : index
    %c0_133 = arith.constant 0 : index
    %c0_134 = arith.constant 0 : index
    %144 = vector.load %arg6[%c2_131, %c1_132, %c0_133, %c0_134] : memref<3x3x32x32xf32, #tpu.memory_space<vmem>>, vector<1x1x32x32xf32>
    %145 = vector.shape_cast %144 : vector<1x1x32x32xf32> to vector<32x32xf32>
    %cst_135 = arith.constant dense<0.000000e+00> : vector<64x32xf32>
    %146 = tpu.matmul %143, %145, %cst_135 {dimension_numbers = #tpu.dot_dimension_numbers<[1], [0], [0], [1], [0, 0, 1, 1], [], []>, precision = #tpu.contract_precision<fp32>} : vector<64x32xf32>, vector<32x32xf32>, vector<64x32xf32> -> vector<64x32xf32>
    %147 = arith.addf %141, %146 : vector<64x32xf32>
    %c2_136 = arith.constant 2 : index
    %c2_137 = arith.constant 2 : index
    %c0_138 = arith.constant 0 : index
    %148 = vector.load %arg16[%c2_136, %c2_137, %c0_138] : memref<10x10x32xf32, #tpu.memory_space<vmem>>, vector<8x8x32xf32>
    %149 = vector.shape_cast %148 : vector<8x8x32xf32> to vector<64x32xf32>
    %c2_139 = arith.constant 2 : index
    %c2_140 = arith.constant 2 : index
    %c0_141 = arith.constant 0 : index
    %c0_142 = arith.constant 0 : index
    %150 = vector.load %arg6[%c2_139, %c2_140, %c0_141, %c0_142] : memref<3x3x32x32xf32, #tpu.memory_space<vmem>>, vector<1x1x32x32xf32>
    %151 = vector.shape_cast %150 : vector<1x1x32x32xf32> to vector<32x32xf32>
    %cst_143 = arith.constant dense<0.000000e+00> : vector<64x32xf32>
    %152 = tpu.matmul %149, %151, %cst_143 {dimension_numbers = #tpu.dot_dimension_numbers<[1], [0], [0], [1], [0, 0, 1, 1], [], []>, precision = #tpu.contract_precision<fp32>} : vector<64x32xf32>, vector<32x32xf32>, vector<64x32xf32> -> vector<64x32xf32>
    %153 = arith.addf %147, %152 : vector<64x32xf32>
    %c0_144 = arith.constant 0 : index
    %c0_145 = arith.constant 0 : index
    %154 = vector.load %arg7[%c0_144, %c0_145] : memref<1x32xf32, #tpu.memory_space<vmem>>, vector<1x32xf32>
    %155 = vector.broadcast %154 : vector<1x32xf32> to vector<64x32xf32>
    %156 = arith.addf %153, %155 : vector<64x32xf32>
    %cst_146 = arith.constant 2.000000e-01 : f32
    %157 = vector.broadcast %cst_146 : f32 to vector<64x32xf32>
    %158 = arith.mulf %157, %156 : vector<64x32xf32>
    %159 = arith.maximumf %156, %158 : vector<64x32xf32>
    %cst_147 = arith.constant 0.000000e+00 : f32
    %160 = vector.broadcast %cst_147 : f32 to vector<10x10x32xf32>
    %c0_148 = arith.constant 0 : index
    %c0_149 = arith.constant 0 : index
    %c0_150 = arith.constant 0 : index
    %161 = vector.load %arg17[%c0_148, %c0_149, %c0_150] : memref<10x10x32xf32, #tpu.memory_space<vmem>>, vector<10x10x32xf32>
    tpu.vector_store %arg17[%c0_148, %c0_149, %c0_150], %160 {strides = array<i32>} : memref<10x10x32xf32, #tpu.memory_space<vmem>>, vector<10x10x32xf32>,
    %162 = vector.shape_cast %159 : vector<64x32xf32> to vector<8x8x32xf32>
    %c1_151 = arith.constant 1 : index
    %c1_152 = arith.constant 1 : index
    %c0_153 = arith.constant 0 : index
    %163 = vector.load %arg17[%c1_151, %c1_152, %c0_153] : memref<10x10x32xf32, #tpu.memory_space<vmem>>, vector<8x8x32xf32>
    tpu.vector_store %arg17[%c1_151, %c1_152, %c0_153], %162 {strides = array<i32>} : memref<10x10x32xf32, #tpu.memory_space<vmem>>, vector<8x8x32xf32>,
    %c0_154 = arith.constant 0 : index
    %c0_155 = arith.constant 0 : index
    %c0_156 = arith.constant 0 : index
    %164 = vector.load %arg17[%c0_154, %c0_155, %c0_156] : memref<10x10x32xf32, #tpu.memory_space<vmem>>, vector<10x10x32xf32>
    %165 = vector.shape_cast %164 : vector<10x10x32xf32> to vector<5x2x5x2x32xf32>
    %cst_157 = arith.constant 0.000000e+00 : f32
    %166 = vector.broadcast %cst_157 : f32 to vector<16x32xf32>
    %167 = vector.extract_strided_slice %165 {offsets = [0, 0, 0, 0, 0], sizes = [5, 1, 5, 1, 32], strides = [1, 1, 1, 1, 1]} : vector<5x2x5x2x32xf32> to vector<5x1x5x1x32xf32>
    %168 = vector.shape_cast %167 : vector<5x1x5x1x32xf32> to vector<5x5x32xf32>
    %169 = vector.extract_strided_slice %168 {offsets = [0, 0, 0], sizes = [4, 4, 32], strides = [1, 1, 1]} : vector<5x5x32xf32> to vector<4x4x32xf32>
    %170 = vector.shape_cast %169 : vector<4x4x32xf32> to vector<16x32xf32>
    %c0_158 = arith.constant 0 : index
    %c0_159 = arith.constant 0 : index
    %c0_160 = arith.constant 0 : index
    %c0_161 = arith.constant 0 : index
    %171 = vector.load %arg8[%c0_158, %c0_159, %c0_160, %c0_161] : memref<3x3x32x32xf32, #tpu.memory_space<vmem>>, vector<1x1x32x32xf32>
    %172 = vector.shape_cast %171 : vector<1x1x32x32xf32> to vector<32x32xf32>
    %cst_162 = arith.constant dense<0.000000e+00> : vector<16x32xf32>
    %173 = tpu.matmul %170, %172, %cst_162 {dimension_numbers = #tpu.dot_dimension_numbers<[1], [0], [0], [1], [0, 0, 1, 1], [], []>, precision = #tpu.contract_precision<fp32>} : vector<16x32xf32>, vector<32x32xf32>, vector<16x32xf32> -> vector<16x32xf32>
    %174 = arith.addf %166, %173 : vector<16x32xf32>
    %175 = vector.extract_strided_slice %165 {offsets = [0, 0, 0, 1, 0], sizes = [5, 1, 5, 1, 32], strides = [1, 1, 1, 1, 1]} : vector<5x2x5x2x32xf32> to vector<5x1x5x1x32xf32>
    %176 = vector.shape_cast %175 : vector<5x1x5x1x32xf32> to vector<5x5x32xf32>
    %177 = vector.extract_strided_slice %176 {offsets = [0, 0, 0], sizes = [4, 4, 32], strides = [1, 1, 1]} : vector<5x5x32xf32> to vector<4x4x32xf32>
    %178 = vector.shape_cast %177 : vector<4x4x32xf32> to vector<16x32xf32>
    %c0_163 = arith.constant 0 : index
    %c1_164 = arith.constant 1 : index
    %c0_165 = arith.constant 0 : index
    %c0_166 = arith.constant 0 : index
    %179 = vector.load %arg8[%c0_163, %c1_164, %c0_165, %c0_166] : memref<3x3x32x32xf32, #tpu.memory_space<vmem>>, vector<1x1x32x32xf32>
    %180 = vector.shape_cast %179 : vector<1x1x32x32xf32> to vector<32x32xf32>
    %cst_167 = arith.constant dense<0.000000e+00> : vector<16x32xf32>
    %181 = tpu.matmul %178, %180, %cst_167 {dimension_numbers = #tpu.dot_dimension_numbers<[1], [0], [0], [1], [0, 0, 1, 1], [], []>, precision = #tpu.contract_precision<fp32>} : vector<16x32xf32>, vector<32x32xf32>, vector<16x32xf32> -> vector<16x32xf32>
    %182 = arith.addf %174, %181 : vector<16x32xf32>
    %183 = vector.extract_strided_slice %165 {offsets = [0, 0, 0, 0, 0], sizes = [5, 1, 5, 1, 32], strides = [1, 1, 1, 1, 1]} : vector<5x2x5x2x32xf32> to vector<5x1x5x1x32xf32>
    %184 = vector.shape_cast %183 : vector<5x1x5x1x32xf32> to vector<5x5x32xf32>
    %185 = vector.extract_strided_slice %184 {offsets = [0, 1, 0], sizes = [4, 4, 32], strides = [1, 1, 1]} : vector<5x5x32xf32> to vector<4x4x32xf32>
    %186 = vector.shape_cast %185 : vector<4x4x32xf32> to vector<16x32xf32>
    %c0_168 = arith.constant 0 : index
    %c2_169 = arith.constant 2 : index
    %c0_170 = arith.constant 0 : index
    %c0_171 = arith.constant 0 : index
    %187 = vector.load %arg8[%c0_168, %c2_169, %c0_170, %c0_171] : memref<3x3x32x32xf32, #tpu.memory_space<vmem>>, vector<1x1x32x32xf32>
    %188 = vector.shape_cast %187 : vector<1x1x32x32xf32> to vector<32x32xf32>
    %cst_172 = arith.constant dense<0.000000e+00> : vector<16x32xf32>
    %189 = tpu.matmul %186, %188, %cst_172 {dimension_numbers = #tpu.dot_dimension_numbers<[1], [0], [0], [1], [0, 0, 1, 1], [], []>, precision = #tpu.contract_precision<fp32>} : vector<16x32xf32>, vector<32x32xf32>, vector<16x32xf32> -> vector<16x32xf32>
    %190 = arith.addf %182, %189 : vector<16x32xf32>
    %191 = vector.extract_strided_slice %165 {offsets = [0, 1, 0, 0, 0], sizes = [5, 1, 5, 1, 32], strides = [1, 1, 1, 1, 1]} : vector<5x2x5x2x32xf32> to vector<5x1x5x1x32xf32>
    %192 = vector.shape_cast %191 : vector<5x1x5x1x32xf32> to vector<5x5x32xf32>
    %193 = vector.extract_strided_slice %192 {offsets = [0, 0, 0], sizes = [4, 4, 32], strides = [1, 1, 1]} : vector<5x5x32xf32> to vector<4x4x32xf32>
    %194 = vector.shape_cast %193 : vector<4x4x32xf32> to vector<16x32xf32>
    %c1_173 = arith.constant 1 : index
    %c0_174 = arith.constant 0 : index
    %c0_175 = arith.constant 0 : index
    %c0_176 = arith.constant 0 : index
    %195 = vector.load %arg8[%c1_173, %c0_174, %c0_175, %c0_176] : memref<3x3x32x32xf32, #tpu.memory_space<vmem>>, vector<1x1x32x32xf32>
    %196 = vector.shape_cast %195 : vector<1x1x32x32xf32> to vector<32x32xf32>
    %cst_177 = arith.constant dense<0.000000e+00> : vector<16x32xf32>
    %197 = tpu.matmul %194, %196, %cst_177 {dimension_numbers = #tpu.dot_dimension_numbers<[1], [0], [0], [1], [0, 0, 1, 1], [], []>, precision = #tpu.contract_precision<fp32>} : vector<16x32xf32>, vector<32x32xf32>, vector<16x32xf32> -> vector<16x32xf32>
    %198 = arith.addf %190, %197 : vector<16x32xf32>
    %199 = vector.extract_strided_slice %165 {offsets = [0, 1, 0, 1, 0], sizes = [5, 1, 5, 1, 32], strides = [1, 1, 1, 1, 1]} : vector<5x2x5x2x32xf32> to vector<5x1x5x1x32xf32>
    %200 = vector.shape_cast %199 : vector<5x1x5x1x32xf32> to vector<5x5x32xf32>
    %201 = vector.extract_strided_slice %200 {offsets = [0, 0, 0], sizes = [4, 4, 32], strides = [1, 1, 1]} : vector<5x5x32xf32> to vector<4x4x32xf32>
    %202 = vector.shape_cast %201 : vector<4x4x32xf32> to vector<16x32xf32>
    %c1_178 = arith.constant 1 : index
    %c1_179 = arith.constant 1 : index
    %c0_180 = arith.constant 0 : index
    %c0_181 = arith.constant 0 : index
    %203 = vector.load %arg8[%c1_178, %c1_179, %c0_180, %c0_181] : memref<3x3x32x32xf32, #tpu.memory_space<vmem>>, vector<1x1x32x32xf32>
    %204 = vector.shape_cast %203 : vector<1x1x32x32xf32> to vector<32x32xf32>
    %cst_182 = arith.constant dense<0.000000e+00> : vector<16x32xf32>
    %205 = tpu.matmul %202, %204, %cst_182 {dimension_numbers = #tpu.dot_dimension_numbers<[1], [0], [0], [1], [0, 0, 1, 1], [], []>, precision = #tpu.contract_precision<fp32>} : vector<16x32xf32>, vector<32x32xf32>, vector<16x32xf32> -> vector<16x32xf32>
    %206 = arith.addf %198, %205 : vector<16x32xf32>
    %207 = vector.extract_strided_slice %165 {offsets = [0, 1, 0, 0, 0], sizes = [5, 1, 5, 1, 32], strides = [1, 1, 1, 1, 1]} : vector<5x2x5x2x32xf32> to vector<5x1x5x1x32xf32>
    %208 = vector.shape_cast %207 : vector<5x1x5x1x32xf32> to vector<5x5x32xf32>
    %209 = vector.extract_strided_slice %208 {offsets = [0, 1, 0], sizes = [4, 4, 32], strides = [1, 1, 1]} : vector<5x5x32xf32> to vector<4x4x32xf32>
    %210 = vector.shape_cast %209 : vector<4x4x32xf32> to vector<16x32xf32>
    %c1_183 = arith.constant 1 : index
    %c2_184 = arith.constant 2 : index
    %c0_185 = arith.constant 0 : index
    %c0_186 = arith.constant 0 : index
    %211 = vector.load %arg8[%c1_183, %c2_184, %c0_185, %c0_186] : memref<3x3x32x32xf32, #tpu.memory_space<vmem>>, vector<1x1x32x32xf32>
    %212 = vector.shape_cast %211 : vector<1x1x32x32xf32> to vector<32x32xf32>
    %cst_187 = arith.constant dense<0.000000e+00> : vector<16x32xf32>
    %213 = tpu.matmul %210, %212, %cst_187 {dimension_numbers = #tpu.dot_dimension_numbers<[1], [0], [0], [1], [0, 0, 1, 1], [], []>, precision = #tpu.contract_precision<fp32>} : vector<16x32xf32>, vector<32x32xf32>, vector<16x32xf32> -> vector<16x32xf32>
    %214 = arith.addf %206, %213 : vector<16x32xf32>
    %215 = vector.extract_strided_slice %165 {offsets = [0, 0, 0, 0, 0], sizes = [5, 1, 5, 1, 32], strides = [1, 1, 1, 1, 1]} : vector<5x2x5x2x32xf32> to vector<5x1x5x1x32xf32>
    %216 = vector.shape_cast %215 : vector<5x1x5x1x32xf32> to vector<5x5x32xf32>
    %217 = vector.extract_strided_slice %216 {offsets = [1, 0, 0], sizes = [4, 4, 32], strides = [1, 1, 1]} : vector<5x5x32xf32> to vector<4x4x32xf32>
    %218 = vector.shape_cast %217 : vector<4x4x32xf32> to vector<16x32xf32>
    %c2_188 = arith.constant 2 : index
    %c0_189 = arith.constant 0 : index
    %c0_190 = arith.constant 0 : index
    %c0_191 = arith.constant 0 : index
    %219 = vector.load %arg8[%c2_188, %c0_189, %c0_190, %c0_191] : memref<3x3x32x32xf32, #tpu.memory_space<vmem>>, vector<1x1x32x32xf32>
    %220 = vector.shape_cast %219 : vector<1x1x32x32xf32> to vector<32x32xf32>
    %cst_192 = arith.constant dense<0.000000e+00> : vector<16x32xf32>
    %221 = tpu.matmul %218, %220, %cst_192 {dimension_numbers = #tpu.dot_dimension_numbers<[1], [0], [0], [1], [0, 0, 1, 1], [], []>, precision = #tpu.contract_precision<fp32>} : vector<16x32xf32>, vector<32x32xf32>, vector<16x32xf32> -> vector<16x32xf32>
    %222 = arith.addf %214, %221 : vector<16x32xf32>
    %223 = vector.extract_strided_slice %165 {offsets = [0, 0, 0, 1, 0], sizes = [5, 1, 5, 1, 32], strides = [1, 1, 1, 1, 1]} : vector<5x2x5x2x32xf32> to vector<5x1x5x1x32xf32>
    %224 = vector.shape_cast %223 : vector<5x1x5x1x32xf32> to vector<5x5x32xf32>
    %225 = vector.extract_strided_slice %224 {offsets = [1, 0, 0], sizes = [4, 4, 32], strides = [1, 1, 1]} : vector<5x5x32xf32> to vector<4x4x32xf32>
    %226 = vector.shape_cast %225 : vector<4x4x32xf32> to vector<16x32xf32>
    %c2_193 = arith.constant 2 : index
    %c1_194 = arith.constant 1 : index
    %c0_195 = arith.constant 0 : index
    %c0_196 = arith.constant 0 : index
    %227 = vector.load %arg8[%c2_193, %c1_194, %c0_195, %c0_196] : memref<3x3x32x32xf32, #tpu.memory_space<vmem>>, vector<1x1x32x32xf32>
    %228 = vector.shape_cast %227 : vector<1x1x32x32xf32> to vector<32x32xf32>
    %cst_197 = arith.constant dense<0.000000e+00> : vector<16x32xf32>
    %229 = tpu.matmul %226, %228, %cst_197 {dimension_numbers = #tpu.dot_dimension_numbers<[1], [0], [0], [1], [0, 0, 1, 1], [], []>, precision = #tpu.contract_precision<fp32>} : vector<16x32xf32>, vector<32x32xf32>, vector<16x32xf32> -> vector<16x32xf32>
    %230 = arith.addf %222, %229 : vector<16x32xf32>
    %231 = vector.extract_strided_slice %165 {offsets = [0, 0, 0, 0, 0], sizes = [5, 1, 5, 1, 32], strides = [1, 1, 1, 1, 1]} : vector<5x2x5x2x32xf32> to vector<5x1x5x1x32xf32>
    %232 = vector.shape_cast %231 : vector<5x1x5x1x32xf32> to vector<5x5x32xf32>
    %233 = vector.extract_strided_slice %232 {offsets = [1, 1, 0], sizes = [4, 4, 32], strides = [1, 1, 1]} : vector<5x5x32xf32> to vector<4x4x32xf32>
    %234 = vector.shape_cast %233 : vector<4x4x32xf32> to vector<16x32xf32>
    %c2_198 = arith.constant 2 : index
    %c2_199 = arith.constant 2 : index
    %c0_200 = arith.constant 0 : index
    %c0_201 = arith.constant 0 : index
    %235 = vector.load %arg8[%c2_198, %c2_199, %c0_200, %c0_201] : memref<3x3x32x32xf32, #tpu.memory_space<vmem>>, vector<1x1x32x32xf32>
    %236 = vector.shape_cast %235 : vector<1x1x32x32xf32> to vector<32x32xf32>
    %cst_202 = arith.constant dense<0.000000e+00> : vector<16x32xf32>
    %237 = tpu.matmul %234, %236, %cst_202 {dimension_numbers = #tpu.dot_dimension_numbers<[1], [0], [0], [1], [0, 0, 1, 1], [], []>, precision = #tpu.contract_precision<fp32>} : vector<16x32xf32>, vector<32x32xf32>, vector<16x32xf32> -> vector<16x32xf32>
    %238 = arith.addf %230, %237 : vector<16x32xf32>
    %c0_203 = arith.constant 0 : index
    %c0_204 = arith.constant 0 : index
    %239 = vector.load %arg9[%c0_203, %c0_204] : memref<1x32xf32, #tpu.memory_space<vmem>>, vector<1x32xf32>
    %240 = vector.broadcast %239 : vector<1x32xf32> to vector<16x32xf32>
    %241 = arith.addf %238, %240 : vector<16x32xf32>
    %cst_205 = arith.constant 2.000000e-01 : f32
    %242 = vector.broadcast %cst_205 : f32 to vector<16x32xf32>
    %243 = arith.mulf %242, %241 : vector<16x32xf32>
    %244 = arith.maximumf %241, %243 : vector<16x32xf32>
    %cst_206 = arith.constant dense<0.000000e+00> : vector<32xf32>
    %245 = vector.multi_reduction <add>, %244, %cst_206 [0] : vector<16x32xf32> to vector<32xf32>
    %246 = vector.shape_cast %245 : vector<32xf32> to vector<1x32xf32>
    %cst_207 = arith.constant 1.600000e+01 : f32
    %247 = vector.broadcast %cst_207 : f32 to vector<1x32xf32>
    %248 = arith.divf %246, %247 : vector<1x32xf32>
    %c0_208 = arith.constant 0 : index
    %c0_209 = arith.constant 0 : index
    %249 = vector.load %arg10[%c0_208, %c0_209] : memref<32x4xf32, #tpu.memory_space<vmem>>, vector<32x4xf32>
    %cst_210 = arith.constant dense<0.000000e+00> : vector<1x4xf32>
    %250 = tpu.matmul %248, %249, %cst_210 {dimension_numbers = #tpu.dot_dimension_numbers<[1], [0], [0], [1], [0, 0, 1, 1], [], []>, precision = #tpu.contract_precision<fp32>} : vector<1x32xf32>, vector<32x4xf32>, vector<1x4xf32> -> vector<1x4xf32>
    %c0_211 = arith.constant 0 : index
    %c0_212 = arith.constant 0 : index
    %251 = vector.load %arg11[%c0_211, %c0_212] : memref<1x4xf32, #tpu.memory_space<vmem>>, vector<1x4xf32>
    %252 = arith.addf %250, %251 : vector<1x4xf32>
    %cst_213 = arith.constant 0.000000e+00 : f32
    %253 = vector.broadcast %cst_213 : f32 to vector<1x4xf32>
    %254 = arith.maximumf %252, %253 : vector<1x4xf32>
    %c0_214 = arith.constant 0 : index
    %c0_215 = arith.constant 0 : index
    %255 = vector.load %arg12[%c0_214, %c0_215] : memref<4x32xf32, #tpu.memory_space<vmem>>, vector<4x32xf32>
    %cst_216 = arith.constant dense<0.000000e+00> : vector<1x32xf32>
    %256 = tpu.matmul %254, %255, %cst_216 {dimension_numbers = #tpu.dot_dimension_numbers<[1], [0], [0], [1], [0, 0, 1, 1], [], []>, precision = #tpu.contract_precision<fp32>} : vector<1x4xf32>, vector<4x32xf32>, vector<1x32xf32> -> vector<1x32xf32>
    %c0_217 = arith.constant 0 : index
    %c0_218 = arith.constant 0 : index
    %257 = vector.load %arg13[%c0_217, %c0_218] : memref<1x32xf32, #tpu.memory_space<vmem>>, vector<1x32xf32>
    %258 = arith.addf %256, %257 : vector<1x32xf32>
    %259 = arith.negf %258 : vector<1x32xf32>
    %260 = math.exp %259 : vector<1x32xf32>
    %cst_219 = arith.constant 1.000000e+00 : f32
    %261 = vector.broadcast %cst_219 : f32 to vector<1x32xf32>
    %262 = arith.addf %261, %260 : vector<1x32xf32>
    %263 = arith.divf %261, %262 : vector<1x32xf32>
    %264 = vector.broadcast %263 : vector<1x32xf32> to vector<16x32xf32>
    %265 = arith.mulf %244, %264 : vector<16x32xf32>
    %c0_220 = arith.constant 0 : index
    %c0_221 = arith.constant 0 : index
    %c0_222 = arith.constant 0 : index
    %266 = vector.load %arg14[%c0_220, %c0_221, %c0_222] : memref<1x16x32xf32, #tpu.memory_space<vmem>>, vector<1x16x32xf32>
    %267 = vector.shape_cast %266 : vector<1x16x32xf32> to vector<16x32xf32>
    %268 = vector.shape_cast %265 : vector<16x32xf32> to vector<1x16x32xf32>
    tpu.vector_store %arg14[%c0_220, %c0_221, %c0_222], %268 {strides = array<i32>} : memref<1x16x32xf32, #tpu.memory_space<vmem>>, vector<1x16x32xf32>,
    return
  }
  func.func @transform_0(%arg0: i32) -> (i32, i32, i32) {
    %c0_i32 = arith.constant 0 : i32
    %c0_i32_0 = arith.constant 0 : i32
    %c0_i32_1 = arith.constant 0 : i32
    return %arg0, %c0_i32, %c0_i32_0 : i32, i32, i32
  }
  func.func @transform_1(%arg0: i32) -> (i32, i32) {
    %c0_i32 = arith.constant 0 : i32
    %c0_i32_0 = arith.constant 0 : i32
    %c0_i32_1 = arith.constant 0 : i32
    return %c0_i32, %c0_i32_0 : i32, i32
  }
  func.func @transform_2(%arg0: i32) -> (i32, i32) {
    %c0_i32 = arith.constant 0 : i32
    %c0_i32_0 = arith.constant 0 : i32
    %c0_i32_1 = arith.constant 0 : i32
    return %c0_i32, %c0_i32_0 : i32, i32
  }
  func.func @transform_3(%arg0: i32) -> (i32, i32, i32, i32) {
    %c0_i32 = arith.constant 0 : i32
    %c0_i32_0 = arith.constant 0 : i32
    %c0_i32_1 = arith.constant 0 : i32
    %c0_i32_2 = arith.constant 0 : i32
    %c0_i32_3 = arith.constant 0 : i32
    return %c0_i32, %c0_i32_0, %c0_i32_1, %c0_i32_2 : i32, i32, i32, i32
  }
  func.func @transform_4(%arg0: i32) -> (i32, i32) {
    %c0_i32 = arith.constant 0 : i32
    %c0_i32_0 = arith.constant 0 : i32
    %c0_i32_1 = arith.constant 0 : i32
    return %c0_i32, %c0_i32_0 : i32, i32
  }
  func.func @transform_5(%arg0: i32) -> (i32, i32, i32, i32) {
    %c0_i32 = arith.constant 0 : i32
    %c0_i32_0 = arith.constant 0 : i32
    %c0_i32_1 = arith.constant 0 : i32
    %c0_i32_2 = arith.constant 0 : i32
    %c0_i32_3 = arith.constant 0 : i32
    return %c0_i32, %c0_i32_0, %c0_i32_1, %c0_i32_2 : i32, i32, i32, i32
  }
  func.func @transform_6(%arg0: i32) -> (i32, i32) {
    %c0_i32 = arith.constant 0 : i32
    %c0_i32_0 = arith.constant 0 : i32
    %c0_i32_1 = arith.constant 0 : i32
    return %c0_i32, %c0_i32_0 : i32, i32
  }
  func.func @transform_7(%arg0: i32) -> (i32, i32, i32, i32) {
    %c0_i32 = arith.constant 0 : i32
    %c0_i32_0 = arith.constant 0 : i32
    %c0_i32_1 = arith.constant 0 : i32
    %c0_i32_2 = arith.constant 0 : i32
    %c0_i32_3 = arith.constant 0 : i32
    return %c0_i32, %c0_i32_0, %c0_i32_1, %c0_i32_2 : i32, i32, i32, i32
  }
  func.func @transform_8(%arg0: i32) -> (i32, i32) {
    %c0_i32 = arith.constant 0 : i32
    %c0_i32_0 = arith.constant 0 : i32
    %c0_i32_1 = arith.constant 0 : i32
    return %c0_i32, %c0_i32_0 : i32, i32
  }
  func.func @transform_9(%arg0: i32) -> (i32, i32) {
    %c0_i32 = arith.constant 0 : i32
    %c0_i32_0 = arith.constant 0 : i32
    %c0_i32_1 = arith.constant 0 : i32
    return %c0_i32, %c0_i32_0 : i32, i32
  }
  func.func @transform_10(%arg0: i32) -> (i32, i32) {
    %c0_i32 = arith.constant 0 : i32
    %c0_i32_0 = arith.constant 0 : i32
    %c0_i32_1 = arith.constant 0 : i32
    return %c0_i32, %c0_i32_0 : i32, i32
  }
  func.func @transform_11(%arg0: i32) -> (i32, i32) {
    %c0_i32 = arith.constant 0 : i32
    %c0_i32_0 = arith.constant 0 : i32
    %c0_i32_1 = arith.constant 0 : i32
    return %c0_i32, %c0_i32_0 : i32, i32
  }
  func.func @transform_12(%arg0: i32) -> (i32, i32) {
    %c0_i32 = arith.constant 0 : i32
    %c0_i32_0 = arith.constant 0 : i32
    %c0_i32_1 = arith.constant 0 : i32
    return %c0_i32, %c0_i32_0 : i32, i32
  }
  func.func @transform_13(%arg0: i32) -> (i32, i32, i32) {
    %c0_i32 = arith.constant 0 : i32
    %c0_i32_0 = arith.constant 0 : i32
    %c0_i32_1 = arith.constant 0 : i32
    return %arg0, %c0_i32, %c0_i32_0 : i32, i32, i32
  }
}

</mosaic_0001>

<bundles_post_ra>
// kernel: swin_encoder.1
= control target key start
LH: loop header
LB: loop body
LE: loop exit
PB: predicated region body
PF: predicated region fallthrough
CT: control target
= control target key end

     0   :  { %s40402_s0 = inlined_call_operand.vmem [shape: f32[2,256,9], index: 0, kind: input, shape index: {}]   ;;  %s40403_s1 = inlined_call_operand.vmem [shape: f32[9,16], index: 1, kind: input, shape index: {}]   ;;  %s40404_s2 = inlined_call_operand.vmem [shape: f32[1,16], index: 2, kind: input, shape index: {}]   ;;  %s40405_s3 = inlined_call_operand.vmem [shape: f32[3,3,16,32], index: 3, kind: input, shape index: {}]   ;;  %s40406_s4 = inlined_call_operand.vmem [shape: f32[1,32], index: 4, kind: input, shape index: {}]   ;;  %s40407_s5 = inlined_call_operand.vmem [shape: f32[3,3,32,32], index: 5, kind: input, shape index: {}]   ;;  %s40408_s6 = inlined_call_operand.vmem [shape: f32[1,32], index: 6, kind: input, shape index: {}]   ;;  %s40409_s7 = inlined_call_operand.vmem [shape: f32[3,3,32,32], index: 7, kind: input, shape index: {}]   ;;  %s40410_s8 = inlined_call_operand.vmem [shape: f32[1,32], index: 8, kind: input, shape index: {}]   ;;  %s40411_s9 = inlined_call_operand.vmem [shape: f32[32,4], index: 9, kind: input, shape index: {}]   ;;  %s40412_s10 = inlined_call_operand.vmem [shape: f32[1,4], index: 10, kind: input, shape index: {}]   ;;  %s40413_s11 = inlined_call_operand.vmem [shape: f32[4,32], index: 11, kind: input, shape index: {}]   ;;  %s40414_s12 = inlined_call_operand.vmem [shape: f32[1,32], index: 12, kind: input, shape index: {}]   ;;  %s40415_s13 = inlined_call_operand.hbm [shape: f32[2,16,32], index: 13, kind: output, shape index: {}]  }
   0x1   :  { %40825 = sst [smem:[#allocation156_spill]] %s40402_s0 }
   0x2   :  { %40826 = sst [smem:[#allocation157_spill]] %s40403_s1 }
   0x3   :  { %18 = vsyncpa [#allocation6], 0 }
   0x4   :  { %20 = vsyncpa [#allocation6 + $0x1], 0  ;;  %s33438_s25 = smov 0   ;;  %s33440_s26 = smov 0  }
   0x5   :  { %s33442_s27 = smov 0   ;;  %s33444_s28 = smov 0  }
   0x6 LB: > { %s33459_s29 = sadd.s32 4294967295, %s33359_s28   ;;  %s26066_s30 = sadd.s32 4294967294, %s33359_s28   ;;  %s33359_s28 = sphi %s33444_s28, %s41528_s28   ;;  %s33355_s27 = sphi %s33442_s27, %s41527_s27   ;;  %s33351_s26 = sphi %s33440_s26, %s41526_s26   ;;  %s33347_s25 = sphi %s33438_s25, %s41525_s25  }
   0x7   : > { %s33463_s14 = sadd.s32 1, %s33359_s28   ;;  %s311_s15 = sadd.s32 1, %s33355_s27 }
   0x8   : > { %s308_s16 = ssub.s32 %s33359_s28, %s33463_s14  ;;  %p321_p0 = scmp.ne.s32.totalorder %s33355_s27, %s33351_s26 }
   0x9   : > { %p309_p1 = scmp.eq.s32.totalorder %s308_s16, 0  ;;  %p322_p2 = scmp.eq.s32.totalorder %s33459_s29, 1 }
   0xa   : > { %p327_p3 = scmp.ne.s32.totalorder %s33351_s26, %s33347_s25  ;;  %p328_p4 = scmp.eq.s32.totalorder %s26066_s30, 1 }
   0xb   : > { %s33474_s17 = scalar_select %p309_p1, %s33355_s27, %s311_s15  }
   0xc   : > { %p33476_p5 = por %p322_p2, %p321_p0  ;;  %p33480_p6 = por %p328_p4, %p327_p3 }
   0xd   : > { %p26069_p7 = scmp.ge.s32.totalorder %s33359_s28, 1  ;;  %p390_p8 = scmp.lt.s32.totalorder %s33359_s28, 3 }
   0xf   : > { %p391_p9 = pnand %p26069_p7, %p390_p8 }
  0x11   : > { %394 = sbr.rel (%p391_p9) target bundleno = 4087 (0xff7), region = 72 }
  0x18   : > { %s40829_s1 = sld [smem:[#allocation157_spill]]  ;;  %vm577_vm0 = vcmask 1040384   ;;  %p434_p10 = scmp.lt.s32.totalorder %s33459_s29, 1  ;;  %vm480_vm1 = vcmask 72704   ;;  %vm2437_vm2 = vcmask 130048   ;;  %vm2440_vm3 = vcmask 123904  }
  0x19   : > { %s40830_s0 = sld [smem:[#allocation156_spill]]  ;;  %vm3586_vm4 = vcmask 1041409   ;;  %vm3588_vm5 = vcmask 1042434   ;;  %vm3590_vm6 = vcmask 1043459   ;;  %vm3592_vm7 = vcmask 1044484   ;;  %s431_s23 = sand.u32 1, %s33351_s26  }
  0x1a   : > { %s435_s24 = scalar_select %p434_p10, %s33459_s29, 1  ;;  %vm3594_vm8 = vcmask 1045509   ;;  %vm3596_vm9 = vcmask 1046534   ;;  %vm3598_vm10 = vcmask 1047559   ;;  %vm11900_vm11 = vcmask 261120  }
  0x1b   : > { %vm11902_vm12 = vcmask 254976   ;;  %vm33364_vm13 = vmmov 0   ;;  %vm25526_vm14 = vcmask 1043456   ;;  %vm25522_vm15 = vcmask 31744  }
  0x1c   : > { %s26189_s30 = sshll.u32 %s435_s24, 8  ;;  %s26070_s24 = sshll.u32 %s431_s23, 4 }
  0x1d   : > { %s433_s15 = scalar_lea.vmem [#allocation5], %s26070_s24 }
  0x1e   : > { %v471_v0 = vld [vmem:[%s40829_s1] sm:$0xff]  ;;  %v472_v1 = vld [vmem:[%s40829_s1 + $0x8] sm:$0x1]  ;;  %s26004_s16 = sshll.u32 %s433_s15, 4  ;;  %s40355_s16 = int_to_ptr.vmem [resolvable:$true] %s26004_s16 }
  0x1f   : > { %v579_v2 = vsel %vm577_vm0, %v472_v1, 0  ;;  %v582_v3 = vand.u32 4294901760, %v471_v0  ;;  %s33503_s20 = scalar_lea.vmem %s40830_s0, %s26189_s30  ;;  %s26190_s30 = sshll.u32 %s33459_s29, 8 }
  0x20   : > { %v585_v4 = vand.u32 4294901760, %v579_v2  ;;  %v439_v9 = vld [vmem:[%s33503_s20] sm:$0xff]  ;;  %v440_v11 = vld [vmem:[%s33503_s20 + $0x8] sm:$0xff]  ;;  %v441_v12 = vld [vmem:[%s33503_s20 + $0x10] sm:$0xff]  ;;  %s40353_s22 = scalar_lea.hbm %s40415_s13, %s26190_s30  ;;  %s40361_s29 = scalar_lea.sflag [#allocation6], %s431_s23 }
  0x21   : > { %v33494_v5 = vsub.f32 %v471_v0, %v582_v3  ;;  %v482_v14 = vsel %vm480_vm1, %v439_v9, 0  ;;  %v485_v16 = vsel %vm480_vm1, %v440_v11, 0  ;;  %v488_v17 = vsel %vm480_vm1, %v441_v12, 0  ;;  %v442_v18 = vld [vmem:[%s33503_s20 + $0x18] sm:$0xff]  ;;  %v443_v19 = vld [vmem:[%s33503_s20 + $0x20] sm:$0xff]  ;;  %v444_v20 = vld [vmem:[%s33503_s20 + $0x28] sm:$0xff] }
  0x22   : > { %v33496_v6 = vpack.c.bf16 %v585_v4, %v582_v3  ;;  %v33498_v7 = vsub.f32 %v579_v2, %v585_v4  ;;  %v33527_v21 = vand.u32 4294901760, %v482_v14  ;;  %v33532_v23 = vand.u32 4294901760, %v485_v16  ;;  %v445_v25 = vld [vmem:[%s33503_s20 + $0x30] sm:$0xff]  ;;  %v446_v38 = vld [vmem:[%s33503_s20 + $0x38] sm:$0xff]  ;;  %v447_v55 = vld [vmem:[%s33503_s20 + $0x40] sm:$0xff]  ;;  %s33297_s24 = scalar_lea.vmem %s40355_s16, 256 }
  0x23   : > { %v40432_v8 = vand.u32 4294901760, %v33494_v5  ;;  %v33534_v24 = vand.u32 4294901760, %v488_v17  ;;  %v491_v27 = vsel %vm480_vm1, %v442_v18, 0  ;;  %v494_v28 = vsel %vm480_vm1, %v443_v19, 0  ;;  %v448_v56 = vld [vmem:[%s33503_s20 + $0x48] sm:$0xff]  ;;  %v449_v57 = vld [vmem:[%s33503_s20 + $0x50] sm:$0xff]  ;;  %p33298_p11 = scmp.ne.s32.totalorder %s40355_s16, %s33297_s24 }
  0x24   : > { %30896 = vmatprep.subr.bf16.mxu0 %v33496_v6  ;;  %v40431_v10 = vand.u32 4294901760, %v33498_v7  ;;  %v33513_v13 = vpack.c.bf16 %v33498_v7, %v33494_v5  ;;  %32035 = vmatprep.subr.bf16.mxu1 %v33496_v6  ;;  %v497_v29 = vsel %vm480_vm1, %v444_v20, 0  ;;  %v33541_v30 = vsub.f32 %v482_v14, %v33527_v21  ;;  %v450_v11 = vld [vmem:[%s33503_s20 + $0x58] sm:$0xff]  ;;  %v451_v12 = vld [vmem:[%s33503_s20 + $0x60] sm:$0xff]  ;;  %v452_v14 = vld [vmem:[%s33503_s20 + $0x68] sm:$0xff]  ;;  %s33365_s30 = smov [#allocation5]  }
  0x25   : > { %30898 = vmatpush3.bf16.msra.mxu0 %v33496_v6  ;;  %v972_v15 = vsub.f32 %v33494_v5, %v40432_v8  ;;  %32036 = vmatpush3.bf16.msra.mxu1 %v33496_v6  ;;  %v33544_v32 = vsub.f32 %v485_v16, %v33532_v23  ;;  %v33547_v33 = vsub.f32 %v488_v17, %v33534_v24  ;;  %v33549_v34 = vand.u32 4294901760, %v491_v27  ;;  %v465_v8 = vld [vmem:[%s33503_s20 + $0xd0] sm:$0xff]  ;;  %p33299_p12 = pnand %p33298_p11, %p33476_p5 }
  0x26   : > { %v979_v22 = vsub.f32 %v33498_v7, %v40431_v10  ;;  %v33551_v35 = vand.u32 4294901760, %v494_v28  ;;  %v33553_v36 = vand.u32 4294901760, %v497_v29  ;;  %v500_v37 = vsel %vm480_vm1, %v445_v25, 0  ;;  %v453_v25 = vld [vmem:[%s33503_s20 + $0x70] sm:$0xff] }
  0x27   : > { %v973_v26 = vand.u32 4294901760, %v972_v15  ;;  %v40429_v39 = vand.u32 4294901760, %v33541_v30  ;;  %v40428_v41 = vand.u32 4294901760, %v33544_v32  ;;  %v40426_v42 = vand.u32 4294901760, %v33547_v33  ;;  %p33300_p13 = pneg %p33299_p12 }
  0x28   : > { %v980_v31 = vand.u32 4294901760, %v979_v22  ;;  %v33561_v43 = vsub.f32 %v491_v27, %v33549_v34  ;;  %v33564_v44 = vsub.f32 %v494_v28, %v33551_v35  ;;  %v33567_v45 = vsub.f32 %v497_v29, %v33553_v36 }
  0x29   : > { %v33569_v46 = vand.u32 4294901760, %v500_v37  ;;  %v651_v47 = vsub.f32 %v33541_v30, %v40429_v39  ;;  %v661_v48 = vsub.f32 %v33544_v32, %v40428_v41  ;;  %v671_v49 = vsub.f32 %v33547_v33, %v40426_v42 }
  0x2a   : > { %v30899_v40 = vpack.c.bf16 %v980_v31, %v973_v26  ;;  %v503_v50 = vsel %vm480_vm1, %v446_v38, 0  ;;  %v40425_v51 = vand.u32 4294901760, %v33561_v43  ;;  %v40424_v52 = vand.u32 4294901760, %v33564_v44 }
  0x2b   : > { %v40422_v53 = vand.u32 4294901760, %v33567_v45  ;;  %v33585_v54 = vsub.f32 %v500_v37, %v33569_v46  ;;  %v652_v58 = vand.u32 4294901760, %v651_v47  ;;  %v662_v59 = vand.u32 4294901760, %v661_v48 }
  0x2c   : > { %30900 = vmatprep.subr.bf16.mxu0 %v30899_v40  ;;  %v672_v60 = vand.u32 4294901760, %v671_v49  ;;  %v33590_v61 = vand.u32 4294901760, %v503_v50  ;;  %v681_v62 = vsub.f32 %v33561_v43, %v40425_v51  ;;  %v691_v63 = vsub.f32 %v33564_v44, %v40424_v52  ;;  %v461_v51 = vld [vmem:[%s33503_s20 + $0xb0] sm:$0xff] }
  0x2d   : > { %v701_v0 = vsub.f32 %v33567_v45, %v40422_v53  ;;  %v40420_v1 = vand.u32 4294901760, %v33585_v54  ;;  %27953 = vmatprep.mubr.f32.mxu0 %v652_v58  ;;  %v506_v3 = vsel %vm480_vm1, %v447_v55, 0  ;;  %v509_v4 = vsel %vm480_vm1, %v448_v56, 0  ;;  %v454_v55 = vld [vmem:[%s33503_s20 + $0x78] sm:$0xff] }
  0x2e   : > { %v33603_v2 = vsub.f32 %v503_v50, %v33590_v61  ;;  %v512_v9 = vsel %vm480_vm1, %v449_v57, 0  ;;  %27954 = vmatmul.mubr.f32.vlgmr.msra.gmra.mrb[0].mxu0 %v662_v59  ;;  %v682_v15 = vand.u32 4294901760, %v681_v62  ;;  %v692_v16 = vand.u32 4294901760, %v691_v63 }
  0x2f   : > { %v711_v17 = vsub.f32 %v33585_v54, %v40420_v1  ;;  %30902 = vmatpush3.bf16.msra.mxu0 %v30899_v40  ;;  %27956 = vmatprep.mubr.f32.mxu0 %v672_v60  ;;  %v33615_v19 = vand.u32 4294901760, %v506_v3  ;;  %v33617_v20 = vand.u32 4294901760, %v509_v4  ;;  %v33619_v22 = vand.u32 4294901760, %v512_v9 }
  0x30   : > { %v40419_v18 = vand.u32 4294901760, %v33603_v2  ;;  %v702_v26 = vand.u32 4294901760, %v701_v0  ;;  %v515_v27 = vsel %vm480_vm1, %v450_v11, 0  ;;  %v518_v28 = vsel %vm480_vm1, %v451_v12, 0  ;;  %30904 = vmatprep.subr.bf16.mxu0 %v33513_v13 }
  0x31   : > { %v521_v29 = vsel %vm480_vm1, %v452_v14, 0  ;;  %v33630_v37 = vsub.f32 %v506_v3, %v33615_v19  ;;  %v33633_v38 = vsub.f32 %v509_v4, %v33617_v20  ;;  %v33636_v40 = vsub.f32 %v512_v9, %v33619_v22 }
  0x32   : > { %v721_v31 = vsub.f32 %v33603_v2, %v40419_v18  ;;  %27957 = vmatmul.mubr.f32.gmra.mrb[2].mxu0 %v682_v15  ;;  %v33638_v47 = vand.u32 4294901760, %v515_v27  ;;  %v33640_v48 = vand.u32 4294901760, %v518_v28  ;;  %v33642_v49 = vand.u32 4294901760, %v521_v29 }
  0x33   : > { %40831 = vst [vmem:[#allocation8_spill] sm:$0xff] %v33633_v38  ;;  %40832 = vst [vmem:[#allocation9_spill] sm:$0xff] %v33636_v40  ;;  %v524_v50 = vsel %vm480_vm1, %v453_v25, 0  ;;  %27959 = vmatprep.mubr.f32.mxu0 %v692_v16  ;;  %v712_v56 = vand.u32 4294901760, %v711_v17  ;;  %v40418_v57 = vand.u32 4294901760, %v33630_v37  ;;  %v40417_v58 = vand.u32 4294901760, %v33633_v38 }
  0x34   : > { %v40416_v59 = vand.u32 4294901760, %v33636_v40  ;;  %v33650_v60 = vsub.f32 %v515_v27, %v33638_v47  ;;  %v33653_v62 = vsub.f32 %v518_v28, %v33640_v48  ;;  %v33656_v63 = vsub.f32 %v521_v29, %v33642_v49  ;;  %v455_v16 = vld [vmem:[%s33503_s20 + $0x80] sm:$0xff]  ;;  %v456_v17 = vld [vmem:[%s33503_s20 + $0x88] sm:$0xff]  ;;  %v457_v25 = vld [vmem:[%s33503_s20 + $0x90] sm:$0xff] }
  0x35   : > { %v33658_v0 = vand.u32 4294901760, %v524_v50  ;;  %v722_v3 = vand.u32 4294901760, %v721_v31  ;;  %v731_v4 = vsub.f32 %v33630_v37, %v40418_v57  ;;  %v527_v9 = vsel %vm480_vm1, %v454_v55, 0  ;;  %v459_v57 = vld [vmem:[%s33503_s20 + $0xa0] sm:$0xff] }
  0x36   : > { %40833 = vst [vmem:[#allocation10_spill] sm:$0xff] %v33650_v60  ;;  %40834 = vst [vmem:[#allocation11_spill] sm:$0xff] %v33653_v62  ;;  %27960 = vmatmul.mubr.f32.gmra.mrb[4].mxu0 %v702_v26  ;;  %v741_v11 = vsub.f32 %v33633_v38, %v40417_v58  ;;  %v751_v12 = vsub.f32 %v33636_v40, %v40416_v59  ;;  %v40421_v14 = vand.u32 4294901760, %v33650_v60  ;;  %v40423_v15 = vand.u32 4294901760, %v33653_v62  ;;  %v469_v40 = vld [vmem:[%s33503_s20 + $0xf0] sm:$0xff] }
  0x37   : > { %40835 = vst [vmem:[#allocation12_spill] sm:$0xff] %v33656_v63  ;;  %27962 = vmatprep.mubr.f32.mxu0 %v712_v56  ;;  %v732_v26 = vand.u32 4294901760, %v731_v4  ;;  %v33676_v27 = vsub.f32 %v524_v50, %v33658_v0  ;;  %v33678_v28 = vand.u32 4294901760, %v527_v9  ;;  %v40427_v29 = vand.u32 4294901760, %v33656_v63  ;;  %v458_v56 = vld [vmem:[%s33503_s20 + $0x98] sm:$0xff] }
  0x38   : > { %v761_v31 = vsub.f32 %v33650_v60, %v40421_v14  ;;  %v530_v55 = vsel %vm480_vm1, %v455_v16, 0  ;;  %v533_v59 = vsel %vm480_vm1, %v456_v17, 0  ;;  %v536_v58 = vsel %vm480_vm1, %v457_v25, 0  ;;  %v460_v14 = vld [vmem:[%s33503_s20 + $0xa8] sm:$0xff] }
  0x39   : > { %40836 = vst [vmem:[#allocation13_spill] sm:$0xff] %v33676_v27  ;;  %v742_v4 = vand.u32 4294901760, %v741_v11  ;;  %v752_v50 = vand.u32 4294901760, %v751_v12  ;;  %v771_v18 = vsub.f32 %v33653_v62, %v40423_v15  ;;  %v33693_v1 = vsub.f32 %v527_v9, %v33678_v28 }
  0x3a   : > { %27963 = vmatmul.mubr.f32.gmra.mrb[6].mxu0 %v722_v3  ;;  %v40430_v16 = vand.u32 4294901760, %v33676_v27  ;;  %v33697_v17 = vand.u32 4294901760, %v530_v55  ;;  %v33699_v25 = vand.u32 4294901760, %v533_v59  ;;  %v33701_v53 = vand.u32 4294901760, %v536_v58 }
  0x3b   : > { %40837 = vst [vmem:[#allocation14_spill] sm:$0xff] %v33693_v1  ;;  %27965 = vmatprep.mubr.f32.mxu0 %v732_v26  ;;  %v781_v3 = vsub.f32 %v33656_v63, %v40427_v29  ;;  %v539_v11 = vsel %vm480_vm1, %v458_v56, 0  ;;  %v542_v12 = vsel %vm480_vm1, %v459_v57, 0  ;;  %v762_v9 = vand.u32 4294901760, %v761_v31 }
  0x3c   : > { %v33709_v26 = vsub.f32 %v530_v55, %v33697_v17  ;;  %v33712_v15 = vsub.f32 %v533_v59, %v33699_v25  ;;  %v545_v52 = vsel %vm480_vm1, %v460_v14, 0  ;;  %v40433_v42 = vand.u32 4294901760, %v33693_v1 }
  0x3d   : > { %v33718_v29 = vsub.f32 %v536_v58, %v33701_v53  ;;  %v33720_v56 = vand.u32 4294901760, %v539_v11  ;;  %v33722_v57 = vand.u32 4294901760, %v542_v12  ;;  %v772_v31 = vand.u32 4294901760, %v771_v18  ;;  %v462_v58 = vld [vmem:[%s33503_s20 + $0xb8] sm:$0xff] }
  0x3e   : > { %40838 = vst [vmem:[#allocation15_spill] sm:$0xff] %v33709_v26  ;;  %40839 = vst [vmem:[#allocation16_spill] sm:$0xff] %v33712_v15  ;;  %27966 = vmatmul.mubr.f32.gmra.mrb[8].mxu0 %v742_v4  ;;  %v791_v59 = vsub.f32 %v33676_v27, %v40430_v16  ;;  %v40438_v14 = vand.u32 4294901760, %v33709_v26  ;;  %v33728_v55 = vand.u32 4294901760, %v545_v52  ;;  %v548_v4 = vsel %vm480_vm1, %v461_v51, 0  ;;  %v463_v51 = vld [vmem:[%s33503_s20 + $0xc0] sm:$0xff] }
  0x3f   : > { %40840 = vst [vmem:[#allocation17_spill] sm:$0xff] %v33718_v29  ;;  %40841 = vst [vmem:[#allocation18_spill] sm:$0xff] %v33720_v56  ;;  %27968 = vmatprep.mubr.f32.mxu0 %v752_v50  ;;  %v33734_v39 = vsub.f32 %v539_v11, %v33720_v56  ;;  %v782_v50 = vand.u32 4294901760, %v781_v3  ;;  %v801_v18 = vsub.f32 %v33693_v1, %v40433_v42  ;;  %v33748_v11 = vand.u32 4294901760, %v548_v4  ;;  %v464_v16 = vld [vmem:[%s33503_s20 + $0xc8] sm:$0xff] }
  0x40   : > { %40842 = vst [vmem:[#allocation19_spill] sm:$0xff] %v33722_v57  ;;  %40843 = vst [vmem:[#allocation20_spill] sm:$0xff] %v33728_v55  ;;  %v33741_v10 = vsub.f32 %v542_v12, %v33722_v57  ;;  %v792_v41 = vand.u32 4294901760, %v791_v59  ;;  %v811_v3 = vsub.f32 %v33709_v26, %v40438_v14  ;;  %v33752_v42 = vsub.f32 %v545_v52, %v33728_v55  ;;  %v466_v14 = vld [vmem:[%s33503_s20 + $0xd8] sm:$0xff]  ;;  %v467_v26 = vld [vmem:[%s33503_s20 + $0xe0] sm:$0xff] }
  0x41   : > { %40844 = vst [vmem:[#allocation21_spill] sm:$0xff] %v33734_v39  ;;  %40845 = vst [vmem:[#allocation22_spill] sm:$0xff] %v33748_v11  ;;  %v40847_v12 = vand.u32 4294901760, %v33712_v15  ;;  %v33761_v59 = vsel %vm480_vm1, %v465_v8, 0  ;;  %v802_v52 = vand.u32 4294901760, %v801_v18  ;;  %v40848_v63 = vand.u32 4294901760, %v33718_v29 }
  0x42   : > { %27969 = vmatmul.mubr.f32.gmra.mrb[10].mxu0 %v762_v9  ;;  %v551_v9 = vsel %vm480_vm1, %v462_v58, 0  ;;  %40846 = vst [vmem:[#allocation23_spill] sm:$0xff] %v33752_v42  ;;  %v468_v58 = vld [vmem:[%s33503_s20 + $0xe8] sm:$0xff]  ;;  %v812_v27 = vand.u32 4294901760, %v811_v3  ;;  %v557_v60 = vsel %vm480_vm1, %v464_v16, 0  ;;  %v33781_v18 = vsel %vm480_vm1, %v466_v14, 0 }
  0x43   : > { %27971 = vmatprep.mubr.f32.mxu0 %v772_v31  ;;  %v821_v1 = vsub.f32 %v33712_v15, %v40847_v12  ;;  %v554_v31 = vsel %vm480_vm1, %v463_v51, 0  ;;  %v831_v62 = vsub.f32 %v33718_v29, %v40848_v63  ;;  %v33770_v15 = vand.u32 4294901760, %v551_v9 }
  0x44   : > { %v33773_v51 = vsub.f32 %v548_v4, %v33748_v11  ;;  %v33775_v8 = vand.u32 4294901760, %v554_v31  ;;  %v33784_v63 = vsel %vm480_vm1, %v467_v26, 0  ;;  %v33787_v12 = vsel %vm480_vm1, %v468_v58, 0 }
  0x45   : > { %40849 = vst [vmem:[#allocation24_spill] sm:$0xff] %v33770_v15  ;;  %v40851_v3 = vand.u32 4294901760, %v33734_v39  ;;  %v33794_v16 = vsub.f32 %v551_v9, %v33770_v15  ;;  %v33796_v38 = vand.u32 4294901760, %v557_v60  ;;  %v33799_v14 = vsel %vm480_vm1, %v469_v40, 0 }
  0x46   : > { %27972 = vmatmul.mubr.f32.gmra.mrb[12].mxu0 %v782_v50  ;;  %40850 = vst [vmem:[#allocation25_spill] sm:$0xff] %v33775_v8  ;;  %v470_v50 = vld [vmem:[%s33503_s20 + $0xf8] sm:$0xff]  ;;  %v40853_v58 = vand.u32 4294901760, %v33741_v10  ;;  %v40462_v29 = vand.u32 4294901760, %v33773_v51  ;;  %s33301_s20 = sshll.u32 %s33365_s30, 4  ;;  %s33302_s20 = int_to_ptr.vmem [resolvable:$false] %s33301_s20 }
  0x47   : > { %27974 = vmatprep.mubr.f32.mxu0 %v792_v41  ;;  %v822_v41 = vand.u32 4294901760, %v821_v1  ;;  %v841_v4 = vsub.f32 %v33734_v39, %v40851_v3  ;;  %40852 = vst [vmem:[#allocation26_spill] sm:$0xff] %v33796_v38  ;;  %v33802_v26 = vsel %vm480_vm1, %v470_v50, 0  ;;  %v832_v1 = vand.u32 4294901760, %v831_v62  ;;  %s33303_s21 = scalar_lea.vmem %s33302_s20, 512  ;;  %p33304_p0 = scmp.lt.s32.totalorder %s40355_s16, %s33302_s20 }
  0x48   : > { %v851_v3 = vsub.f32 %v33741_v10, %v40853_v58  ;;  %v40854_v39 = vand.u32 4294901760, %v33752_v42  ;;  %v40459_v50 = vand.u32 4294901760, %v33794_v16  ;;  %v871_v58 = vsub.f32 %v33773_v51, %v40462_v29  ;;  %v40867_v29 = vld [vmem:[#allocation17_spill] sm:$0xff]  ;;  %p33305_p1 = scmp.lt.s32.totalorder %s33303_s21, %s33297_s24 }
  0x49   : > { %v842_v9 = vand.u32 4294901760, %v841_v4 }
  0x4a   : > { %27975 = vmatmul.mubr.f32.gmra.mrb[14].mxu0 %v802_v52  ;;  %v33809_v52 = vsub.f32 %v554_v31, %v33775_v8  ;;  %v861_v40 = vsub.f32 %v33752_v42, %v40854_v39  ;;  %v852_v62 = vand.u32 4294901760, %v851_v3  ;;  %v881_v4 = vsub.f32 %v33794_v16, %v40459_v50  ;;  %p33306_p2 = por %p33305_p1, %p33304_p0 }
  0x4b   : > { %27977 = vmatprep.mubr.f32.mxu0 %v812_v27  ;;  %v33816_v27 = vsub.f32 %v557_v60, %v33796_v38  ;;  %v872_v42 = vand.u32 4294901760, %v871_v58  ;;  %v40856_v58 = vand.u32 4294901760, %v33498_v7  ;;  %v33870_v7 = vand.u32 4294901760, %v33781_v18 }
  0x4c   : > { %v40461_v31 = vand.u32 4294901760, %v33809_v52  ;;  %p33307_p3 = pnand %p33306_p2, %p33300_p13 }
  0x4d   : > { %v40460_v39 = vand.u32 4294901760, %v33816_v27  ;;  %40857 = vst [vmem:[#allocation27_spill] sm:$0xff] %v33870_v7 }
  0x4e   : > { %27978 = vmatmul.mubr.f32.gmra.mrb[16].mxu0 %v822_v41  ;;  %v862_v41 = vand.u32 4294901760, %v861_v40  ;;  %v891_v60 = vsub.f32 %v33809_v52, %v40461_v31  ;;  %v40866_v31 = vld [vmem:[#allocation16_spill] sm:$0xff] }
  0x4f   : > { %27980 = vmatprep.mubr.f32.mxu0 %v832_v1  ;;  %v882_v1 = vand.u32 4294901760, %v881_v4  ;;  %v901_v3 = vsub.f32 %v33816_v27, %v40460_v39  ;;  %v33886_v4 = vand.u32 4294901760, %v33802_v26  ;;  %v40865_v39 = vld [vmem:[#allocation15_spill] sm:$0xff] }
  0x51   : > { %v902_v40 = vand.u32 4294901760, %v901_v3  ;;  %v40860_v3 = vld [vmem:[#allocation10_spill] sm:$0xff] }
  0x52   : > { %27981 = vmatmul.mubr.f32.gmra.mrb[18].mxu0 %v842_v9  ;;  %v892_v9 = vand.u32 4294901760, %v891_v60  ;;  %v40858_v60 = vld [vmem:[#allocation8_spill] sm:$0xff] }
  0x53   : > { %27983 = vmatprep.mubr.f32.mxu0 %v852_v62  ;;  %v40855_v62 = vand.u32 4294901760, %v33494_v5  ;;  %v33866_v5 = vand.u32 4294901760, %v33761_v59 }
  0x55   : > { %v33837_v50 = vpack.c.bf16 %v40856_v58, %v40855_v62  ;;  %v40863_v62 = vld [vmem:[#allocation13_spill] sm:$0xff]  ;;  %v40864_v58 = vld [vmem:[#allocation14_spill] sm:$0xff] }
  0x56   : > { %27984 = vmatmul.mubr.f32.gmra.mrb[20].mxu0 %v862_v41  ;;  %v33882_v41 = vand.u32 4294901760, %v33799_v14 }
  0x57   : > { %27986 = vmatprep.mubr.f32.mxu0 %v872_v42  ;;  %v33878_v42 = vand.u32 4294901760, %v33787_v12 }
  0x5a   : > { %27987 = vmatmul.mubr.f32.gmra.mrb[22].mxu0 %v882_v1  ;;  %v40859_v1 = vld [vmem:[#allocation9_spill] sm:$0xff] }
  0x5b   : > { %27989 = vmatprep.mubr.f32.mxu0 %v892_v9  ;;  %v40861_v9 = vld [vmem:[#allocation11_spill] sm:$0xff] }
  0x5e   : > { %27990 = vmatmul.mubr.f32.gmra.mrb[24].mxu0 %v902_v40  ;;  %v40862_v40 = vld [vmem:[#allocation12_spill] sm:$0xff] }
  0x5f   : > { %28005 = vmatprep.mubr.f32.mxu0 %v33527_v21 }
  0x62   : > { %28006 = vmatmul.mubr.f32.vlgmr.msra.gmra.mrb[0].mxu0 %v33532_v23 }
  0x63   : > { %30906 = vmatpush3.bf16.msra.mxu0 %v33513_v13  ;;  %28008 = vmatprep.mubr.f32.mxu0 %v33534_v24  ;;  %v33874_v13 = vand.u32 4294901760, %v33784_v63 }
  0x64   : > { %30908 = vmatprep.subr.bf16.mxu0 %v33496_v6 }
  0x66   : > { %28009 = vmatmul.mubr.f32.gmra.mrb[2].mxu0 %v33549_v34 }
  0x67   : > { %28011 = vmatprep.mubr.f32.mxu0 %v33551_v35 }
  0x6a   : > { %28012 = vmatmul.mubr.f32.gmra.mrb[4].mxu0 %v33553_v36 }
  0x6b   : > { %28014 = vmatprep.mubr.f32.mxu0 %v33569_v46 }
  0x6e   : > { %28015 = vmatmul.mubr.f32.gmra.mrb[6].mxu0 %v33590_v61 }
  0x6f   : > { %28017 = vmatprep.mubr.f32.mxu0 %v33615_v19 }
  0x72   : > { %28018 = vmatmul.mubr.f32.gmra.mrb[8].mxu0 %v33617_v20 }
  0x73   : > { %28020 = vmatprep.mubr.f32.mxu0 %v33619_v22 }
  0x76   : > { %28021 = vmatmul.mubr.f32.gmra.mrb[10].mxu0 %v33638_v47 }
  0x77   : > { %28023 = vmatprep.mubr.f32.mxu0 %v33640_v48 }
  0x7a   : > { %28024 = vmatmul.mubr.f32.gmra.mrb[12].mxu0 %v33642_v49 }
  0x7b   : > { %28026 = vmatprep.mubr.f32.mxu0 %v33658_v0 }
  0x7e   : > { %28027 = vmatmul.mubr.f32.gmra.mrb[14].mxu0 %v33678_v28 }
  0x7f   : > { %28029 = vmatprep.mubr.f32.mxu0 %v33697_v17 }
  0x82   : > { %28030 = vmatmul.mubr.f32.gmra.mrb[16].mxu0 %v33699_v25 }
  0x83   : > { %28032 = vmatprep.mubr.f32.mxu0 %v33701_v53 }
  0x86   : > { %28033 = vmatmul.mubr.f32.gmra.mrb[18].mxu0 %v33720_v56  ;;  %v949_v56 = vsub.f32 %v33799_v14, %v33882_v41  ;;  %v40874_v14 = vand.u32 4294901760, %v33564_v44 }
  0x87   : > { %28035 = vmatprep.mubr.f32.mxu0 %v33722_v57  ;;  %v939_v57 = vsub.f32 %v33787_v12, %v33878_v42  ;;  %v40872_v12 = vand.u32 4294901760, %v33547_v33 }
  0x8a   : > { %28036 = vmatmul.mubr.f32.gmra.mrb[20].mxu0 %v33728_v55  ;;  %v929_v55 = vsub.f32 %v33784_v63, %v33874_v13  ;;  %v40873_v63 = vand.u32 4294901760, %v33561_v43 }
  0x8b   : > { %28038 = vmatprep.mubr.f32.mxu0 %v33748_v11  ;;  %v919_v11 = vsub.f32 %v33781_v18, %v33870_v7  ;;  %v40870_v18 = vand.u32 4294901760, %v33541_v30 }
  0x8e   : > { %28039 = vmatmul.mubr.f32.gmra.mrb[22].mxu0 %v33770_v15  ;;  %v909_v15 = vsub.f32 %v33761_v59, %v33866_v5  ;;  %v959_v59 = vsub.f32 %v33802_v26, %v33886_v4  ;;  %v40875_v26 = vand.u32 4294901760, %v33567_v45 }
  0x8f   : > { %28041 = vmatprep.mubr.f32.mxu0 %v33775_v8  ;;  %v40869_v8 = vld [vmem:[#allocation23_spill] sm:$0xff] }
  0x92   : > { %28042 = vmatmul.mubr.f32.gmra.mrb[24].mxu0 %v33796_v38  ;;  %v40868_v38 = vld [vmem:[#allocation21_spill] sm:$0xff] }
  0x93   : > { %28044 = vmatprep.mubr.f32.mxu0 %v33866_v5 }
  0x96   : > { %28045 = vmatmul.mubr.f32.gmra.mrb[26].mxu0 %v33870_v7  ;;  %v40871_v7 = vand.u32 4294901760, %v33544_v32 }
  0x97   : > { %28047 = vmatprep.mubr.f32.mxu0 %v33874_v13 }
  0x9a   : > { %28048 = vmatmul.mubr.f32.gmra.mrb[28].mxu0 %v33878_v42 }
  0x9b   : > { %28050 = vmatprep.mubr.f32.mxu0 %v33882_v41 }
  0x9e   : > { %28051 = vmatmul.mubr.f32.gmra.mrb[30].mxu0 %v33886_v4 }
  0x9f   : > { %28057 = vmatprep.mubr.f32.mxu0 %v33541_v30  ;;  %v40876_v30 = vand.u32 4294901760, %v33585_v54 }
  0xa2   : > { %28058 = vmatmul.mubr.f32.vlgmr.msra.gmra.mrb[0].mxu0 %v33544_v32  ;;  %v40877_v32 = vand.u32 4294901760, %v33603_v2 }
  0xa3   : > { %30910 = vmatpush3.bf16.msra.mxu0 %v33496_v6  ;;  %28060 = vmatprep.mubr.f32.mxu0 %v33547_v33  ;;  %v40878_v33 = vand.u32 4294901760, %v33630_v37 }
  0xa4   : > { %30912 = vmatprep.subr.bf16.mxu0 %v33837_v50 }
  0xa6   : > { %28061 = vmatmul.mubr.f32.gmra.mrb[2].mxu0 %v33561_v43  ;;  %v40880_v43 = vand.u32 4294901760, %v40859_v1 }
  0xa7   : > { %28063 = vmatprep.mubr.f32.mxu0 %v33564_v44  ;;  %v40881_v44 = vand.u32 4294901760, %v40860_v3 }
  0xaa   : > { %28064 = vmatmul.mubr.f32.gmra.mrb[4].mxu0 %v33567_v45  ;;  %v40882_v45 = vand.u32 4294901760, %v40861_v9 }
  0xab   : > { %28066 = vmatprep.mubr.f32.mxu0 %v33585_v54  ;;  %v40883_v54 = vand.u32 4294901760, %v40862_v40 }
  0xae   : > { %28067 = vmatmul.mubr.f32.gmra.mrb[6].mxu0 %v33603_v2  ;;  %v40884_v2 = vand.u32 4294901760, %v40863_v62 }
  0xaf   : > { %28069 = vmatprep.mubr.f32.mxu0 %v33630_v37  ;;  %v40885_v37 = vand.u32 4294901760, %v40864_v58 }
  0xb2   : > { %28070 = vmatmul.mubr.f32.gmra.mrb[8].mxu0 %v40858_v60 }
  0xb3   : > { %28072 = vmatprep.mubr.f32.mxu0 %v40859_v1  ;;  %v40888_v1 = vand.u32 4294901760, %v40867_v29 }
  0xb6   : > { %28073 = vmatmul.mubr.f32.gmra.mrb[10].mxu0 %v40860_v3  ;;  %v40889_v3 = vand.u32 4294901760, %v40868_v38 }
  0xb7   : > { %28075 = vmatprep.mubr.f32.mxu0 %v40861_v9  ;;  %v40890_v9 = vand.u32 4294901760, %v33741_v10 }
  0xba   : > { %28076 = vmatmul.mubr.f32.gmra.mrb[12].mxu0 %v40862_v40  ;;  %v40891_v40 = vand.u32 4294901760, %v40869_v8 }
  0xbb   : > { %28078 = vmatprep.mubr.f32.mxu0 %v40863_v62  ;;  %v40892_v62 = vand.u32 4294901760, %v33773_v51 }
  0xbe   : > { %28079 = vmatmul.mubr.f32.gmra.mrb[14].mxu0 %v40864_v58  ;;  %v920_v58 = vand.u32 4294901760, %v919_v11 }
  0xbf   : > { %28081 = vmatprep.mubr.f32.mxu0 %v40865_v39 }
  0xc2   : > { %28082 = vmatmul.mubr.f32.gmra.mrb[16].mxu0 %v40866_v31 }
  0xc3   : > { %28084 = vmatprep.mubr.f32.mxu0 %v40867_v29  ;;  %v40894_v29 = vand.u32 4294901760, %v33809_v52 }
  0xc6   : > { %28085 = vmatmul.mubr.f32.gmra.mrb[18].mxu0 %v40868_v38  ;;  %v921_v38 = vsub.f32 %v919_v11, %v920_v58 }
  0xc7   : > { %28087 = vmatprep.mubr.f32.mxu0 %v33741_v10 }
  0xc8   : > { %v922_v10 = vand.u32 4294901760, %v921_v38 }
  0xca   : > { %28088 = vmatmul.mubr.f32.gmra.mrb[20].mxu0 %v40869_v8  ;;  %v940_v8 = vand.u32 4294901760, %v939_v57 }
  0xcb   : > { %28090 = vmatprep.mubr.f32.mxu0 %v33773_v51 }
  0xce   : > { %28091 = vmatmul.mubr.f32.gmra.mrb[22].mxu0 %v33794_v16 }
  0xcf   : > { %28093 = vmatprep.mubr.f32.mxu0 %v33809_v52 }
  0xd2   : > { %28094 = vmatmul.mubr.f32.gmra.mrb[24].mxu0 %v33816_v27 }
  0xd3   : > { %28096 = vmatprep.mubr.f32.mxu0 %v909_v15 }
  0xd6   : > { %28097 = vmatmul.mubr.f32.gmra.mrb[26].mxu0 %v919_v11 }
  0xd7   : > { %28099 = vmatprep.mubr.f32.mxu0 %v929_v55 }
  0xda   : > { %28100 = vmatmul.mubr.f32.gmra.mrb[28].mxu0 %v939_v57 }
  0xdb   : > { %28102 = vmatprep.mubr.f32.mxu0 %v949_v56 }
  0xde   : > { %28103 = vmatmul.mubr.f32.gmra.mrb[30].mxu0 %v959_v59 }
  0xdf   : > { %28109 = vmatprep.mubr.f32.mxu0 %v40870_v18 }
  0xe2   : > { %28110 = vmatmul.mubr.f32.vlgmr.msra.gmra.mrb[0].mxu0 %v40871_v7  ;;  %v40886_v7 = vand.u32 4294901760, %v40865_v39  ;;  %v910_v39 = vand.u32 4294901760, %v909_v15 }
  0xe3   : > { %30914 = vmatpush3.bf16.msra.mxu0 %v33837_v50  ;;  %28112 = vmatprep.mubr.f32.mxu0 %v40872_v12  ;;  %v40879_v50 = vand.u32 4294901760, %v40858_v60  ;;  %v40887_v60 = vand.u32 4294901760, %v40866_v31  ;;  %v40893_v31 = vand.u32 4294901760, %v33794_v16 }
  0xe4   : > { %30916 = vmatprep.subr.bf16.mxu0 %v33496_v6  ;;  %v911_v18 = vsub.f32 %v909_v15, %v910_v39  ;;  %v960_v15 = vand.u32 4294901760, %v959_v59 }
  0xe6   : > { %28113 = vmatmul.mubr.f32.gmra.mrb[2].mxu0 %v40873_v63  ;;  %v912_v12 = vand.u32 4294901760, %v911_v18  ;;  %v930_v63 = vand.u32 4294901760, %v929_v55  ;;  %v961_v52 = vsub.f32 %v959_v59, %v960_v15  ;;  %v40900_v59 = vld [vmem:[#allocation24_spill] sm:$0xff]  ;;  %v26092_v18 = vld [vmem:[%s40405_s3 + $0x18] sm:$0xff] }
  0xe7   : > { %28115 = vmatprep.mubr.f32.mxu0 %v40874_v14  ;;  %v40895_v14 = vand.u32 4294901760, %v33816_v27  ;;  %v3669_v38 = vand.u32 4294901760, %v26092_v18 }
  0xe8   : > { %27992 = vmatprep.mubr.f32.mxu1 %v912_v12  ;;  %v931_v51 = vsub.f32 %v929_v55, %v930_v63  ;;  %v962_v27 = vand.u32 4294901760, %v961_v52  ;;  %v40899_v55 = vld [vmem:[#allocation22_spill] sm:$0xff] }
  0xe9   : > { %27993 = vmatmul.mubr.f32.vlgmr.msra.gmra.mrb[0].mxu1 %v922_v10  ;;  %v3821_v52 = vsub.f32 %v26092_v18, %v3669_v38 }
  0xea   : > { %28116 = vmatmul.mubr.f32.gmra.mrb[4].mxu0 %v40875_v26  ;;  %v941_v26 = vsub.f32 %v939_v57, %v940_v8  ;;  %v932_v16 = vand.u32 4294901760, %v931_v51  ;;  %v40898_v57 = vld [vmem:[#allocation20_spill] sm:$0xff] }
  0xeb   : > { %28118 = vmatprep.mubr.f32.mxu0 %v40876_v30  ;;  %v950_v30 = vand.u32 4294901760, %v949_v56 }
  0xec   : > { %27995 = vmatprep.mubr.f32.mxu1 %v932_v16 }
  0xed   : > { %v951_v11 = vsub.f32 %v949_v56, %v950_v30  ;;  %v40897_v56 = vld [vmem:[#allocation19_spill] sm:$0xff] }
  0xee   : > { %28119 = vmatmul.mubr.f32.gmra.mrb[6].mxu0 %v40877_v32  ;;  %v942_v32 = vand.u32 4294901760, %v941_v26 }
  0xef   : > { %28121 = vmatprep.mubr.f32.mxu0 %v40878_v33  ;;  %v952_v33 = vand.u32 4294901760, %v951_v11 }
  0xf0   : > { %27996 = vmatmul.mubr.f32.gmra.mrb[2].mxu1 %v942_v32 }
  0xf1   : > { %27998 = vmatprep.mubr.f32.mxu1 %v952_v33 }
  0xf2   : > { %28122 = vmatmul.mubr.f32.gmra.mrb[8].mxu0 %v40879_v50  ;;  %v40901_v50 = vld [vmem:[#allocation25_spill] sm:$0xff] }
  0xf3   : > { %28124 = vmatprep.mubr.f32.mxu0 %v40880_v43  ;;  %v40902_v43 = vld [vmem:[#allocation26_spill] sm:$0xff] }
  0xf4   : > { %27999 = vmatmul.mubr.f32.gmra.mrb[4].mxu1 %v962_v27  ;;  %v3822_v27 = vand.u32 4294901760, %v3821_v52 }
  0xf6   : > { %28125 = vmatmul.mubr.f32.gmra.mrb[10].mxu0 %v40881_v44  ;;  %v40903_v44 = vld [vmem:[#allocation27_spill] sm:$0xff] }
  0xf7   : > { %28127 = vmatprep.mubr.f32.mxu0 %v40882_v45 }
  0xfa   : > { %28128 = vmatmul.mubr.f32.gmra.mrb[12].mxu0 %v40883_v54 }
  0xfb   : > { %28130 = vmatprep.mubr.f32.mxu0 %v40884_v2 }
  0xfe   : > { %28131 = vmatmul.mubr.f32.gmra.mrb[14].mxu0 %v40885_v37 }
  0xff   : > { %28133 = vmatprep.mubr.f32.mxu0 %v40886_v7 }
 0x102   : > { %28134 = vmatmul.mubr.f32.gmra.mrb[16].mxu0 %v40887_v60 }
 0x103   : > { %28136 = vmatprep.mubr.f32.mxu0 %v40888_v1 }
 0x106   : > { %28137 = vmatmul.mubr.f32.gmra.mrb[18].mxu0 %v40889_v3 }
 0x107   : > { %28139 = vmatprep.mubr.f32.mxu0 %v40890_v9 }
 0x10a   : > { %28140 = vmatmul.mubr.f32.gmra.mrb[20].mxu0 %v40891_v40 }
 0x10b   : > { %28142 = vmatprep.mubr.f32.mxu0 %v40892_v62 }
 0x10e   : > { %28143 = vmatmul.mubr.f32.gmra.mrb[22].mxu0 %v40893_v31  ;;  %v26091_v31 = vld [vmem:[%s40405_s3 + $0x10] sm:$0xff] }
 0x10f   : > { %28145 = vmatprep.mubr.f32.mxu0 %v40894_v29  ;;  %v3666_v29 = vand.u32 4294901760, %v26091_v31 }
 0x111   : > { %v3814_v11 = vsub.f32 %v26091_v31, %v3666_v29 }
 0x112   : > { %28146 = vmatmul.mubr.f32.gmra.mrb[24].mxu0 %v40895_v14 }
 0x113   : > { %28148 = vmatprep.mubr.f32.mxu0 %v910_v39  ;;  %v3815_v33 = vand.u32 4294901760, %v3814_v11 }
 0x116   : > { %28149 = vmatmul.mubr.f32.gmra.mrb[26].mxu0 %v920_v58 }
 0x117   : > { %28151 = vmatprep.mubr.f32.mxu0 %v930_v63  ;;  %v34222_v63 = vpack.c.bf16 %v3669_v38, %v3666_v29 }
 0x119   : > { %30920 = vmatprep.subr.bf16.mxu1 %v34222_v63 }
 0x11a   : > { %28152 = vmatmul.mubr.f32.gmra.mrb[28].mxu0 %v940_v8  ;;  %30922 = vmatpush3.bf16.msra.mxu1 %v34222_v63 }
 0x11b   : > { %28154 = vmatprep.mubr.f32.mxu0 %v950_v30 }
 0x11e   : > { %28155 = vmatmul.mubr.f32.gmra.mrb[30].mxu0 %v960_v15 }
 0x11f   : > { %28161 = vmatprep.mubr.f32.mxu0 %v33527_v21 }
 0x122   : > { %28162 = vmatmul.mubr.f32.vlgmr.msra.gmra.mrb[0].mxu0 %v33532_v23 }
 0x123   : > { %30918 = vmatpush3.bf16.msra.mxu0 %v33496_v6  ;;  %28164 = vmatprep.mubr.f32.mxu0 %v33534_v24  ;;  %v40896_v6 = vld [vmem:[#allocation18_spill] sm:$0xff] }
 0x126   : > { %28165 = vmatmul.mubr.f32.gmra.mrb[2].mxu0 %v33549_v34 }
 0x127   : > { %28167 = vmatprep.mubr.f32.mxu0 %v33551_v35 }
 0x12a   : > { %28168 = vmatmul.mubr.f32.gmra.mrb[4].mxu0 %v33553_v36 }
 0x12b   : > { %28170 = vmatprep.mubr.f32.mxu0 %v33569_v46 }
 0x12e   : > { %28171 = vmatmul.mubr.f32.gmra.mrb[6].mxu0 %v33590_v61 }
 0x12f   : > { %28173 = vmatprep.mubr.f32.mxu0 %v33615_v19 }
 0x132   : > { %28174 = vmatmul.mubr.f32.gmra.mrb[8].mxu0 %v33617_v20 }
 0x133   : > { %28176 = vmatprep.mubr.f32.mxu0 %v33619_v22 }
 0x136   : > { %28177 = vmatmul.mubr.f32.gmra.mrb[10].mxu0 %v33638_v47 }
 0x137   : > { %28179 = vmatprep.mubr.f32.mxu0 %v33640_v48 }
 0x13a   : > { %28180 = vmatmul.mubr.f32.gmra.mrb[12].mxu0 %v33642_v49 }
 0x13b   : > { %28182 = vmatprep.mubr.f32.mxu0 %v33658_v0 }
 0x13e   : > { %28183 = vmatmul.mubr.f32.gmra.mrb[14].mxu0 %v33678_v28 }
 0x13f   : > { %28185 = vmatprep.mubr.f32.mxu0 %v33697_v17 }
 0x142   : > { %28186 = vmatmul.mubr.f32.gmra.mrb[16].mxu0 %v33699_v25 }
 0x143   : > { %28188 = vmatprep.mubr.f32.mxu0 %v33701_v53 }
 0x146   : > { %28189 = vmatmul.mubr.f32.gmra.mrb[18].mxu0 %v40896_v6 }
 0x147   : > { %28191 = vmatprep.mubr.f32.mxu0 %v40897_v56 }
 0x14a   : > { %28192 = vmatmul.mubr.f32.gmra.mrb[20].mxu0 %v40898_v57 }
 0x14b   : > { %28194 = vmatprep.mubr.f32.mxu0 %v40899_v55 }
 0x14e   : > { %28195 = vmatmul.mubr.f32.gmra.mrb[22].mxu0 %v40900_v59 }
 0x14f   : > { %28197 = vmatprep.mubr.f32.mxu0 %v40901_v50 }
 0x152   : > { %28198 = vmatmul.mubr.f32.gmra.mrb[24].mxu0 %v40902_v43 }
 0x153   : > { %28200 = vmatprep.mubr.f32.mxu0 %v33866_v5 }
 0x156   : > { %28201 = vmatmul.mubr.f32.gmra.mrb[26].mxu0 %v40903_v44 }
 0x157   : > { %28203 = vmatprep.mubr.f32.mxu0 %v33874_v13 }
 0x15a   : > { %28204 = vmatmul.mubr.f32.gmra.mrb[28].mxu0 %v33878_v42 }
 0x15b   : > { %28206 = vmatprep.mubr.f32.mxu0 %v33882_v41 }
 0x15e   : > { %28207 = vmatmul.mubr.f32.gmra.mrb[30].mxu0 %v33886_v4 }
 0x15f   : > { %28213 = vmatprep.mubr.f32.mxu0 %v33527_v21  ;;  %v40479_v21 = vmov 0.0  }
 0x160   : > { %2443 = vst.msk [vmem:[#allocation2 + $0x20] sm:$0xff] %vm2437_vm2, %v40479_v21  ;;  %2438 = vst.msk [vmem:[#allocation2] sm:$0xff] %vm2437_vm2, %v40479_v21 }
 0x161   : > { %2444 = vst.msk [vmem:[#allocation2 + $0x28] sm:$0x3] %vm2440_vm3, %v40479_v21  ;;  %2441 = vst.msk [vmem:[#allocation2 + $0x10] sm:$0x3] %vm2440_vm3, %v40479_v21 }
 0x162   : > { %28214 = vmatmul.mubr.f32.vlgmr.msra.gmra.mrb[0].mxu0 %v33532_v23  ;;  %2439 = vst.msk [vmem:[#allocation2 + $0x8] sm:$0xff] %vm2437_vm2, %v40479_v21  ;;  %2442 = vst.msk [vmem:[#allocation2 + $0x18] sm:$0xff] %vm2437_vm2, %v40479_v21  ;;  %v2632_v23 = vlaneseq }
 0x163   : > { %28216 = vmatprep.mubr.f32.mxu0 %v33534_v24  ;;  %2445 = vst.msk [vmem:[#allocation2 + $0x30] sm:$0xff] %vm2437_vm2, %v40479_v21  ;;  %2446 = vst.msk [vmem:[#allocation2 + $0x38] sm:$0xff] %vm2437_vm2, %v40479_v21  ;;  %v33362_v24 = vmov 1983009808  }
 0x164   : > { %2447 = vst.msk [vmem:[#allocation2 + $0x40] sm:$0x3] %vm2440_vm3, %v40479_v21  ;;  %2450 = vst.msk [vmem:[#allocation2 + $0x58] sm:$0x3] %vm2440_vm3, %v40479_v21 }
 0x165   : > { %2448 = vst.msk [vmem:[#allocation2 + $0x48] sm:$0xff] %vm2437_vm2, %v40479_v21  ;;  %2449 = vst.msk [vmem:[#allocation2 + $0x50] sm:$0xff] %vm2437_vm2, %v40479_v21 }
 0x166   : > { %28217 = vmatmul.mubr.f32.gmra.mrb[2].mxu0 %v33549_v34  ;;  %2451 = vst.msk [vmem:[#allocation2 + $0x60] sm:$0xff] %vm2437_vm2, %v40479_v21  ;;  %2452 = vst.msk [vmem:[#allocation2 + $0x68] sm:$0xff] %vm2437_vm2, %v40479_v21  ;;  %v2630_v34 = vunpack.c.l.s4 %v33362_v24 }
 0x167   : > { %28219 = vmatprep.mubr.f32.mxu0 %v33551_v35  ;;  %2453 = vst.msk [vmem:[#allocation2 + $0x70] sm:$0x3] %vm2440_vm3, %v40479_v21  ;;  %2456 = vst.msk [vmem:[#allocation2 + $0x88] sm:$0x3] %vm2440_vm3, %v40479_v21 }
 0x168   : > { %2454 = vst.msk [vmem:[#allocation2 + $0x78] sm:$0xff] %vm2437_vm2, %v40479_v21  ;;  %2455 = vst.msk [vmem:[#allocation2 + $0x80] sm:$0xff] %vm2437_vm2, %v40479_v21  ;;  %v2631_v35 = vunpack.c.0.s8 %v2630_v34 }
 0x169   : > { %2457 = vst.msk [vmem:[#allocation2 + $0x90] sm:$0xff] %vm2437_vm2, %v40479_v21  ;;  %2458 = vst.msk [vmem:[#allocation2 + $0x98] sm:$0xff] %vm2437_vm2, %v40479_v21 }
 0x16a   : > { %28220 = vmatmul.mubr.f32.gmra.mrb[4].mxu0 %v33553_v36  ;;  %2459 = vst.msk [vmem:[#allocation2 + $0xa0] sm:$0x3] %vm2440_vm3, %v40479_v21  ;;  %2462 = vst.msk [vmem:[#allocation2 + $0xb8] sm:$0x3] %vm2440_vm3, %v40479_v21  ;;  %v34151_v36 = vshrl.u32 %v2632_v23, 7 }
 0x16b   : > { %28222 = vmatprep.mubr.f32.mxu0 %v33569_v46  ;;  %2460 = vst.msk [vmem:[#allocation2 + $0xa8] sm:$0xff] %vm2437_vm2, %v40479_v21  ;;  %2461 = vst.msk [vmem:[#allocation2 + $0xb0] sm:$0xff] %vm2437_vm2, %v40479_v21 }
 0x16c   : > { %2463 = vst.msk [vmem:[#allocation2 + $0xc0] sm:$0xff] %vm2437_vm2, %v40479_v21  ;;  %2464 = vst.msk [vmem:[#allocation2 + $0xc8] sm:$0xff] %vm2437_vm2, %v40479_v21  ;;  %v34154_v46 = vsub.s32 %v2631_v35, %v34151_v36 }
 0x16d   : > { %2465 = vst.msk [vmem:[#allocation2 + $0xd0] sm:$0x3] %vm2440_vm3, %v40479_v21  ;;  %2468 = vst.msk [vmem:[#allocation2 + $0xe8] sm:$0x3] %vm2440_vm3, %v40479_v21 }
 0x16e   : > { %28223 = vmatmul.mubr.f32.gmra.mrb[6].mxu0 %v33590_v61  ;;  %2466 = vst.msk [vmem:[#allocation2 + $0xd8] sm:$0xff] %vm2437_vm2, %v40479_v21  ;;  %2467 = vst.msk [vmem:[#allocation2 + $0xe0] sm:$0xff] %vm2437_vm2, %v40479_v21 }
 0x16f   : > { %28225 = vmatprep.mubr.f32.mxu0 %v33615_v19  ;;  %2469 = vst.msk [vmem:[#allocation2 + $0xf0] sm:$0xff] %vm2437_vm2, %v40479_v21  ;;  %2470 = vst.msk [vmem:[#allocation2 + $0xf8] sm:$0xff] %vm2437_vm2, %v40479_v21 }
 0x170   : > { %2471 = vst.msk [vmem:[#allocation2 + $0x100] sm:$0x3] %vm2440_vm3, %v40479_v21  ;;  %2474 = vst.msk [vmem:[#allocation2 + $0x118] sm:$0x3] %vm2440_vm3, %v40479_v21 }
 0x171   : > { %2472 = vst.msk [vmem:[#allocation2 + $0x108] sm:$0xff] %vm2437_vm2, %v40479_v21  ;;  %2473 = vst.msk [vmem:[#allocation2 + $0x110] sm:$0xff] %vm2437_vm2, %v40479_v21 }
 0x172   : > { %28226 = vmatmul.mubr.f32.gmra.mrb[8].mxu0 %v33617_v20  ;;  %2475 = vst.msk [vmem:[#allocation2 + $0x120] sm:$0xff] %vm2437_vm2, %v40479_v21  ;;  %2476 = vst.msk [vmem:[#allocation2 + $0x128] sm:$0xff] %vm2437_vm2, %v40479_v21 }
 0x173   : > { %28228 = vmatprep.mubr.f32.mxu0 %v33619_v22  ;;  %2477 = vst.msk [vmem:[#allocation2 + $0x130] sm:$0x3] %vm2440_vm3, %v40479_v21  ;;  %2480 = vst.msk [vmem:[#allocation2 + $0x148] sm:$0x3] %vm2440_vm3, %v40479_v21 }
 0x174   : > { %2478 = vst.msk [vmem:[#allocation2 + $0x138] sm:$0xff] %vm2437_vm2, %v40479_v21  ;;  %2479 = vst.msk [vmem:[#allocation2 + $0x140] sm:$0xff] %vm2437_vm2, %v40479_v21 }
 0x175   : > { %2481 = vst.msk [vmem:[#allocation2 + $0x150] sm:$0xff] %vm2437_vm2, %v40479_v21  ;;  %2482 = vst.msk [vmem:[#allocation2 + $0x158] sm:$0xff] %vm2437_vm2, %v40479_v21 }
 0x176   : > { %28229 = vmatmul.mubr.f32.gmra.mrb[10].mxu0 %v33638_v47  ;;  %2483 = vst.msk [vmem:[#allocation2 + $0x160] sm:$0x3] %vm2440_vm3, %v40479_v21  ;;  %2486 = vst.msk [vmem:[#allocation2 + $0x178] sm:$0x3] %vm2440_vm3, %v40479_v21  ;;  %v34167_v47 = vsub.s32 1, %v34151_v36 }
 0x177   : > { %28231 = vmatprep.mubr.f32.mxu0 %v33640_v48  ;;  %2484 = vst.msk [vmem:[#allocation2 + $0x168] sm:$0xff] %vm2437_vm2, %v40479_v21  ;;  %2485 = vst.msk [vmem:[#allocation2 + $0x170] sm:$0xff] %vm2437_vm2, %v40479_v21  ;;  %v2527_v48 = vld [vmem:[#allocation2 + $0x8] sm:$0xff] }
 0x178   : > { %2487 = vst.msk [vmem:[#allocation2 + $0x180] sm:$0xff] %vm2437_vm2, %v40479_v21  ;;  %2488 = vst.msk [vmem:[#allocation2 + $0x188] sm:$0xff] %vm2437_vm2, %v40479_v21 }
 0x179   : > { %2489 = vst.msk [vmem:[#allocation2 + $0x190] sm:$0x3] %vm2440_vm3, %v40479_v21  ;;  %40904 = vst [vmem:[#allocation8_spill] sm:$0xff] %v34154_v46 }
 0x17a   : > { %28232 = vmatmul.mubr.f32.gmra.mrb[12].mxu0 %v33642_v49  ;;  %40908 = vst [vmem:[#allocation12_spill] sm:$0xff] %v34167_v47 }
 0x17b   : > { %28234 = vmatprep.mubr.f32.mxu0 %v33658_v0  ;;  %v2645_v0 = vcombine.high %v2527_v48, %v2527_v48 }
 0x17e   : > { %28235 = vmatmul.mubr.f32.gmra.mrb[14].mxu0 %v33678_v28  ;;  %v34174_v28 = vrot.slane %v2527_v48, %v34154_v46 }
 0x17f   : > { %28237 = vmatprep.mubr.f32.mxu0 %v33697_v17 }
 0x180   : > { %40910 = vst [vmem:[#allocation14_spill] sm:$0xff] %v34174_v28 }
 0x182   : > { %28238 = vmatmul.mubr.f32.gmra.mrb[16].mxu0 %v33699_v25 }
 0x183   : > { %28240 = vmatprep.mubr.f32.mxu0 %v33701_v53  ;;  %v2526_v53 = vld [vmem:[#allocation2] sm:$0xff] }
 0x184   : > { %v2628_v61 = vcombine.high %v2526_v53, %v2526_v53  ;;  %v34157_v19 = vrot.slane %v2526_v53, %v34154_v46 }
 0x186   : > { %28241 = vmatmul.mubr.f32.gmra.mrb[18].mxu0 %v40896_v6  ;;  %40905 = vst [vmem:[#allocation9_spill] sm:$0xff] %v34157_v19  ;;  %v34160_v20 = vrot.slane %v2628_v61, %v34154_v46  ;;  %v34164_v22 = vcombine.high %v34157_v19, %v34157_v19  ;;  %v3333_v17 = vrot.slane %v34157_v19, %v34167_v47 }
 0x187   : > { %28243 = vmatprep.mubr.f32.mxu0 %v40897_v56  ;;  %v3816_v6 = vsub.f32 %v3814_v11, %v3815_v33  ;;  %v3823_v56 = vsub.f32 %v3821_v52, %v3822_v27 }
 0x188   : > { %40906 = vst [vmem:[#allocation10_spill] sm:$0xff] %v34160_v20  ;;  %40907 = vst [vmem:[#allocation11_spill] sm:$0xff] %v34164_v22  ;;  %v34171_v49 = vcombine.high %v34160_v20, %v34160_v20  ;;  %v3337_v25 = vrot.slane %v34164_v22, %v34167_v47 }
 0x18a   : > { %28244 = vmatmul.mubr.f32.gmra.mrb[20].mxu0 %v40898_v57  ;;  %40909 = vst [vmem:[#allocation13_spill] sm:$0xff] %v34171_v49  ;;  %v3587_v45 = vsel %vm3586_vm4, %v3337_v25, %v3333_v17  ;;  %v3817_v57 = vand.u32 4294901760, %v3816_v6 }
 0x18b   : > { %28246 = vmatprep.mubr.f32.mxu0 %v40899_v55  ;;  %v3824_v55 = vand.u32 4294901760, %v3823_v56 }
 0x18e   : > { %28247 = vmatmul.mubr.f32.gmra.mrb[22].mxu0 %v40900_v59  ;;  %v34238_v59 = vpack.c.bf16 %v3824_v55, %v3817_v57 }
 0x18f   : > { %28249 = vmatprep.mubr.f32.mxu0 %v40901_v50  ;;  %v34241_v50 = vpack.c.bf16 %v3821_v52, %v3814_v11 }
 0x190   : > { %30924 = vmatprep.subr.bf16.mxu1 %v34238_v59 }
 0x192   : > { %28250 = vmatmul.mubr.f32.gmra.mrb[24].mxu0 %v40902_v43  ;;  %v34246_v43 = vld [vmem:[%s40404_s2] ss:$0 sm:$0xff] }
 0x193   : > { %28252 = vmatprep.mubr.f32.mxu0 %v33866_v5  ;;  %v3341_v5 = vrot.slane %v34160_v20, %v34167_v47 }
 0x195   : > { %v3589_v37 = vsel %vm3588_vm5, %v3341_v5, %v3587_v45 }
 0x196   : > { %28253 = vmatmul.mubr.f32.gmra.mrb[26].mxu0 %v40903_v44 }
 0x197   : > { %28255 = vmatprep.mubr.f32.mxu0 %v33874_v13  ;;  %v34183_v13 = vrot.slane %v2645_v0, %v34154_v46 }
 0x199   : > { %40911 = vst [vmem:[#allocation15_spill] sm:$0xff] %v34183_v13  ;;  %v34196_v54 = vcombine.high %v34183_v13, %v34183_v13  ;;  %v3357_v7 = vrot.slane %v34183_v13, %v34167_v47 }
 0x19a   : > { %28256 = vmatmul.mubr.f32.gmra.mrb[28].mxu0 %v33878_v42  ;;  %v34187_v42 = vcombine.high %v34174_v28, %v34174_v28 }
 0x19b   : > { %28258 = vmatprep.mubr.f32.mxu0 %v33882_v41  ;;  %v3345_v41 = vrot.slane %v34171_v49, %v34167_v47  ;;  %40913 = vst [vmem:[#allocation17_spill] sm:$0xff] %v34196_v54  ;;  %v3361_v1 = vrot.slane %v34196_v54, %v34167_v47 }
 0x19c   : > { %40912 = vst [vmem:[#allocation16_spill] sm:$0xff] %v34187_v42  ;;  %v3353_v2 = vrot.slane %v34187_v42, %v34167_v47 }
 0x19d   : > { %v3591_v60 = vsel %vm3590_vm6, %v3345_v41, %v3589_v37 }
 0x19e   : > { %28259 = vmatmul.mubr.f32.gmra.mrb[30].mxu0 %v33886_v4  ;;  %v3349_v4 = vrot.slane %v34174_v28, %v34167_v47 }
 0x1a0   : > { %v3593_v3 = vsel %vm3592_vm7, %v3349_v4, %v3591_v60  ;;  %v34255_v60 = vpack.c.bf16 %v3822_v27, %v3815_v33 }
 0x1a1   : > { %v3595_v9 = vsel %vm3594_vm8, %v3353_v2, %v3593_v3 }
 0x1a2   : > { %v3597_v40 = vsel %vm3596_vm9, %v3357_v7, %v3595_v9  ;;  %40914 = vst [vmem:[#allocation21_spill] sm:$0xff] %v34255_v60 }
 0x1a3   : > { %v3599_v62 = vsel %vm3598_vm10, %v3361_v1, %v3597_v40 }
 0x1a4   : > { %v3649_v39 = vsel %vm2437_vm2, %v3599_v62, 0 }
 0x1a5   : > { %v34211_v58 = vand.u32 4294901760, %v3649_v39 }
 0x1a7   : > { %v34220_v12 = vsub.f32 %v3649_v39, %v34211_v58 }
 0x1a9   : > { %v40481_v10 = vand.u32 4294901760, %v34220_v12 }
 0x1ab   : > { %v3735_v14 = vsub.f32 %v34220_v12, %v40481_v10 }
 0x1ad   : > { %v3736_v8 = vand.u32 4294901760, %v3735_v14 }
 0x1af   : > { %28265 = vmatprep.mubr.f32.mxu1 %v3736_v8 }
 0x1bc   : > { %v27994_v51 = vpop.f32.mrb[0].mxu1 }
 0x1bd   : > { %v914_v26 = vpop.f32.mrb[1].mxu1  ;;  %v34267_v57 = vadd.f32 %v27994_v51, %v34246_v43 }
 0x1be   : > { %v34270_v55 = vadd.f32 %v34246_v43, %v914_v26 }
 0x1c3   : > { %v34230_v30 = vpop.f32.mrb[2].mxu1 }
 0x1c4   : > { %v34232_v16 = vpop.f32.mrb[3].mxu1 }
 0x1c7   : > { %v34234_v15 = vpop.f32.mrb[4].mxu1 }
 0x1c8   : > { %v34236_v32 = vpop.f32.mrb[5].mxu1  ;;  %v34283_v51 = vadd.f32 %v34234_v15, %v34246_v43 }
 0x1c9   : > { %v34295_v15 = vadd.f32 %v34246_v43, %v34236_v32 }
 0x235   : > { %v28215_v44 = vpop.f32.mrb[0].mxu0 }
 0x236   : > { %v32037_v23 = vadd.f32 %v28215_v44, %v34246_v43  ;;  %v2183_v24 = vpop.f32.mrb[1].mxu0 }
 0x237   : > { %v32038_v34 = vadd.f32 %v34246_v43, %v2183_v24 }
 0x238   : > { %v2374_v35 = vmul.f32 0.2, %v32037_v23 }
 0x239   : > { %v2373_v53 = vmul.f32 0.2, %v32038_v34  ;;  %v28218_v61 = vpop.f32.mrb[2].mxu0 }
 0x23a   : > { %v2406_v48 = vmax.f32 %v32037_v23, %v2374_v35  ;;  %v32039_v0 = vadd.f32 %v28218_v61, %v34246_v43  ;;  %v2195_v17 = vpop.f32.mrb[3].mxu0  ;;  %v34279_v35 = vadd.f32 %v34246_v43, %v34232_v16 }
 0x23b   : > { %v2405_v25 = vmax.f32 %v32038_v34, %v2373_v53  ;;  %v32040_v5 = vadd.f32 %v34246_v43, %v2195_v17  ;;  %v34275_v34 = vadd.f32 %v34230_v30, %v34246_v43 }
 0x23c   : > { %2495 = vst.msk [vmem:[#allocation2 + $0x21] sm:$0xff] %vm2437_vm2, %v2406_v48  ;;  %v2376_v41 = vmul.f32 0.2, %v32039_v0 }
 0x23d   : > { %2494 = vst.msk [vmem:[#allocation2 + $0x19] sm:$0xff] %vm2437_vm2, %v2405_v25  ;;  %v2375_v4 = vmul.f32 0.2, %v32040_v5  ;;  %v28221_v45 = vpop.f32.mrb[4].mxu0 }
 0x23e   : > { %v2408_v2 = vmax.f32 %v32039_v0, %v2376_v41  ;;  %v32041_v37 = vadd.f32 %v28221_v45, %v34246_v43  ;;  %v2207_v7 = vpop.f32.mrb[5].mxu0 }
 0x23f   : > { %v2407_v1 = vmax.f32 %v32040_v5, %v2375_v4  ;;  %v32042_v3 = vadd.f32 %v34246_v43, %v2207_v7 }
 0x240   : > { %2497 = vst.msk [vmem:[#allocation2 + $0x39] sm:$0xff] %vm2437_vm2, %v2408_v2  ;;  %v2378_v9 = vmul.f32 0.2, %v32041_v37 }
 0x241   : > { %2496 = vst.msk [vmem:[#allocation2 + $0x31] sm:$0xff] %vm2437_vm2, %v2407_v1  ;;  %v2377_v40 = vmul.f32 0.2, %v32042_v3  ;;  %v28224_v62 = vpop.f32.mrb[6].mxu0 }
 0x242   : > { %v2410_v39 = vmax.f32 %v32041_v37, %v2378_v9  ;;  %v32043_v31 = vadd.f32 %v28224_v62, %v34246_v43  ;;  %v2219_v18 = vpop.f32.mrb[7].mxu0 }
 0x243   : > { %v2409_v29 = vmax.f32 %v32042_v3, %v2377_v40  ;;  %v32044_v38 = vadd.f32 %v34246_v43, %v2219_v18 }
 0x244   : > { %2499 = vst.msk [vmem:[#allocation2 + $0x51] sm:$0xff] %vm2437_vm2, %v2410_v39  ;;  %v2380_v14 = vmul.f32 0.2, %v32043_v31 }
 0x245   : > { %2498 = vst.msk [vmem:[#allocation2 + $0x49] sm:$0xff] %vm2437_vm2, %v2409_v29  ;;  %v2379_v8 = vmul.f32 0.2, %v32044_v38  ;;  %v28227_v11 = vpop.f32.mrb[8].mxu0 }
 0x246   : > { %v2412_v52 = vmax.f32 %v32043_v31, %v2380_v14  ;;  %v32045_v33 = vadd.f32 %v28227_v11, %v34246_v43  ;;  %v2231_v27 = vpop.f32.mrb[9].mxu0 }
 0x247   : > { %v2411_v6 = vmax.f32 %v32044_v38, %v2379_v8  ;;  %v32046_v56 = vadd.f32 %v34246_v43, %v2231_v27 }
 0x248   : > { %v2532_v44 = vld [vmem:[#allocation2 + $0x30] sm:$0xff]  ;;  %2501 = vst.msk [vmem:[#allocation2 + $0x69] sm:$0xff] %vm2437_vm2, %v2412_v52  ;;  %v2382_v23 = vmul.f32 0.2, %v32045_v33  ;;  %v2533_v24 = vld [vmem:[#allocation2 + $0x38] sm:$0xff] }
 0x249   : > { %v2710_v53 = vcombine.high %v2532_v44, %v2532_v44  ;;  %v34286_v26 = vrot.slane %v2532_v44, %v34154_v46  ;;  %2500 = vst.msk [vmem:[#allocation2 + $0x61] sm:$0xff] %vm2437_vm2, %v2411_v6  ;;  %v2381_v61 = vmul.f32 0.2, %v32046_v56  ;;  %v28230_v48 = vpop.f32.mrb[10].mxu0  ;;  %v2727_v0 = vcombine.high %v2533_v24, %v2533_v24 }
 0x24a   : > { %v2414_v17 = vmax.f32 %v32045_v33, %v2382_v23  ;;  %v32047_v30 = vadd.f32 %v28230_v48, %v34246_v43  ;;  %v2243_v25 = vpop.f32.mrb[11].mxu0  ;;  %v34291_v16 = vrot.slane %v2533_v24, %v34154_v46 }
 0x24b   : > { %40915 = vst [vmem:[#allocation23_spill] sm:$0xff] %v34286_v26  ;;  %v2413_v5 = vmax.f32 %v32046_v56, %v2381_v61  ;;  %v32048_v41 = vadd.f32 %v34246_v43, %v2243_v25  ;;  %v34299_v4 = vrot.slane %v2710_v53, %v34154_v46  ;;  %v34303_v45 = vcombine.high %v34286_v26, %v34286_v26 }
 0x24c   : > { %40916 = vst [vmem:[#allocation18_spill] sm:$0xff] %v34291_v16  ;;  %2503 = vst.msk [vmem:[#allocation2 + $0x81] sm:$0xff] %vm2437_vm2, %v2414_v17  ;;  %v2384_v2 = vmul.f32 0.2, %v32047_v30  ;;  %v34307_v37 = vrot.slane %v2727_v0, %v34154_v46  ;;  %v34311_v32 = vcombine.high %v34291_v16, %v34291_v16  ;;  %v3365_v7 = vrot.slane %v34286_v26, %v34167_v47 }
 0x24d   : > { %40917 = vst [vmem:[#allocation19_spill] sm:$0xff] %v34299_v4  ;;  %40918 = vst [vmem:[#allocation20_spill] sm:$0xff] %v34303_v45  ;;  %v2383_v1 = vmul.f32 0.2, %v32048_v41  ;;  %v28233_v3 = vpop.f32.mrb[12].mxu0  ;;  %v34318_v9 = vcombine.high %v34299_v4, %v34299_v4  ;;  %v3369_v40 = vrot.slane %v34303_v45, %v34167_v47  ;;  %v3373_v62 = vrot.slane %v34299_v4, %v34167_v47 }
 0x24e   : > { %40919 = vst [vmem:[#allocation22_spill] sm:$0xff] %v34307_v37  ;;  %40920 = vst [vmem:[#allocation24_spill] sm:$0xff] %v34311_v32  ;;  %v2416_v39 = vmax.f32 %v32047_v30, %v2384_v2  ;;  %v32049_v31 = vadd.f32 %v28233_v3, %v34246_v43  ;;  %v2255_v18 = vpop.f32.mrb[13].mxu0  ;;  %v34327_v29 = vcombine.high %v34307_v37, %v34307_v37 }
 0x24f   : > { %2502 = vst.msk [vmem:[#allocation2 + $0x79] sm:$0xff] %vm2437_vm2, %v2413_v5  ;;  %40921 = vst [vmem:[#allocation25_spill] sm:$0xff] %v34318_v9  ;;  %v3381_v38 = vrot.slane %v34291_v16, %v34167_v47  ;;  %v2415_v14 = vmax.f32 %v32048_v41, %v2383_v1  ;;  %v32050_v8 = vadd.f32 %v34246_v43, %v2255_v18 }
 0x250   : > { %40922 = vst [vmem:[#allocation26_spill] sm:$0xff] %v34327_v29  ;;  %v3377_v11 = vrot.slane %v34318_v9, %v34167_v47  ;;  %v3385_v52 = vrot.slane %v34311_v32, %v34167_v47  ;;  %2505 = vst.msk [vmem:[#allocation2 + $0x99] sm:$0xff] %vm2437_vm2, %v2416_v39  ;;  %v2386_v33 = vmul.f32 0.2, %v32049_v31  ;;  %v3389_v27 = vrot.slane %v34307_v37, %v34167_v47  ;;  %v2538_v44 = vld [vmem:[#allocation2 + $0x60] sm:$0xff]  ;;  %v2539_v23 = vld [vmem:[#allocation2 + $0x68] sm:$0xff] }
 0x251   : > { %v3393_v6 = vrot.slane %v34327_v29, %v34167_v47  ;;  %v3600_v56 = vsel %vm3586_vm4, %v3369_v40, %v3365_v7  ;;  %2504 = vst.msk [vmem:[#allocation2 + $0x91] sm:$0xff] %vm2437_vm2, %v2415_v14  ;;  %v2385_v24 = vmul.f32 0.2, %v32050_v8  ;;  %v28236_v53 = vpop.f32.mrb[14].mxu0  ;;  %v2792_v48 = vcombine.high %v2538_v44, %v2538_v44 }
 0x252   : > { %v3601_v61 = vsel %vm3588_vm5, %v3373_v62, %v3600_v56  ;;  %v34345_v0 = vrot.slane %v2538_v44, %v34154_v46  ;;  %v2418_v17 = vmax.f32 %v32049_v31, %v2386_v33  ;;  %v32051_v30 = vadd.f32 %v28236_v53, %v34246_v43  ;;  %v2267_v25 = vpop.f32.mrb[15].mxu0 }
 0x253   : > { %v3602_v5 = vsel %vm3590_vm6, %v3377_v11, %v3601_v61  ;;  %v2809_v41 = vcombine.high %v2539_v23, %v2539_v23  ;;  %v2417_v2 = vmax.f32 %v32050_v8, %v2385_v24  ;;  %v32052_v7 = vadd.f32 %v34246_v43, %v2267_v25 }
 0x254   : > { %40923 = vst [vmem:[#allocation27_spill] sm:$0xff] %v34345_v0  ;;  %v3603_v1 = vsel %vm3592_vm7, %v3381_v38, %v3602_v5  ;;  %v34352_v3 = vrot.slane %v2792_v48, %v34154_v46  ;;  %2507 = vst.msk [vmem:[#allocation2 + $0xb1] sm:$0xff] %vm2437_vm2, %v2418_v17  ;;  %v2388_v40 = vmul.f32 0.2, %v32051_v30  ;;  %v34358_v39 = vcombine.high %v34345_v0, %v34345_v0 }
 0x255   : > { %v3604_v62 = vsel %vm3594_vm8, %v3385_v52, %v3603_v1  ;;  %v34361_v31 = vrot.slane %v2539_v23, %v34154_v46  ;;  %2506 = vst.msk [vmem:[#allocation2 + $0xa9] sm:$0xff] %vm2437_vm2, %v2417_v2  ;;  %v2387_v18 = vmul.f32 0.2, %v32052_v7  ;;  %v28239_v14 = vpop.f32.mrb[16].mxu0  ;;  %v34370_v11 = vrot.slane %v2809_v41, %v34154_v46 }
 0x256   : > { %40924 = vst [vmem:[#allocation28_spill] sm:$0xff] %v34352_v3  ;;  %40925 = vst [vmem:[#allocation29_spill] sm:$0xff] %v34358_v39  ;;  %v3605_v38 = vsel %vm3596_vm9, %v3389_v27, %v3604_v62  ;;  %v34367_v8 = vcombine.high %v34352_v3, %v34352_v3  ;;  %v2420_v52 = vmax.f32 %v32051_v30, %v2388_v40  ;;  %v2279_v56 = vpop.f32.mrb[17].mxu0 }
 0x257   : > { %40926 = vst [vmem:[#allocation30_spill] sm:$0xff] %v34361_v31  ;;  %40928 = vst [vmem:[#allocation32_spill] sm:$0xff] %v34370_v11  ;;  %v32053_v33 = vadd.f32 %v28239_v14, %v34246_v43  ;;  %v3606_v44 = vsel %vm3598_vm10, %v3393_v6, %v3605_v38  ;;  %v34376_v23 = vcombine.high %v34361_v31, %v34361_v31 }
 0x258   : > { %40927 = vst [vmem:[#allocation31_spill] sm:$0xff] %v34367_v8  ;;  %v2419_v24 = vmax.f32 %v32052_v7, %v2387_v18  ;;  %v32054_v27 = vadd.f32 %v34246_v43, %v2279_v56  ;;  %v3651_v53 = vsel %vm2437_vm2, %v3606_v44, 0  ;;  %v34382_v61 = vcombine.high %v34370_v11, %v34370_v11  ;;  %2509 = vst.msk [vmem:[#allocation2 + $0xc9] sm:$0xff] %vm2437_vm2, %v2420_v52  ;;  %v2544_v1 = vld [vmem:[#allocation2 + $0x90] sm:$0xff]  ;;  %v2545_v52 = vld [vmem:[#allocation2 + $0x98] sm:$0xff] }
 0x259   : > { %40929 = vst [vmem:[#allocation33_spill] sm:$0xff] %v34376_v23  ;;  %v2390_v48 = vmul.f32 0.2, %v32053_v33  ;;  %v34385_v17 = vand.u32 4294901760, %v3651_v53  ;;  %v3397_v6 = vrot.slane %v34345_v0, %v34167_v47  ;;  %v3401_v30 = vrot.slane %v34358_v39, %v34167_v47  ;;  %v28242_v5 = vpop.f32.mrb[18].mxu0 }
 0x25a   : > { %40930 = vst [vmem:[#allocation34_spill] sm:$0xff] %v34382_v61  ;;  %2508 = vst.msk [vmem:[#allocation2 + $0xc1] sm:$0xff] %vm2437_vm2, %v2419_v24  ;;  %v2389_v25 = vmul.f32 0.2, %v32054_v27  ;;  %v3405_v41 = vrot.slane %v34352_v3, %v34167_v47  ;;  %v3409_v2 = vrot.slane %v34367_v8, %v34167_v47  ;;  %v3413_v7 = vrot.slane %v34361_v31, %v34167_v47  ;;  %v2291_v18 = vpop.f32.mrb[19].mxu0 }
 0x25b   : > { %40931 = vst [vmem:[#allocation35_spill] sm:$0xff] %v34385_v17  ;;  %v2422_v40 = vmax.f32 %v32053_v33, %v2390_v48  ;;  %v32055_v62 = vadd.f32 %v28242_v5, %v34246_v43  ;;  %v34400_v14 = vsub.f32 %v3651_v53, %v34385_v17  ;;  %v3417_v38 = vrot.slane %v34376_v23, %v34167_v47 }
 0x25c   : > { %v2421_v56 = vmax.f32 %v32054_v27, %v2389_v25  ;;  %v32056_v44 = vadd.f32 %v34246_v43, %v2291_v18  ;;  %v3421_v24 = vrot.slane %v34370_v11, %v34167_v47  ;;  %v3425_v21 = vrot.slane %v34382_v61, %v34167_v47 }
 0x25d   : > { %40932 = vst [vmem:[#allocation36_spill] sm:$0xff] %v34400_v14  ;;  %2511 = vst.msk [vmem:[#allocation2 + $0xe1] sm:$0xff] %vm2437_vm2, %v2422_v40  ;;  %v2392_v33 = vmul.f32 0.2, %v32055_v62  ;;  %v34411_v48 = vand.u32 4294901760, %v34400_v14  ;;  %v3607_v53 = vsel %vm3586_vm4, %v3401_v30, %v3397_v6  ;;  %v2874_v5 = vcombine.high %v2544_v1, %v2544_v1  ;;  %v28245_v25 = vpop.f32.mrb[20].mxu0 }
 0x25e   : > { %2510 = vst.msk [vmem:[#allocation2 + $0xd9] sm:$0xff] %vm2437_vm2, %v2421_v56  ;;  %v2391_v27 = vmul.f32 0.2, %v32056_v44  ;;  %v3608_v18 = vsel %vm3588_vm5, %v3405_v41, %v3607_v53  ;;  %v34417_v10 = vrot.slane %v2544_v1, %v34154_v46  ;;  %v2891_v54 = vcombine.high %v2545_v52, %v2545_v52  ;;  %v2303_v42 = vpop.f32.mrb[21].mxu0 }
 0x25f   : > { %40933 = vst [vmem:[#allocation37_spill] sm:$0xff] %v34411_v48  ;;  %v2424_v13 = vmax.f32 %v32055_v62, %v2392_v33  ;;  %v32057_v40 = vadd.f32 %v28245_v25, %v34246_v43  ;;  %v3745_v28 = vsub.f32 %v34400_v14, %v34411_v48  ;;  %v3609_v6 = vsel %vm3590_vm6, %v3409_v2, %v3608_v18 }
 0x260   : > { %v2423_v30 = vmax.f32 %v32056_v44, %v2391_v27  ;;  %v32058_v56 = vadd.f32 %v34246_v43, %v2303_v42  ;;  %v3610_v0 = vsel %vm3592_vm7, %v3413_v7, %v3609_v6  ;;  %v34426_v41 = vrot.slane %v2874_v5, %v34154_v46 }
 0x261   : > { %2513 = vst.msk [vmem:[#allocation2 + $0xf9] sm:$0xff] %vm2437_vm2, %v2424_v13  ;;  %v2394_v1 = vmul.f32 0.2, %v32057_v40  ;;  %v34429_v62 = vand.u32 4294901760, %v3745_v28  ;;  %v3611_v33 = vsel %vm3594_vm8, %v3417_v38, %v3610_v0  ;;  %v34434_v53 = vcombine.high %v34417_v10, %v34417_v10  ;;  %v28248_v42 = vpop.f32.mrb[22].mxu0 }
 0x262   : > { %2512 = vst.msk [vmem:[#allocation2 + $0xf1] sm:$0xff] %vm2437_vm2, %v2423_v30  ;;  %v2393_v2 = vmul.f32 0.2, %v32058_v56  ;;  %v3612_v7 = vsel %vm3596_vm9, %v3421_v24, %v3611_v33  ;;  %v34440_v44 = vcombine.high %v34426_v41, %v34426_v41  ;;  %v34443_v13 = vrot.slane %v2545_v52, %v34154_v46  ;;  %v2315_v38 = vpop.f32.mrb[23].mxu0 }
 0x263   : > { %40934 = vst [vmem:[#allocation38_spill] sm:$0xff] %v34429_v62  ;;  %v2426_v28 = vmax.f32 %v32057_v40, %v2394_v1  ;;  %v32059_v0 = vadd.f32 %v28248_v42, %v34246_v43  ;;  %28266 = vmatmul.mubr.f32.vlgmr.msra.gmra.mrb[6].mxu1 %v34429_v62  ;;  %v3613_v5 = vsel %vm3598_vm10, %v3425_v21, %v3612_v7 }
 0x264   : > { %v34449_v27 = vrot.slane %v2891_v54, %v34154_v46  ;;  %v2425_v25 = vmax.f32 %v32058_v56, %v2393_v2  ;;  %v32060_v24 = vadd.f32 %v34246_v43, %v2315_v38  ;;  %v3653_v18 = vsel %vm2437_vm2, %v3613_v5, 0  ;;  %30926 = vmatpush3.bf16.msra.mxu1 %v34238_v59  ;;  %v2550_v5 = vld [vmem:[#allocation2 + $0xc0] sm:$0xff] }
 0x265   : > { %v34455_v52 = vcombine.high %v34443_v13, %v34443_v13  ;;  %2515 = vst.msk [vmem:[#allocation2 + $0x111] sm:$0xff] %vm2437_vm2, %v2426_v28  ;;  %v2396_v40 = vmul.f32 0.2, %v32059_v0  ;;  %v34459_v6 = vand.u32 4294901760, %v3653_v18  ;;  %v3429_v54 = vrot.slane %v34417_v10, %v34167_v47  ;;  %30928 = vmatprep.subr.bf16.mxu1 %v34241_v50  ;;  %v28251_v56 = vpop.f32.mrb[24].mxu0 }
 0x266   : > { %v34463_v21 = vcombine.high %v34449_v27, %v34449_v27  ;;  %2514 = vst.msk [vmem:[#allocation2 + $0x109] sm:$0xff] %vm2437_vm2, %v2425_v25  ;;  %v2395_v30 = vmul.f32 0.2, %v32060_v24  ;;  %v3433_v59 = vrot.slane %v34434_v53, %v34167_v47  ;;  %v3437_v1 = vrot.slane %v34426_v41, %v34167_v47  ;;  %v2327_v7 = vpop.f32.mrb[25].mxu0 }
 0x267   : > { %40935 = vst [vmem:[#allocation39_spill] sm:$0xff] %v34459_v6  ;;  %v3441_v33 = vrot.slane %v34440_v44, %v34167_v47  ;;  %v2428_v2 = vmax.f32 %v32059_v0, %v2396_v40  ;;  %v32061_v42 = vadd.f32 %v28251_v56, %v34246_v43  ;;  %v34477_v28 = vsub.f32 %v3653_v18, %v34459_v6 }
 0x268   : > { %v3445_v38 = vrot.slane %v34443_v13, %v34167_v47  ;;  %v2427_v25 = vmax.f32 %v32060_v24, %v2395_v30  ;;  %v32062_v62 = vadd.f32 %v34246_v43, %v2327_v7  ;;  %v3449_v26 = vrot.slane %v34455_v52, %v34167_v47 }
 0x269   : > { %40936 = vst [vmem:[#allocation40_spill] sm:$0xff] %v34477_v28  ;;  %v3453_v49 = vrot.slane %v34449_v27, %v34167_v47  ;;  %2517 = vst.msk [vmem:[#allocation2 + $0x129] sm:$0xff] %vm2437_vm2, %v2428_v2  ;;  %v2398_v0 = vmul.f32 0.2, %v32061_v42  ;;  %v34488_v40 = vand.u32 4294901760, %v34477_v28  ;;  %v3457_v18 = vrot.slane %v34463_v21, %v34167_v47  ;;  %v28254_v24 = vpop.f32.mrb[26].mxu0 }
 0x26a   : > { %v3614_v56 = vsel %vm3586_vm4, %v3433_v59, %v3429_v54  ;;  %2516 = vst.msk [vmem:[#allocation2 + $0x121] sm:$0xff] %vm2437_vm2, %v2427_v25  ;;  %v2397_v43 = vmul.f32 0.2, %v32062_v62  ;;  %v2956_v7 = vcombine.high %v2550_v5, %v2550_v5  ;;  %v34496_v61 = vrot.slane %v2550_v5, %v34154_v46  ;;  %v2339_v11 = vpop.f32.mrb[27].mxu0  ;;  %v2551_v54 = vld [vmem:[#allocation2 + $0xc8] sm:$0xff] }
 0x26b   : > { %40937 = vst [vmem:[#allocation41_spill] sm:$0xff] %v34488_v40  ;;  %v3615_v30 = vsel %vm3588_vm5, %v3437_v1, %v3614_v56  ;;  %v2430_v2 = vmax.f32 %v32061_v42, %v2398_v0  ;;  %v32064_v20 = vadd.f32 %v28254_v24, %v34267_v57  ;;  %v3755_v48 = vsub.f32 %v34477_v28, %v34488_v40 }
 0x26c   : > { %v3616_v23 = vsel %vm3590_vm6, %v3441_v33, %v3615_v30  ;;  %v2429_v59 = vmax.f32 %v32062_v62, %v2397_v43  ;;  %v32066_v25 = vadd.f32 %v2339_v11, %v34270_v55  ;;  %v34505_v1 = vrot.slane %v2956_v7, %v34154_v46 }
 0x26d   : > { %v3617_v31 = vsel %vm3592_vm7, %v3445_v38, %v3616_v23  ;;  %2519 = vst.msk [vmem:[#allocation2 + $0x141] sm:$0xff] %vm2437_vm2, %v2430_v2  ;;  %v2400_v42 = vmul.f32 0.2, %v32064_v20  ;;  %v34508_v5 = vand.u32 4294901760, %v3755_v48  ;;  %v34513_v0 = vcombine.high %v34496_v61, %v34496_v61  ;;  %v28257_v55 = vpop.f32.mrb[28].mxu0 }
 0x26e   : > { %v3618_v57 = vsel %vm3594_vm8, %v3449_v26, %v3617_v31  ;;  %2518 = vst.msk [vmem:[#allocation2 + $0x139] sm:$0xff] %vm2437_vm2, %v2429_v59  ;;  %v2399_v62 = vmul.f32 0.2, %v32066_v25  ;;  %v34519_v23 = vcombine.high %v34505_v1, %v34505_v1  ;;  %v2973_v33 = vcombine.high %v2551_v54, %v2551_v54  ;;  %v2351_v31 = vpop.f32.mrb[29].mxu0 }
 0x26f   : > { %40938 = vst [vmem:[#allocation42_spill] sm:$0xff] %v34508_v5  ;;  %v3619_v11 = vsel %vm3596_vm9, %v3453_v49, %v3618_v57  ;;  %v2432_v38 = vmax.f32 %v32064_v20, %v2400_v42  ;;  %28268 = vmatprep.mubr.f32.mxu1 %v34508_v5  ;;  %v32068_v26 = vadd.f32 %v28257_v55, %v34275_v34 }
 0x270   : > { %v3620_v48 = vsel %vm3598_vm10, %v3457_v18, %v3619_v11  ;;  %v34525_v56 = vrot.slane %v2551_v54, %v34154_v46  ;;  %v2431_v43 = vmax.f32 %v32066_v25, %v2399_v62  ;;  %v32070_v24 = vadd.f32 %v2351_v31, %v34279_v35 }
 0x271   : > { %v3655_v49 = vsel %vm2437_vm2, %v3620_v48, 0  ;;  %v34530_v30 = vrot.slane %v2973_v33, %v34154_v46  ;;  %2521 = vst.msk [vmem:[#allocation2 + $0x159] sm:$0xff] %vm2437_vm2, %v2432_v38  ;;  %v2402_v20 = vmul.f32 0.2, %v32068_v26  ;;  %v3461_v18 = vrot.slane %v34496_v61, %v34167_v47  ;;  %v28260_v2 = vpop.f32.mrb[30].mxu0  ;;  %v2556_v33 = vld [vmem:[#allocation2 + $0xf0] sm:$0xff] }
 0x272   : > { %v34533_v7 = vand.u32 4294901760, %v3655_v49  ;;  %v34537_v34 = vcombine.high %v34525_v56, %v34525_v56  ;;  %2520 = vst.msk [vmem:[#allocation2 + $0x151] sm:$0xff] %vm2437_vm2, %v2431_v43  ;;  %v2401_v35 = vmul.f32 0.2, %v32070_v24  ;;  %v3465_v59 = vrot.slane %v34513_v0, %v34167_v47  ;;  %v2363_v55 = vpop.f32.mrb[31].mxu0 }
 0x273   : > { %v34544_v54 = vcombine.high %v34530_v30, %v34530_v30  ;;  %v3469_v25 = vrot.slane %v34505_v1, %v34167_v47  ;;  %v2434_v42 = vmax.f32 %v32068_v26, %v2402_v20  ;;  %v32072_v57 = vadd.f32 %v28260_v2, %v34283_v51  ;;  %v2557_v26 = vld [vmem:[#allocation2 + $0xf8] sm:$0xff] }
 0x274   : > { %40939 = vst [vmem:[#allocation43_spill] sm:$0xff] %v34533_v7  ;;  %v34552_v62 = vsub.f32 %v3655_v49, %v34533_v7  ;;  %v3473_v11 = vrot.slane %v34519_v23, %v34167_v47  ;;  %v2433_v38 = vmax.f32 %v32070_v24, %v2401_v35  ;;  %v32074_v31 = vadd.f32 %v2363_v55, %v34295_v15 }
 0x275   : > { %v3477_v48 = vrot.slane %v34525_v56, %v34167_v47  ;;  %v3481_v43 = vrot.slane %v34537_v34, %v34167_v47  ;;  %2523 = vst.msk [vmem:[#allocation2 + $0x171] sm:$0xff] %vm2437_vm2, %v2434_v42  ;;  %v2404_v51 = vmul.f32 0.2, %v32072_v57  ;;  %v3485_v20 = vrot.slane %v34530_v30, %v34167_v47 }
 0x276   : > { %40940 = vst [vmem:[#allocation44_spill] sm:$0xff] %v34552_v62  ;;  %v34563_v49 = vand.u32 4294901760, %v34552_v62  ;;  %v3489_v24 = vrot.slane %v34544_v54, %v34167_v47  ;;  %2522 = vst.msk [vmem:[#allocation2 + $0x169] sm:$0xff] %vm2437_vm2, %v2433_v38  ;;  %v2403_v15 = vmul.f32 0.2, %v32074_v31  ;;  %v3621_v35 = vsel %vm3586_vm4, %v3465_v59, %v3461_v18 }
 0x277   : > { %v3038_v2 = vcombine.high %v2556_v33, %v2556_v33  ;;  %v34572_v55 = vrot.slane %v2556_v33, %v34154_v46  ;;  %v2436_v42 = vmax.f32 %v32072_v57, %v2404_v51  ;;  %v3622_v40 = vsel %vm3588_vm5, %v3469_v25, %v3621_v35 }
 0x278   : > { %40941 = vst [vmem:[#allocation45_spill] sm:$0xff] %v34563_v49  ;;  %v3765_v5 = vsub.f32 %v34552_v62, %v34563_v49  ;;  %v3055_v29 = vcombine.high %v2557_v26, %v2557_v26  ;;  %v2435_v37 = vmax.f32 %v32074_v31, %v2403_v15  ;;  %v3623_v8 = vsel %vm3590_vm6, %v3473_v11, %v3622_v40  ;;  %v2563_v15 = vld [vmem:[#allocation2 + $0x128] sm:$0xff] }
 0x279   : > { %v34579_v32 = vrot.slane %v3038_v2, %v34154_v46  ;;  %v34583_v18 = vcombine.high %v34572_v55, %v34572_v55  ;;  %2525 = vst.msk [vmem:[#allocation2 + $0x189] sm:$0xff] %vm2437_vm2, %v2436_v42  ;;  %v3624_v57 = vsel %vm3592_vm7, %v3477_v48, %v3623_v8  ;;  %v34590_v33 = vrot.slane %v2557_v26, %v34154_v46  ;;  %v2562_v48 = vld [vmem:[#allocation2 + $0x120] sm:$0xff]  ;;  %v2568_v35 = vld [vmem:[#allocation2 + $0x150] sm:$0xff] }
 0x27a   : > { %v34586_v59 = vand.u32 4294901760, %v3765_v5  ;;  %v34593_v25 = vrot.slane %v3055_v29, %v34154_v46  ;;  %2524 = vst.msk [vmem:[#allocation2 + $0x181] sm:$0xff] %vm2437_vm2, %v2435_v37  ;;  %v3625_v40 = vsel %vm3594_vm8, %v3481_v43, %v3624_v57  ;;  %v3493_v5 = vrot.slane %v34572_v55, %v34167_v47 }
 0x27b   : > { %v34599_v11 = vcombine.high %v34579_v32, %v34579_v32  ;;  %v3497_v8 = vrot.slane %v34583_v18, %v34167_v47  ;;  %v3626_v38 = vsel %vm3596_vm9, %v3485_v20, %v3625_v40  ;;  %v34609_v29 = vcombine.high %v34590_v33, %v34590_v33 }
 0x27c   : > { %40942 = vst [vmem:[#allocation46_spill] sm:$0xff] %v34586_v59  ;;  %28269 = vmatmul.mubr.f32.gmra.mrb[8].mxu1 %v34586_v59  ;;  %v34613_v37 = vcombine.high %v34593_v25, %v34593_v25  ;;  %v3501_v31 = vrot.slane %v34579_v32, %v34167_v47  ;;  %v3627_v43 = vsel %vm3598_vm10, %v3489_v24, %v3626_v38 }
 0x27d   : > { %v3505_v26 = vrot.slane %v34599_v11, %v34167_v47  ;;  %v3509_v51 = vrot.slane %v34590_v33, %v34167_v47  ;;  %v3517_v20 = vrot.slane %v34593_v25, %v34167_v47  ;;  %v3657_v2 = vsel %vm2437_vm2, %v3627_v43, 0 }
 0x27e   : > { %v3513_v42 = vrot.slane %v34609_v29, %v34167_v47  ;;  %v3521_v57 = vrot.slane %v34613_v37, %v34167_v47  ;;  %v3628_v24 = vsel %vm3586_vm4, %v3497_v8, %v3493_v5  ;;  %v34630_v40 = vand.u32 4294901760, %v3657_v2 }
 0x27f   : > { %v3629_v38 = vsel %vm3588_vm5, %v3501_v31, %v3628_v24  ;;  %v3120_v59 = vcombine.high %v2562_v48, %v2562_v48  ;;  %v34634_v49 = vrot.slane %v2562_v48, %v34154_v46  ;;  %v3137_v39 = vcombine.high %v2563_v15, %v2563_v15 }
 0x280   : > { %40943 = vst [vmem:[#allocation47_spill] sm:$0xff] %v34630_v40  ;;  %v3630_v3 = vsel %vm3590_vm6, %v3505_v26, %v3629_v38  ;;  %v34638_v43 = vrot.slane %v2563_v15, %v34154_v46  ;;  %v3202_v16 = vcombine.high %v2568_v35, %v2568_v35  ;;  %v34641_v9 = vsub.f32 %v3657_v2, %v34630_v40 }
 0x281   : > { %v3631_v5 = vsel %vm3592_vm7, %v3509_v51, %v3630_v3  ;;  %v34645_v8 = vrot.slane %v3120_v59, %v34154_v46  ;;  %v34649_v31 = vcombine.high %v34634_v49, %v34634_v49  ;;  %v34653_v26 = vrot.slane %v3137_v39, %v34154_v46 }
 0x282   : > { %40944 = vst [vmem:[#allocation48_spill] sm:$0xff] %v34638_v43  ;;  %40945 = vst [vmem:[#allocation49_spill] sm:$0xff] %v34641_v9  ;;  %v3632_v48 = vsel %vm3594_vm8, %v3513_v42, %v3631_v5  ;;  %v34657_v15 = vcombine.high %v34638_v43, %v34638_v43  ;;  %v3525_v2 = vrot.slane %v34634_v49, %v34167_v47  ;;  %v34662_v3 = vand.u32 4294901760, %v34641_v9 }
 0x283   : > { %40946 = vst [vmem:[#allocation50_spill] sm:$0xff] %v34653_v26  ;;  %v3633_v59 = vsel %vm3596_vm9, %v3517_v20, %v3632_v48  ;;  %v34667_v51 = vcombine.high %v34645_v8, %v34645_v8  ;;  %v3529_v39 = vrot.slane %v34649_v31, %v34167_v47  ;;  %v34674_v24 = vcombine.high %v34653_v26, %v34653_v26 }
 0x284   : > { %40947 = vst [vmem:[#allocation51_spill] sm:$0xff] %v34657_v15  ;;  %40948 = vst [vmem:[#allocation52_spill] sm:$0xff] %v34662_v3  ;;  %v3634_v42 = vsel %vm3598_vm10, %v3521_v57, %v3633_v59  ;;  %v3533_v38 = vrot.slane %v34645_v8, %v34167_v47  ;;  %v3541_v5 = vrot.slane %v34638_v43, %v34167_v47  ;;  %v2569_v59 = vld [vmem:[#allocation2 + $0x158] sm:$0xff] }
 0x285   : > { %40949 = vst [vmem:[#allocation53_spill] sm:$0xff] %v34674_v24  ;;  %v3775_v20 = vsub.f32 %v34641_v9, %v34662_v3  ;;  %v3659_v48 = vsel %vm2437_vm2, %v3634_v42, 0  ;;  %v3537_v4 = vrot.slane %v34667_v51, %v34167_v47  ;;  %v3545_v57 = vrot.slane %v34657_v15, %v34167_v47 }
 0x286   : > { %v34687_v62 = vand.u32 4294901760, %v3659_v48  ;;  %v3549_v45 = vrot.slane %v34653_v26, %v34167_v47  ;;  %v3553_v43 = vrot.slane %v34674_v24, %v34167_v47  ;;  %v3635_v22 = vsel %vm3586_vm4, %v3529_v39, %v3525_v2 }
 0x287   : > { %v34694_v3 = vand.u32 4294901760, %v3775_v20  ;;  %v3636_v42 = vsel %vm3588_vm5, %v3533_v38, %v3635_v22  ;;  %v34698_v9 = vrot.slane %v2568_v35, %v34154_v46  ;;  %v34701_v15 = vrot.slane %v3202_v16, %v34154_v46 }
 0x288   : > { %40950 = vst [vmem:[#allocation54_spill] sm:$0xff] %v34687_v62  ;;  %v34704_v19 = vsub.f32 %v3659_v48, %v34687_v62  ;;  %v3637_v26 = vsel %vm3590_vm6, %v3537_v4, %v3636_v42  ;;  %v3219_v60 = vcombine.high %v2569_v59, %v2569_v59  ;;  %v34708_v24 = vrot.slane %v2569_v59, %v34154_v46 }
 0x289   : > { %40951 = vst [vmem:[#allocation55_spill] sm:$0xff] %v34694_v3  ;;  %28271 = vmatprep.mubr.f32.mxu1 %v34694_v3  ;;  %v3638_v2 = vsel %vm3592_vm7, %v3541_v5, %v3637_v26  ;;  %v34714_v22 = vcombine.high %v34698_v9, %v34698_v9  ;;  %v34718_v16 = vcombine.high %v34701_v15, %v34701_v15 }
 0x28a   : > { %40952 = vst [vmem:[#allocation56_spill] sm:$0xff] %v34704_v19  ;;  %v3557_v35 = vrot.slane %v34698_v9, %v34167_v47  ;;  %v34723_v4 = vand.u32 4294901760, %v34704_v19  ;;  %v3639_v39 = vsel %vm3594_vm8, %v3545_v57, %v3638_v2  ;;  %v34727_v38 = vrot.slane %v3219_v60, %v34154_v46 }
 0x28b   : > { %40953 = vst [vmem:[#allocation57_spill] sm:$0xff] %v34718_v16  ;;  %v34731_v26 = vcombine.high %v34708_v24, %v34708_v24  ;;  %v3640_v5 = vsel %vm3596_vm9, %v3549_v45, %v3639_v39  ;;  %v3561_v20 = vrot.slane %v34714_v22, %v34167_v47  ;;  %v3565_v48 = vrot.slane %v34701_v15, %v34167_v47 }
 0x28c   : > { %40954 = vst [vmem:[#allocation58_spill] sm:$0xff] %v34723_v4  ;;  %v3569_v59 = vrot.slane %v34718_v16, %v34167_v47  ;;  %v3785_v57 = vsub.f32 %v34704_v19, %v34723_v4  ;;  %v3641_v60 = vsel %vm3598_vm10, %v3553_v43, %v3640_v5  ;;  %v34746_v2 = vcombine.high %v34727_v38, %v34727_v38 }
 0x28d   : > { %v3661_v42 = vsel %vm2437_vm2, %v3641_v60, 0  ;;  %v3642_v45 = vsel %vm3586_vm4, %v3561_v20, %v3557_v35  ;;  %v3573_v46 = vrot.slane %v34708_v24, %v34167_v47  ;;  %v3577_v43 = vrot.slane %v34731_v26, %v34167_v47 }
 0x28e   : > { %v34749_v39 = vand.u32 4294901760, %v3785_v57  ;;  %v34751_v3 = vand.u32 4294901760, %v3661_v42  ;;  %v3643_v16 = vsel %vm3588_vm5, %v3565_v48, %v3642_v45  ;;  %v3581_v35 = vrot.slane %v34727_v38, %v34167_v47 }
 0x28f   : > { %v3644_v5 = vsel %vm3590_vm6, %v3569_v59, %v3643_v16  ;;  %v3585_v57 = vrot.slane %v34746_v2, %v34167_v47 }
 0x290   : > { %40955 = vst [vmem:[#allocation59_spill] sm:$0xff] %v34749_v39  ;;  %40956 = vst [vmem:[#allocation60_spill] sm:$0xff] %v34751_v3  ;;  %28272 = vmatmul.mubr.f32.gmra.mrb[10].mxu1 %v34749_v39  ;;  %v34761_v60 = vsub.f32 %v3661_v42, %v34751_v3  ;;  %v3645_v20 = vsel %vm3592_vm7, %v3573_v46, %v3644_v5 }
 0x291   : > { %v3646_v48 = vsel %vm3594_vm8, %v3577_v43, %v3645_v20 }
 0x292   : > { %40957 = vst [vmem:[#allocation61_spill] sm:$0xff] %v34761_v60  ;;  %v34770_v45 = vand.u32 4294901760, %v34761_v60  ;;  %v3647_v16 = vsel %vm3596_vm9, %v3581_v35, %v3646_v48 }
 0x293   : > { %v3648_v59 = vsel %vm3598_vm10, %v3585_v57, %v3647_v16  ;;  %v34793_v57 = vsub.s32 0, %v34151_v36 }
 0x294   : > { %40958 = vst [vmem:[#allocation62_spill] sm:$0xff] %v34770_v45  ;;  %v3795_v42 = vsub.f32 %v34761_v60, %v34770_v45  ;;  %v3663_v39 = vsel %vm2437_vm2, %v3648_v59, 0 }
 0x295   : > { %v34777_v4 = vand.u32 4294901760, %v3663_v39  ;;  %40964 = vst [vmem:[#allocation68_spill] sm:$0xff] %v34793_v57  ;;  %v34803_v48 = vrot.slane %v34426_v41, %v34793_v57  ;;  %v4524_v16 = vrot.slane %v34417_v10, %v34793_v57  ;;  %v34810_v36 = vrot.slane %v34440_v44, %v34793_v57 }
 0x296   : > { %v34779_v46 = vand.u32 4294901760, %v3795_v42  ;;  %v34819_v41 = vrot.slane %v34443_v13, %v34793_v57  ;;  %v34825_v44 = vrot.slane %v34513_v0, %v34793_v57  ;;  %v34836_v13 = vrot.slane %v34505_v1, %v34793_v57 }
 0x297   : > { %40959 = vst [vmem:[#allocation63_spill] sm:$0xff] %v34777_v4  ;;  %v34782_v5 = vsub.f32 %v3663_v39, %v34777_v4  ;;  %v34799_v39 = vrot.slane %v34434_v53, %v34793_v57  ;;  %v34841_v42 = vrot.slane %v34449_v27, %v34793_v57  ;;  %v34853_v1 = vrot.slane %v34463_v21, %v34793_v57 }
 0x298   : > { %40960 = vst [vmem:[#allocation64_spill] sm:$0xff] %v34779_v46  ;;  %28274 = vmatprep.mubr.f32.mxu1 %v34779_v46  ;;  %v40974_v46 = vld [vmem:[#allocation19_spill] sm:$0xff] }
 0x299   : > { %40961 = vst [vmem:[#allocation65_spill] sm:$0xff] %v34782_v5  ;;  %v34786_v43 = vand.u32 4294901760, %v34782_v5  ;;  %v4702_v53 = vsel %vm3586_vm4, %v34799_v39, %v4524_v16 }
 0x29a   : > { %v4703_v10 = vsel %vm3588_vm5, %v34803_v48, %v4702_v53 }
 0x29b   : > { %40962 = vst [vmem:[#allocation66_spill] sm:$0xff] %v34786_v43  ;;  %v3805_v35 = vsub.f32 %v34782_v5, %v34786_v43  ;;  %v4704_v59 = vsel %vm3590_vm6, %v34810_v36, %v4703_v10  ;;  %v34874_v10 = vrot.slane %v34583_v18, %v34793_v57 }
 0x29c   : > { %v4705_v0 = vsel %vm3592_vm7, %v34819_v41, %v4704_v59  ;;  %v34879_v59 = vrot.slane %v34537_v34, %v34793_v57  ;;  %v34897_v34 = vrot.slane %v34599_v11, %v34793_v57 }
 0x29d   : > { %v34790_v20 = vand.u32 4294901760, %v3805_v35  ;;  %v34849_v35 = vrot.slane %v34519_v23, %v34793_v57  ;;  %v34868_v23 = vrot.slane %v34525_v56, %v34793_v57  ;;  %v34885_v56 = vrot.slane %v34579_v32, %v34793_v57 }
 0x29f   : > { %40963 = vst [vmem:[#allocation67_spill] sm:$0xff] %v34790_v20  ;;  %28275 = vmatmul.mubr.f32.gmra.mrb[12].mxu1 %v34790_v20 }
 0x2a0   : > { %28281 = vmatprep.mubr.f32.mxu1 %v34211_v58 }
 0x2a3   : > { %28282 = vmatmul.mubr.f32.vlgmr.msra.gmra.mrb[6].mxu1 %v34385_v17 }
 0x2a4   : > { %30930 = vmatpush3.bf16.msra.mxu1 %v34241_v50  ;;  %28284 = vmatprep.mubr.f32.mxu1 %v34459_v6  ;;  %v34830_v50 = vrot.slane %v34455_v52, %v34793_v57  ;;  %v4556_v52 = vrot.slane %v34496_v61, %v34793_v57 }
 0x2a5   : > { %30932 = vmatprep.subr.bf16.mxu1 %v34222_v63 }
 0x2a6   : > { %v4706_v16 = vsel %vm3594_vm8, %v34830_v50, %v4705_v0  ;;  %v4709_v53 = vsel %vm3586_vm4, %v34825_v44, %v4556_v52  ;;  %v34889_v52 = vrot.slane %v34530_v30, %v34793_v57 }
 0x2a7   : > { %28285 = vmatmul.mubr.f32.gmra.mrb[8].mxu1 %v34533_v7  ;;  %v4707_v27 = vsel %vm3596_vm9, %v34841_v42, %v4706_v16  ;;  %v4710_v21 = vsel %vm3588_vm5, %v34836_v13, %v4709_v53  ;;  %v4588_v16 = vrot.slane %v34572_v55, %v34793_v57 }
 0x2a8   : > { %28287 = vmatprep.mubr.f32.mxu1 %v34630_v40  ;;  %v34864_v61 = vsel %vm3598_vm10, %v34853_v1, %v4707_v27  ;;  %v4711_v0 = vsel %vm3590_vm6, %v34849_v35, %v4710_v21  ;;  %v34901_v27 = vrot.slane %v34544_v54, %v34793_v57  ;;  %v34917_v54 = vrot.slane %v34590_v33, %v34793_v57 }
 0x2a9   : > { %40965 = vst [vmem:[#allocation69_spill] sm:$0xff] %v34864_v61  ;;  %v4712_v18 = vsel %vm3592_vm7, %v34868_v23, %v4711_v0  ;;  %v4716_v53 = vsel %vm3586_vm4, %v34874_v10, %v4588_v16  ;;  %v34923_v21 = vrot.slane %v34609_v29, %v34793_v57  ;;  %v34933_v16 = vrot.slane %v34593_v25, %v34793_v57 }
 0x2aa   : > { %v4713_v32 = vsel %vm3594_vm8, %v34879_v59, %v4712_v18  ;;  %v4717_v11 = vsel %vm3588_vm5, %v34885_v56, %v4716_v53  ;;  %v34929_v18 = vrot.slane %v34649_v31, %v34793_v57  ;;  %v34944_v29 = vrot.slane %v34613_v37, %v34793_v57  ;;  %v40967_v53 = vld [vmem:[#allocation21_spill] sm:$0xff] }
 0x2ab   : > { %28288 = vmatmul.mubr.f32.gmra.mrb[10].mxu1 %v34687_v62  ;;  %v4714_v30 = vsel %vm3596_vm9, %v34889_v52, %v4713_v32  ;;  %v4718_v0 = vsel %vm3590_vm6, %v34897_v34, %v4717_v11  ;;  %v34939_v32 = vrot.slane %v34645_v8, %v34793_v57  ;;  %v4620_v25 = vrot.slane %v34634_v49, %v34793_v57  ;;  %v40968_v37 = vld [vmem:[#allocation9_spill] sm:$0xff] }
 0x2ac   : > { %28290 = vmatprep.mubr.f32.mxu1 %v34751_v3  ;;  %v34913_v55 = vsel %vm3598_vm10, %v34901_v27, %v4714_v30  ;;  %v4719_v33 = vsel %vm3592_vm7, %v34917_v54, %v4718_v0  ;;  %v34952_v30 = vrot.slane %v34667_v51, %v34793_v57  ;;  %v40969_v0 = vld [vmem:[#allocation11_spill] sm:$0xff] }
 0x2ad   : > { %40966 = vst [vmem:[#allocation70_spill] sm:$0xff] %v34913_v55  ;;  %v4720_v31 = vsel %vm3594_vm8, %v34923_v21, %v4719_v33  ;;  %v34963_v33 = vrot.slane %v40969_v0, %v34793_v57  ;;  %v4723_v51 = vsel %vm3586_vm4, %v34929_v18, %v4620_v25  ;;  %v34983_v0 = vrot.slane %v34714_v22, %v34793_v57  ;;  %v40977_v22 = vld [vmem:[#allocation50_spill] sm:$0xff]  ;;  %v40978_v55 = vld [vmem:[#allocation57_spill] sm:$0xff] }
 0x2ae   : > { %v4721_v8 = vsel %vm3596_vm9, %v34933_v16, %v4720_v31  ;;  %v40972_v31 = vld [vmem:[#allocation48_spill] sm:$0xff]  ;;  %v4724_v11 = vsel %vm3588_vm5, %v34939_v32, %v4723_v51  ;;  %v34988_v25 = vrot.slane %v40974_v46, %v34793_v57  ;;  %v34998_v51 = vrot.slane %v34701_v15, %v34793_v57 }
 0x2af   : > { %28291 = vmatmul.mubr.f32.gmra.mrb[12].mxu1 %v34777_v4  ;;  %v34967_v49 = vsel %vm3598_vm10, %v34944_v29, %v4721_v8  ;;  %v34977_v20 = vrot.slane %v40972_v31, %v34793_v57  ;;  %v40973_v8 = vld [vmem:[#allocation44_spill] sm:$0xff]  ;;  %v4725_v31 = vsel %vm3590_vm6, %v34952_v30, %v4724_v11  ;;  %v35011_v61 = vrot.slane %v40978_v55, %v34793_v57  ;;  %v40979_v11 = vld [vmem:[#allocation25_spill] sm:$0xff] }
 0x2b0   : > { %28297 = vmatprep.mubr.f32.mxu1 %v34220_v12  ;;  %40970 = vst [vmem:[#allocation21_spill] sm:$0xff] %v34967_v49  ;;  %v40976_v49 = vld [vmem:[#allocation49_spill] sm:$0xff]  ;;  %v35015_v15 = vrot.slane %v40979_v11, %v34793_v57  ;;  %v40983_v55 = vld [vmem:[#allocation28_spill] sm:$0xff] }
 0x2b1   : > { %v4726_v46 = vsel %vm3592_vm7, %v34977_v20, %v4725_v31  ;;  %v35033_v40 = vrot.slane %v40983_v55, %v34793_v57 }
 0x2b3   : > { %28298 = vmatmul.mubr.f32.vlgmr.msra.gmra.mrb[6].mxu1 %v34400_v14 }
 0x2b4   : > { %30934 = vmatpush3.bf16.msra.mxu1 %v34222_v63  ;;  %28300 = vmatprep.mubr.f32.mxu1 %v34477_v28  ;;  %v40971_v28 = vld [vmem:[#allocation20_spill] sm:$0xff] }
 0x2b5   : > { %30936 = vmatprep.subr.bf16.mxu1 %v40967_v53  ;;  %v34973_v14 = vrot.slane %v40971_v28, %v34793_v57  ;;  %v40975_v28 = vld [vmem:[#allocation51_spill] sm:$0xff] }
 0x2b6   : > { %v34992_v47 = vrot.slane %v40975_v28, %v34793_v57  ;;  %v4652_v28 = vrot.slane %v34698_v9, %v34793_v57  ;;  %v40982_v9 = vld [vmem:[#allocation29_spill] sm:$0xff] }
 0x2b7   : > { %28301 = vmatmul.mubr.f32.gmra.mrb[8].mxu1 %v40973_v8  ;;  %v35003_v8 = vrot.slane %v40977_v22, %v34793_v57  ;;  %v40981_v22 = vld [vmem:[#allocation53_spill] sm:$0xff]  ;;  %v35029_v62 = vrot.slane %v40982_v9, %v34793_v57  ;;  %v35050_v9 = vrot.slane %v34708_v24, %v34793_v57  ;;  %v5555_v24 = vsel %vm3586_vm4, %v34988_v25, %v34973_v14 }
 0x2b8   : > { %28303 = vmatprep.mubr.f32.mxu1 %v40976_v49  ;;  %v40980_v49 = vld [vmem:[#allocation18_spill] sm:$0xff]  ;;  %v35023_v3 = vrot.slane %v40981_v22, %v34793_v57  ;;  %v4727_v31 = vsel %vm3594_vm8, %v34992_v47, %v4726_v46  ;;  %v40984_v22 = vld [vmem:[#allocation24_spill] sm:$0xff] }
 0x2b9   : > { %v35019_v4 = vrot.slane %v40980_v49, %v34793_v57  ;;  %v4728_v11 = vsel %vm3596_vm9, %v35003_v8, %v4727_v31  ;;  %v4730_v49 = vsel %vm3586_vm4, %v34983_v0, %v4652_v28  ;;  %v35042_v7 = vrot.slane %v40984_v22, %v34793_v57  ;;  %40986 = vst [vmem:[#allocation11_spill] sm:$0xff] %v35050_v9  ;;  %v40987_v28 = vld [vmem:[#allocation31_spill] sm:$0xff] }
 0x2ba   : > { %v35046_v46 = vsel %vm3598_vm10, %v35023_v3, %v4728_v11  ;;  %v4731_v31 = vsel %vm3588_vm5, %v34998_v51, %v4730_v49  ;;  %v35057_v55 = vrot.slane %v40987_v28, %v34793_v57  ;;  %v35061_v22 = vrot.slane %v34731_v26, %v34793_v57 }
 0x2bb   : > { %28304 = vmatmul.mubr.f32.gmra.mrb[10].mxu1 %v34704_v19  ;;  %40985 = vst [vmem:[#allocation9_spill] sm:$0xff] %v35046_v46  ;;  %v4732_v11 = vsel %vm3590_vm6, %v35011_v61, %v4731_v31  ;;  %v40989_v19 = vld [vmem:[#allocation22_spill] sm:$0xff]  ;;  %v5556_v26 = vsel %vm3588_vm5, %v35015_v15, %v5555_v24  ;;  %v35082_v31 = vrot.slane %v34746_v2, %v34793_v57 }
 0x2bc   : > { %28306 = vmatprep.mubr.f32.mxu1 %v34761_v60  ;;  %40988 = vst [vmem:[#allocation20_spill] sm:$0xff] %v35061_v22  ;;  %v35070_v49 = vrot.slane %v40989_v19, %v34793_v57  ;;  %v35074_v60 = vrot.slane %v34727_v38, %v34793_v57  ;;  %v4733_v28 = vsel %vm3592_vm7, %v35050_v9, %v4732_v11  ;;  %v40992_v11 = vld [vmem:[#allocation26_spill] sm:$0xff] }
 0x2bd   : > { %40991 = vst [vmem:[#allocation19_spill] sm:$0xff] %v35082_v31  ;;  %v4734_v46 = vsel %vm3594_vm8, %v35061_v22, %v4733_v28  ;;  %v5557_v19 = vsel %vm3590_vm6, %v35019_v4, %v5556_v26  ;;  %v5562_v38 = vsel %vm3586_vm4, %v35033_v40, %v35029_v62  ;;  %v35094_v9 = vrot.slane %v40992_v11, %v34793_v57  ;;  %v40993_v24 = vld [vmem:[#allocation30_spill] sm:$0xff] }
 0x2be   : > { %40990 = vst [vmem:[#allocation48_spill] sm:$0xff] %v35074_v60  ;;  %v35098_v2 = vrot.slane %v40993_v24, %v34793_v57  ;;  %v4735_v28 = vsel %vm3596_vm9, %v35074_v60, %v4734_v46  ;;  %v5558_v26 = vsel %vm3592_vm7, %v35042_v7, %v5557_v19  ;;  %v40994_v22 = vand.u32 4294901760, %v34220_v12  ;;  %v40996_v60 = vld [vmem:[#allocation33_spill] sm:$0xff]  ;;  %v40997_v12 = vld [vmem:[#allocation32_spill] sm:$0xff] }
 0x2bf   : > { %28307 = vmatmul.mubr.f32.gmra.mrb[12].mxu1 %v34782_v5  ;;  %v35108_v5 = vsel %vm3598_vm10, %v35082_v31, %v4735_v28  ;;  %v5559_v11 = vsel %vm3594_vm8, %v35070_v49, %v5558_v26  ;;  %v5563_v24 = vsel %vm3588_vm5, %v35057_v55, %v5562_v38  ;;  %v5569_v46 = vsel %vm3586_vm4, %v34803_v48, %v34799_v39  ;;  %v40999_v39 = vld [vmem:[#allocation10_spill] sm:$0xff] }
 0x2c0   : > { %28313 = vmatprep.mubr.f32.mxu1 %v40994_v22  ;;  %40995 = vst [vmem:[#allocation51_spill] sm:$0xff] %v35108_v5  ;;  %v35119_v19 = vrot.slane %v40996_v60, %v34793_v57  ;;  %v35123_v22 = vrot.slane %v40997_v12, %v34793_v57  ;;  %v35127_v28 = vsel %vm3596_vm9, %v35094_v9, %v5559_v11  ;;  %v40998_v5 = vld [vmem:[#allocation37_spill] sm:$0xff]  ;;  %v41000_v48 = vld [vmem:[#allocation34_spill] sm:$0xff] }
 0x2c1   : > { %v5564_v26 = vsel %vm3590_vm6, %v35098_v2, %v5563_v24  ;;  %v5570_v38 = vsel %vm3588_vm5, %v34810_v36, %v5569_v46  ;;  %v4436_v60 = vrot.slane %v40999_v39, %v34793_v57  ;;  %v35138_v31 = vrot.slane %v41000_v48, %v34793_v57  ;;  %v41001_v11 = vld [vmem:[#allocation41_spill] sm:$0xff] }
 0x2c2   : > { %v5565_v12 = vsel %vm3592_vm7, %v35119_v19, %v5564_v26  ;;  %v41002_v24 = vrot.slane %v40968_v37, %v34793_v57  ;;  %v5571_v39 = vsel %vm3590_vm6, %v34819_v41, %v5570_v38  ;;  %v41003_v37 = vld [vmem:[#allocation13_spill] sm:$0xff] }
 0x2c3   : > { %28314 = vmatmul.mubr.f32.vlgmr.msra.gmra.mrb[6].mxu1 %v40998_v5  ;;  %v5566_v46 = vsel %vm3594_vm8, %v35123_v22, %v5565_v12  ;;  %v4440_v48 = vrot.slane %v41003_v37, %v34793_v57  ;;  %v41005_v5 = vld [vmem:[#allocation45_spill] sm:$0xff]  ;;  %v3326_v37 = vld [vmem:[%s40405_s3 + $0x8] sm:$0xff] }
 0x2c4   : > { %30938 = vmatpush3.bf16.msra.mxu1 %v40967_v53  ;;  %28316 = vmatprep.mubr.f32.mxu1 %v41001_v11  ;;  %v4681_v36 = vsel %vm3586_vm4, %v34963_v33, %v41002_v24  ;;  %v35156_v26 = vsel %vm3596_vm9, %v35138_v31, %v5566_v46  ;;  %v5572_v53 = vsel %vm3592_vm7, %v34830_v50, %v5571_v39  ;;  %v41004_v24 = vld [vmem:[#allocation23_spill] sm:$0xff]  ;;  %v41006_v46 = vld [vmem:[#allocation52_spill] sm:$0xff]  ;;  %v3325_v39 = vld [vmem:[%s40405_s3] sm:$0xff] }
 0x2c5   : > { %30940 = vmatprep.subr.bf16.mxu1 %v34222_v63  ;;  %v4460_v11 = vrot.slane %v41004_v24, %v34793_v57  ;;  %v5573_v12 = vsel %vm3594_vm8, %v34841_v42, %v5572_v53  ;;  %v4682_v41 = vsel %vm3588_vm5, %v4436_v60, %v4681_v36  ;;  %v5576_v50 = vsel %vm3586_vm4, %v34836_v13, %v34825_v44  ;;  %v41007_v53 = vld [vmem:[#allocation27_spill] sm:$0xff]  ;;  %v41008_v44 = vld [vmem:[#allocation14_spill] sm:$0xff] }
 0x2c6   : > { %v35170_v38 = vsel %vm3596_vm9, %v34853_v1, %v5573_v12  ;;  %v4492_v36 = vrot.slane %v41007_v53, %v34793_v57  ;;  %v5577_v1 = vsel %vm3588_vm5, %v34849_v35, %v5576_v50  ;;  %v4444_v13 = vrot.slane %v41008_v44, %v34793_v57  ;;  %v41009_v53 = vld [vmem:[#allocation58_spill] sm:$0xff] }
 0x2c7   : > { %28317 = vmatmul.mubr.f32.gmra.mrb[8].mxu1 %v41005_v5  ;;  %v4688_v42 = vsel %vm3586_vm4, %v34973_v14, %v4460_v11  ;;  %v5578_v24 = vsel %vm3590_vm6, %v34868_v23, %v5577_v1  ;;  %v4683_v12 = vsel %vm3590_vm6, %v4440_v48, %v4682_v41  ;;  %v4754_v35 = vand.u32 4294901760, %v3325_v39 }
 0x2c8   : > { %28319 = vmatprep.mubr.f32.mxu1 %v41006_v46  ;;  %v4695_v14 = vsel %vm3586_vm4, %v35029_v62, %v4492_v36  ;;  %v5579_v11 = vsel %vm3592_vm7, %v34879_v59, %v5578_v24  ;;  %v4689_v50 = vsel %vm3588_vm5, %v34988_v25, %v4688_v42  ;;  %v5583_v23 = vsel %vm3586_vm4, %v34885_v56, %v34874_v10  ;;  %v41010_v62 = vld [vmem:[#allocation16_spill] sm:$0xff] }
 0x2c9   : > { %v5580_v44 = vsel %vm3594_vm8, %v34889_v52, %v5579_v11  ;;  %v4757_v41 = vand.u32 4294901760, %v3326_v37  ;;  %v4448_v36 = vrot.slane %v41010_v62, %v34793_v57  ;;  %v5584_v25 = vsel %vm3588_vm5, %v34897_v34, %v5583_v23  ;;  %v41011_v34 = vld [vmem:[#allocation15_spill] sm:$0xff] }
 0x2ca   : > { %v35210_v59 = vsel %vm3596_vm9, %v34901_v27, %v5580_v44  ;;  %v4684_v42 = vsel %vm3592_vm7, %v4444_v13, %v4683_v12  ;;  %v4696_v52 = vsel %vm3588_vm5, %v35033_v40, %v4695_v14  ;;  %v5585_v10 = vsel %vm3590_vm6, %v34917_v54, %v5584_v25 }
 0x2cb   : > { %28320 = vmatmul.mubr.f32.gmra.mrb[10].mxu1 %v41009_v53  ;;  %v5590_v56 = vsel %vm3586_vm4, %v34939_v32, %v34929_v18  ;;  %v4690_v1 = vsel %vm3590_vm6, %v35015_v15, %v4689_v50  ;;  %v5586_v27 = vsel %vm3592_vm7, %v34923_v21, %v5585_v10  ;;  %v4452_v24 = vrot.slane %v41011_v34, %v34793_v57  ;;  %v41021_v34 = vld [vmem:[#allocation48_spill] sm:$0xff] }
 0x2cc   : > { %28322 = vmatprep.mubr.f32.mxu1 %v34770_v45  ;;  %v5548_v40 = vsel %vm3586_vm4, %v4436_v60, %v34963_v33  ;;  %v5587_v54 = vsel %vm3594_vm8, %v34933_v16, %v5586_v27  ;;  %v5591_v18 = vsel %vm3588_vm5, %v34952_v30, %v5590_v56  ;;  %v4685_v32 = vsel %vm3594_vm8, %v4448_v36, %v4684_v42  ;;  %v41012_v60 = vld [vmem:[#allocation17_spill] sm:$0xff]  ;;  %v41018_v56 = vld [vmem:[#allocation54_spill] sm:$0xff] }
 0x2cd   : > { %v35237_v15 = vsub.f32 %v3325_v39, %v4754_v35  ;;  %v4697_v21 = vsel %vm3590_vm6, %v35057_v55, %v4696_v52  ;;  %v5549_v12 = vsel %vm3588_vm5, %v4440_v48, %v5548_v40  ;;  %v35242_v14 = vpack.c.bf16 %v4757_v41, %v4754_v35  ;;  %v41017_v52 = vld [vmem:[#allocation11_spill] sm:$0xff] }
 0x2ce   : > { %v35244_v33 = vsub.f32 %v3326_v37, %v4757_v41  ;;  %v4691_v16 = vsel %vm3592_vm7, %v35019_v4, %v4690_v1  ;;  %v5550_v30 = vsel %vm3590_vm6, %v4444_v13, %v5549_v12  ;;  %v4456_v11 = vrot.slane %v41012_v60, %v34793_v57  ;;  %v41014_v41 = vld [vmem:[#allocation43_spill] sm:$0xff]  ;;  %v41020_v1 = vld [vmem:[#allocation60_spill] sm:$0xff]  ;;  %v41027_v60 = vld [vmem:[#allocation69_spill] sm:$0xff] }
 0x2cf   : > { %28323 = vmatmul.mubr.f32.gmra.mrb[12].mxu1 %v34786_v43  ;;  %v5551_v39 = vsel %vm3592_vm7, %v4448_v36, %v5550_v30  ;;  %v35254_v50 = vsel %vm3596_vm9, %v34944_v29, %v5587_v54  ;;  %v4686_v55 = vsel %vm3596_vm9, %v4452_v24, %v4685_v32  ;;  %v4698_v48 = vsel %vm3592_vm7, %v35098_v2, %v4697_v21  ;;  %v41015_v36 = vld [vmem:[#allocation47_spill] sm:$0xff]  ;;  %v41058_v43 = vld [vmem:[#allocation8_spill] sm:$0xff] }
 0x2d0   : > { %28329 = vmatprep.mubr.f32.mxu1 %v34211_v58  ;;  %41013 = vst [vmem:[#allocation50_spill] sm:$0xff] %v35254_v50  ;;  %v5552_v4 = vsel %vm3594_vm8, %v4452_v24, %v5551_v39  ;;  %v40559_v37 = vand.u32 4294901760, %v35237_v15  ;;  %v4692_v13 = vsel %vm3594_vm8, %v35042_v7, %v4691_v16  ;;  %v40558_v35 = vand.u32 4294901760, %v35244_v33  ;;  %v41022_v54 = vld [vmem:[#allocation19_spill] sm:$0xff]  ;;  %v41028_v39 = vld [vmem:[#allocation70_spill] sm:$0xff] }
 0x2d1   : > { %v35267_v29 = vsel %vm3596_vm9, %v4456_v11, %v5552_v4  ;;  %v5592_v2 = vsel %vm3590_vm6, %v34977_v20, %v5591_v18  ;;  %v4687_v44 = vsel %vm3598_vm10, %v4456_v11, %v4686_v55  ;;  %v4693_v7 = vsel %vm3596_vm9, %v35070_v49, %v4692_v13  ;;  %v41024_v32 = vld [vmem:[#allocation63_spill] sm:$0xff] }
 0x2d2   : > { %v5593_v23 = vsel %vm3592_vm7, %v34992_v47, %v5592_v2  ;;  %v4904_v20 = vsub.f32 %v35237_v15, %v40559_v37  ;;  %v5597_v47 = vsel %vm3586_vm4, %v34998_v51, %v34983_v0  ;;  %v4737_v25 = vsel %vm2437_vm2, %v4687_v44, 0  ;;  %v41019_v0 = vld [vmem:[#allocation20_spill] sm:$0xff]  ;;  %v41033_v44 = vld [vmem:[#allocation21_spill] sm:$0xff] }
 0x2d3   : > { %28330 = vmatmul.mubr.f32.vlgmr.msra.gmra.mrb[6].mxu1 %v34385_v17  ;;  %v5594_v62 = vsel %vm3594_vm8, %v35003_v8, %v5593_v23  ;;  %v4911_v8 = vsub.f32 %v35244_v33, %v40558_v35  ;;  %v5598_v42 = vsel %vm3588_vm5, %v35011_v61, %v5597_v47  ;;  %v35310_v27 = vand.u32 4294901760, %v4737_v25  ;;  %v41034_v23 = vld [vmem:[#allocation9_spill] sm:$0xff] }
 0x2d4   : > { %30942 = vmatpush3.bf16.msra.mxu1 %v34222_v63  ;;  %28332 = vmatprep.mubr.f32.mxu1 %v34459_v6  ;;  %v4699_v63 = vsel %vm3594_vm8, %v35119_v19, %v4698_v48  ;;  %v35289_v19 = vsel %vm3596_vm9, %v35023_v3, %v5594_v62  ;;  %v4694_v3 = vsel %vm3598_vm10, %v35094_v9, %v4693_v7  ;;  %v4905_v24 = vand.u32 4294901760, %v4904_v20 }
 0x2d5   : > { %30944 = vmatprep.subr.bf16.mxu1 %v35242_v14  ;;  %41016 = vst [vmem:[#allocation57_spill] sm:$0xff] %v35289_v19  ;;  %v4700_v49 = vsel %vm3596_vm9, %v35123_v22, %v4699_v63  ;;  %v5599_v10 = vsel %vm3590_vm6, %v41017_v52, %v5598_v42  ;;  %v4912_v9 = vand.u32 4294901760, %v4911_v8  ;;  %v4739_v40 = vsel %vm2437_vm2, %v4694_v3, 0  ;;  %v41041_v3 = vld [vmem:[#allocation51_spill] sm:$0xff] }
 0x2d6   : > { %v5600_v51 = vsel %vm3592_vm7, %v41019_v0, %v5599_v10  ;;  %v4701_v22 = vsel %vm3598_vm10, %v35138_v31, %v4700_v49  ;;  %v35325_v12 = vsub.f32 %v4737_v25, %v35310_v27  ;;  %v35327_v31 = vand.u32 4294901760, %v4739_v40 }
 0x2d7   : > { %28333 = vmatmul.mubr.f32.gmra.mrb[8].mxu1 %v41014_v41  ;;  %v5601_v61 = vsel %vm3594_vm8, %v41021_v34, %v5600_v51  ;;  %v4741_v21 = vsel %vm2437_vm2, %v4701_v22, 0  ;;  %v30947_v16 = vpack.c.bf16 %v4912_v9, %v4905_v24  ;;  %v4743_v11 = vsel %vm2437_vm2, %v41027_v60, 0 }
 0x2d8   : > { %28335 = vmatprep.mubr.f32.mxu1 %v41015_v36  ;;  %v35319_v18 = vsel %vm3596_vm9, %v41022_v54, %v5601_v61  ;;  %41025 = vst [vmem:[#allocation18_spill] sm:$0xff] %v35327_v31  ;;  %v35329_v30 = vand.u32 4294901760, %v4741_v21  ;;  %v4745_v55 = vsel %vm2437_vm2, %v41028_v39, 0  ;;  %v35340_v48 = vsub.f32 %v4739_v40, %v35327_v31 }
 0x2d9   : > { %41023 = vst [vmem:[#allocation25_spill] sm:$0xff] %v35319_v18  ;;  %v35342_v4 = vand.u32 4294901760, %v4743_v11  ;;  %v35347_v2 = vand.u32 4294901760, %v4745_v55  ;;  %v4747_v63 = vsel %vm2437_vm2, %v41033_v44, 0  ;;  %v4749_v7 = vsel %vm2437_vm2, %v41034_v23, 0 }
 0x2da   : > { %41026 = vst [vmem:[#allocation53_spill] sm:$0xff] %v35329_v30  ;;  %41029 = vst [vmem:[#allocation29_spill] sm:$0xff] %v35340_v48  ;;  %v35345_v13 = vsub.f32 %v4741_v21, %v35329_v30  ;;  %v35359_v20 = vand.u32 4294901760, %v35340_v48  ;;  %v35364_v25 = vand.u32 4294901760, %v4747_v63  ;;  %v35372_v42 = vand.u32 4294901760, %v4749_v7 }
 0x2db   : > { %28336 = vmatmul.mubr.f32.gmra.mrb[10].mxu1 %v41018_v56  ;;  %41030 = vst [vmem:[#allocation28_spill] sm:$0xff] %v35342_v4  ;;  %41032 = vst [vmem:[#allocation31_spill] sm:$0xff] %v35347_v2  ;;  %v35362_v47 = vsub.f32 %v4743_v11, %v35342_v4  ;;  %v35370_v49 = vsub.f32 %v4745_v55, %v35347_v2  ;;  %v4751_v52 = vsel %vm2437_vm2, %v41041_v3, 0 }
 0x2dc   : > { %28338 = vmatprep.mubr.f32.mxu1 %v41020_v1  ;;  %41031 = vst [vmem:[#allocation24_spill] sm:$0xff] %v35345_v13  ;;  %41035 = vst [vmem:[#allocation22_spill] sm:$0xff] %v35359_v20  ;;  %v35367_v8 = vand.u32 4294901760, %v35345_v13  ;;  %v4833_v0 = vsub.f32 %v35340_v48, %v35359_v20  ;;  %v35384_v22 = vsub.f32 %v4747_v63, %v35364_v25  ;;  %v35386_v34 = vand.u32 4294901760, %v4751_v52 }
 0x2dd   : > { %41036 = vst [vmem:[#allocation26_spill] sm:$0xff] %v35362_v47  ;;  %41037 = vst [vmem:[#allocation30_spill] sm:$0xff] %v35364_v25  ;;  %v35381_v51 = vand.u32 4294901760, %v35362_v47  ;;  %v35391_v24 = vand.u32 4294901760, %v35370_v49  ;;  %v35394_v9 = vsub.f32 %v4749_v7, %v35372_v42  ;;  %v30951_v11 = vpack.c.bf16 %v35244_v33, %v35237_v15 }
 0x2de   : > { %41038 = vst [vmem:[#allocation33_spill] sm:$0xff] %v35367_v8  ;;  %41039 = vst [vmem:[#allocation32_spill] sm:$0xff] %v35370_v49  ;;  %v4843_v61 = vsub.f32 %v35345_v13, %v35367_v8  ;;  %v35397_v40 = vand.u32 4294901760, %v4833_v0  ;;  %v35402_v21 = vand.u32 4294901760, %v35384_v22  ;;  %v35405_v60 = vsub.f32 %v4751_v52, %v35386_v34 }
 0x2df   : > { %28339 = vmatmul.mubr.f32.gmra.mrb[12].mxu1 %v41024_v32  ;;  %41040 = vst [vmem:[#allocation10_spill] sm:$0xff] %v35372_v42  ;;  %41042 = vst [vmem:[#allocation34_spill] sm:$0xff] %v35381_v51  ;;  %v4853_v54 = vsub.f32 %v35362_v47, %v35381_v51  ;;  %v4863_v55 = vsub.f32 %v35370_v49, %v35391_v24  ;;  %v35414_v44 = vand.u32 4294901760, %v35394_v9 }
 0x2e0   : > { %28345 = vmatprep.mubr.f32.mxu1 %v34211_v58  ;;  %v40557_v58 = vand.u32 4294901760, %v35325_v12  ;;  %41043 = vst [vmem:[#allocation13_spill] sm:$0xff] %v35384_v22  ;;  %41044 = vst [vmem:[#allocation23_spill] sm:$0xff] %v35386_v34  ;;  %v35409_v39 = vand.u32 4294901760, %v4843_v61  ;;  %v4873_v23 = vsub.f32 %v35384_v22, %v35402_v21  ;;  %v35423_v7 = vand.u32 4294901760, %v35405_v60 }
 0x2e1   : > { %41045 = vst [vmem:[#allocation27_spill] sm:$0xff] %v35391_v24  ;;  %41046 = vst [vmem:[#allocation14_spill] sm:$0xff] %v35394_v9  ;;  %v35418_v63 = vand.u32 4294901760, %v4853_v54  ;;  %v4883_v3 = vsub.f32 %v35394_v9, %v35414_v44  ;;  %v2529_v54 = vld [vmem:[#allocation2 + $0x18] sm:$0xff] }
 0x2e2   : > { %v4823_v62 = vsub.f32 %v35325_v12, %v40557_v58  ;;  %41047 = vst [vmem:[#allocation16_spill] sm:$0xff] %v35397_v40  ;;  %41048 = vst [vmem:[#allocation15_spill] sm:$0xff] %v35402_v21  ;;  %v4893_v52 = vsub.f32 %v35405_v60, %v35423_v7  ;;  %v26076_v61 = vld.sshfl [vmem:[#allocation2 + $0x40] sm:$0x3 pattern:$0x76325410]  ;;  %v2669_v58 = vcombine.high %v2529_v54, %v2529_v54 }
 0x2e3   : > { %28346 = vmatmul.mubr.f32.vlgmr.msra.gmra.mrb[6].mxu1 %v34385_v17  ;;  %41049 = vst [vmem:[#allocation17_spill] sm:$0xff] %v35405_v60  ;;  %41050 = vst [vmem:[#allocation11_spill] sm:$0xff] %v35409_v39  ;;  %v35458_v45 = vrot.slane %v2529_v54, %v41058_v43  ;;  %v26074_v54 = vld.sshfl [vmem:[#allocation2 + $0x10] sm:$0x3 pattern:$0x76325410] }
 0x2e4   : > { %30946 = vmatpush3.bf16.msra.mxu1 %v35242_v14  ;;  %28348 = vmatprep.mubr.f32.mxu1 %v34459_v6  ;;  %v4824_v10 = vand.u32 4294901760, %v4823_v62  ;;  %41051 = vst [vmem:[#allocation20_spill] sm:$0xff] %v35414_v44  ;;  %41052 = vst [vmem:[#allocation48_spill] sm:$0xff] %v35418_v63  ;;  %v35425_v62 = vand.u32 4294901760, %v4863_v55  ;;  %v35439_v0 = vand.u32 4294901760, %v4893_v52  ;;  %v26093_v55 = vld [vmem:[%s40405_s3 + $0x20] sm:$0xff]  ;;  %v5519_v17 = vrot.slane %v26074_v54, %v34793_v57 }
 0x2e5   : > { %30948 = vmatprep.subr.bf16.mxu1 %v30947_v16  ;;  %41053 = vst [vmem:[#allocation19_spill] sm:$0xff] %v35423_v7  ;;  %v2530_v52 = vld [vmem:[#allocation2 + $0x20] sm:$0xff]  ;;  %v5621_v37 = vand.u32 4294901760, %v26093_v55  ;;  %41059 = vst [vmem:[#allocation51_spill] sm:$0xff] %v35458_v45 }
 0x2e6   : > { %41054 = vst [vmem:[#allocation69_spill] sm:$0xff] %v35425_v62  ;;  %41057 = vst [vmem:[#allocation9_spill] sm:$0xff] %v35439_v0  ;;  %v2686_v46 = vcombine.high %v2530_v52, %v2530_v52  ;;  %v35463_v5 = vrot.slane %v2530_v52, %v41058_v43  ;;  %v35478_v52 = vcombine.high %v35458_v45, %v35458_v45  ;;  %v35484_v6 = vld.sshfl [vmem:[#allocation2 + $0x100] sm:$0x3 pattern:$0x76325410] }
 0x2e7   : > { %28349 = vmatmul.mubr.f32.gmra.mrb[8].mxu1 %v41014_v41  ;;  %v2535_v41 = vld [vmem:[#allocation2 + $0x48] sm:$0xff]  ;;  %41066 = vst [vmem:[#allocation77_spill] sm:$0xff] %v35484_v6 }
 0x2e8   : > { %28351 = vmatprep.mubr.f32.mxu1 %v41015_v36  ;;  %41060 = vst [vmem:[#allocation71_spill] sm:$0xff] %v35463_v5  ;;  %v26082_v36 = vld.sshfl [vmem:[#allocation2 + $0xd0] sm:$0x3 pattern:$0x76325410]  ;;  %41064 = vst [vmem:[#allocation75_spill] sm:$0xff] %v35478_v52 }
 0x2eb   : > { %28352 = vmatmul.mubr.f32.gmra.mrb[10].mxu1 %v41018_v56 }
 0x2ec   : > { %28354 = vmatprep.mubr.f32.mxu1 %v41020_v1 }
 0x2ef   : > { %28355 = vmatmul.mubr.f32.gmra.mrb[12].mxu1 %v41024_v32  ;;  %v35466_v32 = vsub.f32 %v26093_v55, %v5621_v37  ;;  %v2536_v55 = vld [vmem:[#allocation2 + $0x50] sm:$0xff] }
 0x2f0   : > { %28361 = vmatprep.mubr.f32.mxu1 %v4824_v10  ;;  %v35435_v10 = vand.u32 4294901760, %v4883_v3  ;;  %v26078_v3 = vld.sshfl [vmem:[#allocation2 + $0x70] sm:$0x3 pattern:$0x76325410]  ;;  %v2768_v18 = vcombine.high %v2536_v55, %v2536_v55 }
 0x2f1   : > { %41061 = vst [vmem:[#allocation72_spill] sm:$0xff] %v35466_v32 }
 0x2f2   : > { %41056 = vst [vmem:[#allocation21_spill] sm:$0xff] %v35435_v10 }
 0x2f3   : > { %28362 = vmatmul.mubr.f32.vlgmr.msra.gmra.mrb[6].mxu1 %v35397_v40 }
 0x2f4   : > { %30950 = vmatpush3.bf16.msra.mxu1 %v30947_v16  ;;  %28364 = vmatprep.mubr.f32.mxu1 %v35409_v39  ;;  %v35431_v16 = vand.u32 4294901760, %v4873_v23  ;;  %v5523_v23 = vrot.slane %v26076_v61, %v34793_v57  ;;  %v5527_v61 = vrot.slane %v26078_v3, %v34793_v57 }
 0x2f5   : > { %30952 = vmatprep.subr.bf16.mxu1 %v30951_v11 }
 0x2f6   : > { %41055 = vst [vmem:[#allocation70_spill] sm:$0xff] %v35431_v16  ;;  %v5561_v35 = vsel %vm3598_vm10, %v5523_v23, %v35127_v28  ;;  %v26080_v28 = vld.sshfl [vmem:[#allocation2 + $0xa0] sm:$0x3 pattern:$0x76325410]  ;;  %v35470_v23 = vrot.slane %v2669_v58, %v41058_v43  ;;  %v5568_v3 = vsel %vm3598_vm10, %v5527_v61, %v35156_v26  ;;  %v35491_v26 = vcombine.high %v35463_v5, %v35463_v5  ;;  %v2541_v61 = vld [vmem:[#allocation2 + $0x78] sm:$0xff] }
 0x2f7   : > { %28365 = vmatmul.mubr.f32.gmra.mrb[8].mxu1 %v35418_v63  ;;  %v5606_v1 = vsel %vm2437_vm2, %v5561_v35, 0  ;;  %v5531_v58 = vrot.slane %v26080_v28, %v34793_v57  ;;  %v2833_v19 = vcombine.high %v2541_v61, %v2541_v61 }
 0x2f8   : > { %28367 = vmatprep.mubr.f32.mxu1 %v35425_v62  ;;  %41062 = vst [vmem:[#allocation73_spill] sm:$0xff] %v35470_v23  ;;  %v35481_v35 = vand.u32 4294901760, %v5606_v1  ;;  %41068 = vst [vmem:[#allocation79_spill] sm:$0xff] %v35491_v26  ;;  %v35501_v28 = vcombine.high %v35470_v23, %v35470_v23  ;;  %v41071_v62 = vand.u32 4294901760, %v35244_v33 }
 0x2f9   : > { %v5575_v54 = vsel %vm3598_vm10, %v5531_v58, %v35170_v38  ;;  %v5554_v38 = vsel %vm3598_vm10, %v5519_v17, %v35267_v29  ;;  %v2547_v58 = vld [vmem:[#allocation2 + $0xa8] sm:$0xff] }
 0x2fa   : > { %41065 = vst [vmem:[#allocation76_spill] sm:$0xff] %v35481_v35  ;;  %41069 = vst [vmem:[#allocation80_spill] sm:$0xff] %v35501_v28 }
 0x2fb   : > { %28368 = vmatmul.mubr.f32.gmra.mrb[10].mxu1 %v35431_v16  ;;  %v41070_v16 = vand.u32 4294901760, %v35237_v15  ;;  %v35517_v15 = vsub.f32 %v5606_v1, %v35481_v35  ;;  %v35537_v1 = vrot.slane %v2535_v41, %v41058_v43 }
 0x2fc   : > { %28370 = vmatprep.mubr.f32.mxu1 %v35435_v10  ;;  %v35497_v10 = vsel %vm2437_vm2, %v5568_v3, 0  ;;  %v5535_v3 = vrot.slane %v26082_v36, %v34793_v57  ;;  %v35534_v36 = vsel %vm2437_vm2, %v5575_v54, 0  ;;  %v35553_v54 = vrot.slane %v2536_v55, %v41058_v43 }
 0x2fd   : > { %v35507_v63 = vpack.c.bf16 %v41071_v62, %v41070_v16  ;;  %41072 = vst [vmem:[#allocation81_spill] sm:$0xff] %v35517_v15  ;;  %v35520_v33 = vand.u32 4294901760, %v35497_v10  ;;  %41075 = vst [vmem:[#allocation83_spill] sm:$0xff] %v35534_v36  ;;  %v2915_v55 = vcombine.high %v2547_v58, %v2547_v58 }
 0x2fe   : > { %v35547_v17 = vsel %vm3598_vm10, %v5535_v3, %v35210_v59  ;;  %v35569_v59 = vsel %vm2437_vm2, %v5554_v38, 0 }
 0x2ff   : > { %28371 = vmatmul.mubr.f32.gmra.mrb[12].mxu1 %v35439_v0  ;;  %v2751_v0 = vcombine.high %v2535_v41, %v2535_v41  ;;  %41073 = vst [vmem:[#allocation82_spill] sm:$0xff] %v35520_v33  ;;  %41076 = vst [vmem:[#allocation84_spill] sm:$0xff] %v35547_v17  ;;  %v35556_v41 = vrot.slane %v2768_v18, %v41058_v43  ;;  %v41081_v18 = vld [vmem:[#allocation12_spill] sm:$0xff]  ;;  %v35625_v15 = vrot.slane %v2915_v55, %v41058_v43 }
 0x300   : > { %28377 = vmatprep.mubr.f32.mxu1 %v35310_v27  ;;  %v7497_v3 = vrot.slane %v35478_v52, %v41081_v18  ;;  %v7509_v50 = vrot.slane %v35463_v5, %v41081_v18  ;;  %v7513_v55 = vrot.slane %v35491_v26, %v41081_v18  ;;  %v2554_v26 = vld [vmem:[#allocation2 + $0xe0] sm:$0xff] }
 0x301   : > { %v35550_v29 = vrot.slane %v2751_v0, %v41058_v43  ;;  %41078 = vst [vmem:[#allocation86_spill] sm:$0xff] %v35556_v41  ;;  %v35602_v52 = vcombine.high %v35556_v41, %v35556_v41 }
 0x303   : > { %28378 = vmatmul.mubr.f32.vlgmr.msra.gmra.mrb[6].mxu1 %v35327_v31  ;;  %41077 = vst [vmem:[#allocation85_spill] sm:$0xff] %v35550_v29  ;;  %v35590_v38 = vcombine.high %v35550_v29, %v35550_v29  ;;  %41083 = vst [vmem:[#allocation90_spill] sm:$0xff] %v35602_v52 }
 0x304   : > { %30954 = vmatpush3.bf16.msra.mxu1 %v30951_v11  ;;  %28380 = vmatprep.mubr.f32.mxu1 %v35329_v30  ;;  %v26094_v11 = vld [vmem:[%s40405_s3 + $0x28] sm:$0xff] }
 0x305   : > { %30956 = vmatprep.subr.bf16.mxu1 %v35242_v14  ;;  %v5624_v53 = vand.u32 4294901760, %v26094_v11 }
 0x307   : > { %28381 = vmatmul.mubr.f32.gmra.mrb[8].mxu1 %v35342_v4  ;;  %v35472_v56 = vsub.f32 %v26094_v11, %v5624_v53  ;;  %v35487_v11 = vrot.slane %v2686_v46, %v41058_v43  ;;  %v2542_v46 = vld [vmem:[#allocation2 + $0x80] sm:$0xff]  ;;  %v35512_v40 = vpack.c.bf16 %v5624_v53, %v5621_v37  ;;  %v41074_v53 = vand.u32 4294901760, %v35466_v32 }
 0x308   : > { %28383 = vmatprep.mubr.f32.mxu1 %v35347_v2  ;;  %v2850_v16 = vcombine.high %v2542_v46, %v2542_v46 }
 0x309   : > { %41063 = vst [vmem:[#allocation74_spill] sm:$0xff] %v35472_v56  ;;  %41067 = vst [vmem:[#allocation78_spill] sm:$0xff] %v35487_v11  ;;  %v40579_v39 = vand.u32 4294901760, %v35472_v56  ;;  %v35531_v37 = vsub.f32 %v35466_v32, %v41074_v53  ;;  %v35559_v53 = vrot.slane %v2541_v61, %v41058_v43  ;;  %v35580_v61 = vcombine.high %v35487_v11, %v35487_v11 }
 0x30a   : > { %v35572_v0 = vrot.slane %v2850_v16, %v41058_v43  ;;  %v7501_v16 = vrot.slane %v35470_v23, %v41081_v18  ;;  %v35622_v32 = vrot.slane %v2547_v58, %v41058_v43 }
 0x30b   : > { %28384 = vmatmul.mubr.f32.gmra.mrb[10].mxu1 %v35364_v25  ;;  %v35543_v62 = vsub.f32 %v35472_v56, %v40579_v39  ;;  %v35565_v39 = vrot.slane %v2542_v46, %v41058_v43  ;;  %41082 = vst [vmem:[#allocation89_spill] sm:$0xff] %v35580_v61  ;;  %v35584_v46 = vcombine.high %v35537_v1, %v35537_v1 }
 0x30c   : > { %28386 = vmatprep.mubr.f32.mxu1 %v35372_v42  ;;  %41080 = vst [vmem:[#allocation88_spill] sm:$0xff] %v35572_v0  ;;  %v35606_v23 = vcombine.high %v35559_v53, %v35559_v53 }
 0x30d   : > { %41079 = vst [vmem:[#allocation87_spill] sm:$0xff] %v35565_v39  ;;  %v35614_v56 = vcombine.high %v35565_v39, %v35565_v39  ;;  %v7529_v57 = vrot.slane %v35584_v46, %v41081_v18 }
 0x30f   : > { %28387 = vmatmul.mubr.f32.gmra.mrb[12].mxu1 %v35386_v34  ;;  %41085 = vst [vmem:[#allocation92_spill] sm:$0xff] %v35614_v56 }
 0x310   : > { %28393 = vmatprep.mubr.f32.mxu1 %v35325_v12 }
 0x313   : > { %28394 = vmatmul.mubr.f32.vlgmr.msra.gmra.mrb[6].mxu1 %v35340_v48  ;;  %v7505_v48 = vrot.slane %v35501_v28, %v41081_v18  ;;  %v35619_v28 = vcombine.high %v35572_v0, %v35572_v0 }
 0x314   : > { %30958 = vmatpush3.bf16.msra.mxu1 %v35242_v14  ;;  %28396 = vmatprep.mubr.f32.mxu1 %v35345_v13  ;;  %v35562_v13 = vrot.slane %v2833_v19, %v41058_v43  ;;  %v2548_v19 = vld [vmem:[#allocation2 + $0xb0] sm:$0xff] }
 0x315   : > { %30960 = vmatprep.subr.bf16.mxu1 %v35507_v63  ;;  %41086 = vst [vmem:[#allocation93_spill] sm:$0xff] %v35619_v28  ;;  %v2932_v6 = vcombine.high %v2548_v19, %v2548_v19  ;;  %v35635_v17 = vrot.slane %v2548_v19, %v41058_v43  ;;  %v35650_v19 = vcombine.high %v35622_v32, %v35622_v32 }
 0x316   : > { %v35610_v35 = vcombine.high %v35562_v13, %v35562_v13 }
 0x317   : > { %28397 = vmatmul.mubr.f32.gmra.mrb[8].mxu1 %v35362_v47  ;;  %v7493_v47 = vrot.slane %v35458_v45, %v41081_v18  ;;  %v2553_v45 = vld [vmem:[#allocation2 + $0xd8] sm:$0xff]  ;;  %41087 = vst [vmem:[#allocation94_spill] sm:$0xff] %v35635_v17 }
 0x318   : > { %28399 = vmatprep.mubr.f32.mxu1 %v35370_v49  ;;  %v35594_v49 = vcombine.high %v35553_v54, %v35553_v54  ;;  %41084 = vst [vmem:[#allocation91_spill] sm:$0xff] %v35610_v35  ;;  %v2997_v58 = vcombine.high %v2553_v45, %v2553_v45 }
 0x319   : > { %v7746_v36 = vsel %vm3586_vm4, %v7497_v3, %v7493_v47  ;;  %v7517_v3 = vrot.slane %v35487_v11, %v41081_v18  ;;  %v35661_v11 = vcombine.high %v35625_v15, %v35625_v15 }
 0x31b   : > { %28400 = vmatmul.mubr.f32.gmra.mrb[10].mxu1 %v35384_v22  ;;  %v7747_v22 = vsel %vm3588_vm5, %v7501_v16, %v7746_v36  ;;  %v7525_v36 = vrot.slane %v35537_v1, %v41081_v18  ;;  %v7533_v16 = vrot.slane %v35550_v29, %v41081_v18  ;;  %41089 = vst [vmem:[#allocation95_spill] sm:$0xff] %v35661_v11 }
 0x31c   : > { %28402 = vmatprep.mubr.f32.mxu1 %v35394_v9  ;;  %v7748_v47 = vsel %vm3590_vm6, %v7505_v48, %v7747_v22  ;;  %v7521_v48 = vrot.slane %v35580_v61, %v41081_v18  ;;  %v3014_v61 = vcombine.high %v2554_v26, %v2554_v26 }
 0x31d   : > { %v7749_v9 = vsel %vm3592_vm7, %v7509_v50, %v7748_v47  ;;  %v7537_v50 = vrot.slane %v35590_v38, %v41081_v18  ;;  %v41088_v47 = vand.u32 4294901760, %v35325_v12  ;;  %v7753_v29 = vsel %vm3586_vm4, %v7529_v57, %v7525_v36 }
 0x31e   : > { %v7750_v22 = vsel %vm3594_vm8, %v7513_v55, %v7749_v9  ;;  %v35670_v9 = vcombine.high %v35635_v17, %v35635_v17  ;;  %v35673_v55 = vrot.slane %v2553_v45, %v41058_v43  ;;  %v35676_v12 = vrot.slane %v2997_v58, %v41058_v43 }
 0x31f   : > { %28403 = vmatmul.mubr.f32.gmra.mrb[12].mxu1 %v35405_v60  ;;  %v35664_v60 = vrot.slane %v2932_v6, %v41058_v43  ;;  %v7751_v5 = vsel %vm3596_vm9, %v7517_v3, %v7750_v22  ;;  %v7541_v6 = vrot.slane %v35553_v54, %v41081_v18  ;;  %v7754_v3 = vsel %vm3588_vm5, %v7533_v16, %v7753_v29 }
 0x320   : > { %28409 = vmatprep.mubr.f32.mxu1 %v41088_v47  ;;  %41091 = vst [vmem:[#allocation97_spill] sm:$0xff] %v35670_v9  ;;  %v35679_v47 = vsel %vm3598_vm10, %v7521_v48, %v7751_v5  ;;  %v7561_v57 = vrot.slane %v35606_v23, %v41081_v18  ;;  %v7545_v45 = vrot.slane %v35594_v49, %v41081_v18 }
 0x321   : > { %41090 = vst [vmem:[#allocation96_spill] sm:$0xff] %v35664_v60  ;;  %41092 = vst [vmem:[#allocation98_spill] sm:$0xff] %v35679_v47  ;;  %v7549_v58 = vrot.slane %v35556_v41, %v41081_v18  ;;  %v7755_v5 = vsel %vm3590_vm6, %v7537_v50, %v7754_v3  ;;  %v7565_v36 = vrot.slane %v35562_v13, %v41081_v18  ;;  %v2559_v3 = vld [vmem:[#allocation2 + $0x108] sm:$0xff] }
 0x322   : > { %v7756_v16 = vsel %vm3592_vm7, %v7541_v6, %v7755_v5  ;;  %v7557_v48 = vrot.slane %v35559_v53, %v41081_v18  ;;  %v7569_v22 = vrot.slane %v35610_v35, %v41081_v18  ;;  %v35705_v50 = vcombine.high %v35664_v60, %v35664_v60 }
 0x323   : > { %28410 = vmatmul.mubr.f32.vlgmr.msra.gmra.mrb[6].mxu1 %v35359_v20  ;;  %v7553_v29 = vrot.slane %v35602_v52, %v41081_v18  ;;  %v7757_v6 = vsel %vm3594_vm8, %v7545_v45, %v7756_v16  ;;  %v35715_v5 = vcombine.high %v35673_v55, %v35673_v55  ;;  %v2560_v20 = vld [vmem:[#allocation2 + $0x110] sm:$0xff]  ;;  %v35725_v35 = vrot.slane %v3014_v61, %v41058_v43 }
 0x324   : > { %30962 = vmatpush3.bf16.msra.mxu1 %v35507_v63  ;;  %28412 = vmatprep.mubr.f32.mxu1 %v35367_v8  ;;  %41093 = vst [vmem:[#allocation99_spill] sm:$0xff] %v35705_v50  ;;  %v35708_v63 = vrot.slane %v2554_v26, %v41058_v43  ;;  %v35719_v8 = vcombine.high %v35676_v12, %v35676_v12 }
 0x325   : > { %30964 = vmatprep.subr.bf16.mxu1 %v35242_v14  ;;  %v7758_v47 = vsel %vm3596_vm9, %v7549_v58, %v7757_v6  ;;  %v7760_v26 = vsel %vm3586_vm4, %v7561_v57, %v7557_v48  ;;  %41096 = vst [vmem:[#allocation102_spill] sm:$0xff] %v35725_v35  ;;  %v7573_v16 = vrot.slane %v35565_v39, %v41081_v18  ;;  %v2565_v6 = vld [vmem:[#allocation2 + $0x138] sm:$0xff] }
 0x326   : > { %41094 = vst [vmem:[#allocation100_spill] sm:$0xff] %v35708_v63  ;;  %41095 = vst [vmem:[#allocation101_spill] sm:$0xff] %v35719_v8  ;;  %v35728_v45 = vsel %vm3598_vm10, %v7553_v29, %v7758_v47  ;;  %v7761_v52 = vsel %vm3588_vm5, %v7565_v36, %v7760_v26  ;;  %v3079_v41 = vcombine.high %v2559_v3, %v2559_v3 }
 0x327   : > { %28413 = vmatmul.mubr.f32.gmra.mrb[8].mxu1 %v35381_v51  ;;  %41097 = vst [vmem:[#allocation103_spill] sm:$0xff] %v35728_v45  ;;  %v7577_v58 = vrot.slane %v35614_v56, %v41081_v18  ;;  %v7762_v57 = vsel %vm3590_vm6, %v7569_v22, %v7761_v52  ;;  %v7593_v61 = vrot.slane %v35650_v19, %v41081_v18 }
 0x328   : > { %28415 = vmatprep.mubr.f32.mxu1 %v35391_v24  ;;  %v3096_v48 = vcombine.high %v2560_v20, %v2560_v20  ;;  %v7581_v47 = vrot.slane %v35572_v0, %v41081_v18  ;;  %v7763_v29 = vsel %vm3592_vm7, %v7573_v16, %v7762_v57  ;;  %v7597_v36 = vrot.slane %v35625_v15, %v41081_v18 }
 0x329   : > { %v7585_v26 = vrot.slane %v35619_v28, %v41081_v18  ;;  %v7764_v24 = vsel %vm3594_vm8, %v7577_v58, %v7763_v29  ;;  %v7589_v52 = vrot.slane %v35622_v32, %v41081_v18  ;;  %v7601_v22 = vrot.slane %v35661_v11, %v41081_v18 }
 0x32a   : > { %v35754_v51 = vcombine.high %v35708_v63, %v35708_v63  ;;  %v35758_v16 = vcombine.high %v35725_v35, %v35725_v35  ;;  %v35761_v57 = vrot.slane %v2559_v3, %v41058_v43  ;;  %v7765_v58 = vsel %vm3596_vm9, %v7581_v47, %v7764_v24  ;;  %v2566_v47 = vld [vmem:[#allocation2 + $0x140] sm:$0xff] }
 0x32b   : > { %28416 = vmatmul.mubr.f32.gmra.mrb[10].mxu1 %v35402_v21  ;;  %v35766_v29 = vrot.slane %v3079_v41, %v41058_v43  ;;  %v3161_v45 = vcombine.high %v2565_v6, %v2565_v6  ;;  %v35769_v21 = vsel %vm3598_vm10, %v7585_v26, %v7765_v58  ;;  %v7767_v28 = vsel %vm3586_vm4, %v7593_v61, %v7589_v52 }
 0x32c   : > { %41098 = vst [vmem:[#allocation104_spill] sm:$0xff] %v35754_v51  ;;  %41099 = vst [vmem:[#allocation105_spill] sm:$0xff] %v35758_v16  ;;  %28418 = vmatprep.mubr.f32.mxu1 %v35414_v44  ;;  %v35773_v11 = vrot.slane %v2560_v20, %v41058_v43  ;;  %v7605_v3 = vrot.slane %v35635_v17, %v41081_v18  ;;  %v7768_v0 = vsel %vm3588_vm5, %v7597_v36, %v7767_v28 }
 0x32d   : > { %41100 = vst [vmem:[#allocation106_spill] sm:$0xff] %v35761_v57  ;;  %41101 = vst [vmem:[#allocation107_spill] sm:$0xff] %v35766_v29  ;;  %v7625_v24 = vrot.slane %v35715_v5, %v41081_v18  ;;  %v35781_v41 = vrot.slane %v3096_v48, %v41058_v43  ;;  %v35784_v26 = vrot.slane %v2565_v6, %v41058_v43 }
 0x32e   : > { %41102 = vst [vmem:[#allocation108_spill] sm:$0xff] %v35769_v21  ;;  %41103 = vst [vmem:[#allocation109_spill] sm:$0xff] %v35773_v11  ;;  %v7609_v61 = vrot.slane %v35670_v9, %v41081_v18  ;;  %v7769_v20 = vsel %vm3590_vm6, %v7601_v22, %v7768_v0  ;;  %v7613_v28 = vrot.slane %v35664_v60, %v41081_v18  ;;  %v2571_v22 = vld [vmem:[#allocation2 + $0x168] sm:$0xff] }
 0x32f   : > { %41104 = vst [vmem:[#allocation110_spill] sm:$0xff] %v35781_v41  ;;  %28419 = vmatmul.mubr.f32.gmra.mrb[12].mxu1 %v35423_v7  ;;  %v7770_v36 = vsel %vm3592_vm7, %v7605_v3, %v7769_v20  ;;  %v7621_v48 = vrot.slane %v35673_v55, %v41081_v18  ;;  %v7629_v52 = vrot.slane %v35676_v12, %v41081_v18 }
 0x330   : > { %28425 = vmatprep.mubr.f32.mxu1 %v35310_v27  ;;  %v35800_v6 = vcombine.high %v35761_v57, %v35761_v57  ;;  %v35803_v0 = vrot.slane %v3161_v45, %v41058_v43  ;;  %v7617_v58 = vrot.slane %v35705_v50, %v41081_v18  ;;  %v7771_v3 = vsel %vm3594_vm8, %v7609_v61, %v7770_v36 }
 0x331   : > { %v3178_v20 = vcombine.high %v2566_v47, %v2566_v47  ;;  %v7772_v7 = vsel %vm3596_vm9, %v7613_v28, %v7771_v3  ;;  %v7633_v44 = vrot.slane %v35719_v8, %v41081_v18  ;;  %v7774_v21 = vsel %vm3586_vm4, %v7625_v24, %v7621_v48 }
 0x332   : > { %v35814_v60 = vcombine.high %v35766_v29, %v35766_v29  ;;  %v35818_v45 = vcombine.high %v35773_v11, %v35773_v11  ;;  %v35821_v50 = vrot.slane %v2566_v47, %v41058_v43  ;;  %v35824_v61 = vsel %vm3598_vm10, %v7617_v58, %v7772_v7  ;;  %v2572_v58 = vld [vmem:[#allocation2 + $0x170] sm:$0xff] }
 0x333   : > { %41108 = vst [vmem:[#allocation114_spill] sm:$0xff] %v35824_v61  ;;  %28426 = vmatmul.mubr.f32.vlgmr.msra.gmra.mrb[6].mxu1 %v35327_v31  ;;  %v35829_v28 = vcombine.high %v35781_v41, %v35781_v41  ;;  %v35833_v24 = vcombine.high %v35784_v26, %v35784_v26  ;;  %v3243_v36 = vcombine.high %v2571_v22, %v2571_v22  ;;  %v35839_v7 = vand.u32 4294901760, %v35569_v59 }
 0x334   : > { %41105 = vst [vmem:[#allocation111_spill] sm:$0xff] %v35814_v60  ;;  %41106 = vst [vmem:[#allocation112_spill] sm:$0xff] %v35818_v45  ;;  %v7775_v48 = vsel %vm3588_vm5, %v7629_v52, %v7774_v21  ;;  %30966 = vmatpush3.bf16.msra.mxu1 %v35242_v14  ;;  %28428 = vmatprep.mubr.f32.mxu1 %v35329_v30  ;;  %v35843_v47 = vcombine.high %v35803_v0, %v35803_v0 }
 0x335   : > { %41107 = vst [vmem:[#allocation113_spill] sm:$0xff] %v35821_v50  ;;  %41109 = vst [vmem:[#allocation115_spill] sm:$0xff] %v35829_v28  ;;  %v35846_v3 = vrot.slane %v2571_v22, %v41058_v43  ;;  %v7657_v61 = vrot.slane %v35800_v6, %v41081_v18  ;;  %30968 = vmatprep.subr.bf16.mxu1 %v35512_v40  ;;  %v35852_v14 = vrot.slane %v3178_v20, %v41058_v43 }
 0x336   : > { %41110 = vst [vmem:[#allocation116_spill] sm:$0xff] %v35843_v47  ;;  %v7637_v21 = vrot.slane %v35708_v63, %v41081_v18  ;;  %v7776_v52 = vsel %vm3590_vm6, %v7633_v44, %v7775_v48  ;;  %v7661_v9 = vrot.slane %v35766_v29, %v41081_v18  ;;  %v35861_v22 = vcombine.high %v35821_v50, %v35821_v50 }
 0x337   : > { %41111 = vst [vmem:[#allocation117_spill] sm:$0xff] %v35852_v14  ;;  %v7641_v17 = vrot.slane %v35754_v51, %v41081_v18  ;;  %v7653_v8 = vrot.slane %v35761_v57, %v41081_v18  ;;  %v7665_v20 = vrot.slane %v35814_v60, %v41081_v18  ;;  %28429 = vmatmul.mubr.f32.gmra.mrb[8].mxu1 %v35342_v4 }
 0x338   : > { %41112 = vst [vmem:[#allocation118_spill] sm:$0xff] %v35861_v22  ;;  %v35871_v44 = vrot.slane %v3243_v36, %v41058_v43  ;;  %v3260_v48 = vcombine.high %v2572_v58, %v2572_v58  ;;  %v7645_v63 = vrot.slane %v35725_v35, %v41081_v18  ;;  %v7777_v29 = vsel %vm3592_vm7, %v7637_v21, %v7776_v52 }
 0x339   : > { %28431 = vmatprep.mubr.f32.mxu1 %v35347_v2  ;;  %v35879_v51 = vcombine.high %v35846_v3, %v35846_v3  ;;  %v7649_v60 = vrot.slane %v35758_v16, %v41081_v18  ;;  %v7778_v57 = vsel %vm3594_vm8, %v7641_v17, %v7777_v29  ;;  %v7781_v36 = vsel %vm3586_vm4, %v7657_v61, %v7653_v8 }
 0x33a   : > { %41113 = vst [vmem:[#allocation119_spill] sm:$0xff] %v35871_v44  ;;  %v7779_v56 = vsel %vm3596_vm9, %v7645_v63, %v7778_v57  ;;  %v7669_v35 = vrot.slane %v35773_v11, %v41081_v18  ;;  %v7782_v21 = vsel %vm3588_vm5, %v7661_v9, %v7781_v36  ;;  %v7689_v52 = vrot.slane %v35833_v24, %v41081_v18 }
 0x33b   : > { %v35892_v39 = vsel %vm3598_vm10, %v7649_v60, %v7779_v56  ;;  %v7673_v16 = vrot.slane %v35818_v45, %v41081_v18  ;;  %v7783_v17 = vsel %vm3590_vm6, %v7665_v20, %v7782_v21  ;;  %v7693_v8 = vrot.slane %v35803_v0, %v41081_v18  ;;  %28432 = vmatmul.mubr.f32.gmra.mrb[10].mxu1 %v35364_v25 }
 0x33c   : > { %41114 = vst [vmem:[#allocation120_spill] sm:$0xff] %v35892_v39  ;;  %v7677_v63 = vrot.slane %v35781_v41, %v41081_v18  ;;  %v7784_v9 = vsel %vm3592_vm7, %v7669_v35, %v7783_v17  ;;  %v7685_v57 = vrot.slane %v35784_v26, %v41081_v18  ;;  %v7697_v56 = vrot.slane %v35843_v47, %v41081_v18 }
 0x33d   : > { %28434 = vmatprep.mubr.f32.mxu1 %v35372_v42  ;;  %v41115_v60 = vand.u32 4294901760, %v35531_v37  ;;  %v41116_v29 = vand.u32 4294901760, %v35543_v62  ;;  %v35915_v20 = vrot.slane %v2572_v58, %v41058_v43  ;;  %v7681_v35 = vrot.slane %v35829_v28, %v41081_v18  ;;  %v26088_v28 = vld.sshfl [vmem:[#allocation2 + $0x160] sm:$0x3 pattern:$0x76325410] }
 0x33e   : > { %v7785_v36 = vsel %vm3594_vm8, %v7673_v16, %v7784_v9  ;;  %v35922_v21 = vcombine.high %v35852_v14, %v35852_v14  ;;  %v35926_v17 = vcombine.high %v35871_v44, %v35871_v44  ;;  %v7788_v37 = vsel %vm3586_vm4, %v7689_v52, %v7685_v57 }
 0x33f   : > { %v35912_v61 = vpack.c.bf16 %v41116_v29, %v41115_v60  ;;  %41117 = vst [vmem:[#allocation121_spill] sm:$0xff] %v35915_v20  ;;  %v7786_v62 = vsel %vm3596_vm9, %v7677_v63, %v7785_v36  ;;  %v35932_v58 = vsub.f32 %v35569_v59, %v35839_v7  ;;  %v7701_v16 = vrot.slane %v35821_v50, %v41081_v18  ;;  %v26086_v29 = vld.sshfl [vmem:[#allocation2 + $0x130] sm:$0x3 pattern:$0x76325410] }
 0x340   : > { %41118 = vst [vmem:[#allocation122_spill] sm:$0xff] %v35922_v21  ;;  %41119 = vst [vmem:[#allocation123_spill] sm:$0xff] %v35926_v17  ;;  %v35935_v60 = vsel %vm3598_vm10, %v7681_v35, %v7786_v62  ;;  %v7789_v9 = vsel %vm3588_vm5, %v7693_v8, %v7788_v37  ;;  %28435 = vmatmul.mubr.f32.gmra.mrb[12].mxu1 %v35386_v34  ;;  %v35942_v39 = vrot.slane %v3260_v48, %v41058_v43 }
 0x341   : > { %41120 = vst [vmem:[#allocation124_spill] sm:$0xff] %v35935_v60  ;;  %v7705_v52 = vrot.slane %v35861_v22, %v41081_v18  ;;  %v7790_v59 = vsel %vm3590_vm6, %v7697_v56, %v7789_v9  ;;  %v7721_v63 = vrot.slane %v35879_v51, %v41081_v18  ;;  %28441 = vmatprep.mubr.f32.mxu1 %v35310_v27  ;;  %v41124_v9 = vld [vmem:[#allocation84_spill] sm:$0xff] }
 0x342   : > { %41121 = vst [vmem:[#allocation125_spill] sm:$0xff] %v35942_v39  ;;  %v35952_v57 = vcombine.high %v35915_v20, %v35915_v20  ;;  %v7709_v8 = vrot.slane %v35852_v14, %v41081_v18  ;;  %v7791_v48 = vsel %vm3592_vm7, %v7701_v16, %v7790_v59  ;;  %v7725_v35 = vrot.slane %v35871_v44, %v41081_v18  ;;  %v41125_v59 = vld [vmem:[#allocation68_spill] sm:$0xff] }
 0x343   : > { %v7713_v56 = vrot.slane %v35922_v21, %v41081_v18  ;;  %v7792_v36 = vsel %vm3594_vm8, %v7705_v52, %v7791_v48  ;;  %v7717_v27 = vrot.slane %v35846_v3, %v41081_v18  ;;  %v7729_v62 = vrot.slane %v35926_v17, %v41081_v18  ;;  %v41126_v52 = vld [vmem:[#allocation50_spill] sm:$0xff]  ;;  %v41127_v48 = vld [vmem:[#allocation77_spill] sm:$0xff] }
 0x344   : > { %41122 = vst [vmem:[#allocation126_spill] sm:$0xff] %v35952_v57  ;;  %v35968_v37 = vsub.f32 %v35497_v10, %v35520_v33  ;;  %v5612_v16 = vsel %vm2437_vm2, %v41124_v9, 0  ;;  %v5543_v60 = vrot.slane %v26086_v29, %v41125_v59  ;;  %v7793_v21 = vsel %vm3596_vm9, %v7709_v8, %v7792_v36  ;;  %28442 = vmatmul.mubr.f32.vlgmr.msra.gmra.mrb[6].mxu1 %v35327_v31  ;;  %v41131_v36 = vld [vmem:[#allocation57_spill] sm:$0xff] }
 0x345   : > { %v41128_v14 = vrot.slane %v41127_v48, %v41125_v59  ;;  %v35982_v10 = vcombine.high %v35942_v39, %v35942_v39  ;;  %v35985_v22 = vsel %vm3598_vm10, %v7713_v56, %v7793_v21  ;;  %v7795_v29 = vsel %vm3586_vm4, %v7721_v63, %v7717_v27  ;;  %30970 = vmatpush3.bf16.msra.mxu1 %v35512_v40  ;;  %v41132_v21 = vld [vmem:[#allocation83_spill] sm:$0xff] }
 0x346   : > { %41123 = vst [vmem:[#allocation127_spill] sm:$0xff] %v35968_v37  ;;  %41130 = vst [vmem:[#allocation50_spill] sm:$0xff] %v35985_v22  ;;  %28444 = vmatprep.mubr.f32.mxu1 %v35329_v30  ;;  %v5596_v9 = vsel %vm3598_vm10, %v5543_v60, %v41131_v36  ;;  %30972 = vmatprep.subr.bf16.mxu1 %v35912_v61  ;;  %v35998_v56 = vand.u32 4294901760, %v41132_v21  ;;  %v5547_v63 = vrot.slane %v26088_v28, %v41125_v59  ;;  %v41135_v30 = vld [vmem:[#allocation25_spill] sm:$0xff] }
 0x347   : > { %v5589_v41 = vsel %vm3598_vm10, %v41128_v14, %v41126_v52  ;;  %41129 = vst [vmem:[#allocation84_spill] sm:$0xff] %v35982_v10  ;;  %v7733_v14 = vrot.slane %v35915_v20, %v41081_v18  ;;  %v7796_v52 = vsel %vm3588_vm5, %v7725_v35, %v7795_v29  ;;  %v7737_v27 = vrot.slane %v35952_v57, %v41081_v18  ;;  %v41137_v22 = vld [vmem:[#allocation81_spill] sm:$0xff] }
 0x348   : > { %41133 = vst [vmem:[#allocation77_spill] sm:$0xff] %v35998_v56  ;;  %v7797_v48 = vsel %vm3590_vm6, %v7729_v62, %v7796_v52  ;;  %v36004_v8 = vand.u32 4294901760, %v5612_v16  ;;  %v5614_v60 = vsel %vm2437_vm2, %v5589_v41, 0  ;;  %v7741_v36 = vrot.slane %v35942_v39, %v41081_v18  ;;  %28445 = vmatmul.mubr.f32.gmra.mrb[8].mxu1 %v35342_v4 }
 0x349   : > { %v7798_v35 = vsel %vm3592_vm7, %v7733_v14, %v7797_v48  ;;  %v5616_v29 = vsel %vm2437_vm2, %v5596_v9, 0  ;;  %v5603_v28 = vsel %vm3598_vm10, %v5547_v63, %v41135_v30  ;;  %v7745_v31 = vrot.slane %v35982_v10, %v41081_v18  ;;  %28447 = vmatprep.mubr.f32.mxu1 %v35347_v2  ;;  %v41154_v10 = vld [vmem:[#allocation74_spill] sm:$0xff] }
 0x34a   : > { %41134 = vst [vmem:[#allocation57_spill] sm:$0xff] %v36004_v8  ;;  %v7799_v62 = vsel %vm3594_vm8, %v7737_v27, %v7798_v35  ;;  %v41136_v41 = vand.u32 4294901760, %v35932_v58  ;;  %v36022_v14 = vand.u32 4294901760, %v41137_v22  ;;  %v36027_v9 = vsub.f32 %v41132_v21, %v35998_v56 }
 0x34b   : > { %v7800_v48 = vsel %vm3596_vm9, %v7741_v36, %v7799_v62  ;;  %v36029_v30 = vand.u32 4294901760, %v5614_v60  ;;  %v36035_v27 = vand.u32 4294901760, %v35968_v37  ;;  %v36038_v35 = vsub.f32 %v5612_v16, %v36004_v8 }
 0x34c   : > { %v5690_v52 = vsub.f32 %v35932_v58, %v41136_v41  ;;  %41138 = vst [vmem:[#allocation83_spill] sm:$0xff] %v36022_v14  ;;  %41139 = vst [vmem:[#allocation25_spill] sm:$0xff] %v36027_v9  ;;  %v36032_v63 = vsel %vm3598_vm10, %v7745_v31, %v7800_v48  ;;  %v36040_v41 = vand.u32 4294901760, %v5616_v29  ;;  %v5618_v2 = vsel %vm2437_vm2, %v5603_v28, 0  ;;  %28448 = vmatmul.mubr.f32.gmra.mrb[10].mxu1 %v35364_v25 }
 0x34d   : > { %41140 = vst [vmem:[#allocation128_spill] sm:$0xff] %v36029_v30  ;;  %41141 = vst [vmem:[#allocation129_spill] sm:$0xff] %v36032_v63  ;;  %28450 = vmatprep.mubr.f32.mxu1 %v35372_v42  ;;  %v5700_v36 = vsub.f32 %v41137_v22, %v36022_v14  ;;  %v36048_v31 = vand.u32 4294901760, %v36027_v9  ;;  %v36051_v62 = vsub.f32 %v5614_v60, %v36029_v30  ;;  %v36053_v16 = vand.u32 4294901760, %v5618_v2  ;;  %v41153_v63 = vld [vmem:[#allocation72_spill] sm:$0xff] }
 0x34e   : > { %41142 = vst [vmem:[#allocation130_spill] sm:$0xff] %v36035_v27  ;;  %41143 = vst [vmem:[#allocation131_spill] sm:$0xff] %v36038_v35  ;;  %v5691_v21 = vand.u32 4294901760, %v5690_v52  ;;  %v5710_v48 = vsub.f32 %v35968_v37, %v36035_v27  ;;  %v36058_v28 = vand.u32 4294901760, %v36038_v35  ;;  %v36061_v42 = vsub.f32 %v5616_v29, %v36040_v41 }
 0x34f   : > { %41144 = vst [vmem:[#allocation132_spill] sm:$0xff] %v36040_v41  ;;  %41145 = vst [vmem:[#allocation133_spill] sm:$0xff] %v36048_v31  ;;  %v36064_v52 = vand.u32 4294901760, %v5700_v36  ;;  %v5720_v60 = vsub.f32 %v36027_v9, %v36048_v31  ;;  %v36069_v25 = vand.u32 4294901760, %v36051_v62  ;;  %v36072_v4 = vsub.f32 %v5618_v2, %v36053_v16 }
 0x350   : > { %41146 = vst [vmem:[#allocation134_spill] sm:$0xff] %v36051_v62  ;;  %41147 = vst [vmem:[#allocation135_spill] sm:$0xff] %v36053_v16  ;;  %28451 = vmatmul.mubr.f32.gmra.mrb[12].mxu1 %v35386_v34  ;;  %v30975_v39 = vpack.c.bf16 %v41154_v10, %v41153_v63  ;;  %v36076_v57 = vand.u32 4294901760, %v5710_v48  ;;  %v5730_v29 = vsub.f32 %v36038_v35, %v36058_v28 }
 0x351   : > { %41148 = vst [vmem:[#allocation136_spill] sm:$0xff] %v36058_v28  ;;  %41149 = vst [vmem:[#allocation137_spill] sm:$0xff] %v36061_v42  ;;  %28457 = vmatprep.mubr.f32.mxu1 %v5691_v21  ;;  %v36081_v21 = vand.u32 4294901760, %v36061_v42  ;;  %v36086_v36 = vand.u32 4294901760, %v5720_v60  ;;  %v5740_v2 = vsub.f32 %v36051_v62, %v36069_v25  ;;  %v36091_v48 = vand.u32 4294901760, %v36072_v4 }
 0x352   : > { %41150 = vst [vmem:[#allocation138_spill] sm:$0xff] %v36064_v52  ;;  %41151 = vst [vmem:[#allocation139_spill] sm:$0xff] %v36069_v25  ;;  %v36093_v34 = vand.u32 4294901760, %v5730_v29  ;;  %v2574_v29 = vld [vmem:[#allocation2 + $0x180] sm:$0xff] }
 0x353   : > { %41152 = vst [vmem:[#allocation140_spill] sm:$0xff] %v36072_v4  ;;  %41155 = vst [vmem:[#allocation72_spill] sm:$0xff] %v36076_v57  ;;  %v5750_v20 = vsub.f32 %v36061_v42, %v36081_v21  ;;  %v5760_v60 = vsub.f32 %v36072_v4, %v36091_v48  ;;  %v3284_v45 = vcombine.high %v2574_v29, %v2574_v29 }
 0x354   : > { %41156 = vst [vmem:[#allocation74_spill] sm:$0xff] %v36081_v21  ;;  %28458 = vmatmul.mubr.f32.vlgmr.msra.gmra.mrb[6].mxu1 %v36064_v52  ;;  %41157 = vst [vmem:[#allocation141_spill] sm:$0xff] %v36086_v36 }
 0x355   : > { %30974 = vmatpush3.bf16.msra.mxu1 %v35912_v61  ;;  %28460 = vmatprep.mubr.f32.mxu1 %v36076_v57  ;;  %41158 = vst [vmem:[#allocation142_spill] sm:$0xff] %v36091_v48  ;;  %41159 = vst [vmem:[#allocation143_spill] sm:$0xff] %v36093_v34  ;;  %v36099_v61 = vand.u32 4294901760, %v5740_v2  ;;  %v36103_v57 = vand.u32 4294901760, %v5750_v20  ;;  %v36107_v52 = vand.u32 4294901760, %v5760_v60  ;;  %v36112_v2 = vrot.slane %v2574_v29, %v41058_v43  ;;  %v41164_v20 = vld [vmem:[#allocation76_spill] sm:$0xff] }
 0x356   : > { %30976 = vmatprep.subr.bf16.mxu1 %v30975_v39 }
 0x357   : > { %41160 = vst [vmem:[#allocation144_spill] sm:$0xff] %v36099_v61  ;;  %41161 = vst [vmem:[#allocation145_spill] sm:$0xff] %v36103_v57  ;;  %v3299_v60 = vcombine.high %v36112_v2, %v36112_v2 }
 0x358   : > { %28461 = vmatmul.mubr.f32.gmra.mrb[8].mxu1 %v36086_v36  ;;  %41162 = vst [vmem:[#allocation146_spill] sm:$0xff] %v36107_v52  ;;  %41163 = vst [vmem:[#allocation147_spill] sm:$0xff] %v36112_v2  ;;  %v3298_v36 = vrot.slane %v3284_v45, %v41058_v43 }
 0x359   : > { %28463 = vmatprep.mubr.f32.mxu1 %v36093_v34  ;;  %v2575_v34 = vld [vmem:[#allocation2 + $0x188] sm:$0xff]  ;;  %v10283_v11 = vrot.slane %v3299_v60, %v41081_v18 }
 0x35a   : > { %v36128_v50 = vrot.slane %v3298_v36, %v41125_v59 }
 0x35c   : > { %28464 = vmatmul.mubr.f32.gmra.mrb[10].mxu1 %v36099_v61  ;;  %v3300_v61 = vcombine.high %v3298_v36, %v3298_v36  ;;  %41166 = vst [vmem:[#allocation149_spill] sm:$0xff] %v36128_v50 }
 0x35d   : > { %28466 = vmatprep.mubr.f32.mxu1 %v36103_v57  ;;  %v3301_v57 = vcombine.high %v2575_v34, %v2575_v34 }
 0x35e   : > { %v36132_v17 = vrot.slane %v3300_v61, %v41125_v59 }
 0x35f   : > { %v3315_v45 = vrot.slane %v3301_v57, %v41058_v43 }
 0x360   : > { %28467 = vmatmul.mubr.f32.gmra.mrb[12].mxu1 %v36107_v52  ;;  %v3308_v52 = vrot.slane %v2575_v34, %v41058_v43  ;;  %41167 = vst [vmem:[#allocation150_spill] sm:$0xff] %v36132_v17  ;;  %v10279_v34 = vrot.slane %v36112_v2, %v41081_v18 }
 0x361   : > { %28473 = vmatprep.mubr.f32.mxu1 %v35839_v7  ;;  %v3317_v57 = vcombine.high %v3315_v45, %v3315_v45 }
 0x362   : > { %v3316_v29 = vcombine.high %v3308_v52, %v3308_v52  ;;  %v10308_v43 = vsel %vm3586_vm4, %v10283_v11, %v10279_v34  ;;  %v36142_v44 = vrot.slane %v3308_v52, %v41125_v59 }
 0x364   : > { %28474 = vmatmul.mubr.f32.vlgmr.msra.gmra.mrb[6].mxu1 %v41164_v20  ;;  %41168 = vst [vmem:[#allocation151_spill] sm:$0xff] %v36142_v44  ;;  %v10299_v2 = vrot.slane %v3316_v29, %v41081_v18 }
 0x365   : > { %30978 = vmatpush3.bf16.msra.mxu1 %v30975_v39  ;;  %28476 = vmatprep.mubr.f32.mxu1 %v35520_v33  ;;  %v36125_v39 = vrot.slane %v3299_v60, %v41125_v59  ;;  %v10295_v60 = vrot.slane %v3308_v52, %v41081_v18  ;;  %v36158_v52 = vrot.slane %v3315_v45, %v41125_v59 }
 0x366   : > { %30980 = vmatprep.subr.bf16.mxu1 %v35512_v40 }
 0x367   : > { %41165 = vst [vmem:[#allocation148_spill] sm:$0xff] %v36125_v39  ;;  %41170 = vst [vmem:[#allocation153_spill] sm:$0xff] %v36158_v52 }
 0x368   : > { %28477 = vmatmul.mubr.f32.gmra.mrb[8].mxu1 %v35998_v56  ;;  %v10287_v56 = vrot.slane %v3298_v36, %v41081_v18  ;;  %v11092_v36 = vsel %vm3586_vm4, %v36128_v50, %v36125_v39 }
 0x369   : > { %28479 = vmatprep.mubr.f32.mxu1 %v36004_v8  ;;  %v10291_v8 = vrot.slane %v3300_v61, %v41081_v18  ;;  %v36150_v61 = vrot.slane %v3316_v29, %v41125_v59  ;;  %v11093_v11 = vsel %vm3588_vm5, %v36132_v17, %v11092_v36  ;;  %v36166_v29 = vrot.slane %v3317_v57, %v41125_v59 }
 0x36a   : > { %v10309_v47 = vsel %vm3588_vm5, %v10287_v56, %v10308_v43  ;;  %v10303_v43 = vrot.slane %v3315_v45, %v41081_v18  ;;  %v11094_v34 = vsel %vm3590_vm6, %v36142_v44, %v11093_v11  ;;  %v41172_v17 = vand.u32 4294901760, %v41153_v63  ;;  %v41178_v63 = vld [vmem:[#allocation73_spill] sm:$0xff] }
 0x36b   : > { %41169 = vst [vmem:[#allocation152_spill] sm:$0xff] %v36150_v61  ;;  %41171 = vst [vmem:[#allocation154_spill] sm:$0xff] %v36166_v29  ;;  %v11095_v36 = vsel %vm3592_vm7, %v36150_v61, %v11094_v34  ;;  %v41173_v45 = vand.u32 4294901760, %v41154_v10 }
 0x36c   : > { %28480 = vmatmul.mubr.f32.gmra.mrb[10].mxu1 %v36029_v30  ;;  %v11096_v50 = vsel %vm3594_vm8, %v36158_v52, %v11095_v36  ;;  %v41180_v36 = vld [vmem:[#allocation85_spill] sm:$0xff] }
 0x36d   : > { %28482 = vmatprep.mubr.f32.mxu1 %v36040_v41  ;;  %v10310_v41 = vsel %vm3590_vm6, %v10291_v8, %v10309_v47  ;;  %v10307_v47 = vrot.slane %v3317_v57, %v41081_v18  ;;  %v41188_v18 = vld [vmem:[#allocation90_spill] sm:$0xff] }
 0x36e   : > { %v10311_v56 = vsel %vm3592_vm7, %v10295_v60, %v10310_v41  ;;  %v30983_v41 = vpack.c.bf16 %v41173_v45, %v41172_v17  ;;  %v41174_v60 = vld [vmem:[#allocation75_spill] sm:$0xff]  ;;  %v36217_v45 = vrot.slane %v41180_v36, %v41125_v59  ;;  %v36248_v36 = vrot.slane %v35553_v54, %v41125_v59 }
 0x36f   : > { %v10312_v8 = vsel %vm3594_vm8, %v10299_v2, %v10311_v56  ;;  %v36178_v11 = vrot.slane %v41174_v60, %v41125_v59  ;;  %v36188_v2 = vsel %vm3596_vm9, %v36166_v29, %v11096_v50  ;;  %v41177_v17 = vld [vmem:[#allocation51_spill] sm:$0xff]  ;;  %v36203_v50 = vrot.slane %v35584_v46, %v41125_v59  ;;  %v41179_v56 = vld [vmem:[#allocation80_spill] sm:$0xff] }
 0x370   : > { %28483 = vmatmul.mubr.f32.gmra.mrb[12].mxu1 %v36053_v16  ;;  %v10313_v44 = vsel %vm3596_vm9, %v10303_v43, %v10312_v8  ;;  %41176 = vst [vmem:[#allocation155_spill] sm:$0xff] %v36188_v2  ;;  %v6394_v10 = vrot.slane %v41177_v17, %v41125_v59  ;;  %v36197_v43 = vrot.slane %v41178_v63, %v41125_v59  ;;  %v41181_v17 = vld [vmem:[#allocation71_spill] sm:$0xff] }
 0x371   : > { %28489 = vmatprep.mubr.f32.mxu1 %v35932_v58  ;;  %v36184_v57 = vsel %vm3598_vm10, %v10307_v47, %v10313_v44  ;;  %v36208_v34 = vrot.slane %v41179_v56, %v41125_v59  ;;  %v6426_v47 = vrot.slane %v35537_v1, %v41125_v59  ;;  %v36226_v1 = vrot.slane %v35590_v38, %v41125_v59  ;;  %v41182_v56 = vld [vmem:[#allocation79_spill] sm:$0xff] }
 0x372   : > { %41175 = vst [vmem:[#allocation75_spill] sm:$0xff] %v36184_v57  ;;  %v6647_v44 = vsel %vm3586_vm4, %v36178_v11, %v6394_v10  ;;  %v36231_v10 = vrot.slane %v41181_v17, %v41125_v59  ;;  %v36265_v54 = vrot.slane %v35594_v49, %v41125_v59  ;;  %v36281_v49 = vrot.slane %v35562_v13, %v41125_v59  ;;  %v41187_v13 = vld [vmem:[#allocation91_spill] sm:$0xff] }
 0x373   : > { %v6648_v8 = vsel %vm3588_vm5, %v36197_v43, %v6647_v44  ;;  %v6654_v46 = vsel %vm3586_vm4, %v36203_v50, %v6426_v47  ;;  %v36240_v47 = vrot.slane %v41182_v56, %v41125_v59 }
 0x374   : > { %28490 = vmatmul.mubr.f32.vlgmr.msra.gmra.mrb[6].mxu1 %v41137_v22  ;;  %v6649_v60 = vsel %vm3590_vm6, %v36208_v34, %v6648_v8  ;;  %v6655_v63 = vsel %vm3588_vm5, %v36217_v45, %v6654_v46  ;;  %v41183_v8 = vand.u32 4294901760, %v35932_v58  ;;  %v41202_v22 = vld [vmem:[#allocation94_spill] sm:$0xff] }
 0x375   : > { %30982 = vmatpush3.bf16.msra.mxu1 %v35512_v40  ;;  %28492 = vmatprep.mubr.f32.mxu1 %v35968_v37  ;;  %v6650_v44 = vsel %vm3592_vm7, %v36231_v10, %v6649_v60  ;;  %v6656_v38 = vsel %vm3590_vm6, %v36226_v1, %v6655_v63  ;;  %v41184_v60 = vld [vmem:[#allocation78_spill] sm:$0xff]  ;;  %v36260_v63 = vrot.slane %v35606_v23, %v41125_v59  ;;  %v41185_v23 = vld [vmem:[#allocation89_spill] sm:$0xff] }
 0x376   : > { %30984 = vmatprep.subr.bf16.mxu1 %v30983_v41  ;;  %v6651_v46 = vsel %vm3594_vm8, %v36240_v47, %v6650_v44  ;;  %v36254_v17 = vrot.slane %v41184_v60, %v41125_v59  ;;  %v6657_v56 = vsel %vm3592_vm7, %v36248_v36, %v6656_v38  ;;  %v6458_v44 = vrot.slane %v35559_v53, %v41125_v59 }
 0x377   : > { %v36275_v38 = vrot.slane %v41185_v23, %v41125_v59  ;;  %v36297_v23 = vrot.slane %v41187_v13, %v41125_v59  ;;  %v6490_v13 = vrot.slane %v35622_v32, %v41125_v59 }
 0x378   : > { %28493 = vmatmul.mubr.f32.gmra.mrb[8].mxu1 %v36027_v9  ;;  %v6652_v58 = vsel %vm3596_vm9, %v36254_v17, %v6651_v46  ;;  %v6661_v53 = vsel %vm3586_vm4, %v36260_v63, %v6458_v44  ;;  %v36305_v44 = vrot.slane %v35715_v5, %v41125_v59  ;;  %v6522_v5 = vrot.slane %v35673_v55, %v41125_v59 }
 0x379   : > { %28495 = vmatprep.mubr.f32.mxu1 %v36038_v35  ;;  %v6653_v46 = vsel %vm3598_vm10, %v36275_v38, %v6652_v58  ;;  %v36309_v58 = vrot.slane %v41188_v18, %v41125_v59  ;;  %v36368_v35 = vrot.slane %v35833_v24, %v41125_v59  ;;  %v41199_v24 = vld [vmem:[#allocation107_spill] sm:$0xff] }
 0x37a   : > { %v36325_v18 = vsel %vm2437_vm2, %v6653_v46, 0  ;;  %v6675_v46 = vsel %vm3586_vm4, %v36305_v44, %v6522_v5  ;;  %v41195_v5 = vld [vmem:[#allocation95_spill] sm:$0xff] }
 0x37b   : > { %41189 = vst [vmem:[#allocation51_spill] sm:$0xff] %v36309_v58  ;;  %41197 = vst [vmem:[#allocation85_spill] sm:$0xff] %v36368_v35 }
 0x37c   : > { %28496 = vmatmul.mubr.f32.gmra.mrb[10].mxu1 %v36051_v62 }
 0x37d   : > { %28498 = vmatprep.mubr.f32.mxu1 %v36061_v42  ;;  %v36362_v42 = vrot.slane %v41195_v5, %v41125_v59 }
 0x380   : > { %28499 = vmatmul.mubr.f32.gmra.mrb[12].mxu1 %v36072_v4 }
 0x381   : > { %28505 = vmatprep.mubr.f32.mxu1 %v41183_v8  ;;  %v6658_v8 = vsel %vm3594_vm8, %v36265_v54, %v6657_v56 }
 0x384   : > { %28506 = vmatmul.mubr.f32.vlgmr.msra.gmra.mrb[6].mxu1 %v36022_v14 }
 0x385   : > { %30986 = vmatpush3.bf16.msra.mxu1 %v30983_v41  ;;  %28508 = vmatprep.mubr.f32.mxu1 %v36035_v27  ;;  %v41186_v41 = vld [vmem:[#allocation86_spill] sm:$0xff]  ;;  %v36335_v27 = vrot.slane %v35676_v12, %v41125_v59  ;;  %v41190_v12 = vld [vmem:[#allocation87_spill] sm:$0xff] }
 0x386   : > { %30988 = vmatprep.subr.bf16.mxu1 %v35512_v40  ;;  %v36285_v60 = vrot.slane %v41186_v41, %v41125_v59  ;;  %v36301_v41 = vrot.slane %v35650_v19, %v41125_v59  ;;  %v26096_v19 = vld [vmem:[%s40405_s3 + $0x38] sm:$0xff]  ;;  %v36350_v14 = vrot.slane %v41190_v12, %v41125_v59 }
 0x387   : > { %v6676_v5 = vsel %vm3588_vm5, %v36335_v27, %v6675_v46 }
 0x388   : > { %28509 = vmatmul.mubr.f32.gmra.mrb[8].mxu1 %v36048_v31  ;;  %v6659_v56 = vsel %vm3596_vm9, %v36285_v60, %v6658_v8  ;;  %v26095_v8 = vld [vmem:[%s40405_s3 + $0x30] sm:$0xff]  ;;  %v36331_v31 = vrot.slane %v35625_v15, %v41125_v59  ;;  %v6668_v55 = vsel %vm3586_vm4, %v36301_v41, %v6490_v13 }
 0x389   : > { %28511 = vmatprep.mubr.f32.mxu1 %v36058_v28  ;;  %v6662_v28 = vsel %vm3588_vm5, %v36281_v49, %v6661_v53  ;;  %v6660_v53 = vsel %vm3598_vm10, %v36309_v58, %v6659_v56  ;;  %v36346_v56 = vrot.slane %v35800_v6, %v41125_v59  ;;  %v6720_v15 = vand.u32 4294901760, %v26095_v8  ;;  %v41196_v6 = vld [vmem:[#allocation106_spill] sm:$0xff] }
 0x38a   : > { %v6663_v32 = vsel %vm3590_vm6, %v36297_v23, %v6662_v28  ;;  %v41193_v28 = vld [vmem:[#allocation88_spill] sm:$0xff]  ;;  %v6554_v62 = vrot.slane %v41196_v6, %v41125_v59  ;;  %v6669_v12 = vsel %vm3588_vm5, %v36331_v31, %v6668_v55  ;;  %v36384_v6 = vrot.slane %v41199_v24, %v41125_v59 }
 0x38b   : > { %v36358_v13 = vrot.slane %v41193_v28, %v41125_v59  ;;  %v41198_v28 = vld [vmem:[#allocation101_spill] sm:$0xff]  ;;  %v36392_v55 = vrot.slane %v35803_v0, %v41125_v59  ;;  %v36396_v37 = vsub.f32 %v26095_v8, %v6720_v15  ;;  %v36402_v24 = vrot.slane %v35879_v51, %v41125_v59 }
 0x38c   : > { %28512 = vmatmul.mubr.f32.gmra.mrb[10].mxu1 %v36069_v25  ;;  %v6723_v25 = vand.u32 4294901760, %v26096_v19  ;;  %v36377_v9 = vrot.slane %v41198_v28, %v41125_v59  ;;  %v6670_v0 = vsel %vm3590_vm6, %v36362_v42, %v6669_v12  ;;  %v36430_v12 = vand.u32 4294901760, %v36325_v18 }
 0x38d   : > { %28514 = vmatprep.mubr.f32.mxu1 %v36081_v21  ;;  %v41191_v21 = vld [vmem:[#allocation92_spill] sm:$0xff]  ;;  %41194 = vst [vmem:[#allocation80_spill] sm:$0xff] %v36358_v13  ;;  %41200 = vst [vmem:[#allocation71_spill] sm:$0xff] %v36392_v55  ;;  %v36450_v29 = vsel %vm2437_vm2, %v6660_v53, 0 }
 0x38e   : > { %v36354_v4 = vrot.slane %v41191_v21, %v41125_v59  ;;  %v6664_v21 = vsel %vm3592_vm7, %v36350_v14, %v6663_v32  ;;  %v6586_v32 = vrot.slane %v35784_v26, %v41125_v59  ;;  %v36394_v28 = vpack.c.bf16 %v6723_v25, %v6720_v15  ;;  %41201 = vst [vmem:[#allocation79_spill] sm:$0xff] %v36402_v24  ;;  %v41206_v15 = vld [vmem:[#allocation111_spill] sm:$0xff] }
 0x38f   : > { %v36398_v46 = vsub.f32 %v26096_v19, %v6723_v25  ;;  %v36408_v26 = vrot.slane %v41202_v22, %v41125_v59  ;;  %v41204_v25 = vld [vmem:[#allocation100_spill] sm:$0xff]  ;;  %v6677_v51 = vsel %vm3590_vm6, %v36377_v9, %v6676_v5  ;;  %v6618_v22 = vrot.slane %v35846_v3, %v41125_v59  ;;  %v41214_v3 = vld [vmem:[#allocation77_spill] sm:$0xff] }
 0x390   : > { %41192 = vst [vmem:[#allocation73_spill] sm:$0xff] %v36354_v4  ;;  %28515 = vmatmul.mubr.f32.gmra.mrb[12].mxu1 %v36091_v48  ;;  %v6682_v48 = vsel %vm3586_vm4, %v36346_v56, %v6554_v62  ;;  %v6665_v62 = vsel %vm3594_vm8, %v36354_v4, %v6664_v21  ;;  %v6689_v8 = vsel %vm3586_vm4, %v36368_v35, %v6586_v32 }
 0x391   : > { %28521 = vmatprep.mubr.f32.mxu1 %v35839_v7  ;;  %41203 = vst [vmem:[#allocation78_spill] sm:$0xff] %v36408_v26  ;;  %v36417_v19 = vrot.slane %v41204_v25, %v41125_v59  ;;  %v36423_v21 = vrot.slane %v41206_v15, %v41125_v59  ;;  %v6683_v32 = vsel %vm3588_vm5, %v36384_v6, %v6682_v48  ;;  %v41208_v25 = vld [vmem:[#allocation116_spill] sm:$0xff]  ;;  %v41210_v15 = vld [vmem:[#allocation119_spill] sm:$0xff] }
 0x392   : > { %v36436_v5 = vrot.slane %v41208_v25, %v41125_v59  ;;  %v36440_v2 = vrot.slane %v41210_v15, %v41125_v59  ;;  %v6690_v57 = vsel %vm3588_vm5, %v36392_v55, %v6689_v8  ;;  %v6696_v48 = vsel %vm3586_vm4, %v36402_v24, %v6618_v22  ;;  %v41212_v25 = vld [vmem:[#allocation93_spill] sm:$0xff] }
 0x393   : > { %41205 = vst [vmem:[#allocation89_spill] sm:$0xff] %v36417_v19  ;;  %41207 = vst [vmem:[#allocation86_spill] sm:$0xff] %v36423_v21  ;;  %v36454_v52 = vrot.slane %v41212_v25, %v41125_v59  ;;  %v6666_v15 = vsel %vm3596_vm9, %v36358_v13, %v6665_v62  ;;  %v41215_v8 = vld [vmem:[#allocation97_spill] sm:$0xff]  ;;  %v6678_v53 = vsel %vm3592_vm7, %v36417_v19, %v6677_v51  ;;  %v41217_v25 = vld [vmem:[#allocation123_spill] sm:$0xff]  ;;  %v41225_v19 = vand.u32 4294901760, %v36398_v46 }
 0x394   : > { %28522 = vmatmul.mubr.f32.vlgmr.msra.gmra.mrb[6].mxu1 %v41164_v20  ;;  %41209 = vst [vmem:[#allocation91_spill] sm:$0xff] %v36436_v5  ;;  %41211 = vst [vmem:[#allocation90_spill] sm:$0xff] %v36440_v2  ;;  %v36463_v61 = vrot.slane %v41215_v8, %v41125_v59  ;;  %v6684_v22 = vsel %vm3590_vm6, %v36423_v21, %v6683_v32  ;;  %v36471_v39 = vrot.slane %v41217_v25, %v41125_v59  ;;  %v41219_v62 = vld [vmem:[#allocation57_spill] sm:$0xff] }
 0x395   : > { %30990 = vmatpush3.bf16.msra.mxu1 %v35512_v40  ;;  %28524 = vmatprep.mubr.f32.mxu1 %v35520_v33  ;;  %41213 = vst [vmem:[#allocation87_spill] sm:$0xff] %v36454_v52  ;;  %v6671_v40 = vsel %vm3592_vm7, %v36408_v26, %v6670_v0  ;;  %v41220_v0 = vld [vmem:[#allocation104_spill] sm:$0xff]  ;;  %v41222_v24 = vld [vmem:[#allocation109_spill] sm:$0xff]  ;;  %v6691_v51 = vsel %vm3590_vm6, %v36436_v5, %v6690_v57  ;;  %v41224_v21 = vand.u32 4294901760, %v36396_v37 }
 0x396   : > { %30992 = vmatprep.subr.bf16.mxu1 %v36394_v28  ;;  %41216 = vst [vmem:[#allocation92_spill] sm:$0xff] %v36463_v61  ;;  %41218 = vst [vmem:[#allocation88_spill] sm:$0xff] %v36471_v39  ;;  %v36476_v13 = vrot.slane %v41220_v0, %v41125_v59  ;;  %v36480_v8 = vrot.slane %v41222_v24, %v41125_v59  ;;  %v6697_v32 = vsel %vm3588_vm5, %v36440_v2, %v6696_v48  ;;  %v41226_v24 = vld [vmem:[#allocation113_spill] sm:$0xff]  ;;  %v41228_v48 = vld [vmem:[#allocation96_spill] sm:$0xff] }
 0x397   : > { %v6870_v25 = vsub.f32 %v36396_v37, %v41224_v21  ;;  %v6877_v58 = vsub.f32 %v36398_v46, %v41225_v19  ;;  %v6672_v0 = vsel %vm3594_vm8, %v36463_v61, %v6671_v40  ;;  %v36496_v26 = vrot.slane %v41226_v24, %v41125_v59  ;;  %v41230_v40 = vld [vmem:[#allocation102_spill] sm:$0xff]  ;;  %v41232_v24 = vld [vmem:[#allocation112_spill] sm:$0xff] }
 0x398   : > { %28525 = vmatmul.mubr.f32.gmra.mrb[8].mxu1 %v41214_v3  ;;  %41221 = vst [vmem:[#allocation95_spill] sm:$0xff] %v36476_v13  ;;  %41223 = vst [vmem:[#allocation106_spill] sm:$0xff] %v36480_v8  ;;  %v6667_v57 = vsel %vm3598_vm10, %v36454_v52, %v6666_v15  ;;  %v36502_v2 = vrot.slane %v41228_v48, %v41125_v59  ;;  %v6679_v21 = vsel %vm3594_vm8, %v36476_v13, %v6678_v53  ;;  %v41234_v53 = vld [vmem:[#allocation132_spill] sm:$0xff] }
 0x399   : > { %28527 = vmatprep.mubr.f32.mxu1 %v41219_v62  ;;  %41227 = vst [vmem:[#allocation101_spill] sm:$0xff] %v36496_v26  ;;  %v6685_v19 = vsel %vm3592_vm7, %v36480_v8, %v6684_v22  ;;  %v36511_v61 = vrot.slane %v41230_v40, %v41125_v59  ;;  %v36515_v5 = vrot.slane %v41232_v24, %v41125_v59  ;;  %v41235_v22 = vld [vmem:[#allocation99_spill] sm:$0xff]  ;;  %v41237_v8 = vld [vmem:[#allocation118_spill] sm:$0xff]  ;;  %v41239_v24 = vld [vmem:[#allocation121_spill] sm:$0xff] }
 0x39a   : > { %41229 = vst [vmem:[#allocation107_spill] sm:$0xff] %v36502_v2  ;;  %v6692_v15 = vsel %vm3592_vm7, %v36496_v26, %v6691_v51  ;;  %v6698_v48 = vsel %vm3590_vm6, %v36471_v39, %v6697_v32  ;;  %v36524_v52 = vrot.slane %v41235_v22, %v41125_v59  ;;  %v6673_v40 = vsel %vm3596_vm9, %v36502_v2, %v6672_v0  ;;  %v41241_v39 = vld [vmem:[#allocation105_spill] sm:$0xff]  ;;  %v41243_v0 = vld [vmem:[#allocation110_spill] sm:$0xff] }
 0x39b   : > { %41231 = vst [vmem:[#allocation94_spill] sm:$0xff] %v36511_v61  ;;  %41233 = vst [vmem:[#allocation100_spill] sm:$0xff] %v36515_v5  ;;  %v36530_v13 = vrot.slane %v41237_v8, %v41125_v59  ;;  %v36534_v4 = vrot.slane %v41239_v24, %v41125_v59  ;;  %v6871_v51 = vand.u32 4294901760, %v6870_v25  ;;  %v6878_v26 = vand.u32 4294901760, %v6877_v58 }
 0x39c   : > { %28528 = vmatmul.mubr.f32.gmra.mrb[10].mxu1 %v36029_v30  ;;  %41236 = vst [vmem:[#allocation111_spill] sm:$0xff] %v36524_v52  ;;  %v6680_v32 = vsel %vm3596_vm9, %v36511_v61, %v6679_v21  ;;  %v6686_v22 = vsel %vm3594_vm8, %v36515_v5, %v6685_v19  ;;  %v36542_v55 = vrot.slane %v41241_v39, %v41125_v59  ;;  %v6707_v25 = vsel %vm2437_vm2, %v6667_v57, 0  ;;  %v41245_v39 = vld [vmem:[#allocation117_spill] sm:$0xff] }
 0x39d   : > { %28530 = vmatprep.mubr.f32.mxu1 %v41234_v53  ;;  %41238 = vst [vmem:[#allocation116_spill] sm:$0xff] %v36530_v13  ;;  %41240 = vst [vmem:[#allocation119_spill] sm:$0xff] %v36534_v4  ;;  %v36546_v8 = vrot.slane %v41243_v0, %v41125_v59  ;;  %v6693_v24 = vsel %vm3594_vm8, %v36530_v13, %v6692_v15  ;;  %v6699_v58 = vsel %vm3592_vm7, %v36534_v4, %v6698_v48  ;;  %v41247_v0 = vld [vmem:[#allocation126_spill] sm:$0xff] }
 0x39e   : > { %41242 = vst [vmem:[#allocation93_spill] sm:$0xff] %v36542_v55  ;;  %v6674_v21 = vsel %vm3598_vm10, %v36524_v52, %v6673_v40  ;;  %v36558_v19 = vrot.slane %v41245_v39, %v41125_v59  ;;  %v36562_v5 = vrot.slane %v41247_v0, %v41125_v59  ;;  %v36567_v15 = vsub.f32 %v36325_v18, %v36430_v12  ;;  %v41249_v52 = vld [vmem:[#allocation115_spill] sm:$0xff] }
 0x39f   : > { %41244 = vst [vmem:[#allocation97_spill] sm:$0xff] %v36546_v8  ;;  %v36570_v48 = vand.u32 4294901760, %v36450_v29  ;;  %v6681_v57 = vsel %vm3598_vm10, %v36542_v55, %v6680_v32  ;;  %v6687_v40 = vsel %vm3596_vm9, %v36546_v8, %v6686_v22  ;;  %v30995_v39 = vpack.c.bf16 %v6878_v26, %v6871_v51  ;;  %v41251_v32 = vld [vmem:[#allocation122_spill] sm:$0xff]  ;;  %v41253_v26 = vld [vmem:[#allocation125_spill] sm:$0xff] }
 0x3a0   : > { %28531 = vmatmul.mubr.f32.gmra.mrb[12].mxu1 %v36053_v16  ;;  %41246 = vst [vmem:[#allocation123_spill] sm:$0xff] %v36558_v19  ;;  %41248 = vst [vmem:[#allocation104_spill] sm:$0xff] %v36562_v5  ;;  %v36578_v0 = vrot.slane %v41249_v52, %v41125_v59  ;;  %v6700_v18 = vsel %vm3594_vm8, %v36562_v5, %v6699_v58  ;;  %v36584_v4 = vand.u32 4294901760, %v6707_v25  ;;  %v6709_v13 = vsel %vm2437_vm2, %v6674_v21, 0 }
 0x3a1   : > { %28537 = vmatprep.mubr.f32.mxu1 %v35839_v7  ;;  %v6694_v7 = vsel %vm3596_vm9, %v36558_v19, %v6693_v24  ;;  %v36589_v55 = vrot.slane %v41251_v32, %v41125_v59  ;;  %v36593_v51 = vrot.slane %v41253_v26, %v41125_v59  ;;  %v6711_v52 = vsel %vm2437_vm2, %v6681_v57, 0 }
 0x3a2   : > { %41250 = vst [vmem:[#allocation109_spill] sm:$0xff] %v36578_v0  ;;  %v6688_v22 = vsel %vm3598_vm10, %v36578_v0, %v6687_v40  ;;  %v36603_v24 = vsub.f32 %v36450_v29, %v36570_v48  ;;  %v36610_v57 = vand.u32 4294901760, %v6709_v13  ;;  %v41255_v40 = vld [vmem:[#allocation84_spill] sm:$0xff]  ;;  %v36619_v29 = vand.u32 4294901760, %v6711_v52 }
 0x3a3   : > { %41252 = vst [vmem:[#allocation113_spill] sm:$0xff] %v36589_v55  ;;  %41254 = vst [vmem:[#allocation96_spill] sm:$0xff] %v36593_v51  ;;  %v6695_v58 = vsel %vm3598_vm10, %v36589_v55, %v6694_v7  ;;  %v6701_v21 = vsel %vm3596_vm9, %v36593_v51, %v6700_v18  ;;  %v36614_v26 = vrot.slane %v41255_v40, %v41125_v59  ;;  %v41257_v40 = vand.u32 4294901760, %v36567_v15 }
 0x3a4   : > { %28538 = vmatmul.mubr.f32.vlgmr.msra.gmra.mrb[6].mxu1 %v41164_v20  ;;  %v6713_v20 = vsel %vm2437_vm2, %v6688_v22, 0  ;;  %v6715_v7 = vsel %vm2437_vm2, %v6695_v58, 0  ;;  %v40731_v32 = vand.u32 4294901760, %v36603_v24  ;;  %v36632_v51 = vsub.f32 %v6709_v13, %v36610_v57 }
 0x3a5   : > { %30994 = vmatpush3.bf16.msra.mxu1 %v36394_v28  ;;  %28540 = vmatprep.mubr.f32.mxu1 %v35520_v33  ;;  %41256 = vst [vmem:[#allocation102_spill] sm:$0xff] %v36614_v26  ;;  %v36617_v33 = vsub.f32 %v6707_v25, %v36584_v4  ;;  %v6702_v18 = vsel %vm3598_vm10, %v36614_v26, %v6701_v21  ;;  %v36634_v55 = vand.u32 4294901760, %v6713_v20 }
 0x3a6   : > { %30996 = vmatprep.subr.bf16.mxu1 %v30995_v39  ;;  %v6789_v25 = vsub.f32 %v36567_v15, %v41257_v40  ;;  %v36638_v58 = vsub.f32 %v6711_v52, %v36619_v29  ;;  %v6717_v21 = vsel %vm2437_vm2, %v6702_v18, 0  ;;  %v6799_v13 = vsub.f32 %v36603_v24, %v40731_v32 }
 0x3a7   : > { %v6818_v40 = vand.u32 4294901760, %v36632_v51  ;;  %v36652_v22 = vand.u32 4294901760, %v6717_v21  ;;  %v41258_v26 = vand.u32 4294901760, %v36617_v33 }
 0x3a8   : > { %28541 = vmatmul.mubr.f32.gmra.mrb[8].mxu1 %v41214_v3  ;;  %v36640_v3 = vand.u32 4294901760, %v6715_v7  ;;  %v6790_v52 = vand.u32 4294901760, %v6789_v25  ;;  %v6800_v32 = vand.u32 4294901760, %v6799_v13  ;;  %v30999_v25 = vpack.c.bf16 %v36398_v46, %v36396_v37 }
 0x3a9   : > { %28543 = vmatprep.mubr.f32.mxu1 %v41219_v62  ;;  %v36650_v62 = vsub.f32 %v6713_v20, %v36634_v55  ;;  %v6809_v18 = vsub.f32 %v36617_v33, %v41258_v26  ;;  %v6819_v0 = vsub.f32 %v36632_v51, %v6818_v40  ;;  %v6857_v5 = vsub.f32 %v6717_v21, %v36652_v22 }
 0x3ab   : > { %v6838_v20 = vand.u32 4294901760, %v36650_v62  ;;  %v6810_v19 = vand.u32 4294901760, %v6809_v18  ;;  %v6858_v13 = vand.u32 4294901760, %v6857_v5 }
 0x3ac   : > { %28544 = vmatmul.mubr.f32.gmra.mrb[10].mxu1 %v36029_v30  ;;  %v6828_v30 = vand.u32 4294901760, %v36638_v58 }
 0x3ad   : > { %28546 = vmatprep.mubr.f32.mxu1 %v41234_v53  ;;  %v6847_v53 = vsub.f32 %v6715_v7, %v36640_v3  ;;  %v6820_v7 = vand.u32 4294901760, %v6819_v0  ;;  %v6859_v2 = vsub.f32 %v6857_v5, %v6858_v13 }
 0x3ae   : > { %v6829_v26 = vsub.f32 %v36638_v58, %v6828_v30 }
 0x3af   : > { %v6848_v8 = vand.u32 4294901760, %v6847_v53  ;;  %v6860_v18 = vand.u32 4294901760, %v6859_v2  ;;  %v41262_v2 = vand.u32 4294901760, %v36603_v24 }
 0x3b0   : > { %28547 = vmatmul.mubr.f32.gmra.mrb[12].mxu1 %v36053_v16  ;;  %v6830_v16 = vand.u32 4294901760, %v6829_v26  ;;  %v41266_v26 = vld [vmem:[#allocation108_spill] sm:$0xff] }
 0x3b1   : > { %28553 = vmatprep.mubr.f32.mxu1 %v6790_v52  ;;  %v6839_v52 = vsub.f32 %v36650_v62, %v6838_v20  ;;  %v6849_v61 = vsub.f32 %v6847_v53, %v6848_v8 }
 0x3b3   : > { %v6840_v21 = vand.u32 4294901760, %v6839_v52  ;;  %v6850_v35 = vand.u32 4294901760, %v6849_v61 }
 0x3b4   : > { %28554 = vmatmul.mubr.f32.vlgmr.msra.gmra.mrb[6].mxu1 %v6800_v32 }
 0x3b5   : > { %30998 = vmatpush3.bf16.msra.mxu1 %v30995_v39  ;;  %28556 = vmatprep.mubr.f32.mxu1 %v6810_v19 }
 0x3b6   : > { %31000 = vmatprep.subr.bf16.mxu1 %v30999_v25 }
 0x3b8   : > { %28557 = vmatmul.mubr.f32.gmra.mrb[8].mxu1 %v6820_v7  ;;  %v7806_v7 = vsel %vm2437_vm2, %v41266_v26, 0 }
 0x3b9   : > { %28559 = vmatprep.mubr.f32.mxu1 %v6830_v16  ;;  %v41260_v16 = vand.u32 4294901760, %v36398_v46  ;;  %v41263_v46 = vand.u32 4294901760, %v36617_v33 }
 0x3bc   : > { %28560 = vmatmul.mubr.f32.gmra.mrb[10].mxu1 %v6840_v21 }
 0x3bd   : > { %28562 = vmatprep.mubr.f32.mxu1 %v6850_v35  ;;  %v41259_v35 = vand.u32 4294901760, %v36396_v37  ;;  %v41261_v37 = vand.u32 4294901760, %v36567_v15 }
 0x3bf   : > { %v31007_v61 = vpack.c.bf16 %v41260_v16, %v41259_v35  ;;  %v41267_v35 = vld [vmem:[#allocation114_spill] sm:$0xff] }
 0x3c0   : > { %28563 = vmatmul.mubr.f32.gmra.mrb[12].mxu1 %v6860_v18  ;;  %v36738_v18 = vand.u32 4294901760, %v7806_v7  ;;  %v7808_v16 = vsel %vm2437_vm2, %v41267_v35, 0 }
 0x3c1   : > { %28569 = vmatprep.mubr.f32.mxu1 %v36430_v12 }
 0x3c4   : > { %28570 = vmatmul.mubr.f32.vlgmr.msra.gmra.mrb[6].mxu1 %v36570_v48 }
 0x3c5   : > { %31002 = vmatpush3.bf16.msra.mxu1 %v30999_v25  ;;  %28572 = vmatprep.mubr.f32.mxu1 %v36584_v4 }
 0x3c6   : > { %31004 = vmatprep.subr.bf16.mxu1 %v36394_v28 }
 0x3c8   : > { %28573 = vmatmul.mubr.f32.gmra.mrb[8].mxu1 %v36610_v57 }
 0x3c9   : > { %28575 = vmatprep.mubr.f32.mxu1 %v36619_v29 }
 0x3cc   : > { %28576 = vmatmul.mubr.f32.gmra.mrb[10].mxu1 %v36634_v55 }
 0x3cd   : > { %28578 = vmatprep.mubr.f32.mxu1 %v36640_v3 }
 0x3d0   : > { %28579 = vmatmul.mubr.f32.gmra.mrb[12].mxu1 %v36652_v22 }
 0x3d1   : > { %28585 = vmatprep.mubr.f32.mxu1 %v36567_v15 }
 0x3d4   : > { %28586 = vmatmul.mubr.f32.vlgmr.msra.gmra.mrb[6].mxu1 %v36603_v24 }
 0x3d5   : > { %31006 = vmatpush3.bf16.msra.mxu1 %v36394_v28  ;;  %28588 = vmatprep.mubr.f32.mxu1 %v36617_v33 }
 0x3d6   : > { %31008 = vmatprep.subr.bf16.mxu1 %v31007_v61 }
 0x3d8   : > { %28589 = vmatmul.mubr.f32.gmra.mrb[8].mxu1 %v36632_v51  ;;  %v41264_v51 = vld [vmem:[#allocation98_spill] sm:$0xff] }
 0x3d9   : > { %28591 = vmatprep.mubr.f32.mxu1 %v36638_v58  ;;  %v7802_v24 = vsel %vm2437_vm2, %v41264_v51, 0 }
 0x3da   : > { %v36725_v32 = vand.u32 4294901760, %v7802_v24 }
 0x3dc   : > { %28592 = vmatmul.mubr.f32.gmra.mrb[10].mxu1 %v36650_v62  ;;  %v26097_v62 = vld [vmem:[%s40405_s3 + $0x40] sm:$0xff] }
 0x3dd   : > { %28594 = vmatprep.mubr.f32.mxu1 %v6847_v53  ;;  %v7819_v53 = vand.u32 4294901760, %v26097_v62 }
 0x3df   : > { %v36703_v15 = vsub.f32 %v26097_v62, %v7819_v53  ;;  %v36754_v62 = vsub.f32 %v7806_v7, %v36738_v18 }
 0x3e0   : > { %28595 = vmatmul.mubr.f32.gmra.mrb[12].mxu1 %v6857_v5  ;;  %v26098_v5 = vld [vmem:[%s40405_s3 + $0x48] sm:$0xff] }
 0x3e1   : > { %28601 = vmatprep.mubr.f32.mxu1 %v41261_v37  ;;  %v7822_v19 = vand.u32 4294901760, %v26098_v5 }
 0x3e3   : > { %v36701_v33 = vpack.c.bf16 %v7822_v19, %v7819_v53 }
 0x3e4   : > { %28602 = vmatmul.mubr.f32.vlgmr.msra.gmra.mrb[6].mxu1 %v41262_v2 }
 0x3e5   : > { %31010 = vmatpush3.bf16.msra.mxu1 %v31007_v61  ;;  %28604 = vmatprep.mubr.f32.mxu1 %v41263_v46  ;;  %v41268_v61 = vld [vmem:[#allocation120_spill] sm:$0xff]  ;;  %v36751_v46 = vand.u32 4294901760, %v7808_v16 }
 0x3e6   : > { %31012 = vmatprep.subr.bf16.mxu1 %v36394_v28  ;;  %v7810_v37 = vsel %vm2437_vm2, %v41268_v61, 0 }
 0x3e7   : > { %v36769_v51 = vsub.f32 %v7808_v16, %v36751_v46 }
 0x3e8   : > { %28605 = vmatmul.mubr.f32.gmra.mrb[8].mxu1 %v6818_v40 }
 0x3e9   : > { %28607 = vmatprep.mubr.f32.mxu1 %v6828_v30  ;;  %v36705_v30 = vsub.f32 %v26098_v5, %v7822_v19  ;;  %v36756_v5 = vand.u32 4294901760, %v7810_v37  ;;  %v41270_v19 = vld [vmem:[#allocation50_spill] sm:$0xff]  ;;  %v40742_v26 = vand.u32 4294901760, %v36769_v51 }
 0x3eb   : > { %v7975_v39 = vand.u32 4294901760, %v36705_v30 }
 0x3ec   : > { %28608 = vmatmul.mubr.f32.gmra.mrb[10].mxu1 %v6838_v20  ;;  %v41265_v20 = vld [vmem:[#allocation103_spill] sm:$0xff] }
 0x3ed   : > { %28610 = vmatprep.mubr.f32.mxu1 %v6848_v8  ;;  %v7968_v8 = vand.u32 4294901760, %v36703_v15  ;;  %v7804_v25 = vsel %vm2437_vm2, %v41265_v20, 0  ;;  %v41271_v20 = vld [vmem:[#allocation129_spill] sm:$0xff] }
 0x3ee   : > { %v36733_v52 = vand.u32 4294901760, %v7804_v25 }
 0x3ef   : > { %v7969_v0 = vsub.f32 %v36703_v15, %v7968_v8 }
 0x3f0   : > { %28611 = vmatmul.mubr.f32.gmra.mrb[12].mxu1 %v6858_v13  ;;  %v36736_v13 = vsub.f32 %v7802_v24, %v36725_v32 }
 0x3f1   : > { %28617 = vmatprep.mubr.f32.mxu1 %v36430_v12  ;;  %v7970_v58 = vand.u32 4294901760, %v7969_v0 }
 0x3f2   : > { %v40744_v2 = vand.u32 4294901760, %v36736_v13 }
 0x3f4   : > { %28618 = vmatmul.mubr.f32.vlgmr.msra.gmra.mrb[6].mxu1 %v36570_v48 }
 0x3f5   : > { %31014 = vmatpush3.bf16.msra.mxu1 %v36394_v28  ;;  %28620 = vmatprep.mubr.f32.mxu1 %v36584_v4  ;;  %v7976_v28 = vsub.f32 %v36705_v30, %v7975_v39 }
 0x3f6   : > { %31016 = vmatprep.subr.bf16.mxu1 %v36701_v33 }
 0x3f7   : > { %v7977_v40 = vand.u32 4294901760, %v7976_v28  ;;  %v7888_v28 = vsub.f32 %v36736_v13, %v40744_v2 }
 0x3f8   : > { %28621 = vmatmul.mubr.f32.gmra.mrb[8].mxu1 %v36610_v57 }
 0x3f9   : > { %28623 = vmatprep.mubr.f32.mxu1 %v36619_v29  ;;  %v31019_v21 = vpack.c.bf16 %v7977_v40, %v7970_v58  ;;  %v40741_v58 = vand.u32 4294901760, %v36754_v62  ;;  %v7889_v16 = vand.u32 4294901760, %v7888_v28  ;;  %v31023_v28 = vpack.c.bf16 %v36705_v30, %v36703_v15 }
 0x3fa   : > { %v41272_v15 = vand.u32 4294901760, %v36736_v13  ;;  %v8621_v30 = vsel %vm3586_vm4, %v36197_v43, %v36178_v11  ;;  %v41275_v43 = vand.u32 4294901760, %v36769_v51 }
 0x3fb   : > { %v7908_v61 = vsub.f32 %v36754_v62, %v40741_v58 }
 0x3fc   : > { %28624 = vmatmul.mubr.f32.gmra.mrb[10].mxu1 %v36634_v55 }
 0x3fd   : > { %28626 = vmatprep.mubr.f32.mxu1 %v36640_v3 }
 0x400   : > { %28627 = vmatmul.mubr.f32.gmra.mrb[12].mxu1 %v36652_v22 }
 0x401   : > { %28633 = vmatprep.mubr.f32.mxu1 %v36430_v12  ;;  %v36748_v12 = vsub.f32 %v7804_v25, %v36733_v52 }
 0x403   : > { %v40743_v0 = vand.u32 4294901760, %v36748_v12 }
 0x404   : > { %28634 = vmatmul.mubr.f32.vlgmr.msra.gmra.mrb[6].mxu1 %v36570_v48  ;;  %v41269_v48 = vld [vmem:[#allocation124_spill] sm:$0xff] }
 0x405   : > { %31018 = vmatpush3.bf16.msra.mxu1 %v36701_v33  ;;  %28636 = vmatprep.mubr.f32.mxu1 %v36584_v4  ;;  %v7812_v53 = vsel %vm2437_vm2, %v41269_v48, 0  ;;  %v7814_v4 = vsel %vm2437_vm2, %v41270_v19, 0  ;;  %v7898_v25 = vsub.f32 %v36748_v12, %v40743_v0  ;;  %v7918_v48 = vsub.f32 %v36769_v51, %v40742_v26 }
 0x406   : > { %31020 = vmatprep.subr.bf16.mxu1 %v31019_v21  ;;  %v36771_v24 = vand.u32 4294901760, %v7812_v53  ;;  %v36777_v40 = vand.u32 4294901760, %v7814_v4 }
 0x408   : > { %28637 = vmatmul.mubr.f32.gmra.mrb[8].mxu1 %v36610_v57  ;;  %v36775_v57 = vsub.f32 %v7810_v37, %v36756_v5  ;;  %v36788_v7 = vsub.f32 %v7812_v53, %v36771_v24  ;;  %v7899_v37 = vand.u32 4294901760, %v7898_v25 }
 0x409   : > { %28639 = vmatprep.mubr.f32.mxu1 %v36619_v29  ;;  %v7816_v29 = vsel %vm2437_vm2, %v41271_v20, 0  ;;  %v7909_v20 = vand.u32 4294901760, %v7908_v61 }
 0x40a   : > { %v36790_v35 = vand.u32 4294901760, %v7816_v29  ;;  %v7937_v53 = vand.u32 4294901760, %v36788_v7 }
 0x40c   : > { %28640 = vmatmul.mubr.f32.gmra.mrb[10].mxu1 %v36634_v55  ;;  %v7927_v55 = vand.u32 4294901760, %v36775_v57  ;;  %v36805_v19 = vsub.f32 %v7816_v29, %v36790_v35  ;;  %v7938_v25 = vsub.f32 %v36788_v7, %v7937_v53 }
 0x40d   : > { %28642 = vmatprep.mubr.f32.mxu1 %v36640_v3  ;;  %v36797_v3 = vsub.f32 %v7814_v4, %v36777_v40 }
 0x40e   : > { %v7928_v4 = vsub.f32 %v36775_v57, %v7927_v55  ;;  %v7939_v0 = vand.u32 4294901760, %v7938_v25 }
 0x40f   : > { %v7947_v58 = vand.u32 4294901760, %v36797_v3 }
 0x410   : > { %28643 = vmatmul.mubr.f32.gmra.mrb[12].mxu1 %v36652_v22  ;;  %v7919_v22 = vand.u32 4294901760, %v7918_v48  ;;  %v7929_v26 = vand.u32 4294901760, %v7928_v4  ;;  %v41279_v48 = vld [vmem:[#allocation78_spill] sm:$0xff] }
 0x411   : > { %28649 = vmatprep.mubr.f32.mxu1 %v7889_v16  ;;  %v7957_v16 = vand.u32 4294901760, %v36805_v19  ;;  %v7948_v29 = vsub.f32 %v36797_v3, %v7947_v58 }
 0x413   : > { %v7958_v61 = vsub.f32 %v36805_v19, %v7957_v16  ;;  %v7949_v2 = vand.u32 4294901760, %v7948_v29  ;;  %v41284_v29 = vld [vmem:[#allocation79_spill] sm:$0xff] }
 0x414   : > { %28650 = vmatmul.mubr.f32.vlgmr.msra.gmra.mrb[6].mxu1 %v7899_v37 }
 0x415   : > { %31022 = vmatpush3.bf16.msra.mxu1 %v31019_v21  ;;  %28652 = vmatprep.mubr.f32.mxu1 %v7909_v20  ;;  %v7959_v37 = vand.u32 4294901760, %v7958_v61  ;;  %v31031_v21 = vpack.c.bf16 %v7975_v39, %v7968_v8  ;;  %v41273_v8 = vand.u32 4294901760, %v36748_v12  ;;  %v8622_v39 = vsel %vm3588_vm5, %v36208_v34, %v8621_v30  ;;  %v41282_v20 = vld [vmem:[#allocation86_spill] sm:$0xff] }
 0x416   : > { %31024 = vmatprep.subr.bf16.mxu1 %v31023_v28  ;;  %v41285_v61 = vld [vmem:[#allocation90_spill] sm:$0xff] }
 0x418   : > { %28653 = vmatmul.mubr.f32.gmra.mrb[8].mxu1 %v7919_v22 }
 0x419   : > { %28655 = vmatprep.mubr.f32.mxu1 %v7929_v26 }
 0x41c   : > { %28656 = vmatmul.mubr.f32.gmra.mrb[10].mxu1 %v7939_v0  ;;  %v41274_v0 = vand.u32 4294901760, %v36754_v62 }
 0x41d   : > { %28658 = vmatprep.mubr.f32.mxu1 %v7949_v2  ;;  %v8628_v2 = vsel %vm3586_vm4, %v36217_v45, %v36203_v50  ;;  %v8635_v45 = vsel %vm3586_vm4, %v36281_v49, %v36260_v63 }
 0x41e   : > { %v8629_v11 = vsel %vm3588_vm5, %v36226_v1, %v8628_v2  ;;  %v26100_v1 = vld [vmem:[%s40405_s3 + $0x58] sm:$0xff]  ;;  %v8636_v63 = vsel %vm3588_vm5, %v36297_v23, %v8635_v45  ;;  %v26079_v2 = vld.sshfl [vmem:[#allocation2 + $0x88] sm:$0x3 pattern:$0x76325410] }
 0x41f   : > { %v8630_v50 = vsel %vm3590_vm6, %v36248_v36, %v8629_v11  ;;  %v8637_v23 = vsel %vm3590_vm6, %v36350_v14, %v8636_v63  ;;  %v41289_v11 = vld [vmem:[#allocation106_spill] sm:$0xff]  ;;  %v26081_v45 = vld.sshfl [vmem:[#allocation2 + $0xb8] sm:$0x3 pattern:$0x76325410] }
 0x420   : > { %28659 = vmatmul.mubr.f32.gmra.mrb[12].mxu1 %v7959_v37  ;;  %v8631_v36 = vsel %vm3592_vm7, %v36265_v54, %v8630_v50  ;;  %v8670_v37 = vsel %vm3586_vm4, %v41285_v61, %v41284_v29  ;;  %v41301_v29 = vld [vmem:[#allocation123_spill] sm:$0xff] }
 0x421   : > { %28665 = vmatprep.mubr.f32.mxu1 %v36725_v32  ;;  %v8632_v54 = vsel %vm3594_vm8, %v36285_v60, %v8631_v36  ;;  %v41276_v60 = vld [vmem:[#allocation85_spill] sm:$0xff] }
 0x424   : > { %28666 = vmatmul.mubr.f32.vlgmr.msra.gmra.mrb[6].mxu1 %v36733_v52 }
 0x425   : > { %31026 = vmatpush3.bf16.msra.mxu1 %v31023_v28  ;;  %28668 = vmatprep.mubr.f32.mxu1 %v36738_v18 }
 0x426   : > { %31028 = vmatprep.subr.bf16.mxu1 %v36701_v33 }
 0x428   : > { %28669 = vmatmul.mubr.f32.gmra.mrb[8].mxu1 %v36751_v46 }
 0x429   : > { %28671 = vmatprep.mubr.f32.mxu1 %v36756_v5 }
 0x42c   : > { %28672 = vmatmul.mubr.f32.gmra.mrb[10].mxu1 %v36771_v24 }
 0x42d   : > { %28674 = vmatprep.mubr.f32.mxu1 %v36777_v40 }
 0x430   : > { %28675 = vmatmul.mubr.f32.gmra.mrb[12].mxu1 %v36790_v35 }
 0x431   : > { %28681 = vmatprep.mubr.f32.mxu1 %v36736_v13  ;;  %v8623_v13 = vsel %vm3590_vm6, %v36231_v10, %v8622_v39  ;;  %v26099_v10 = vld [vmem:[%s40405_s3 + $0x50] sm:$0xff] }
 0x432   : > { %v8624_v34 = vsel %vm3592_vm7, %v36240_v47, %v8623_v13  ;;  %v8694_v49 = vand.u32 4294901760, %v26099_v10 }
 0x433   : > { %v8625_v47 = vsel %vm3594_vm8, %v36254_v17, %v8624_v34 }
 0x434   : > { %28682 = vmatmul.mubr.f32.vlgmr.msra.gmra.mrb[6].mxu1 %v36748_v12  ;;  %v26075_v12 = vld.sshfl [vmem:[#allocation2 + $0x28] sm:$0x3 pattern:$0x76325410]  ;;  %v8626_v17 = vsel %vm3596_vm9, %v36275_v38, %v8625_v47  ;;  %v8656_v38 = vsel %vm3586_vm4, %v36384_v6, %v36346_v56 }
 0x435   : > { %31030 = vmatpush3.bf16.msra.mxu1 %v36701_v33  ;;  %28684 = vmatprep.mubr.f32.mxu1 %v36754_v62  ;;  %v8697_v62 = vand.u32 4294901760, %v26100_v1  ;;  %v41280_v56 = vld [vmem:[#allocation51_spill] sm:$0xff]  ;;  %v8657_v4 = vsel %vm3588_vm5, %v41282_v20, %v8656_v38  ;;  %v41300_v20 = vld [vmem:[#allocation97_spill] sm:$0xff] }
 0x436   : > { %31032 = vmatprep.subr.bf16.mxu1 %v31031_v21  ;;  %v8633_v6 = vsel %vm3596_vm9, %v41280_v56, %v8632_v54  ;;  %v26083_v38 = vld.sshfl [vmem:[#allocation2 + $0xe8] sm:$0x3 pattern:$0x76325410] }
 0x437   : > { %v36899_v26 = vsub.f32 %v26100_v1, %v8697_v62 }
 0x438   : > { %28685 = vmatmul.mubr.f32.gmra.mrb[8].mxu1 %v36769_v51  ;;  %v8642_v51 = vsel %vm3586_vm4, %v36331_v31, %v36301_v41  ;;  %v36895_v41 = vpack.c.bf16 %v8697_v62, %v8694_v49 }
 0x439   : > { %28687 = vmatprep.mubr.f32.mxu1 %v36775_v57  ;;  %v8592_v57 = vrot.slane %v26075_v12, %v41125_v59  ;;  %v8643_v31 = vsel %vm3588_vm5, %v36362_v42, %v8642_v51  ;;  %v8850_v25 = vand.u32 4294901760, %v36899_v26  ;;  %v41291_v12 = vld [vmem:[#allocation88_spill] sm:$0xff]  ;;  %v41293_v51 = vld [vmem:[#allocation107_spill] sm:$0xff] }
 0x43a   : > { %v8671_v47 = vsel %vm3588_vm5, %v41291_v12, %v8670_v37  ;;  %v41302_v37 = vld [vmem:[#allocation104_spill] sm:$0xff] }
 0x43b   : > { %v8627_v42 = vsel %vm3598_vm10, %v8592_v57, %v8626_v17  ;;  %v8851_v63 = vsub.f32 %v36899_v26, %v8850_v25  ;;  %v8600_v57 = vrot.slane %v26079_v2, %v41125_v59  ;;  %v41294_v17 = vld [vmem:[#allocation94_spill] sm:$0xff] }
 0x43c   : > { %28688 = vmatmul.mubr.f32.gmra.mrb[10].mxu1 %v36788_v7  ;;  %v41277_v7 = vld [vmem:[#allocation71_spill] sm:$0xff]  ;;  %v8677_v34 = vsel %vm2437_vm2, %v8627_v42, 0 }
 0x43d   : > { %28690 = vmatprep.mubr.f32.mxu1 %v36797_v3  ;;  %v8663_v14 = vsel %vm3586_vm4, %v41277_v7, %v41276_v60  ;;  %v41296_v60 = vld [vmem:[#allocation116_spill] sm:$0xff] }
 0x440   : > { %28691 = vmatmul.mubr.f32.gmra.mrb[12].mxu1 %v36805_v19  ;;  %v41281_v19 = vld [vmem:[#allocation89_spill] sm:$0xff] }
 0x441   : > { %28697 = vmatprep.mubr.f32.mxu1 %v41272_v15  ;;  %v41286_v15 = vld [vmem:[#allocation80_spill] sm:$0xff] }
 0x444   : > { %28698 = vmatmul.mubr.f32.vlgmr.msra.gmra.mrb[6].mxu1 %v41273_v8  ;;  %v41287_v8 = vld [vmem:[#allocation92_spill] sm:$0xff] }
 0x445   : > { %31034 = vmatpush3.bf16.msra.mxu1 %v31031_v21  ;;  %28700 = vmatprep.mubr.f32.mxu1 %v41274_v0  ;;  %v41288_v0 = vld [vmem:[#allocation95_spill] sm:$0xff] }
 0x446   : > { %31036 = vmatprep.subr.bf16.mxu1 %v36701_v33 }
 0x448   : > { %28701 = vmatmul.mubr.f32.gmra.mrb[8].mxu1 %v41275_v43  ;;  %v8658_v43 = vsel %vm3590_vm6, %v41289_v11, %v8657_v4 }
 0x449   : > { %28703 = vmatprep.mubr.f32.mxu1 %v7927_v55  ;;  %v26077_v55 = vld.sshfl [vmem:[#allocation2 + $0x58] sm:$0x3 pattern:$0x76325410] }
 0x44a   : > { %v8596_v21 = vrot.slane %v26077_v55, %v41125_v59  ;;  %v36968_v55 = vand.u32 4294901760, %v8677_v34 }
 0x44c   : > { %28704 = vmatmul.mubr.f32.gmra.mrb[10].mxu1 %v7937_v53  ;;  %v8644_v53 = vsel %vm3590_vm6, %v41279_v48, %v8643_v31  ;;  %v8634_v50 = vsel %vm3598_vm10, %v8596_v21, %v8633_v6  ;;  %v41298_v48 = vld [vmem:[#allocation111_spill] sm:$0xff]  ;;  %v8852_v6 = vand.u32 4294901760, %v8851_v63 }
 0x44d   : > { %28706 = vmatprep.mubr.f32.mxu1 %v7947_v58  ;;  %v8649_v58 = vsel %vm3586_vm4, %v36335_v27, %v36305_v44  ;;  %v36897_v44 = vsub.f32 %v26099_v10, %v8694_v49  ;;  %v8645_v39 = vsel %vm3592_vm7, %v41287_v8, %v8644_v53  ;;  %v41290_v10 = vld [vmem:[#allocation101_spill] sm:$0xff]  ;;  %v41292_v49 = vld [vmem:[#allocation87_spill] sm:$0xff] }
 0x44e   : > { %v8650_v27 = vsel %vm3588_vm5, %v36377_v9, %v8649_v58  ;;  %v41278_v9 = vld [vmem:[#allocation73_spill] sm:$0xff]  ;;  %v8646_v58 = vsel %vm3594_vm8, %v41293_v51, %v8645_v39  ;;  %v26087_v8 = vld.sshfl [vmem:[#allocation2 + $0x148] sm:$0x3 pattern:$0x76325410]  ;;  %v36988_v39 = vsub.f32 %v8677_v34, %v36968_v55 }
 0x44f   : > { %v8638_v3 = vsel %vm3592_vm7, %v41278_v9, %v8637_v23  ;;  %v8651_v28 = vsel %vm3590_vm6, %v41281_v19, %v8650_v27  ;;  %v8843_v22 = vand.u32 4294901760, %v36897_v44  ;;  %v41295_v23 = vld [vmem:[#allocation100_spill] sm:$0xff]  ;;  %v8604_v27 = vrot.slane %v26081_v45, %v41125_v59  ;;  %v41299_v19 = vld [vmem:[#allocation93_spill] sm:$0xff] }
 0x450   : > { %28707 = vmatmul.mubr.f32.gmra.mrb[12].mxu1 %v7957_v16  ;;  %v41283_v16 = vld [vmem:[#allocation91_spill] sm:$0xff]  ;;  %v8639_v30 = vsel %vm3594_vm8, %v41286_v15, %v8638_v3  ;;  %v8652_v13 = vsel %vm3592_vm7, %v41288_v0, %v8651_v28  ;;  %v8659_v31 = vsel %vm3592_vm7, %v41295_v23, %v8658_v43  ;;  %v8679_v9 = vsel %vm2437_vm2, %v8634_v50, 0  ;;  %v41304_v45 = vld [vmem:[#allocation113_spill] sm:$0xff] }
 0x451   : > { %28713 = vmatprep.mubr.f32.mxu1 %v36725_v32  ;;  %v8844_v36 = vsub.f32 %v36897_v44, %v8843_v22  ;;  %v8640_v62 = vsel %vm3596_vm9, %v41292_v49, %v8639_v30  ;;  %v8653_v54 = vsel %vm3594_vm8, %v41294_v17, %v8652_v13  ;;  %v8647_v53 = vsel %vm3596_vm9, %v41298_v48, %v8646_v58  ;;  %v41303_v13 = vld [vmem:[#allocation109_spill] sm:$0xff]  ;;  %v41306_v58 = vld [vmem:[#allocation102_spill] sm:$0xff] }
 0x452   : > { %v8641_v3 = vsel %vm3598_vm10, %v8600_v57, %v8640_v62  ;;  %v8654_v28 = vsel %vm3596_vm9, %v41299_v19, %v8653_v54  ;;  %v8660_v4 = vsel %vm3594_vm8, %v41300_v20, %v8659_v31  ;;  %v8648_v30 = vsel %vm3598_vm10, %v8604_v27, %v8647_v53 }
 0x453   : > { %v8845_v56 = vand.u32 4294901760, %v8844_v36  ;;  %v8681_v15 = vsel %vm2437_vm2, %v8641_v3, 0  ;;  %v36990_v2 = vand.u32 4294901760, %v8679_v9  ;;  %v8661_v11 = vsel %vm3596_vm9, %v41303_v13, %v8660_v4 }
 0x454   : > { %28714 = vmatmul.mubr.f32.vlgmr.msra.gmra.mrb[6].mxu1 %v36733_v52  ;;  %v8683_v34 = vsel %vm2437_vm2, %v8648_v30, 0  ;;  %v26089_v36 = vld.sshfl [vmem:[#allocation2 + $0x178] sm:$0x3 pattern:$0x76325410]  ;;  %v8762_v17 = vand.u32 4294901760, %v36988_v39 }
 0x455   : > { %31038 = vmatpush3.bf16.msra.mxu1 %v36701_v33  ;;  %28716 = vmatprep.mubr.f32.mxu1 %v36738_v18  ;;  %v8664_v33 = vsel %vm3588_vm5, %v41283_v16, %v8663_v14  ;;  %v41297_v14 = vld [vmem:[#allocation119_spill] sm:$0xff]  ;;  %v8608_v16 = vrot.slane %v26083_v38, %v41125_v59  ;;  %v31043_v43 = vpack.c.bf16 %v8852_v6, %v8845_v56 }
 0x456   : > { %31040 = vmatprep.subr.bf16.mxu1 %v36895_v41  ;;  %v8665_v1 = vsel %vm3590_vm6, %v41290_v10, %v8664_v33  ;;  %v8672_v42 = vsel %vm3590_vm6, %v41297_v14, %v8671_v47  ;;  %v26085_v33 = vld.sshfl [vmem:[#allocation2 + $0x118] sm:$0x3 pattern:$0x76325410]  ;;  %v8616_v47 = vrot.slane %v26087_v8, %v41125_v59  ;;  %v37010_v62 = vsub.f32 %v8679_v9, %v36990_v2 }
 0x457   : > { %v8666_v7 = vsel %vm3592_vm7, %v41296_v60, %v8665_v1  ;;  %v8673_v21 = vsel %vm3592_vm7, %v41302_v37, %v8672_v42  ;;  %v8655_v0 = vsel %vm3598_vm10, %v8608_v16, %v8654_v28  ;;  %v8612_v50 = vrot.slane %v26085_v33, %v41125_v59  ;;  %v41305_v1 = vld [vmem:[#allocation96_spill] sm:$0xff] }
 0x458   : > { %28717 = vmatmul.mubr.f32.gmra.mrb[8].mxu1 %v36751_v46  ;;  %v8667_v61 = vsel %vm3594_vm8, %v41301_v29, %v8666_v7  ;;  %v8674_v12 = vsel %vm3594_vm8, %v41305_v1, %v8673_v21  ;;  %v8685_v63 = vsel %vm2437_vm2, %v8655_v0, 0  ;;  %v8620_v54 = vrot.slane %v26089_v36, %v41125_v59 }
 0x459   : > { %28719 = vmatprep.mubr.f32.mxu1 %v36756_v5  ;;  %v8668_v10 = vsel %vm3596_vm9, %v41304_v45, %v8667_v61  ;;  %v8662_v49 = vsel %vm3598_vm10, %v8612_v50, %v8661_v11  ;;  %v8675_v57 = vsel %vm3596_vm9, %v41306_v58, %v8674_v12  ;;  %v37022_v31 = vand.u32 4294901760, %v8685_v63  ;;  %v41307_v12 = vld [vmem:[#allocation147_spill] sm:$0xff] }
 0x45a   : > { %v8669_v51 = vsel %vm3598_vm10, %v8616_v47, %v8668_v10  ;;  %v8676_v38 = vsel %vm3598_vm10, %v8620_v54, %v8675_v57  ;;  %v8772_v60 = vand.u32 4294901760, %v37010_v62  ;;  %v8763_v7 = vsub.f32 %v36988_v39, %v8762_v17  ;;  %v41310_v57 = vld [vmem:[#allocation150_spill] sm:$0xff] }
 0x45b   : > { %v8689_v27 = vsel %vm2437_vm2, %v8669_v51, 0  ;;  %v31047_v29 = vpack.c.bf16 %v36899_v26, %v36897_v44  ;;  %v26101_v44 = vld [vmem:[%s40405_s3 + $0x60] sm:$0xff]  ;;  %v26102_v26 = vld [vmem:[%s40405_s3 + $0x68] sm:$0xff] }
 0x45c   : > { %28720 = vmatmul.mubr.f32.gmra.mrb[10].mxu1 %v36771_v24  ;;  %v37042_v3 = vand.u32 4294901760, %v8689_v27  ;;  %v8773_v48 = vsub.f32 %v37010_v62, %v8772_v60  ;;  %v8764_v19 = vand.u32 4294901760, %v8763_v7 }
 0x45d   : > { %28722 = vmatprep.mubr.f32.mxu1 %v36777_v40 }
 0x45e   : > { %v8774_v20 = vand.u32 4294901760, %v8773_v48 }
 0x460   : > { %28723 = vmatmul.mubr.f32.gmra.mrb[12].mxu1 %v36790_v35 }
 0x461   : > { %28729 = vmatprep.mubr.f32.mxu1 %v36725_v32  ;;  %v37000_v32 = vand.u32 4294901760, %v8681_v15 }
 0x463   : > { %v37020_v23 = vsub.f32 %v8681_v15, %v37000_v32 }
 0x464   : > { %28730 = vmatmul.mubr.f32.vlgmr.msra.gmra.mrb[6].mxu1 %v36733_v52  ;;  %v37016_v52 = vand.u32 4294901760, %v8683_v34 }
 0x465   : > { %31042 = vmatpush3.bf16.msra.mxu1 %v36895_v41  ;;  %28732 = vmatprep.mubr.f32.mxu1 %v36738_v18  ;;  %v8687_v18 = vsel %vm2437_vm2, %v8662_v49, 0  ;;  %v8782_v9 = vand.u32 4294901760, %v37020_v23 }
 0x466   : > { %31044 = vmatprep.subr.bf16.mxu1 %v31043_v43  ;;  %v37034_v14 = vsub.f32 %v8683_v34, %v37016_v52  ;;  %v37036_v42 = vand.u32 4294901760, %v8687_v18  ;;  %v9467_v34 = vrot.slane %v41307_v12, %v41125_v59 }
 0x467   : > { %v8783_v28 = vsub.f32 %v37020_v23, %v8782_v9 }
 0x468   : > { %28733 = vmatmul.mubr.f32.gmra.mrb[8].mxu1 %v36751_v46  ;;  %v37040_v46 = vsub.f32 %v8685_v63, %v37022_v31  ;;  %v8792_v53 = vand.u32 4294901760, %v37034_v14  ;;  %v37052_v56 = vsub.f32 %v8687_v18, %v37036_v42  ;;  %v41308_v63 = vld [vmem:[#allocation148_spill] sm:$0xff]  ;;  %v41311_v18 = vld [vmem:[#allocation151_spill] sm:$0xff] }
 0x469   : > { %28735 = vmatprep.mubr.f32.mxu1 %v36756_v5  ;;  %v8691_v5 = vsel %vm2437_vm2, %v8676_v38, 0  ;;  %v8784_v61 = vand.u32 4294901760, %v8783_v28  ;;  %v9496_v49 = vsel %vm3586_vm4, %v41308_v63, %v9467_v34  ;;  %v41321_v28 = vld [vmem:[#allocation9_spill] sm:$0xff] }
 0x46a   : > { %v37054_v6 = vand.u32 4294901760, %v8691_v5  ;;  %v8793_v4 = vsub.f32 %v37034_v14, %v8792_v53  ;;  %v8812_v16 = vand.u32 4294901760, %v37052_v56 }
 0x46c   : > { %28736 = vmatmul.mubr.f32.gmra.mrb[10].mxu1 %v36771_v24  ;;  %v8802_v24 = vand.u32 4294901760, %v37040_v46  ;;  %v8831_v33 = vsub.f32 %v8691_v5, %v37054_v6  ;;  %v8794_v15 = vand.u32 4294901760, %v8793_v4  ;;  %v41324_v4 = vld [vmem:[#allocation28_spill] sm:$0xff] }
 0x46d   : > { %28738 = vmatprep.mubr.f32.mxu1 %v36777_v40  ;;  %v8821_v40 = vsub.f32 %v8689_v27, %v37042_v3 }
 0x46e   : > { %v8803_v37 = vsub.f32 %v37040_v46, %v8802_v24  ;;  %v8832_v30 = vand.u32 4294901760, %v8831_v33 }
 0x46f   : > { %v8822_v21 = vand.u32 4294901760, %v8821_v40 }
 0x470   : > { %28739 = vmatmul.mubr.f32.gmra.mrb[12].mxu1 %v36790_v35  ;;  %v8813_v35 = vsub.f32 %v37052_v56, %v8812_v16  ;;  %v8804_v8 = vand.u32 4294901760, %v8803_v37  ;;  %v8833_v11 = vsub.f32 %v8831_v33, %v8832_v30  ;;  %v41329_v37 = vld [vmem:[#allocation29_spill] sm:$0xff] }
 0x471   : > { %28745 = vmatprep.mubr.f32.mxu1 %v8764_v19  ;;  %v8823_v0 = vsub.f32 %v8821_v40, %v8822_v21 }
 0x472   : > { %v8814_v13 = vand.u32 4294901760, %v8813_v35  ;;  %v8834_v45 = vand.u32 4294901760, %v8833_v11  ;;  %v41331_v35 = vld [vmem:[#allocation26_spill] sm:$0xff] }
 0x473   : > { %v8824_v50 = vand.u32 4294901760, %v8823_v0  ;;  %v41334_v0 = vld [vmem:[#allocation14_spill] sm:$0xff] }
 0x474   : > { %28746 = vmatmul.mubr.f32.vlgmr.msra.gmra.mrb[6].mxu1 %v8774_v20  ;;  %v41323_v20 = vld [vmem:[#allocation53_spill] sm:$0xff]  ;;  %v41336_v11 = vld [vmem:[#allocation22_spill] sm:$0xff] }
 0x475   : > { %31046 = vmatpush3.bf16.msra.mxu1 %v31043_v43  ;;  %28748 = vmatprep.mubr.f32.mxu1 %v8784_v61  ;;  %v31055_v43 = vpack.c.bf16 %v8850_v25, %v8843_v22  ;;  %v9506_v22 = vand.u32 4294901760, %v26101_v44  ;;  %v9509_v25 = vand.u32 4294901760, %v26102_v26  ;;  %v41328_v61 = vld [vmem:[#allocation23_spill] sm:$0xff] }
 0x476   : > { %31048 = vmatprep.subr.bf16.mxu1 %v31047_v29 }
 0x477   : > { %v37105_v10 = vsub.f32 %v26101_v44, %v9506_v22  ;;  %v37107_v1 = vsub.f32 %v26102_v26, %v9509_v25  ;;  %v41340_v44 = vld [vmem:[#allocation15_spill] sm:$0xff]  ;;  %v26103_v26 = vld [vmem:[%s40405_s3 + $0x70] sm:$0xff] }
 0x478   : > { %28749 = vmatmul.mubr.f32.gmra.mrb[8].mxu1 %v8794_v15  ;;  %v41330_v15 = vld [vmem:[#allocation24_spill] sm:$0xff] }
 0x479   : > { %28751 = vmatprep.mubr.f32.mxu1 %v8804_v8  ;;  %v9655_v47 = vand.u32 4294901760, %v37105_v10  ;;  %v9662_v36 = vand.u32 4294901760, %v37107_v1  ;;  %v41333_v8 = vld [vmem:[#allocation13_spill] sm:$0xff] }
 0x47b   : > { %v9663_v58 = vsub.f32 %v37107_v1, %v9662_v36 }
 0x47c   : > { %28752 = vmatmul.mubr.f32.gmra.mrb[10].mxu1 %v8814_v13  ;;  %v41335_v13 = vld [vmem:[#allocation17_spill] sm:$0xff] }
 0x47d   : > { %28754 = vmatprep.mubr.f32.mxu1 %v8824_v50  ;;  %v41337_v50 = vld [vmem:[#allocation33_spill] sm:$0xff] }
 0x480   : > { %28755 = vmatmul.mubr.f32.gmra.mrb[12].mxu1 %v8834_v45  ;;  %v41338_v45 = vld [vmem:[#allocation34_spill] sm:$0xff] }
 0x481   : > { %28761 = vmatprep.mubr.f32.mxu1 %v36968_v55 }
 0x484   : > { %28762 = vmatmul.mubr.f32.vlgmr.msra.gmra.mrb[6].mxu1 %v36990_v2 }
 0x485   : > { %31050 = vmatpush3.bf16.msra.mxu1 %v31047_v29  ;;  %28764 = vmatprep.mubr.f32.mxu1 %v37000_v32  ;;  %v41327_v29 = vld [vmem:[#allocation10_spill] sm:$0xff] }
 0x486   : > { %31052 = vmatprep.subr.bf16.mxu1 %v36895_v41 }
 0x488   : > { %28765 = vmatmul.mubr.f32.gmra.mrb[8].mxu1 %v37016_v52 }
 0x489   : > { %28767 = vmatprep.mubr.f32.mxu1 %v37022_v31 }
 0x48c   : > { %28768 = vmatmul.mubr.f32.gmra.mrb[10].mxu1 %v37036_v42 }
 0x48d   : > { %28770 = vmatprep.mubr.f32.mxu1 %v37042_v3 }
 0x490   : > { %28771 = vmatmul.mubr.f32.gmra.mrb[12].mxu1 %v37054_v6 }
 0x491   : > { %28777 = vmatprep.mubr.f32.mxu1 %v36988_v39  ;;  %v37103_v39 = vpack.c.bf16 %v9509_v25, %v9506_v22  ;;  %v26104_v22 = vld [vmem:[%s40405_s3 + $0x78] sm:$0xff]  ;;  %v41341_v25 = vld [vmem:[#allocation20_spill] sm:$0xff] }
 0x492   : > { %v10321_v12 = vand.u32 4294901760, %v26104_v22 }
 0x494   : > { %28778 = vmatmul.mubr.f32.vlgmr.msra.gmra.mrb[6].mxu1 %v37010_v62  ;;  %v41309_v62 = vld [vmem:[#allocation149_spill] sm:$0xff] }
 0x495   : > { %31054 = vmatpush3.bf16.msra.mxu1 %v36895_v41  ;;  %28780 = vmatprep.mubr.f32.mxu1 %v37020_v23  ;;  %v9497_v51 = vsel %vm3588_vm5, %v41309_v62, %v9496_v49  ;;  %v9664_v23 = vand.u32 4294901760, %v9663_v58 }
 0x496   : > { %31056 = vmatprep.subr.bf16.mxu1 %v31055_v43 }
 0x498   : > { %28781 = vmatmul.mubr.f32.gmra.mrb[8].mxu1 %v37034_v14  ;;  %v41313_v14 = vld [vmem:[#allocation153_spill] sm:$0xff] }
 0x499   : > { %28783 = vmatprep.mubr.f32.mxu1 %v37040_v46  ;;  %v41314_v46 = vld [vmem:[#allocation154_spill] sm:$0xff] }
 0x49c   : > { %28784 = vmatmul.mubr.f32.gmra.mrb[10].mxu1 %v37052_v56 }
 0x49d   : > { %28786 = vmatprep.mubr.f32.mxu1 %v8821_v40  ;;  %v41322_v40 = vld [vmem:[#allocation18_spill] sm:$0xff] }
 0x4a0   : > { %28787 = vmatmul.mubr.f32.gmra.mrb[12].mxu1 %v8831_v33  ;;  %v41326_v33 = vld [vmem:[#allocation30_spill] sm:$0xff] }
 0x4a1   : > { %28793 = vmatprep.mubr.f32.mxu1 %v8762_v17  ;;  %v9498_v17 = vsel %vm3590_vm6, %v41310_v57, %v9497_v51  ;;  %v41343_v57 = vld [vmem:[#allocation75_spill] sm:$0xff] }
 0x4a2   : > { %v9499_v27 = vsel %vm3592_vm7, %v41311_v18, %v9498_v17  ;;  %v10315_v17 = vsel %vm2437_vm2, %v41343_v57, 0  ;;  %v41372_v57 = vld [vmem:[#allocation155_spill] sm:$0xff] }
 0x4a4   : > { %28794 = vmatmul.mubr.f32.vlgmr.msra.gmra.mrb[6].mxu1 %v8772_v60  ;;  %v41312_v60 = vld [vmem:[#allocation152_spill] sm:$0xff] }
 0x4a5   : > { %31058 = vmatpush3.bf16.msra.mxu1 %v31055_v43  ;;  %28796 = vmatprep.mubr.f32.mxu1 %v8782_v9  ;;  %v9500_v7 = vsel %vm3594_vm8, %v41312_v60, %v9499_v27  ;;  %v41339_v43 = vld [vmem:[#allocation27_spill] sm:$0xff]  ;;  %v41346_v60 = vld [vmem:[#allocation46_spill] sm:$0xff] }
 0x4a6   : > { %31060 = vmatprep.subr.bf16.mxu1 %v36895_v41  ;;  %v9501_v9 = vsel %vm3596_vm9, %v41313_v14, %v9500_v7  ;;  %v41347_v14 = vld [vmem:[#allocation55_spill] sm:$0xff] }
 0x4a7   : > { %v9502_v5 = vsel %vm3598_vm10, %v41314_v46, %v9501_v9  ;;  %v41348_v9 = vld [vmem:[#allocation59_spill] sm:$0xff] }
 0x4a8   : > { %28797 = vmatmul.mubr.f32.gmra.mrb[8].mxu1 %v8792_v53  ;;  %v41316_v53 = vld [vmem:[#allocation11_spill] sm:$0xff] }
 0x4a9   : > { %28799 = vmatprep.mubr.f32.mxu1 %v8802_v24 }
 0x4ac   : > { %28800 = vmatmul.mubr.f32.gmra.mrb[10].mxu1 %v8812_v16  ;;  %v41325_v16 = vld [vmem:[#allocation31_spill] sm:$0xff] }
 0x4ad   : > { %28802 = vmatprep.mubr.f32.mxu1 %v8822_v21  ;;  %v31079_v21 = vpack.c.bf16 %v9662_v36, %v9655_v47  ;;  %v10473_v36 = vsub.f32 %v26104_v22, %v10321_v12 }
 0x4af   : > { %v10474_v49 = vand.u32 4294901760, %v10473_v36 }
 0x4b0   : > { %28803 = vmatmul.mubr.f32.gmra.mrb[12].mxu1 %v8832_v30  ;;  %v41332_v30 = vld [vmem:[#allocation32_spill] sm:$0xff] }
 0x4b1   : > { %28809 = vmatprep.mubr.f32.mxu1 %v36968_v55  ;;  %v10475_v51 = vsub.f32 %v10473_v36, %v10474_v49 }
 0x4b3   : > { %v10476_v58 = vand.u32 4294901760, %v10475_v51 }
 0x4b4   : > { %28810 = vmatmul.mubr.f32.vlgmr.msra.gmra.mrb[6].mxu1 %v36990_v2 }
 0x4b5   : > { %31062 = vmatpush3.bf16.msra.mxu1 %v36895_v41  ;;  %28812 = vmatprep.mubr.f32.mxu1 %v37000_v32  ;;  %v9656_v41 = vsub.f32 %v37105_v10, %v9655_v47 }
 0x4b6   : > { %31064 = vmatprep.subr.bf16.mxu1 %v37103_v39 }
 0x4b7   : > { %v9657_v54 = vand.u32 4294901760, %v9656_v41 }
 0x4b8   : > { %28813 = vmatmul.mubr.f32.gmra.mrb[8].mxu1 %v37016_v52 }
 0x4b9   : > { %28815 = vmatprep.mubr.f32.mxu1 %v37022_v31  ;;  %v31067_v38 = vpack.c.bf16 %v9664_v23, %v9657_v54  ;;  %v37213_v54 = vand.u32 4294901760, %v10315_v17  ;;  %v41344_v23 = vld [vmem:[#allocation38_spill] sm:$0xff] }
 0x4bb   : > { %v10455_v18 = vsub.f32 %v10315_v17, %v37213_v54 }
 0x4bc   : > { %28816 = vmatmul.mubr.f32.gmra.mrb[10].mxu1 %v37036_v42 }
 0x4bd   : > { %28818 = vmatprep.mubr.f32.mxu1 %v37042_v3  ;;  %v10456_v7 = vand.u32 4294901760, %v10455_v18 }
 0x4bf   : > { %v10457_v46 = vsub.f32 %v10455_v18, %v10456_v7 }
 0x4c0   : > { %28819 = vmatmul.mubr.f32.gmra.mrb[12].mxu1 %v37054_v6 }
 0x4c1   : > { %28825 = vmatprep.mubr.f32.mxu1 %v36968_v55  ;;  %v9503_v55 = vsel %vm2437_vm2, %v9502_v5, 0  ;;  %v41349_v5 = vld [vmem:[#allocation64_spill] sm:$0xff] }
 0x4c4   : > { %28826 = vmatmul.mubr.f32.vlgmr.msra.gmra.mrb[6].mxu1 %v36990_v2  ;;  %v37147_v2 = vand.u32 4294901760, %v9503_v55 }
 0x4c5   : > { %31066 = vmatpush3.bf16.msra.mxu1 %v37103_v39  ;;  %28828 = vmatprep.mubr.f32.mxu1 %v37000_v32  ;;  %v41315_v32 = vld [vmem:[#allocation16_spill] sm:$0xff] }
 0x4c6   : > { %31068 = vmatprep.subr.bf16.mxu1 %v31067_v38  ;;  %v9643_v48 = vsub.f32 %v9503_v55, %v37147_v2  ;;  %v41350_v55 = vld [vmem:[#allocation67_spill] sm:$0xff] }
 0x4c8   : > { %28829 = vmatmul.mubr.f32.gmra.mrb[8].mxu1 %v37016_v52  ;;  %v31071_v52 = vpack.c.bf16 %v37107_v1, %v37105_v10  ;;  %v9644_v56 = vand.u32 4294901760, %v9643_v48  ;;  %v41342_v10 = vld [vmem:[#allocation19_spill] sm:$0xff]  ;;  %v10318_v1 = vand.u32 4294901760, %v26103_v26 }
 0x4c9   : > { %28831 = vmatprep.mubr.f32.mxu1 %v37022_v31  ;;  %v41317_v31 = vld [vmem:[#allocation48_spill] sm:$0xff] }
 0x4ca   : > { %v9645_v19 = vsub.f32 %v9643_v48, %v9644_v56  ;;  %v37192_v34 = vpack.c.bf16 %v10321_v12, %v10318_v1  ;;  %v10466_v47 = vsub.f32 %v26103_v26, %v10318_v1 }
 0x4cc   : > { %28832 = vmatmul.mubr.f32.gmra.mrb[10].mxu1 %v37036_v42  ;;  %v41318_v42 = vld [vmem:[#allocation69_spill] sm:$0xff]  ;;  %v9646_v24 = vand.u32 4294901760, %v9645_v19  ;;  %v10467_v63 = vand.u32 4294901760, %v10466_v47  ;;  %v31095_v27 = vpack.c.bf16 %v10473_v36, %v10466_v47 }
 0x4cd   : > { %28834 = vmatprep.mubr.f32.mxu1 %v37042_v3  ;;  %v41319_v3 = vld [vmem:[#allocation70_spill] sm:$0xff] }
 0x4ce   : > { %v10468_v62 = vsub.f32 %v10466_v47, %v10467_v63  ;;  %v31103_v19 = vpack.c.bf16 %v10474_v49, %v10467_v63 }
 0x4d0   : > { %28835 = vmatmul.mubr.f32.gmra.mrb[12].mxu1 %v37054_v6  ;;  %v41320_v6 = vld [vmem:[#allocation21_spill] sm:$0xff]  ;;  %v10469_v41 = vand.u32 4294901760, %v10468_v62 }
 0x4d1   : > { %28841 = vmatprep.mubr.f32.mxu1 %v41315_v32  ;;  %v41351_v32 = vld [vmem:[#allocation35_spill] sm:$0xff] }
 0x4d4   : > { %28842 = vmatmul.mubr.f32.vlgmr.msra.gmra.mrb[6].mxu1 %v41316_v53  ;;  %v41354_v53 = vld [vmem:[#allocation47_spill] sm:$0xff] }
 0x4d5   : > { %31070 = vmatpush3.bf16.msra.mxu1 %v31067_v38  ;;  %28844 = vmatprep.mubr.f32.mxu1 %v41317_v31  ;;  %v41345_v38 = vld [vmem:[#allocation42_spill] sm:$0xff] }
 0x4d6   : > { %31072 = vmatprep.subr.bf16.mxu1 %v31071_v52  ;;  %v41355_v31 = vld [vmem:[#allocation54_spill] sm:$0xff] }
 0x4d8   : > { %28845 = vmatmul.mubr.f32.gmra.mrb[8].mxu1 %v41318_v42  ;;  %v41357_v42 = vld [vmem:[#allocation63_spill] sm:$0xff] }
 0x4d9   : > { %28847 = vmatprep.mubr.f32.mxu1 %v41319_v3  ;;  %v41358_v3 = vld [vmem:[#allocation36_spill] sm:$0xff] }
 0x4dc   : > { %28848 = vmatmul.mubr.f32.gmra.mrb[10].mxu1 %v41320_v6  ;;  %v41359_v6 = vld [vmem:[#allocation40_spill] sm:$0xff] }
 0x4dd   : > { %28850 = vmatprep.mubr.f32.mxu1 %v41321_v28  ;;  %v41360_v28 = vld [vmem:[#allocation44_spill] sm:$0xff] }
 0x4e0   : > { %28851 = vmatmul.mubr.f32.gmra.mrb[12].mxu1 %v9646_v24  ;;  %v41361_v24 = vld [vmem:[#allocation49_spill] sm:$0xff] }
 0x4e1   : > { %28857 = vmatprep.mubr.f32.mxu1 %v41322_v40 }
 0x4e4   : > { %28858 = vmatmul.mubr.f32.vlgmr.msra.gmra.mrb[6].mxu1 %v41323_v20 }
 0x4e5   : > { %31074 = vmatpush3.bf16.msra.mxu1 %v31071_v52  ;;  %28860 = vmatprep.mubr.f32.mxu1 %v41324_v4  ;;  %v41353_v52 = vld [vmem:[#allocation43_spill] sm:$0xff] }
 0x4e6   : > { %31076 = vmatprep.subr.bf16.mxu1 %v37103_v39 }
 0x4e8   : > { %28861 = vmatmul.mubr.f32.gmra.mrb[8].mxu1 %v41325_v16 }
 0x4e9   : > { %28863 = vmatprep.mubr.f32.mxu1 %v41326_v33 }
 0x4ec   : > { %28864 = vmatmul.mubr.f32.gmra.mrb[10].mxu1 %v41327_v29 }
 0x4ed   : > { %28866 = vmatprep.mubr.f32.mxu1 %v41328_v61 }
 0x4f0   : > { %28867 = vmatmul.mubr.f32.gmra.mrb[12].mxu1 %v37147_v2 }
 0x4f1   : > { %28873 = vmatprep.mubr.f32.mxu1 %v41329_v37  ;;  %v41369_v37 = vld [vmem:[#allocation58_spill] sm:$0xff] }
 0x4f4   : > { %28874 = vmatmul.mubr.f32.vlgmr.msra.gmra.mrb[6].mxu1 %v41330_v15  ;;  %v26106_v15 = vld [vmem:[%s40405_s3 + $0x88] sm:$0xff] }
 0x4f5   : > { %31078 = vmatpush3.bf16.msra.mxu1 %v37103_v39  ;;  %28876 = vmatprep.mubr.f32.mxu1 %v41331_v35  ;;  %v41370_v35 = vld [vmem:[#allocation62_spill] sm:$0xff] }
 0x4f6   : > { %31080 = vmatprep.subr.bf16.mxu1 %v31079_v21 }
 0x4f8   : > { %28877 = vmatmul.mubr.f32.gmra.mrb[8].mxu1 %v41332_v30  ;;  %v41371_v30 = vld [vmem:[#allocation66_spill] sm:$0xff] }
 0x4f9   : > { %28879 = vmatprep.mubr.f32.mxu1 %v41333_v8 }
 0x4fc   : > { %28880 = vmatmul.mubr.f32.gmra.mrb[10].mxu1 %v41334_v0  ;;  %v11105_v0 = vand.u32 4294901760, %v26106_v15 }
 0x4fd   : > { %28882 = vmatprep.mubr.f32.mxu1 %v41335_v13  ;;  %v37258_v13 = vld [vmem:[%s40407_s5 + $0x20] sm:$0xff] }
 0x500   : > { %28883 = vmatmul.mubr.f32.gmra.mrb[12].mxu1 %v9643_v48  ;;  %v41352_v48 = vld [vmem:[#allocation39_spill] sm:$0xff] }
 0x501   : > { %28889 = vmatprep.mubr.f32.mxu1 %v41336_v11  ;;  %v37263_v11 = vld [vmem:[%s40407_s5 + $0x28] sm:$0xff] }
 0x504   : > { %28890 = vmatmul.mubr.f32.vlgmr.msra.gmra.mrb[6].mxu1 %v41337_v50  ;;  %v37268_v50 = vld [vmem:[%s40407_s5 + $0x30] sm:$0xff] }
 0x505   : > { %31082 = vmatpush3.bf16.msra.mxu1 %v31079_v21  ;;  %28892 = vmatprep.mubr.f32.mxu1 %v41338_v45  ;;  %v26105_v21 = vld [vmem:[%s40405_s3 + $0x80] sm:$0xff]  ;;  %v11981_v45 = vand.u32 4294901760, %v37258_v13  ;;  %v11987_v26 = vand.u32 4294901760, %v37268_v50 }
 0x506   : > { %31084 = vmatprep.subr.bf16.mxu1 %v37103_v39  ;;  %v11102_v8 = vand.u32 4294901760, %v26105_v21 }
 0x508   : > { %28893 = vmatmul.mubr.f32.gmra.mrb[8].mxu1 %v41339_v43  ;;  %v11984_v43 = vand.u32 4294901760, %v37263_v11  ;;  %v37279_v22 = vpack.c.bf16 %v11105_v0, %v11102_v8 }
 0x509   : > { %28895 = vmatprep.mubr.f32.mxu1 %v41340_v44  ;;  %v37276_v44 = vld [vmem:[%s40407_s5 + $0x38] sm:$0xff] }
 0x50a   : > { %v11990_v1 = vand.u32 4294901760, %v37276_v44  ;;  %v37290_v12 = vpack.c.bf16 %v11984_v43, %v11981_v45 }
 0x50c   : > { %28896 = vmatmul.mubr.f32.gmra.mrb[10].mxu1 %v41341_v25  ;;  %v37281_v25 = vsub.f32 %v26105_v21, %v11102_v8  ;;  %v37297_v47 = vpack.c.bf16 %v11990_v1, %v11987_v26  ;;  %31136 = vmatprep.subr.bf16.mxu0 %v37290_v12  ;;  %v41398_v21 = vld [vmem:[#allocation139_spill] sm:$0xff] }
 0x50d   : > { %28898 = vmatprep.mubr.f32.mxu1 %v41342_v10  ;;  %v37283_v10 = vsub.f32 %v26106_v15, %v11105_v0  ;;  %31138 = vmatpush3.bf16.msra.mxu0 %v37290_v12  ;;  %v41399_v15 = vld [vmem:[#allocation74_spill] sm:$0xff]  ;;  %v12131_v0 = vsub.f32 %v37258_v13, %v11981_v45 }
 0x50e   : > { %v11251_v36 = vand.u32 4294901760, %v37281_v25  ;;  %31140 = vmatprep.subr.bf16.mxu0 %v37297_v47 }
 0x50f   : > { %v11258_v63 = vand.u32 4294901760, %v37283_v10 }
 0x510   : > { %28899 = vmatmul.mubr.f32.gmra.mrb[12].mxu1 %v9644_v56  ;;  %v41356_v56 = vld [vmem:[#allocation60_spill] sm:$0xff] }
 0x511   : > { %28905 = vmatprep.mubr.f32.mxu1 %v41322_v40  ;;  %v11259_v49 = vsub.f32 %v37283_v10, %v11258_v63  ;;  %31142 = vmatpush3.bf16.msra.mxu0 %v37297_v47 }
 0x513   : > { %v11260_v51 = vand.u32 4294901760, %v11259_v49 }
 0x514   : > { %28906 = vmatmul.mubr.f32.vlgmr.msra.gmra.mrb[6].mxu1 %v41323_v20 }
 0x515   : > { %31086 = vmatpush3.bf16.msra.mxu1 %v37103_v39  ;;  %28908 = vmatprep.mubr.f32.mxu1 %v41324_v4  ;;  %v31091_v39 = vpack.c.bf16 %v10476_v58, %v10469_v41  ;;  %v26090_v58 = vld.sshfl [vmem:[#allocation2 + $0x190] sm:$0x3 pattern:$0x76325410] }
 0x516   : > { %31088 = vmatprep.subr.bf16.mxu1 %v37192_v34 }
 0x518   : > { %28909 = vmatmul.mubr.f32.gmra.mrb[8].mxu1 %v41325_v16 }
 0x519   : > { %28911 = vmatprep.mubr.f32.mxu1 %v41326_v33 }
 0x51c   : > { %28912 = vmatmul.mubr.f32.gmra.mrb[10].mxu1 %v41327_v29 }
 0x51d   : > { %28914 = vmatprep.mubr.f32.mxu1 %v41328_v61 }
 0x520   : > { %28915 = vmatmul.mubr.f32.gmra.mrb[12].mxu1 %v37147_v2 }
 0x521   : > { %28921 = vmatprep.mubr.f32.mxu1 %v41322_v40  ;;  %v41362_v40 = vld [vmem:[#allocation56_spill] sm:$0xff] }
 0x524   : > { %28922 = vmatmul.mubr.f32.vlgmr.msra.gmra.mrb[6].mxu1 %v41323_v20  ;;  %v41363_v20 = vld [vmem:[#allocation61_spill] sm:$0xff] }
 0x525   : > { %31090 = vmatpush3.bf16.msra.mxu1 %v37192_v34  ;;  %28924 = vmatprep.mubr.f32.mxu1 %v41324_v4  ;;  %v41364_v4 = vld [vmem:[#allocation65_spill] sm:$0xff] }
 0x526   : > { %31092 = vmatprep.subr.bf16.mxu1 %v31091_v39 }
 0x528   : > { %28925 = vmatmul.mubr.f32.gmra.mrb[8].mxu1 %v41325_v16  ;;  %v41365_v16 = vld [vmem:[#allocation37_spill] sm:$0xff] }
 0x529   : > { %28927 = vmatprep.mubr.f32.mxu1 %v41326_v33  ;;  %v41366_v33 = vld [vmem:[#allocation41_spill] sm:$0xff] }
 0x52c   : > { %28928 = vmatmul.mubr.f32.gmra.mrb[10].mxu1 %v41327_v29  ;;  %v41367_v29 = vld [vmem:[#allocation45_spill] sm:$0xff] }
 0x52d   : > { %28930 = vmatprep.mubr.f32.mxu1 %v41328_v61  ;;  %v41368_v61 = vld [vmem:[#allocation52_spill] sm:$0xff] }
 0x530   : > { %28931 = vmatmul.mubr.f32.gmra.mrb[12].mxu1 %v37147_v2  ;;  %v10458_v2 = vand.u32 4294901760, %v10457_v46  ;;  %v41376_v46 = vld [vmem:[#allocation143_spill] sm:$0xff] }
 0x531   : > { %28937 = vmatprep.mubr.f32.mxu1 %v41344_v23 }
 0x534   : > { %28938 = vmatmul.mubr.f32.vlgmr.msra.gmra.mrb[6].mxu1 %v41345_v38 }
 0x535   : > { %31094 = vmatpush3.bf16.msra.mxu1 %v31091_v39  ;;  %28940 = vmatprep.mubr.f32.mxu1 %v41346_v60  ;;  %v11091_v39 = vrot.slane %v26090_v58, %v41125_v59  ;;  %v31119_v60 = vpack.c.bf16 %v37283_v10, %v37281_v25 }
 0x536   : > { %31096 = vmatprep.subr.bf16.mxu1 %v31095_v27 }
 0x537   : > { %v11098_v17 = vsel %vm3598_vm10, %v11091_v39, %v41372_v57  ;;  %v26107_v57 = vld [vmem:[%s40406_s4] ss:$0 sm:$0xff] }
 0x538   : > { %28941 = vmatmul.mubr.f32.gmra.mrb[8].mxu1 %v41347_v14  ;;  %v11099_v23 = vsel %vm2437_vm2, %v11098_v17, 0  ;;  %v41375_v14 = vld [vmem:[#allocation141_spill] sm:$0xff] }
 0x539   : > { %28943 = vmatprep.mubr.f32.mxu1 %v41348_v9 }
 0x53c   : > { %28944 = vmatmul.mubr.f32.gmra.mrb[10].mxu1 %v41349_v5  ;;  %v41377_v5 = vld [vmem:[#allocation144_spill] sm:$0xff] }
 0x53d   : > { %28946 = vmatprep.mubr.f32.mxu1 %v41350_v55 }
 0x540   : > { %28947 = vmatmul.mubr.f32.gmra.mrb[12].mxu1 %v10458_v2  ;;  %v41379_v2 = vld [vmem:[#allocation146_spill] sm:$0xff] }
 0x541   : > { %28953 = vmatprep.mubr.f32.mxu1 %v41351_v32 }
 0x544   : > { %28954 = vmatmul.mubr.f32.vlgmr.msra.gmra.mrb[6].mxu1 %v41352_v48 }
 0x545   : > { %31098 = vmatpush3.bf16.msra.mxu1 %v31095_v27  ;;  %28956 = vmatprep.mubr.f32.mxu1 %v41353_v52  ;;  %v41373_v27 = vld [vmem:[#allocation138_spill] sm:$0xff] }
 0x546   : > { %31100 = vmatprep.subr.bf16.mxu1 %v37192_v34 }
 0x548   : > { %28957 = vmatmul.mubr.f32.gmra.mrb[8].mxu1 %v41354_v53 }
 0x549   : > { %28959 = vmatprep.mubr.f32.mxu1 %v41355_v31 }
 0x54c   : > { %28960 = vmatmul.mubr.f32.gmra.mrb[10].mxu1 %v41356_v56 }
 0x54d   : > { %28962 = vmatprep.mubr.f32.mxu1 %v41357_v42 }
 0x550   : > { %28963 = vmatmul.mubr.f32.gmra.mrb[12].mxu1 %v37213_v54 }
 0x551   : > { %28969 = vmatprep.mubr.f32.mxu1 %v41358_v3  ;;  %v41386_v3 = vld [vmem:[#allocation135_spill] sm:$0xff] }
 0x554   : > { %28970 = vmatmul.mubr.f32.vlgmr.msra.gmra.mrb[6].mxu1 %v41359_v6  ;;  %v31127_v6 = vpack.c.bf16 %v11258_v63, %v11251_v36 }
 0x555   : > { %31102 = vmatpush3.bf16.msra.mxu1 %v37192_v34  ;;  %28972 = vmatprep.mubr.f32.mxu1 %v41360_v28  ;;  %v41388_v28 = vld [vmem:[#allocation127_spill] sm:$0xff] }
 0x556   : > { %31104 = vmatprep.subr.bf16.mxu1 %v31103_v19 }
 0x558   : > { %28973 = vmatmul.mubr.f32.gmra.mrb[8].mxu1 %v41361_v24  ;;  %v41389_v24 = vld [vmem:[#allocation25_spill] sm:$0xff] }
 0x559   : > { %28975 = vmatprep.mubr.f32.mxu1 %v41362_v40  ;;  %v41390_v40 = vld [vmem:[#allocation131_spill] sm:$0xff] }
 0x55c   : > { %28976 = vmatmul.mubr.f32.gmra.mrb[10].mxu1 %v41363_v20  ;;  %v41391_v20 = vld [vmem:[#allocation134_spill] sm:$0xff] }
 0x55d   : > { %28978 = vmatprep.mubr.f32.mxu1 %v41364_v4  ;;  %v41392_v4 = vld [vmem:[#allocation137_spill] sm:$0xff] }
 0x560   : > { %28979 = vmatmul.mubr.f32.gmra.mrb[12].mxu1 %v10455_v18  ;;  %v37327_v18 = vand.u32 4294901760, %v11099_v23 }
 0x561   : > { %28985 = vmatprep.mubr.f32.mxu1 %v41365_v16  ;;  %v41393_v16 = vld [vmem:[#allocation140_spill] sm:$0xff] }
 0x562   : > { %v11239_v38 = vsub.f32 %v11099_v23, %v37327_v18 }
 0x564   : > { %28986 = vmatmul.mubr.f32.vlgmr.msra.gmra.mrb[6].mxu1 %v41366_v33  ;;  %v11240_v9 = vand.u32 4294901760, %v11239_v38  ;;  %v41394_v33 = vld [vmem:[#allocation83_spill] sm:$0xff] }
 0x565   : > { %31106 = vmatpush3.bf16.msra.mxu1 %v31103_v19  ;;  %28988 = vmatprep.mubr.f32.mxu1 %v41367_v29  ;;  %v41387_v19 = vld [vmem:[#allocation81_spill] sm:$0xff]  ;;  %v41395_v29 = vld [vmem:[#allocation130_spill] sm:$0xff] }
 0x566   : > { %31108 = vmatprep.subr.bf16.mxu1 %v37192_v34  ;;  %v11241_v55 = vsub.f32 %v11239_v38, %v11240_v9 }
 0x568   : > { %28989 = vmatmul.mubr.f32.gmra.mrb[8].mxu1 %v41368_v61  ;;  %v41396_v61 = vld [vmem:[#allocation133_spill] sm:$0xff] }
 0x569   : > { %28991 = vmatprep.mubr.f32.mxu1 %v41369_v37  ;;  %v41397_v37 = vld [vmem:[#allocation136_spill] sm:$0xff] }
 0x56c   : > { %28992 = vmatmul.mubr.f32.gmra.mrb[10].mxu1 %v41370_v35  ;;  %v41400_v35 = vld [vmem:[#allocation142_spill] sm:$0xff] }
 0x56d   : > { %28994 = vmatprep.mubr.f32.mxu1 %v41371_v30  ;;  %v41401_v30 = vmov 0.0  }
 0x56e   : > { %11906 = vst.msk [vmem:[#allocation3 + $0x20] sm:$0xff] %vm11900_vm11, %v41401_v30  ;;  %11901 = vst.msk [vmem:[#allocation3] sm:$0xff] %vm11900_vm11, %v41401_v30 }
 0x56f   : > { %11907 = vst.msk [vmem:[#allocation3 + $0x28] sm:$0x3] %vm11902_vm12, %v41401_v30  ;;  %11903 = vst.msk [vmem:[#allocation3 + $0x8] sm:$0x3] %vm11902_vm12, %v41401_v30 }
 0x570   : > { %28995 = vmatmul.mubr.f32.gmra.mrb[12].mxu1 %v10456_v7  ;;  %v41374_v7 = vld [vmem:[#allocation72_spill] sm:$0xff]  ;;  %11904 = vst.msk [vmem:[#allocation3 + $0x10] sm:$0xff] %vm11900_vm11, %v41401_v30  ;;  %11908 = vst.msk [vmem:[#allocation3 + $0x30] sm:$0xff] %vm11900_vm11, %v41401_v30 }
 0x571   : > { %29001 = vmatprep.mubr.f32.mxu1 %v41351_v32  ;;  %11905 = vst.msk [vmem:[#allocation3 + $0x18] sm:$0x3] %vm11902_vm12, %v41401_v30  ;;  %11909 = vst.msk [vmem:[#allocation3 + $0x38] sm:$0x3] %vm11902_vm12, %v41401_v30 }
 0x572   : > { %11910 = vst.msk [vmem:[#allocation3 + $0x40] sm:$0xff] %vm11900_vm11, %v41401_v30  ;;  %11912 = vst.msk [vmem:[#allocation3 + $0x50] sm:$0xff] %vm11900_vm11, %v41401_v30 }
 0x573   : > { %11911 = vst.msk [vmem:[#allocation3 + $0x48] sm:$0x3] %vm11902_vm12, %v41401_v30  ;;  %11913 = vst.msk [vmem:[#allocation3 + $0x58] sm:$0x3] %vm11902_vm12, %v41401_v30 }
 0x574   : > { %29002 = vmatmul.mubr.f32.vlgmr.msra.gmra.mrb[6].mxu1 %v41352_v48  ;;  %11914 = vst.msk [vmem:[#allocation3 + $0x60] sm:$0xff] %vm11900_vm11, %v41401_v30  ;;  %11916 = vst.msk [vmem:[#allocation3 + $0x70] sm:$0xff] %vm11900_vm11, %v41401_v30 }
 0x575   : > { %31110 = vmatpush3.bf16.msra.mxu1 %v37192_v34  ;;  %29004 = vmatprep.mubr.f32.mxu1 %v41353_v52  ;;  %v11252_v34 = vsub.f32 %v37281_v25, %v11251_v36  ;;  %11915 = vst.msk [vmem:[#allocation3 + $0x68] sm:$0x3] %vm11902_vm12, %v41401_v30  ;;  %11917 = vst.msk [vmem:[#allocation3 + $0x78] sm:$0x3] %vm11902_vm12, %v41401_v30  ;;  %v12132_v36 = vand.u32 4294901760, %v12131_v0 }
 0x576   : > { %31112 = vmatprep.subr.bf16.mxu1 %v37279_v22  ;;  %11918 = vst.msk [vmem:[#allocation3 + $0x80] sm:$0xff] %vm11900_vm11, %v41401_v30  ;;  %11920 = vst.msk [vmem:[#allocation3 + $0x90] sm:$0xff] %vm11900_vm11, %v41401_v30  ;;  %v11943_v8 = vld [vmem:[#allocation3 + $0x1] sm:$0xff] }
 0x577   : > { %v11253_v62 = vand.u32 4294901760, %v11252_v34  ;;  %11919 = vst.msk [vmem:[#allocation3 + $0x88] sm:$0x3] %vm11902_vm12, %v41401_v30  ;;  %11921 = vst.msk [vmem:[#allocation3 + $0x98] sm:$0x3] %vm11902_vm12, %v41401_v30  ;;  %v11957_v25 = vsel %vm11900_vm11, %v11943_v8, 0  ;;  %v12133_v49 = vsub.f32 %v12131_v0, %v12132_v36 }
 0x578   : > { %29005 = vmatmul.mubr.f32.gmra.mrb[8].mxu1 %v41354_v53  ;;  %19425 = vst.msk [vmem:[#allocation4] sm:$0xff] %vm11900_vm11, %v41401_v30  ;;  %19427 = vst.msk [vmem:[#allocation4 + $0x10] sm:$0xff] %vm11900_vm11, %v41401_v30  ;;  %v37465_v10 = vand.u32 4294901760, %v11957_v25 }
 0x579   : > { %29007 = vmatprep.mubr.f32.mxu1 %v41355_v31  ;;  %v31115_v41 = vpack.c.bf16 %v11260_v51, %v11253_v62  ;;  %19426 = vst.msk [vmem:[#allocation4 + $0x8] sm:$0x3] %vm11902_vm12, %v41401_v30  ;;  %19428 = vst.msk [vmem:[#allocation4 + $0x18] sm:$0x3] %vm11902_vm12, %v41401_v30 }
 0x57a   : > { %19429 = vst.msk [vmem:[#allocation4 + $0x20] sm:$0xff] %vm11900_vm11, %v41401_v30  ;;  %19431 = vst.msk [vmem:[#allocation4 + $0x30] sm:$0xff] %vm11900_vm11, %v41401_v30  ;;  %v37468_v34 = vsub.f32 %v11957_v25, %v37465_v10 }
 0x57b   : > { %19430 = vst.msk [vmem:[#allocation4 + $0x28] sm:$0x3] %vm11902_vm12, %v41401_v30  ;;  %19432 = vst.msk [vmem:[#allocation4 + $0x38] sm:$0x3] %vm11902_vm12, %v41401_v30 }
 0x57c   : > { %29008 = vmatmul.mubr.f32.gmra.mrb[10].mxu1 %v41356_v56  ;;  %19433 = vst.msk [vmem:[#allocation4 + $0x40] sm:$0xff] %vm11900_vm11, %v41401_v30  ;;  %19435 = vst.msk [vmem:[#allocation4 + $0x50] sm:$0xff] %vm11900_vm11, %v41401_v30  ;;  %v12051_v51 = vand.u32 4294901760, %v37468_v34 }
 0x57d   : > { %29010 = vmatprep.mubr.f32.mxu1 %v41357_v42  ;;  %19434 = vst.msk [vmem:[#allocation4 + $0x48] sm:$0x3] %vm11902_vm12, %v41401_v30  ;;  %19436 = vst.msk [vmem:[#allocation4 + $0x58] sm:$0x3] %vm11902_vm12, %v41401_v30 }
 0x57e   : > { %19437 = vst.msk [vmem:[#allocation4 + $0x60] sm:$0xff] %vm11900_vm11, %v41401_v30  ;;  %19439 = vst.msk [vmem:[#allocation4 + $0x70] sm:$0xff] %vm11900_vm11, %v41401_v30  ;;  %v12052_v13 = vsub.f32 %v37468_v34, %v12051_v51 }
 0x57f   : > { %19438 = vst.msk [vmem:[#allocation4 + $0x68] sm:$0x3] %vm11902_vm12, %v41401_v30  ;;  %19440 = vst.msk [vmem:[#allocation4 + $0x78] sm:$0x3] %vm11902_vm12, %v41401_v30 }
 0x580   : > { %29011 = vmatmul.mubr.f32.gmra.mrb[12].mxu1 %v37213_v54  ;;  %19441 = vst.msk [vmem:[#allocation4 + $0x80] sm:$0xff] %vm11900_vm11, %v41401_v30  ;;  %v12053_v45 = vand.u32 4294901760, %v12052_v13 }
 0x581   : > { %29017 = vmatprep.mubr.f32.mxu1 %v41351_v32  ;;  %v11242_v32 = vand.u32 4294901760, %v11241_v55  ;;  %19442 = vst.msk [vmem:[#allocation4 + $0x88] sm:$0x3] %vm11902_vm12, %v41401_v30 }
 0x582   : > { %29133 = vmatprep.mubr.f32.mxu0 %v12053_v45 }
 0x584   : > { %29018 = vmatmul.mubr.f32.vlgmr.msra.gmra.mrb[6].mxu1 %v41352_v48  ;;  %v41380_v48 = vld [vmem:[#allocation76_spill] sm:$0xff] }
 0x585   : > { %31114 = vmatpush3.bf16.msra.mxu1 %v37279_v22  ;;  %29020 = vmatprep.mubr.f32.mxu1 %v41353_v52  ;;  %v41381_v52 = vld [vmem:[#allocation82_spill] sm:$0xff] }
 0x586   : > { %31116 = vmatprep.subr.bf16.mxu1 %v31115_v41 }
 0x588   : > { %29021 = vmatmul.mubr.f32.gmra.mrb[8].mxu1 %v41354_v53  ;;  %v41382_v53 = vld [vmem:[#allocation77_spill] sm:$0xff] }
 0x589   : > { %29023 = vmatprep.mubr.f32.mxu1 %v41355_v31  ;;  %v41383_v31 = vld [vmem:[#allocation57_spill] sm:$0xff] }
 0x58c   : > { %29024 = vmatmul.mubr.f32.gmra.mrb[10].mxu1 %v41356_v56  ;;  %v41384_v56 = vld [vmem:[#allocation128_spill] sm:$0xff] }
 0x58d   : > { %29026 = vmatprep.mubr.f32.mxu1 %v41357_v42  ;;  %v41385_v42 = vld [vmem:[#allocation132_spill] sm:$0xff] }
 0x590   : > { %29027 = vmatmul.mubr.f32.gmra.mrb[12].mxu1 %v37213_v54  ;;  %v41378_v54 = vld [vmem:[#allocation145_spill] sm:$0xff] }
 0x591   : > { %29033 = vmatprep.mubr.f32.mxu1 %v41373_v27 }
 0x594   : > { %29034 = vmatmul.mubr.f32.vlgmr.msra.gmra.mrb[6].mxu1 %v41374_v7 }
 0x595   : > { %31118 = vmatpush3.bf16.msra.mxu1 %v31115_v41  ;;  %29036 = vmatprep.mubr.f32.mxu1 %v41375_v14  ;;  %v12134_v41 = vand.u32 4294901760, %v12133_v49 }
 0x596   : > { %31120 = vmatprep.subr.bf16.mxu1 %v31119_v60 }
 0x598   : > { %29037 = vmatmul.mubr.f32.gmra.mrb[8].mxu1 %v41376_v46 }
 0x599   : > { %29039 = vmatprep.mubr.f32.mxu1 %v41377_v5 }
 0x59c   : > { %29040 = vmatmul.mubr.f32.gmra.mrb[10].mxu1 %v41378_v54 }
 0x59d   : > { %29042 = vmatprep.mubr.f32.mxu1 %v41379_v2 }
 0x5a0   : > { %29043 = vmatmul.mubr.f32.gmra.mrb[12].mxu1 %v11242_v32 }
 0x5a1   : > { %29049 = vmatprep.mubr.f32.mxu1 %v41380_v48 }
 0x5a4   : > { %29050 = vmatmul.mubr.f32.vlgmr.msra.gmra.mrb[6].mxu1 %v41381_v52 }
 0x5a5   : > { %31122 = vmatpush3.bf16.msra.mxu1 %v31119_v60  ;;  %29052 = vmatprep.mubr.f32.mxu1 %v41382_v53 }
 0x5a6   : > { %31124 = vmatprep.subr.bf16.mxu1 %v37279_v22 }
 0x5a8   : > { %29053 = vmatmul.mubr.f32.gmra.mrb[8].mxu1 %v41383_v31 }
 0x5a9   : > { %29055 = vmatprep.mubr.f32.mxu1 %v41384_v56 }
 0x5ac   : > { %29056 = vmatmul.mubr.f32.gmra.mrb[10].mxu1 %v41385_v42 }
 0x5ad   : > { %29058 = vmatprep.mubr.f32.mxu1 %v41386_v3 }
 0x5b0   : > { %29059 = vmatmul.mubr.f32.gmra.mrb[12].mxu1 %v37327_v18 }
 0x5b1   : > { %29065 = vmatprep.mubr.f32.mxu1 %v41387_v19 }
 0x5b4   : > { %29066 = vmatmul.mubr.f32.vlgmr.msra.gmra.mrb[6].mxu1 %v41388_v28 }
 0x5b5   : > { %31126 = vmatpush3.bf16.msra.mxu1 %v37279_v22  ;;  %29068 = vmatprep.mubr.f32.mxu1 %v41389_v24 }
 0x5b6   : > { %31128 = vmatprep.subr.bf16.mxu1 %v31127_v6 }
 0x5b8   : > { %29069 = vmatmul.mubr.f32.gmra.mrb[8].mxu1 %v41390_v40 }
 0x5b9   : > { %29071 = vmatprep.mubr.f32.mxu1 %v41391_v20 }
 0x5bc   : > { %29072 = vmatmul.mubr.f32.gmra.mrb[10].mxu1 %v41392_v4 }
 0x5bd   : > { %29074 = vmatprep.mubr.f32.mxu1 %v41393_v16 }
 0x5c0   : > { %29075 = vmatmul.mubr.f32.gmra.mrb[12].mxu1 %v11239_v38 }
 0x5c1   : > { %29081 = vmatprep.mubr.f32.mxu1 %v41394_v33 }
 0x5c4   : > { %29082 = vmatmul.mubr.f32.vlgmr.msra.gmra.mrb[6].mxu1 %v41395_v29 }
 0x5c5   : > { %31130 = vmatpush3.bf16.msra.mxu1 %v31127_v6  ;;  %29084 = vmatprep.mubr.f32.mxu1 %v41396_v61 }
 0x5c6   : > { %31132 = vmatprep.subr.bf16.mxu1 %v37279_v22 }
 0x5c8   : > { %29085 = vmatmul.mubr.f32.gmra.mrb[8].mxu1 %v41397_v37 }
 0x5c9   : > { %29087 = vmatprep.mubr.f32.mxu1 %v41398_v21 }
 0x5cc   : > { %29088 = vmatmul.mubr.f32.gmra.mrb[10].mxu1 %v41399_v15 }
 0x5cd   : > { %29090 = vmatprep.mubr.f32.mxu1 %v41400_v35 }
 0x5d0   : > { %29091 = vmatmul.mubr.f32.gmra.mrb[12].mxu1 %v11240_v9 }
 0x5d1   : > { %29097 = vmatprep.mubr.f32.mxu1 %v41380_v48 }
 0x5d4   : > { %29098 = vmatmul.mubr.f32.vlgmr.msra.gmra.mrb[6].mxu1 %v41381_v52 }
 0x5d5   : > { %31134 = vmatpush3.bf16.msra.mxu1 %v37279_v22  ;;  %29100 = vmatprep.mubr.f32.mxu1 %v41382_v53  ;;  %v12138_v22 = vsub.f32 %v37263_v11, %v11984_v43 }
 0x5d7   : > { %v12139_v63 = vand.u32 4294901760, %v12138_v22  ;;  %v37477_v43 = vpack.c.bf16 %v12138_v22, %v12131_v0 }
 0x5d8   : > { %29101 = vmatmul.mubr.f32.gmra.mrb[8].mxu1 %v41383_v31 }
 0x5d9   : > { %29103 = vmatprep.mubr.f32.mxu1 %v41384_v56  ;;  %v12140_v62 = vsub.f32 %v12138_v22, %v12139_v63  ;;  %v37479_v39 = vpack.c.bf16 %v12139_v63, %v12132_v36 }
 0x5db   : > { %v12141_v58 = vand.u32 4294901760, %v12140_v62 }
 0x5dc   : > { %29104 = vmatmul.mubr.f32.gmra.mrb[10].mxu1 %v41385_v42 }
 0x5dd   : > { %29106 = vmatprep.mubr.f32.mxu1 %v41386_v3  ;;  %v37474_v11 = vpack.c.bf16 %v12141_v58, %v12134_v41 }
 0x5df   : > { %31144 = vmatprep.subr.bf16.mxu0 %v37474_v11 }
 0x5e0   : > { %29107 = vmatmul.mubr.f32.gmra.mrb[12].mxu1 %v37327_v18 }
 0x5e1   : > { %29113 = vmatprep.mubr.f32.mxu1 %v41380_v48 }
 0x5e4   : > { %29114 = vmatmul.mubr.f32.vlgmr.msra.gmra.mrb[6].mxu1 %v41381_v52 }
 0x5e5   : > { %29116 = vmatprep.mubr.f32.mxu1 %v41382_v53 }
 0x5e8   : > { %29117 = vmatmul.mubr.f32.gmra.mrb[8].mxu1 %v41383_v31  ;;  %v37489_v31 = vsub.f32 %v37268_v50, %v11987_v26 }
 0x5e9   : > { %29119 = vmatprep.mubr.f32.mxu1 %v41384_v56  ;;  %v37494_v56 = vsub.f32 %v37276_v44, %v11990_v1 }
 0x5ea   : > { %v12146_v50 = vand.u32 4294901760, %v37489_v31 }
 0x5eb   : > { %v12153_v26 = vand.u32 4294901760, %v37494_v56 }
 0x5ec   : > { %29120 = vmatmul.mubr.f32.gmra.mrb[10].mxu1 %v41385_v42  ;;  %v12147_v8 = vsub.f32 %v37489_v31, %v12146_v50 }
 0x5ed   : > { %29122 = vmatprep.mubr.f32.mxu1 %v41386_v3  ;;  %v12154_v0 = vsub.f32 %v37494_v56, %v12153_v26 }
 0x5f0   : > { %29123 = vmatmul.mubr.f32.gmra.mrb[12].mxu1 %v37327_v18 }
 0x6b7   : > { %v29115_v17 = vpop.f32.mrb[6].mxu1 }
 0x6b8   : > { %v11877_v23 = vadd.f32 %v29115_v17, %v26107_v57  ;;  %v11815_v18 = vpop.f32.mrb[7].mxu1  ;;  %v12148_v17 = vand.u32 4294901760, %v12147_v8  ;;  %v31155_v8 = vpack.c.bf16 %v37494_v56, %v37489_v31 }
 0x6b9   : > { %v11876_v27 = vadd.f32 %v26107_v57, %v11815_v18 }
 0x6ba   : > { %v11885_v38 = vmul.f32 0.2, %v11877_v23 }
 0x6bb   : > { %v11884_v60 = vmul.f32 0.2, %v11876_v27  ;;  %v29118_v7 = vpop.f32.mrb[8].mxu1 }
 0x6bc   : > { %v11893_v14 = vmax.f32 %v11877_v23, %v11885_v38  ;;  %v11879_v9 = vadd.f32 %v29118_v7, %v26107_v57  ;;  %v11827_v46 = vpop.f32.mrb[9].mxu1  ;;  %v12155_v23 = vand.u32 4294901760, %v12154_v0  ;;  %v11931_v0 = vld [vmem:[#allocation3] sm:$0xff] }
 0x6bd   : > { %v11892_v5 = vmax.f32 %v11876_v27, %v11884_v60  ;;  %v11878_v55 = vadd.f32 %v26107_v57, %v11827_v46 }
 0x6be   : > { %11924 = vst.msk [vmem:[#allocation3 + $0x21] sm:$0xff] %vm11900_vm11, %v11893_v14  ;;  %v11887_v54 = vmul.f32 0.2, %v11879_v9 }
 0x6bf   : > { %11923 = vst.msk [vmem:[#allocation3 + $0x11] sm:$0xff] %vm11900_vm11, %v11892_v5  ;;  %v11886_v2 = vmul.f32 0.2, %v11878_v55  ;;  %v29121_v32 = vpop.f32.mrb[10].mxu1 }
 0x6c0   : > { %v11895_v48 = vmax.f32 %v11879_v9, %v11887_v54  ;;  %v11881_v52 = vadd.f32 %v29121_v32, %v26107_v57  ;;  %v11839_v53 = vpop.f32.mrb[11].mxu1  ;;  %v31147_v32 = vpack.c.bf16 %v12155_v23, %v12148_v17 }
 0x6c1   : > { %v11894_v42 = vmax.f32 %v11878_v55, %v11886_v2  ;;  %v11880_v3 = vadd.f32 %v26107_v57, %v11839_v53 }
 0x6c2   : > { %11926 = vst.msk [vmem:[#allocation3 + $0x41] sm:$0xff] %vm11900_vm11, %v11895_v48  ;;  %v11889_v19 = vmul.f32 0.2, %v11881_v52 }
 0x6c3   : > { %11925 = vst.msk [vmem:[#allocation3 + $0x31] sm:$0xff] %vm11900_vm11, %v11894_v42  ;;  %v11888_v6 = vmul.f32 0.2, %v11880_v3  ;;  %v29124_v28 = vpop.f32.mrb[12].mxu1 }
 0x6c4   : > { %v11897_v24 = vmax.f32 %v11881_v52, %v11889_v19  ;;  %v11883_v40 = vadd.f32 %v29124_v28, %v26107_v57  ;;  %v11851_v20 = vpop.f32.mrb[13].mxu1 }
 0x6c5   : > { %v11896_v4 = vmax.f32 %v11880_v3, %v11888_v6  ;;  %v11882_v16 = vadd.f32 %v26107_v57, %v11851_v20  ;;  %v11945_v44 = vld [vmem:[#allocation3 + $0x21] sm:$0xff] }
 0x6c6   : > { %11928 = vst.msk [vmem:[#allocation3 + $0x61] sm:$0xff] %vm11900_vm11, %v11897_v24  ;;  %v11891_v1 = vmul.f32 0.2, %v11883_v40  ;;  %v11944_v33 = vld [vmem:[#allocation3 + $0x11] sm:$0xff]  ;;  %v11963_v29 = vsel %vm11900_vm11, %v11945_v44, 0 }
 0x6c7   : > { %11927 = vst.msk [vmem:[#allocation3 + $0x51] sm:$0xff] %vm11900_vm11, %v11896_v4  ;;  %v11890_v61 = vmul.f32 0.2, %v11882_v16  ;;  %v11960_v37 = vsel %vm11900_vm11, %v11944_v33, 0  ;;  %v37504_v21 = vand.u32 4294901760, %v11963_v29 }
 0x6c8   : > { %v11899_v15 = vmax.f32 %v11883_v40, %v11891_v1  ;;  %v37506_v35 = vand.u32 4294901760, %v11960_v37 }
 0x6c9   : > { %v11898_v22 = vmax.f32 %v11882_v16, %v11890_v61  ;;  %v37515_v25 = vsub.f32 %v11963_v29, %v37504_v21  ;;  %v11947_v36 = vld [vmem:[#allocation3 + $0x41] sm:$0xff] }
 0x6ca   : > { %11930 = vst.msk [vmem:[#allocation3 + $0x81] sm:$0xff] %vm11900_vm11, %v11899_v15  ;;  %v37519_v63 = vsub.f32 %v11960_v37, %v37506_v35  ;;  %v11946_v49 = vld [vmem:[#allocation3 + $0x31] sm:$0xff]  ;;  %v11969_v62 = vsel %vm11900_vm11, %v11947_v36, 0  ;;  %v11941_v36 = vld [vmem:[%s40407_s5 + $0x10] sm:$0xff] }
 0x6cb   : > { %11929 = vst.msk [vmem:[#allocation3 + $0x71] sm:$0xff] %vm11900_vm11, %v11898_v22  ;;  %v12071_v41 = vand.u32 4294901760, %v37515_v25  ;;  %v11966_v58 = vsel %vm11900_vm11, %v11946_v49, 0  ;;  %v37525_v13 = vand.u32 4294901760, %v11969_v62  ;;  %v11932_v49 = vld [vmem:[#allocation3 + $0x10] sm:$0xff] }
 0x6cc   : > { %v12061_v45 = vand.u32 4294901760, %v37519_v63  ;;  %v37528_v57 = vand.u32 4294901760, %v11966_v58  ;;  %v12770_v23 = vsel %vm11900_vm11, %v11932_v49, 0 }
 0x6cd   : > { %v12072_v18 = vsub.f32 %v37515_v25, %v12071_v41  ;;  %v37534_v27 = vsub.f32 %v11969_v62, %v37525_v13  ;;  %v11949_v38 = vld [vmem:[#allocation3 + $0x61] sm:$0xff] }
 0x6ce   : > { %v12062_v60 = vsub.f32 %v37519_v63, %v12061_v45  ;;  %v37540_v7 = vsub.f32 %v11966_v58, %v37528_v57  ;;  %v11948_v14 = vld [vmem:[#allocation3 + $0x51] sm:$0xff]  ;;  %v11975_v9 = vsel %vm11900_vm11, %v11949_v38, 0  ;;  %v11933_v62 = vld [vmem:[#allocation3 + $0x20] sm:$0xff] }
 0x6cf   : > { %v12091_v46 = vand.u32 4294901760, %v37534_v27  ;;  %v11972_v5 = vsel %vm11900_vm11, %v11948_v14, 0  ;;  %v37545_v55 = vand.u32 4294901760, %v11975_v9  ;;  %v12073_v52 = vand.u32 4294901760, %v12072_v18 }
 0x6d0   : > { %v12063_v54 = vand.u32 4294901760, %v12062_v60  ;;  %v12081_v2 = vand.u32 4294901760, %v37540_v7  ;;  %v37548_v48 = vand.u32 4294901760, %v11972_v5  ;;  %v12773_v18 = vsel %vm11900_vm11, %v11933_v62, 0  ;;  %v11935_v60 = vld [vmem:[#allocation3 + $0x40] sm:$0xff] }
 0x6d1   : > { %v12092_v53 = vsub.f32 %v37534_v27, %v12091_v46  ;;  %v37554_v42 = vsub.f32 %v11975_v9, %v37545_v55 }
 0x6d2   : > { %29134 = vmatmul.mubr.f32.vlgmr.msra.gmra.mrb[32].mxu0 %v12063_v54  ;;  %v12082_v3 = vsub.f32 %v37540_v7, %v12081_v2  ;;  %v12100_v19 = vsub.f32 %v11972_v5, %v37548_v48  ;;  %v11950_v6 = vld [vmem:[#allocation3 + $0x71] sm:$0xff]  ;;  %v37659_v54 = vand.u32 4294901760, %v12770_v23 }
 0x6d3   : > { %31146 = vmatpush3.bf16.msra.mxu0 %v37474_v11  ;;  %29136 = vmatprep.mubr.f32.mxu0 %v12073_v52  ;;  %v12111_v28 = vand.u32 4294901760, %v37554_v42  ;;  %v11978_v24 = vsel %vm11900_vm11, %v11950_v6, 0  ;;  %v12093_v16 = vand.u32 4294901760, %v12092_v53  ;;  %v11936_v52 = vld [vmem:[#allocation3 + $0x50] sm:$0xff] }
 0x6d4   : > { %v12083_v40 = vand.u32 4294901760, %v12082_v3  ;;  %31148 = vmatprep.subr.bf16.mxu0 %v31147_v32  ;;  %v12101_v20 = vand.u32 4294901760, %v12100_v19  ;;  %v37563_v4 = vand.u32 4294901760, %v11978_v24 }
 0x6d5   : > { %v12112_v44 = vsub.f32 %v37554_v42, %v12111_v28 }
 0x6d6   : > { %29137 = vmatmul.mubr.f32.gmra.mrb[34].mxu0 %v12083_v40  ;;  %v12102_v1 = vsub.f32 %v12100_v19, %v12101_v20  ;;  %v12120_v33 = vsub.f32 %v11978_v24, %v37563_v4 }
 0x6d7   : > { %29139 = vmatprep.mubr.f32.mxu0 %v12093_v16  ;;  %31150 = vmatpush3.bf16.msra.mxu0 %v31147_v32  ;;  %v12113_v61 = vand.u32 4294901760, %v12112_v44  ;;  %v11938_v16 = vld [vmem:[#allocation3 + $0x70] sm:$0xff] }
 0x6d8   : > { %v12103_v11 = vand.u32 4294901760, %v12102_v1  ;;  %v12121_v29 = vand.u32 4294901760, %v12120_v33  ;;  %31152 = vmatprep.subr.bf16.mxu0 %v37477_v43 }
 0x6da   : > { %29140 = vmatmul.mubr.f32.gmra.mrb[36].mxu0 %v12103_v11  ;;  %v12122_v37 = vsub.f32 %v12120_v33, %v12121_v29 }
 0x6db   : > { %29142 = vmatprep.mubr.f32.mxu0 %v12113_v61 }
 0x6dc   : > { %v12123_v15 = vand.u32 4294901760, %v12122_v37 }
 0x6de   : > { %29143 = vmatmul.mubr.f32.gmra.mrb[38].mxu0 %v12123_v15  ;;  %v12788_v15 = vsel %vm11900_vm11, %v11938_v16, 0 }
 0x6df   : > { %29153 = vmatprep.mubr.f32.mxu0 %v37465_v10 }
 0x6e2   : > { %29154 = vmatmul.mubr.f32.vlgmr.msra.gmra.mrb[32].mxu0 %v37506_v35 }
 0x6e3   : > { %31154 = vmatpush3.bf16.msra.mxu0 %v37477_v43  ;;  %29156 = vmatprep.mubr.f32.mxu0 %v37504_v21  ;;  %v31171_v43 = vpack.c.bf16 %v12153_v26, %v12146_v50 }
 0x6e4   : > { %31156 = vmatprep.subr.bf16.mxu0 %v31155_v8 }
 0x6e6   : > { %29157 = vmatmul.mubr.f32.gmra.mrb[34].mxu0 %v37528_v57 }
 0x6e7   : > { %29159 = vmatprep.mubr.f32.mxu0 %v37525_v13  ;;  %31158 = vmatpush3.bf16.msra.mxu0 %v31155_v8 }
 0x6e8   : > { %31160 = vmatprep.subr.bf16.mxu0 %v37290_v12 }
 0x6ea   : > { %29160 = vmatmul.mubr.f32.gmra.mrb[36].mxu0 %v37548_v48 }
 0x6eb   : > { %29162 = vmatprep.mubr.f32.mxu0 %v37545_v55 }
 0x6ee   : > { %29163 = vmatmul.mubr.f32.gmra.mrb[38].mxu0 %v37563_v4 }
 0x6ef   : > { %29173 = vmatprep.mubr.f32.mxu0 %v37468_v34  ;;  %v11939_v34 = vld [vmem:[%s40407_s5] sm:$0xff] }
 0x6f2   : > { %29174 = vmatmul.mubr.f32.vlgmr.msra.gmra.mrb[32].mxu0 %v37519_v63  ;;  %v11942_v63 = vld [vmem:[%s40407_s5 + $0x18] sm:$0xff] }
 0x6f3   : > { %31162 = vmatpush3.bf16.msra.mxu0 %v37290_v12  ;;  %29176 = vmatprep.mubr.f32.mxu0 %v37515_v25  ;;  %v12800_v58 = vand.u32 4294901760, %v11942_v63 }
 0x6f4   : > { %31164 = vmatprep.subr.bf16.mxu0 %v37297_v47 }
 0x6f5   : > { %v37655_v14 = vsub.f32 %v11942_v63, %v12800_v58 }
 0x6f6   : > { %29177 = vmatmul.mubr.f32.gmra.mrb[34].mxu0 %v37540_v7 }
 0x6f7   : > { %29179 = vmatprep.mubr.f32.mxu0 %v37534_v27  ;;  %31166 = vmatpush3.bf16.msra.mxu0 %v37297_v47  ;;  %v11934_v27 = vld [vmem:[#allocation3 + $0x30] sm:$0xff]  ;;  %v12963_v3 = vand.u32 4294901760, %v37655_v14 }
 0x6f8   : > { %31168 = vmatprep.subr.bf16.mxu0 %v37479_v39  ;;  %v12776_v32 = vsel %vm11900_vm11, %v11934_v27, 0 }
 0x6fa   : > { %29180 = vmatmul.mubr.f32.gmra.mrb[36].mxu0 %v12100_v19  ;;  %v11937_v19 = vld [vmem:[#allocation3 + $0x60] sm:$0xff] }
 0x6fb   : > { %29182 = vmatprep.mubr.f32.mxu0 %v37554_v42 }
 0x6fe   : > { %29183 = vmatmul.mubr.f32.gmra.mrb[38].mxu0 %v12120_v33  ;;  %v12964_v33 = vsub.f32 %v37655_v14, %v12963_v3 }
 0x6ff   : > { %29193 = vmatprep.mubr.f32.mxu0 %v12051_v51  ;;  %v11940_v51 = vld [vmem:[%s40407_s5 + $0x8] sm:$0xff] }
 0x700   : > { %v12794_v31 = vand.u32 4294901760, %v11940_v51 }
 0x702   : > { %29194 = vmatmul.mubr.f32.vlgmr.msra.gmra.mrb[32].mxu0 %v12061_v45  ;;  %v37621_v26 = vsub.f32 %v11940_v51, %v12794_v31 }
 0x703   : > { %31170 = vmatpush3.bf16.msra.mxu0 %v37479_v39  ;;  %29196 = vmatprep.mubr.f32.mxu0 %v12071_v41  ;;  %v12791_v39 = vand.u32 4294901760, %v11939_v34  ;;  %v12797_v41 = vand.u32 4294901760, %v11941_v36 }
 0x704   : > { %31172 = vmatprep.subr.bf16.mxu0 %v31171_v43  ;;  %v12949_v25 = vand.u32 4294901760, %v37621_v26 }
 0x705   : > { %v37617_v56 = vpack.c.bf16 %v12794_v31, %v12791_v39  ;;  %v37619_v50 = vsub.f32 %v11939_v34, %v12791_v39  ;;  %v37653_v7 = vsub.f32 %v11941_v36, %v12797_v41  ;;  %v37657_v9 = vpack.c.bf16 %v12800_v58, %v12797_v41 }
 0x706   : > { %29197 = vmatmul.mubr.f32.gmra.mrb[34].mxu0 %v12081_v2  ;;  %v12950_v17 = vsub.f32 %v37621_v26, %v12949_v25  ;;  %v37661_v2 = vand.u32 4294901760, %v12773_v18  ;;  %v12965_v34 = vand.u32 4294901760, %v12964_v33 }
 0x707   : > { %29199 = vmatprep.mubr.f32.mxu0 %v12091_v46  ;;  %31174 = vmatpush3.bf16.msra.mxu0 %v31171_v43  ;;  %v12942_v22 = vand.u32 4294901760, %v37619_v50  ;;  %v12956_v42 = vand.u32 4294901760, %v37653_v7  ;;  %v31199_v27 = vpack.c.bf16 %v37621_v26, %v37619_v50  ;;  %v26112_v26 = vld [vmem:[%s40407_s5 + $0x40] sm:$0xff] }
 0x708   : > { %31176 = vmatprep.subr.bf16.mxu0 %v37290_v12  ;;  %v12951_v5 = vand.u32 4294901760, %v12950_v17  ;;  %v37678_v24 = vsub.f32 %v12773_v18, %v37661_v2 }
 0x709   : > { %v12943_v45 = vsub.f32 %v37619_v50, %v12942_v22  ;;  %v12957_v1 = vsub.f32 %v37653_v7, %v12956_v42  ;;  %v31219_v50 = vpack.c.bf16 %v12963_v3, %v12956_v42  ;;  %v13576_v42 = vld [vmem:[#allocation3 + $0x2] sm:$0xff] }
 0x70a   : > { %29200 = vmatmul.mubr.f32.gmra.mrb[36].mxu0 %v12101_v20  ;;  %v12785_v20 = vsel %vm11900_vm11, %v11937_v19, 0  ;;  %v31203_v19 = vpack.c.bf16 %v37655_v14, %v37653_v7  ;;  %v26115_v3 = vld [vmem:[%s40407_s5 + $0x58] sm:$0xff] }
 0x70b   : > { %29202 = vmatprep.mubr.f32.mxu0 %v12111_v28  ;;  %v12944_v46 = vand.u32 4294901760, %v12943_v45  ;;  %v37673_v28 = vsub.f32 %v12770_v23, %v37659_v54  ;;  %v37710_v37 = vand.u32 4294901760, %v12785_v20  ;;  %v12958_v43 = vand.u32 4294901760, %v12957_v1 }
 0x70c   : > { %v13623_v1 = vand.u32 4294901760, %v26115_v3 }
 0x70d   : > { %v31191_v6 = vpack.c.bf16 %v12951_v5, %v12944_v46  ;;  %v31195_v36 = vpack.c.bf16 %v12965_v34, %v12958_v43 }
 0x70e   : > { %29203 = vmatmul.mubr.f32.gmra.mrb[38].mxu0 %v12121_v29  ;;  %v37705_v29 = vand.u32 4294901760, %v37678_v24 }
 0x70f   : > { %29213 = vmatprep.mubr.f32.mxu0 %v37465_v10 }
 0x712   : > { %29214 = vmatmul.mubr.f32.vlgmr.msra.gmra.mrb[32].mxu0 %v37506_v35 }
 0x713   : > { %31178 = vmatpush3.bf16.msra.mxu0 %v37290_v12  ;;  %29216 = vmatprep.mubr.f32.mxu0 %v37504_v21  ;;  %v12767_v12 = vsel %vm11900_vm11, %v11931_v0, 0  ;;  %v37723_v0 = vand.u32 4294901760, %v12788_v15 }
 0x714   : > { %31180 = vmatprep.subr.bf16.mxu0 %v37297_v47 }
 0x715   : > { %v37742_v41 = vsub.f32 %v12788_v15, %v37723_v0  ;;  %v13578_v15 = vld [vmem:[#allocation3 + $0x22] sm:$0xff] }
 0x716   : > { %29217 = vmatmul.mubr.f32.gmra.mrb[34].mxu0 %v37528_v57 }
 0x717   : > { %29219 = vmatprep.mubr.f32.mxu0 %v37525_v13  ;;  %31182 = vmatpush3.bf16.msra.mxu0 %v37297_v47  ;;  %v37638_v47 = vand.u32 4294901760, %v12767_v12  ;;  %v37758_v18 = vand.u32 4294901760, %v37742_v41 }
 0x718   : > { %31184 = vmatprep.subr.bf16.mxu0 %v37617_v56 }
 0x719   : > { %v37651_v38 = vsub.f32 %v12767_v12, %v37638_v47  ;;  %v12882_v12 = vsub.f32 %v37678_v24, %v37705_v29  ;;  %41405 = vst [vmem:[#allocation121_spill] sm:$0xff] %v37758_v18 }
 0x71a   : > { %29220 = vmatmul.mubr.f32.gmra.mrb[36].mxu0 %v37548_v48 }
 0x71b   : > { %29222 = vmatprep.mubr.f32.mxu0 %v37545_v55  ;;  %v12861_v53 = vand.u32 4294901760, %v37651_v38  ;;  %v37744_v58 = vand.u32 4294901760, %v12882_v12  ;;  %v13596_v12 = vsel %vm11900_vm11, %v13578_v15, 0 }
 0x71d   : > { %v12862_v44 = vsub.f32 %v37651_v38, %v12861_v53 }
 0x71e   : > { %29223 = vmatmul.mubr.f32.gmra.mrb[38].mxu0 %v37563_v4 }
 0x71f   : > { %29233 = vmatprep.mubr.f32.mxu0 %v37465_v10  ;;  %v12779_v10 = vsel %vm11900_vm11, %v11935_v60, 0  ;;  %v12863_v8 = vand.u32 4294901760, %v12862_v44  ;;  %v13577_v44 = vld [vmem:[#allocation3 + $0x12] sm:$0xff] }
 0x720   : > { %v37680_v40 = vand.u32 4294901760, %v12779_v10  ;;  %v13593_v34 = vsel %vm11900_vm11, %v13577_v44, 0 }
 0x722   : > { %29234 = vmatmul.mubr.f32.vlgmr.msra.gmra.mrb[32].mxu0 %v37506_v35  ;;  %v37675_v35 = vand.u32 4294901760, %v12776_v32  ;;  %v37708_v61 = vsub.f32 %v12779_v10, %v37680_v40 }
 0x723   : > { %31186 = vmatpush3.bf16.msra.mxu0 %v37617_v56  ;;  %29236 = vmatprep.mubr.f32.mxu0 %v37504_v21  ;;  %v12782_v21 = vsel %vm11900_vm11, %v11936_v52, 0 }
 0x724   : > { %31188 = vmatprep.subr.bf16.mxu0 %v37657_v9  ;;  %v37702_v11 = vand.u32 4294901760, %v12782_v21 }
 0x726   : > { %29237 = vmatmul.mubr.f32.gmra.mrb[34].mxu0 %v37528_v57  ;;  %v37697_v57 = vand.u32 4294901760, %v37673_v28  ;;  %v37721_v31 = vsub.f32 %v12782_v21, %v37702_v11  ;;  %v13590_v21 = vsel %vm11900_vm11, %v13576_v42, 0  ;;  %v13582_v42 = vld [vmem:[#allocation3 + $0x62] sm:$0xff] }
 0x727   : > { %29239 = vmatprep.mubr.f32.mxu0 %v37525_v13  ;;  %31190 = vmatpush3.bf16.msra.mxu0 %v37657_v9  ;;  %v37700_v13 = vsub.f32 %v12776_v32, %v37675_v35  ;;  %v12932_v32 = vsub.f32 %v37742_v41, %v37758_v18  ;;  %v37851_v33 = vand.u32 4294901760, %v13590_v21  ;;  %v13608_v15 = vsel %vm11900_vm11, %v13582_v42, 0 }
 0x728   : > { %31192 = vmatprep.subr.bf16.mxu0 %v31191_v6  ;;  %v12872_v51 = vsub.f32 %v37673_v28, %v37697_v57  ;;  %v37739_v62 = vand.u32 4294901760, %v37721_v31  ;;  %v37923_v42 = vand.u32 4294901760, %v13608_v15 }
 0x729   : > { %v37718_v39 = vand.u32 4294901760, %v37700_v13  ;;  %v37776_v52 = vand.u32 4294901760, %v12932_v32 }
 0x72a   : > { %29240 = vmatmul.mubr.f32.gmra.mrb[36].mxu0 %v37548_v48  ;;  %v37728_v48 = vand.u32 4294901760, %v37708_v61  ;;  %v37734_v63 = vand.u32 4294901760, %v12872_v51  ;;  %41403 = vst [vmem:[#allocation99_spill] sm:$0xff] %v37739_v62  ;;  %v12912_v23 = vsub.f32 %v37721_v31, %v37739_v62  ;;  %v13579_v51 = vld [vmem:[#allocation3 + $0x32] sm:$0xff] }
 0x72b   : > { %29242 = vmatprep.mubr.f32.mxu0 %v37545_v55  ;;  %v37731_v55 = vsub.f32 %v12785_v20, %v37710_v37  ;;  %v12892_v49 = vsub.f32 %v37700_v13, %v37718_v39 }
 0x72c   : > { %41402 = vst [vmem:[#allocation112_spill] sm:$0xff] %v37728_v48  ;;  %v12902_v45 = vsub.f32 %v37708_v61, %v37728_v48  ;;  %v37768_v5 = vand.u32 4294901760, %v12912_v23  ;;  %v13599_v23 = vsel %vm11900_vm11, %v13579_v51, 0 }
 0x72d   : > { %v37753_v17 = vand.u32 4294901760, %v12892_v49  ;;  %v37866_v49 = vsub.f32 %v13590_v21, %v37851_v33 }
 0x72e   : > { %29243 = vmatmul.mubr.f32.gmra.mrb[38].mxu0 %v37563_v4  ;;  %v37749_v4 = vand.u32 4294901760, %v37731_v55  ;;  %v37762_v60 = vand.u32 4294901760, %v12902_v45  ;;  %v37868_v45 = vand.u32 4294901760, %v13593_v34 }
 0x72f   : > { %29253 = vmatprep.mubr.f32.mxu0 %v12863_v8 }
 0x730   : > { %41404 = vst [vmem:[#allocation118_spill] sm:$0xff] %v37749_v4  ;;  %v12922_v46 = vsub.f32 %v37731_v55, %v37749_v4 }
 0x732   : > { %29254 = vmatmul.mubr.f32.vlgmr.msra.gmra.mrb[32].mxu0 %v37734_v63  ;;  %v37772_v10 = vand.u32 4294901760, %v12922_v46 }
 0x733   : > { %31194 = vmatpush3.bf16.msra.mxu0 %v31191_v6  ;;  %29256 = vmatprep.mubr.f32.mxu0 %v37744_v58  ;;  %v31215_v6 = vpack.c.bf16 %v12949_v25, %v12942_v22  ;;  %v26113_v22 = vld [vmem:[%s40407_s5 + $0x48] sm:$0xff]  ;;  %v13614_v25 = vand.u32 4294901760, %v26112_v26 }
 0x734   : > { %31196 = vmatprep.subr.bf16.mxu0 %v31195_v36 }
 0x735   : > { %v37832_v14 = vsub.f32 %v26112_v26, %v13614_v25  ;;  %v13581_v26 = vld [vmem:[#allocation3 + $0x52] sm:$0xff] }
 0x736   : > { %29257 = vmatmul.mubr.f32.gmra.mrb[34].mxu0 %v37753_v17 }
 0x737   : > { %29259 = vmatprep.mubr.f32.mxu0 %v37762_v60  ;;  %31198 = vmatpush3.bf16.msra.mxu0 %v31195_v36  ;;  %v40749_v20 = vand.u32 4294901760, %v37832_v14 }
 0x738   : > { %31200 = vmatprep.subr.bf16.mxu0 %v31199_v27 }
 0x739   : > { %v13766_v8 = vsub.f32 %v37832_v14, %v40749_v20 }
 0x73a   : > { %29260 = vmatmul.mubr.f32.gmra.mrb[36].mxu0 %v37768_v5 }
 0x73b   : > { %29262 = vmatprep.mubr.f32.mxu0 %v37772_v10  ;;  %v13767_v46 = vand.u32 4294901760, %v13766_v8  ;;  %v13583_v8 = vld [vmem:[#allocation3 + $0x72] sm:$0xff] }
 0x73e   : > { %29263 = vmatmul.mubr.f32.gmra.mrb[38].mxu0 %v37776_v52 }
 0x73f   : > { %29273 = vmatprep.mubr.f32.mxu0 %v37638_v47 }
 0x742   : > { %29274 = vmatmul.mubr.f32.vlgmr.msra.gmra.mrb[32].mxu0 %v37659_v54 }
 0x743   : > { %31202 = vmatpush3.bf16.msra.mxu0 %v31199_v27  ;;  %29276 = vmatprep.mubr.f32.mxu0 %v37661_v2  ;;  %v13580_v27 = vld [vmem:[#allocation3 + $0x42] sm:$0xff] }
 0x744   : > { %31204 = vmatprep.subr.bf16.mxu0 %v31203_v19 }
 0x746   : > { %29277 = vmatmul.mubr.f32.gmra.mrb[34].mxu0 %v37675_v35 }
 0x747   : > { %29279 = vmatprep.mubr.f32.mxu0 %v37680_v40  ;;  %31206 = vmatpush3.bf16.msra.mxu0 %v31203_v19 }
 0x748   : > { %31208 = vmatprep.subr.bf16.mxu0 %v37617_v56 }
 0x74a   : > { %29280 = vmatmul.mubr.f32.gmra.mrb[36].mxu0 %v37702_v11 }
 0x74b   : > { %29282 = vmatprep.mubr.f32.mxu0 %v37710_v37 }
 0x74e   : > { %29283 = vmatmul.mubr.f32.gmra.mrb[38].mxu0 %v37723_v0 }
 0x74f   : > { %29293 = vmatprep.mubr.f32.mxu0 %v37651_v38  ;;  %v13617_v38 = vand.u32 4294901760, %v26113_v22 }
 0x751   : > { %v37830_v7 = vpack.c.bf16 %v13617_v38, %v13614_v25  ;;  %v37883_v25 = vsub.f32 %v13593_v34, %v37868_v45 }
 0x752   : > { %29294 = vmatmul.mubr.f32.vlgmr.msra.gmra.mrb[32].mxu0 %v37673_v28 }
 0x753   : > { %31210 = vmatpush3.bf16.msra.mxu0 %v37617_v56  ;;  %29296 = vmatprep.mubr.f32.mxu0 %v37678_v24  ;;  %v37904_v34 = vand.u32 4294901760, %v37883_v25 }
 0x754   : > { %31212 = vmatprep.subr.bf16.mxu0 %v37657_v9 }
 0x756   : > { %29297 = vmatmul.mubr.f32.gmra.mrb[34].mxu0 %v37700_v13 }
 0x757   : > { %29299 = vmatprep.mubr.f32.mxu0 %v37708_v61  ;;  %31214 = vmatpush3.bf16.msra.mxu0 %v37657_v9 }
 0x758   : > { %31216 = vmatprep.subr.bf16.mxu0 %v31215_v6 }
 0x75a   : > { %29300 = vmatmul.mubr.f32.gmra.mrb[36].mxu0 %v37721_v31 }
 0x75b   : > { %29302 = vmatprep.mubr.f32.mxu0 %v37731_v55 }
 0x75e   : > { %29303 = vmatmul.mubr.f32.gmra.mrb[38].mxu0 %v37742_v41 }
 0x75f   : > { %29313 = vmatprep.mubr.f32.mxu0 %v12861_v53  ;;  %v37834_v53 = vsub.f32 %v26113_v22, %v13617_v38  ;;  %v40747_v22 = vand.u32 4294901760, %v37866_v49  ;;  %v37885_v38 = vand.u32 4294901760, %v13599_v23 }
 0x761   : > { %v40748_v16 = vand.u32 4294901760, %v37834_v53  ;;  %v37907_v51 = vsub.f32 %v13599_v23, %v37885_v38  ;;  %v13611_v23 = vsel %vm11900_vm11, %v13583_v8, 0 }
 0x762   : > { %29314 = vmatmul.mubr.f32.vlgmr.msra.gmra.mrb[32].mxu0 %v37697_v57  ;;  %v37936_v30 = vand.u32 4294901760, %v13611_v23 }
 0x763   : > { %31218 = vmatpush3.bf16.msra.mxu0 %v31215_v6  ;;  %29316 = vmatprep.mubr.f32.mxu0 %v37705_v29  ;;  %v13773_v43 = vsub.f32 %v37834_v53, %v40748_v16  ;;  %v37873_v6 = vsub.f32 %v26115_v3, %v13623_v1 }
 0x764   : > { %31220 = vmatprep.subr.bf16.mxu0 %v31219_v50 }
 0x765   : > { %v13774_v32 = vand.u32 4294901760, %v13773_v43  ;;  %v40746_v21 = vand.u32 4294901760, %v37873_v6  ;;  %v13685_v43 = vsub.f32 %v37866_v49, %v40747_v22  ;;  %v37931_v22 = vand.u32 4294901760, %v37907_v51 }
 0x766   : > { %29317 = vmatmul.mubr.f32.gmra.mrb[34].mxu0 %v37718_v39 }
 0x767   : > { %29319 = vmatprep.mubr.f32.mxu0 %v37728_v48  ;;  %31222 = vmatpush3.bf16.msra.mxu0 %v31219_v50  ;;  %v37875_v50 = vand.u32 4294901760, %v13596_v12  ;;  %41406 = vst [vmem:[#allocation105_spill] sm:$0xff] %v37931_v22 }
 0x768   : > { %31224 = vmatprep.subr.bf16.mxu0 %v37617_v56 }
 0x769   : > { %v37891_v44 = vsub.f32 %v13596_v12, %v37875_v50 }
 0x76a   : > { %29320 = vmatmul.mubr.f32.gmra.mrb[36].mxu0 %v37739_v62 }
 0x76b   : > { %29322 = vmatprep.mubr.f32.mxu0 %v37749_v4  ;;  %v37955_v4 = vsub.f32 %v13611_v23, %v37936_v30 }
 0x76e   : > { %29323 = vmatmul.mubr.f32.gmra.mrb[38].mxu0 %v37758_v18 }
 0x76f   : > { %29333 = vmatprep.mubr.f32.mxu0 %v37638_v47 }
 0x772   : > { %29334 = vmatmul.mubr.f32.vlgmr.msra.gmra.mrb[32].mxu0 %v37659_v54 }
 0x773   : > { %31226 = vmatpush3.bf16.msra.mxu0 %v37617_v56  ;;  %29336 = vmatprep.mubr.f32.mxu0 %v37661_v2  ;;  %v26114_v56 = vld [vmem:[%s40407_s5 + $0x50] sm:$0xff] }
 0x774   : > { %31228 = vmatprep.subr.bf16.mxu0 %v37657_v9 }
 0x776   : > { %29337 = vmatmul.mubr.f32.gmra.mrb[34].mxu0 %v37675_v35 }
 0x777   : > { %29339 = vmatprep.mubr.f32.mxu0 %v37680_v40  ;;  %31230 = vmatpush3.bf16.msra.mxu0 %v37657_v9  ;;  %v13620_v9 = vand.u32 4294901760, %v26114_v56 }
 0x778   : > { %31232 = vmatprep.subr.bf16.mxu0 %v37830_v7 }
 0x779   : > { %v37863_v36 = vpack.c.bf16 %v13623_v1, %v13620_v9  ;;  %v37871_v19 = vsub.f32 %v26114_v56, %v13620_v9  ;;  %v31239_v56 = vpack.c.bf16 %v13774_v32, %v13767_v46  ;;  %v13605_v1 = vsel %vm11900_vm11, %v13581_v26, 0 }
 0x77a   : > { %29340 = vmatmul.mubr.f32.gmra.mrb[36].mxu0 %v37702_v11  ;;  %v37915_v46 = vand.u32 4294901760, %v13605_v1  ;;  %v37918_v32 = vand.u32 4294901760, %v37891_v44 }
 0x77b   : > { %29342 = vmatprep.mubr.f32.mxu0 %v37710_v37  ;;  %v40745_v3 = vand.u32 4294901760, %v37871_v19 }
 0x77c   : > { %v13705_v8 = vsub.f32 %v37891_v44, %v37918_v32 }
 0x77d   : > { %v13780_v12 = vsub.f32 %v37871_v19, %v40745_v3  ;;  %v13686_v3 = vand.u32 4294901760, %v13685_v43  ;;  %v37944_v43 = vsub.f32 %v13608_v15, %v37923_v42 }
 0x77e   : > { %29343 = vmatmul.mubr.f32.gmra.mrb[38].mxu0 %v37723_v0  ;;  %v37957_v62 = vand.u32 4294901760, %v13705_v8 }
 0x77f   : > { %29353 = vmatprep.mubr.f32.mxu0 %v37638_v47  ;;  %v13602_v47 = vsel %vm11900_vm11, %v13580_v27, 0  ;;  %v13787_v27 = vsub.f32 %v37873_v6, %v40746_v21  ;;  %v13695_v21 = vsub.f32 %v37883_v25, %v37904_v34  ;;  %v13781_v16 = vand.u32 4294901760, %v13780_v12 }
 0x780   : > { %v37893_v9 = vand.u32 4294901760, %v13602_v47  ;;  %41409 = vst [vmem:[#allocation126_spill] sm:$0xff] %v37957_v62  ;;  %v37962_v48 = vand.u32 4294901760, %v37944_v43 }
 0x781   : > { %v13788_v20 = vand.u32 4294901760, %v13787_v27  ;;  %v37947_v18 = vand.u32 4294901760, %v13695_v21  ;;  %v31247_v21 = vpack.c.bf16 %v37834_v53, %v37832_v14 }
 0x782   : > { %29354 = vmatmul.mubr.f32.vlgmr.msra.gmra.mrb[32].mxu0 %v37659_v54  ;;  %v37921_v26 = vsub.f32 %v13602_v47, %v37893_v9  ;;  %v37934_v47 = vsub.f32 %v13605_v1, %v37915_v46  ;;  %v13715_v1 = vsub.f32 %v37907_v51, %v37931_v22  ;;  %41410 = vst [vmem:[#allocation115_spill] sm:$0xff] %v37962_v48 }
 0x783   : > { %31234 = vmatpush3.bf16.msra.mxu0 %v37830_v7  ;;  %29356 = vmatprep.mubr.f32.mxu0 %v37661_v2  ;;  %v31243_v12 = vpack.c.bf16 %v13788_v20, %v13781_v16  ;;  %v13745_v8 = vsub.f32 %v37944_v43, %v37962_v48 }
 0x784   : > { %31236 = vmatprep.subr.bf16.mxu0 %v37863_v36  ;;  %v37941_v59 = vand.u32 4294901760, %v37921_v26  ;;  %v37952_v27 = vand.u32 4294901760, %v37934_v47  ;;  %v37966_v20 = vand.u32 4294901760, %v13715_v1 }
 0x786   : > { %29357 = vmatmul.mubr.f32.gmra.mrb[34].mxu0 %v37675_v35  ;;  %41407 = vst [vmem:[#allocation110_spill] sm:$0xff] %v37941_v59  ;;  %41408 = vst [vmem:[#allocation117_spill] sm:$0xff] %v37952_v27  ;;  %v13725_v15 = vsub.f32 %v37921_v26, %v37941_v59  ;;  %v13735_v16 = vsub.f32 %v37934_v47, %v37952_v27 }
 0x787   : > { %29359 = vmatprep.mubr.f32.mxu0 %v37680_v40  ;;  %31238 = vmatpush3.bf16.msra.mxu0 %v37863_v36 }
 0x788   : > { %31240 = vmatprep.subr.bf16.mxu0 %v31239_v56  ;;  %v37975_v23 = vand.u32 4294901760, %v13725_v15 }
 0x78a   : > { %29360 = vmatmul.mubr.f32.gmra.mrb[36].mxu0 %v37702_v11 }
 0x78b   : > { %29362 = vmatprep.mubr.f32.mxu0 %v37710_v37 }
 0x78e   : > { %29363 = vmatmul.mubr.f32.gmra.mrb[38].mxu0 %v37723_v0 }
 0x78f   : > { %29373 = vmatprep.mubr.f32.mxu0 %v13686_v3  ;;  %v37971_v3 = vand.u32 4294901760, %v37955_v4 }
 0x791   : > { %41411 = vst [vmem:[#allocation122_spill] sm:$0xff] %v37971_v3  ;;  %v13755_v1 = vsub.f32 %v37955_v4, %v37971_v3 }
 0x792   : > { %29374 = vmatmul.mubr.f32.vlgmr.msra.gmra.mrb[32].mxu0 %v37947_v18 }
 0x793   : > { %31242 = vmatpush3.bf16.msra.mxu0 %v31239_v56  ;;  %29376 = vmatprep.mubr.f32.mxu0 %v37957_v62  ;;  %v37981_v56 = vand.u32 4294901760, %v13735_v16  ;;  %v37985_v62 = vand.u32 4294901760, %v13745_v8  ;;  %v37989_v15 = vand.u32 4294901760, %v13755_v1  ;;  %v41412_v16 = vand.u32 4294901760, %v37832_v14 }
 0x794   : > { %31244 = vmatprep.subr.bf16.mxu0 %v31243_v12  ;;  %v41414_v1 = vand.u32 4294901760, %v37866_v49  ;;  %v41415_v14 = vand.u32 4294901760, %v37871_v19 }
 0x796   : > { %29377 = vmatmul.mubr.f32.gmra.mrb[34].mxu0 %v37966_v20 }
 0x797   : > { %29379 = vmatprep.mubr.f32.mxu0 %v37975_v23  ;;  %31246 = vmatpush3.bf16.msra.mxu0 %v31243_v12  ;;  %v31251_v12 = vpack.c.bf16 %v37873_v6, %v37871_v19  ;;  %v26117_v19 = vld [vmem:[%s40407_s5 + $0x68] sm:$0xff] }
 0x798   : > { %31248 = vmatprep.subr.bf16.mxu0 %v31247_v21 }
 0x79a   : > { %29380 = vmatmul.mubr.f32.gmra.mrb[36].mxu0 %v37981_v56 }
 0x79b   : > { %29382 = vmatprep.mubr.f32.mxu0 %v37985_v62 }
 0x79e   : > { %29383 = vmatmul.mubr.f32.gmra.mrb[38].mxu0 %v37989_v15 }
 0x79f   : > { %29393 = vmatprep.mubr.f32.mxu0 %v37851_v33 }
 0x7a2   : > { %29394 = vmatmul.mubr.f32.vlgmr.msra.gmra.mrb[32].mxu0 %v37868_v45 }
 0x7a3   : > { %31250 = vmatpush3.bf16.msra.mxu0 %v31247_v21  ;;  %29396 = vmatprep.mubr.f32.mxu0 %v37875_v50  ;;  %v41413_v21 = vand.u32 4294901760, %v37834_v53  ;;  %v41416_v53 = vand.u32 4294901760, %v37873_v6 }
 0x7a4   : > { %31252 = vmatprep.subr.bf16.mxu0 %v31251_v12 }
 0x7a5   : > { %v31263_v8 = vpack.c.bf16 %v41413_v21, %v41412_v16  ;;  %v14448_v16 = vand.u32 4294901760, %v26117_v19 }
 0x7a6   : > { %29397 = vmatmul.mubr.f32.gmra.mrb[34].mxu0 %v37885_v38 }
 0x7a7   : > { %29399 = vmatprep.mubr.f32.mxu0 %v37893_v9  ;;  %31254 = vmatpush3.bf16.msra.mxu0 %v31251_v12  ;;  %v31267_v12 = vpack.c.bf16 %v41416_v53, %v41415_v14  ;;  %v26119_v14 = vld [vmem:[%s40407_s5 + $0x78] sm:$0xff] }
 0x7a8   : > { %31256 = vmatprep.subr.bf16.mxu0 %v37830_v7 }
 0x7aa   : > { %29400 = vmatmul.mubr.f32.gmra.mrb[36].mxu0 %v37915_v46 }
 0x7ab   : > { %29402 = vmatprep.mubr.f32.mxu0 %v37923_v42 }
 0x7ae   : > { %29403 = vmatmul.mubr.f32.gmra.mrb[38].mxu0 %v37936_v30 }
 0x7af   : > { %29413 = vmatprep.mubr.f32.mxu0 %v37866_v49  ;;  %v26116_v49 = vld [vmem:[%s40407_s5 + $0x60] sm:$0xff] }
 0x7b0   : > { %v14445_v6 = vand.u32 4294901760, %v26116_v49 }
 0x7b2   : > { %29414 = vmatmul.mubr.f32.vlgmr.msra.gmra.mrb[32].mxu0 %v37883_v25  ;;  %v38043_v21 = vpack.c.bf16 %v14448_v16, %v14445_v6 }
 0x7b3   : > { %31258 = vmatpush3.bf16.msra.mxu0 %v37830_v7  ;;  %29416 = vmatprep.mubr.f32.mxu0 %v37891_v44 }
 0x7b4   : > { %31260 = vmatprep.subr.bf16.mxu0 %v37863_v36 }
 0x7b6   : > { %29417 = vmatmul.mubr.f32.gmra.mrb[34].mxu0 %v37907_v51 }
 0x7b7   : > { %29419 = vmatprep.mubr.f32.mxu0 %v37921_v26  ;;  %31262 = vmatpush3.bf16.msra.mxu0 %v37863_v36 }
 0x7b8   : > { %31264 = vmatprep.subr.bf16.mxu0 %v31263_v8 }
 0x7ba   : > { %29420 = vmatmul.mubr.f32.gmra.mrb[36].mxu0 %v37934_v47 }
 0x7bb   : > { %29422 = vmatprep.mubr.f32.mxu0 %v37944_v43 }
 0x7be   : > { %29423 = vmatmul.mubr.f32.gmra.mrb[38].mxu0 %v37955_v4 }
 0x7bf   : > { %29433 = vmatprep.mubr.f32.mxu0 %v41414_v1  ;;  %v38047_v1 = vsub.f32 %v26117_v19, %v14448_v16 }
 0x7c2   : > { %29434 = vmatmul.mubr.f32.vlgmr.msra.gmra.mrb[32].mxu0 %v37904_v34 }
 0x7c3   : > { %31266 = vmatpush3.bf16.msra.mxu0 %v31263_v8  ;;  %29436 = vmatprep.mubr.f32.mxu0 %v37918_v32  ;;  %v38045_v8 = vsub.f32 %v26116_v49, %v14445_v6 }
 0x7c4   : > { %31268 = vmatprep.subr.bf16.mxu0 %v31267_v12 }
 0x7c5   : > { %v40762_v53 = vand.u32 4294901760, %v38045_v8 }
 0x7c6   : > { %29437 = vmatmul.mubr.f32.gmra.mrb[34].mxu0 %v37931_v22 }
 0x7c7   : > { %29439 = vmatprep.mubr.f32.mxu0 %v37941_v59  ;;  %31270 = vmatpush3.bf16.msra.mxu0 %v31267_v12  ;;  %v40761_v12 = vand.u32 4294901760, %v38047_v1  ;;  %v14597_v19 = vsub.f32 %v38045_v8, %v40762_v53 }
 0x7c8   : > { %31272 = vmatprep.subr.bf16.mxu0 %v37830_v7 }
 0x7c9   : > { %v14604_v6 = vsub.f32 %v38047_v1, %v40761_v12 }
 0x7ca   : > { %29440 = vmatmul.mubr.f32.gmra.mrb[36].mxu0 %v37952_v27 }
 0x7cb   : > { %29442 = vmatprep.mubr.f32.mxu0 %v37962_v48  ;;  %v14605_v48 = vand.u32 4294901760, %v14604_v6 }
 0x7ce   : > { %29443 = vmatmul.mubr.f32.gmra.mrb[38].mxu0 %v37971_v3  ;;  %v14598_v3 = vand.u32 4294901760, %v14597_v19  ;;  %v14414_v19 = vld [vmem:[#allocation3 + $0x80] sm:$0xff] }
 0x7cf   : > { %29453 = vmatprep.mubr.f32.mxu0 %v37851_v33 }
 0x7d0   : > { %v31287_v12 = vpack.c.bf16 %v14605_v48, %v14598_v3 }
 0x7d2   : > { %29454 = vmatmul.mubr.f32.vlgmr.msra.gmra.mrb[32].mxu0 %v37868_v45 }
 0x7d3   : > { %31274 = vmatpush3.bf16.msra.mxu0 %v37830_v7  ;;  %29456 = vmatprep.mubr.f32.mxu0 %v37875_v50  ;;  %v26118_v7 = vld [vmem:[%s40407_s5 + $0x70] sm:$0xff] }
 0x7d4   : > { %31276 = vmatprep.subr.bf16.mxu0 %v37863_v36  ;;  %v14451_v49 = vand.u32 4294901760, %v26118_v7 }
 0x7d6   : > { %29457 = vmatmul.mubr.f32.gmra.mrb[34].mxu0 %v37885_v38  ;;  %v38073_v27 = vsub.f32 %v26118_v7, %v14451_v49 }
 0x7d7   : > { %29459 = vmatprep.mubr.f32.mxu0 %v37893_v9  ;;  %31278 = vmatpush3.bf16.msra.mxu0 %v37863_v36  ;;  %v14454_v36 = vand.u32 4294901760, %v26119_v14 }
 0x7d8   : > { %31280 = vmatprep.subr.bf16.mxu0 %v38043_v21  ;;  %v14610_v53 = vand.u32 4294901760, %v38073_v27 }
 0x7d9   : > { %v38071_v16 = vpack.c.bf16 %v14454_v36, %v14451_v49  ;;  %v38075_v59 = vsub.f32 %v26119_v14, %v14454_v36  ;;  %v14442_v49 = vsel %vm11900_vm11, %v14414_v19, 0 }
 0x7da   : > { %29460 = vmatmul.mubr.f32.gmra.mrb[36].mxu0 %v37915_v46  ;;  %v14611_v7 = vsub.f32 %v38073_v27, %v14610_v53  ;;  %v38091_v36 = vand.u32 4294901760, %v14442_v49 }
 0x7db   : > { %29462 = vmatprep.mubr.f32.mxu0 %v37923_v42 }
 0x7dc   : > { %v14612_v48 = vand.u32 4294901760, %v14611_v7  ;;  %v38096_v22 = vsub.f32 %v14442_v49, %v38091_v36  ;;  %v31295_v7 = vpack.c.bf16 %v38047_v1, %v38045_v8 }
 0x7de   : > { %29463 = vmatmul.mubr.f32.gmra.mrb[38].mxu0 %v37936_v30  ;;  %41417 = vst [vmem:[#allocation125_spill] sm:$0xff] %v38096_v22  ;;  %v38101_v19 = vand.u32 4294901760, %v38096_v22 }
 0x7df   : > { %29473 = vmatprep.mubr.f32.mxu0 %v37851_v33  ;;  %v14617_v33 = vand.u32 4294901760, %v38075_v59 }
 0x7e0   : > { %41418 = vst [vmem:[#allocation84_spill] sm:$0xff] %v38101_v19 }
 0x7e1   : > { %v14618_v14 = vsub.f32 %v38075_v59, %v14617_v33 }
 0x7e2   : > { %29474 = vmatmul.mubr.f32.vlgmr.msra.gmra.mrb[32].mxu0 %v37868_v45 }
 0x7e3   : > { %31282 = vmatpush3.bf16.msra.mxu0 %v38043_v21  ;;  %29476 = vmatprep.mubr.f32.mxu0 %v37875_v50  ;;  %v14619_v3 = vand.u32 4294901760, %v14618_v14 }
 0x7e4   : > { %31284 = vmatprep.subr.bf16.mxu0 %v38071_v16 }
 0x7e5   : > { %v31291_v6 = vpack.c.bf16 %v14619_v3, %v14612_v48  ;;  %v15240_v48 = vld [vmem:[#allocation3 + $0x31] sm:$0xff] }
 0x7e6   : > { %29477 = vmatmul.mubr.f32.gmra.mrb[34].mxu0 %v37885_v38 }
 0x7e7   : > { %29479 = vmatprep.mubr.f32.mxu0 %v37893_v9  ;;  %31286 = vmatpush3.bf16.msra.mxu0 %v38071_v16 }
 0x7e8   : > { %31288 = vmatprep.subr.bf16.mxu0 %v31287_v12 }
 0x7ea   : > { %29480 = vmatmul.mubr.f32.gmra.mrb[36].mxu0 %v37915_v46 }
 0x7eb   : > { %29482 = vmatprep.mubr.f32.mxu0 %v37923_v42 }
 0x7ee   : > { %29483 = vmatmul.mubr.f32.gmra.mrb[38].mxu0 %v37936_v30 }
 0x7ef   : > { %29493 = vmatprep.mubr.f32.mxu0 %v37734_v63  ;;  %v14586_v63 = vsub.f32 %v38096_v22, %v38101_v19 }
 0x7f2   : > { %29494 = vmatmul.mubr.f32.vlgmr.msra.gmra.mrb[32].mxu0 %v37744_v58  ;;  %v38111_v58 = vand.u32 4294901760, %v14586_v63  ;;  %v15241_v63 = vld [vmem:[#allocation3 + $0x41] sm:$0xff] }
 0x7f3   : > { %31290 = vmatpush3.bf16.msra.mxu0 %v31287_v12  ;;  %29496 = vmatprep.mubr.f32.mxu0 %v37753_v17  ;;  %v31299_v17 = vpack.c.bf16 %v38075_v59, %v38073_v27  ;;  %v41419_v59 = vand.u32 4294901760, %v38045_v8  ;;  %v15238_v27 = vld [vmem:[#allocation3 + $0x11] sm:$0xff]  ;;  %v26123_v8 = vld [vmem:[%s40407_s5 + $0x98] sm:$0xff] }
 0x7f4   : > { %31292 = vmatprep.subr.bf16.mxu0 %v31291_v6  ;;  %v15285_v14 = vand.u32 4294901760, %v26123_v8 }
 0x7f6   : > { %29497 = vmatmul.mubr.f32.gmra.mrb[34].mxu0 %v37762_v60  ;;  %v41420_v60 = vand.u32 4294901760, %v38047_v1  ;;  %v15252_v1 = vsel %vm11900_vm11, %v15238_v27, 0 }
 0x7f7   : > { %29499 = vmatprep.mubr.f32.mxu0 %v37768_v5  ;;  %31294 = vmatpush3.bf16.msra.mxu0 %v31291_v6  ;;  %v38181_v49 = vand.u32 4294901760, %v15252_v1 }
 0x7f8   : > { %31296 = vmatprep.subr.bf16.mxu0 %v31295_v7  ;;  %v31311_v5 = vpack.c.bf16 %v41420_v60, %v41419_v59 }
 0x7f9   : > { %v38196_v60 = vsub.f32 %v15252_v1, %v38181_v49 }
 0x7fa   : > { %29500 = vmatmul.mubr.f32.gmra.mrb[36].mxu0 %v37772_v10 }
 0x7fb   : > { %29502 = vmatprep.mubr.f32.mxu0 %v37776_v52 }
 0x7fe   : > { %29503 = vmatmul.mubr.f32.gmra.mrb[38].mxu0 %v38111_v58 }
 0x7ff   : > { %29513 = vmatprep.mubr.f32.mxu0 %v37659_v54 }
 0x802   : > { %29514 = vmatmul.mubr.f32.vlgmr.msra.gmra.mrb[32].mxu0 %v37661_v2 }
 0x803   : > { %31298 = vmatpush3.bf16.msra.mxu0 %v31295_v7  ;;  %29516 = vmatprep.mubr.f32.mxu0 %v37675_v35 }
 0x804   : > { %31300 = vmatprep.subr.bf16.mxu0 %v31299_v17 }
 0x806   : > { %29517 = vmatmul.mubr.f32.gmra.mrb[34].mxu0 %v37680_v40 }
 0x807   : > { %29519 = vmatprep.mubr.f32.mxu0 %v37702_v11  ;;  %31302 = vmatpush3.bf16.msra.mxu0 %v31299_v17  ;;  %v15258_v17 = vsel %vm11900_vm11, %v15240_v48, 0 }
 0x808   : > { %31304 = vmatprep.subr.bf16.mxu0 %v38043_v21 }
 0x80a   : > { %29520 = vmatmul.mubr.f32.gmra.mrb[36].mxu0 %v37710_v37 }
 0x80b   : > { %29522 = vmatprep.mubr.f32.mxu0 %v37723_v0 }
 0x80e   : > { %29523 = vmatmul.mubr.f32.gmra.mrb[38].mxu0 %v38091_v36 }
 0x80f   : > { %29533 = vmatprep.mubr.f32.mxu0 %v37673_v28  ;;  %v31315_v28 = vpack.c.bf16 %v14617_v33, %v14610_v53  ;;  %v15239_v33 = vld [vmem:[#allocation3 + $0x21] sm:$0xff] }
 0x810   : > { %v15255_v7 = vsel %vm11900_vm11, %v15239_v33, 0 }
 0x812   : > { %29534 = vmatmul.mubr.f32.vlgmr.msra.gmra.mrb[32].mxu0 %v37678_v24  ;;  %v41421_v24 = vld [vmem:[#allocation112_spill] sm:$0xff] }
 0x813   : > { %31306 = vmatpush3.bf16.msra.mxu0 %v38043_v21  ;;  %29536 = vmatprep.mubr.f32.mxu0 %v37700_v13  ;;  %v41422_v13 = vld [vmem:[#allocation99_spill] sm:$0xff] }
 0x814   : > { %31308 = vmatprep.subr.bf16.mxu0 %v38071_v16 }
 0x816   : > { %29537 = vmatmul.mubr.f32.gmra.mrb[34].mxu0 %v37708_v61  ;;  %v41423_v61 = vld [vmem:[#allocation118_spill] sm:$0xff] }
 0x817   : > { %29539 = vmatprep.mubr.f32.mxu0 %v37721_v31  ;;  %31310 = vmatpush3.bf16.msra.mxu0 %v38071_v16  ;;  %v41424_v31 = vld [vmem:[#allocation121_spill] sm:$0xff] }
 0x818   : > { %31312 = vmatprep.subr.bf16.mxu0 %v31311_v5 }
 0x81a   : > { %29540 = vmatmul.mubr.f32.gmra.mrb[36].mxu0 %v37731_v55 }
 0x81b   : > { %29542 = vmatprep.mubr.f32.mxu0 %v37742_v41 }
 0x81e   : > { %29543 = vmatmul.mubr.f32.gmra.mrb[38].mxu0 %v38096_v22 }
 0x81f   : > { %29553 = vmatprep.mubr.f32.mxu0 %v37697_v57  ;;  %v26120_v57 = vld [vmem:[%s40407_s5 + $0x80] sm:$0xff] }
 0x822   : > { %29554 = vmatmul.mubr.f32.vlgmr.msra.gmra.mrb[32].mxu0 %v37705_v29  ;;  %v26121_v29 = vld [vmem:[%s40407_s5 + $0x88] sm:$0xff] }
 0x823   : > { %31314 = vmatpush3.bf16.msra.mxu0 %v31311_v5  ;;  %29556 = vmatprep.mubr.f32.mxu0 %v37718_v39  ;;  %v15276_v39 = vand.u32 4294901760, %v26120_v57  ;;  %v15279_v55 = vand.u32 4294901760, %v26121_v29  ;;  %v38198_v5 = vand.u32 4294901760, %v15255_v7 }
 0x824   : > { %31316 = vmatprep.subr.bf16.mxu0 %v31315_v28 }
 0x825   : > { %v38160_v41 = vpack.c.bf16 %v15279_v55, %v15276_v39  ;;  %v38162_v10 = vsub.f32 %v26120_v57, %v15276_v39  ;;  %v38164_v52 = vsub.f32 %v26121_v29, %v15279_v55  ;;  %v38203_v57 = vsub.f32 %v26123_v8, %v15285_v14  ;;  %v15243_v39 = vld [vmem:[#allocation3 + $0x61] sm:$0xff] }
 0x826   : > { %29557 = vmatmul.mubr.f32.gmra.mrb[34].mxu0 %v41421_v24  ;;  %v15242_v24 = vld [vmem:[#allocation3 + $0x51] sm:$0xff]  ;;  %v38205_v29 = vand.u32 4294901760, %v15258_v17  ;;  %v38212_v55 = vsub.f32 %v15255_v7, %v38198_v5  ;;  %v40766_v8 = vand.u32 4294901760, %v38196_v60 }
 0x827   : > { %29559 = vmatprep.mubr.f32.mxu0 %v41422_v13  ;;  %31318 = vmatpush3.bf16.msra.mxu0 %v31315_v28  ;;  %v40768_v53 = vand.u32 4294901760, %v38162_v10  ;;  %v40767_v12 = vand.u32 4294901760, %v38164_v52  ;;  %v15261_v28 = vsel %vm11900_vm11, %v15241_v63, 0  ;;  %v40764_v33 = vand.u32 4294901760, %v38203_v57 }
 0x828   : > { %31320 = vmatprep.subr.bf16.mxu0 %v38043_v21  ;;  %v38214_v27 = vand.u32 4294901760, %v15261_v28  ;;  %v15347_v63 = vsub.f32 %v38196_v60, %v40766_v8 }
 0x829   : > { %v15428_v3 = vsub.f32 %v38162_v10, %v40768_v53  ;;  %v15435_v6 = vsub.f32 %v38164_v52, %v40767_v12 }
 0x82a   : > { %29560 = vmatmul.mubr.f32.gmra.mrb[36].mxu0 %v41423_v61  ;;  %v38234_v7 = vsub.f32 %v15261_v28, %v38214_v27  ;;  %v15348_v12 = vand.u32 4294901760, %v15347_v63 }
 0x82b   : > { %29562 = vmatprep.mubr.f32.mxu0 %v41424_v31  ;;  %v15429_v13 = vand.u32 4294901760, %v15428_v3  ;;  %v15436_v61 = vand.u32 4294901760, %v15435_v6  ;;  %v15245_v3 = vld [vmem:[#allocation3 + $0x81] sm:$0xff]  ;;  %v38231_v6 = vand.u32 4294901760, %v38212_v55 }
 0x82d   : > { %v31335_v1 = vpack.c.bf16 %v15436_v61, %v15429_v13  ;;  %v15273_v61 = vsel %vm11900_vm11, %v15245_v3, 0 }
 0x82e   : > { %29563 = vmatmul.mubr.f32.gmra.mrb[38].mxu0 %v38101_v19 }
 0x82f   : > { %29573 = vmatprep.mubr.f32.mxu0 %v37659_v54 }
 0x832   : > { %29574 = vmatmul.mubr.f32.vlgmr.msra.gmra.mrb[32].mxu0 %v37661_v2 }
 0x833   : > { %31322 = vmatpush3.bf16.msra.mxu0 %v38043_v21  ;;  %29576 = vmatprep.mubr.f32.mxu0 %v37675_v35  ;;  %v26122_v21 = vld [vmem:[%s40407_s5 + $0x90] sm:$0xff] }
 0x834   : > { %31324 = vmatprep.subr.bf16.mxu0 %v38071_v16 }
 0x836   : > { %29577 = vmatmul.mubr.f32.gmra.mrb[34].mxu0 %v37680_v40 }
 0x837   : > { %29579 = vmatprep.mubr.f32.mxu0 %v37702_v11  ;;  %31326 = vmatpush3.bf16.msra.mxu0 %v38071_v16  ;;  %v15282_v16 = vand.u32 4294901760, %v26122_v21 }
 0x838   : > { %31328 = vmatprep.subr.bf16.mxu0 %v38160_v41 }
 0x839   : > { %v38193_v59 = vpack.c.bf16 %v15285_v14, %v15282_v16  ;;  %v38201_v31 = vsub.f32 %v26122_v21, %v15282_v16  ;;  %v15244_v21 = vld [vmem:[#allocation3 + $0x71] sm:$0xff]  ;;  %v38221_v16 = vsub.f32 %v15258_v17, %v38205_v29 }
 0x83a   : > { %29580 = vmatmul.mubr.f32.gmra.mrb[36].mxu0 %v37710_v37  ;;  %v15270_v48 = vsel %vm11900_vm11, %v15244_v21, 0  ;;  %v38261_v21 = vand.u32 4294901760, %v38234_v7 }
 0x83b   : > { %29582 = vmatprep.mubr.f32.mxu0 %v37723_v0  ;;  %v38253_v13 = vand.u32 4294901760, %v15270_v48 }
 0x83c   : > { %41426 = vst [vmem:[#allocation103_spill] sm:$0xff] %v38261_v21 }
 0x83e   : > { %29583 = vmatmul.mubr.f32.gmra.mrb[38].mxu0 %v38091_v36 }
 0x83f   : > { %29593 = vmatprep.mubr.f32.mxu0 %v37659_v54  ;;  %v15264_v54 = vsel %vm11900_vm11, %v15242_v24, 0  ;;  %v38248_v24 = vand.u32 4294901760, %v38221_v16 }
 0x840   : > { %v38223_v14 = vand.u32 4294901760, %v15264_v54 }
 0x841   : > { %41425 = vst [vmem:[#allocation98_spill] sm:$0xff] %v38248_v24  ;;  %v15367_v3 = vsub.f32 %v38221_v16, %v38248_v24 }
 0x842   : > { %29594 = vmatmul.mubr.f32.vlgmr.msra.gmra.mrb[32].mxu0 %v37661_v2  ;;  %v40765_v2 = vand.u32 4294901760, %v38201_v31  ;;  %v38251_v28 = vsub.f32 %v15264_v54, %v38223_v14  ;;  %v38266_v54 = vand.u32 4294901760, %v15273_v61 }
 0x843   : > { %31330 = vmatpush3.bf16.msra.mxu0 %v38160_v41  ;;  %29596 = vmatprep.mubr.f32.mxu0 %v37675_v35  ;;  %v15267_v35 = vsel %vm11900_vm11, %v15243_v39, 0  ;;  %v15357_v39 = vsub.f32 %v38212_v55, %v38231_v6  ;;  %v38287_v19 = vand.u32 4294901760, %v15367_v3 }
 0x844   : > { %31332 = vmatprep.subr.bf16.mxu0 %v38193_v59  ;;  %v38245_v17 = vand.u32 4294901760, %v15267_v35  ;;  %v38285_v53 = vsub.f32 %v15273_v61, %v38266_v54  ;;  %v31343_v61 = vpack.c.bf16 %v38164_v52, %v38162_v10 }
 0x845   : > { %41429 = vst [vmem:[#allocation120_spill] sm:$0xff] %v38287_v19 }
 0x846   : > { %29597 = vmatmul.mubr.f32.gmra.mrb[34].mxu0 %v37680_v40  ;;  %v15442_v40 = vsub.f32 %v38201_v31, %v40765_v2  ;;  %v38264_v8 = vsub.f32 %v15267_v35, %v38245_v17  ;;  %v15377_v35 = vsub.f32 %v38234_v7, %v38261_v21 }
 0x847   : > { %29599 = vmatprep.mubr.f32.mxu0 %v37702_v11  ;;  %31334 = vmatpush3.bf16.msra.mxu0 %v38193_v59  ;;  %v15449_v11 = vsub.f32 %v38203_v57, %v40764_v33 }
 0x848   : > { %31336 = vmatprep.subr.bf16.mxu0 %v31335_v1  ;;  %v15443_v33 = vand.u32 4294901760, %v15442_v40  ;;  %v38277_v40 = vand.u32 4294901760, %v15357_v39  ;;  %v38282_v63 = vand.u32 4294901760, %v38264_v8 }
 0x849   : > { %v15450_v2 = vand.u32 4294901760, %v15449_v11 }
 0x84a   : > { %29600 = vmatmul.mubr.f32.gmra.mrb[36].mxu0 %v37710_v37  ;;  %v38271_v37 = vand.u32 4294901760, %v38251_v28  ;;  %41428 = vst [vmem:[#allocation114_spill] sm:$0xff] %v38282_v63 }
 0x84b   : > { %29602 = vmatprep.mubr.f32.mxu0 %v37723_v0  ;;  %v38274_v0 = vsub.f32 %v15270_v48, %v38253_v13  ;;  %v31339_v11 = vpack.c.bf16 %v15450_v2, %v15443_v33  ;;  %v15397_v2 = vsub.f32 %v38264_v8, %v38282_v63  ;;  %v38301_v33 = vand.u32 4294901760, %v38285_v53 }
 0x84c   : > { %41427 = vst [vmem:[#allocation108_spill] sm:$0xff] %v38271_v37  ;;  %v15387_v48 = vsub.f32 %v38251_v28, %v38271_v37 }
 0x84d   : > { %v38292_v22 = vand.u32 4294901760, %v38274_v0  ;;  %41431 = vst [vmem:[#allocation50_spill] sm:$0xff] %v38301_v33 }
 0x84e   : > { %29603 = vmatmul.mubr.f32.gmra.mrb[38].mxu0 %v38091_v36  ;;  %v38305_v39 = vand.u32 4294901760, %v15387_v48 }
 0x84f   : > { %29613 = vmatprep.mubr.f32.mxu0 %v15348_v12  ;;  %41430 = vst [vmem:[#allocation124_spill] sm:$0xff] %v38292_v22  ;;  %v38296_v12 = vand.u32 4294901760, %v15377_v35  ;;  %v15407_v3 = vsub.f32 %v38274_v0, %v38292_v22  ;;  %v15417_v35 = vsub.f32 %v38285_v53, %v38301_v33 }
 0x851   : > { %v38319_v48 = vand.u32 4294901760, %v15417_v35  ;;  %v41434_v35 = vand.u32 4294901760, %v38196_v60 }
 0x852   : > { %29614 = vmatmul.mubr.f32.vlgmr.msra.gmra.mrb[32].mxu0 %v38277_v40 }
 0x853   : > { %31338 = vmatpush3.bf16.msra.mxu0 %v31335_v1  ;;  %29616 = vmatprep.mubr.f32.mxu0 %v38287_v19  ;;  %v38311_v1 = vand.u32 4294901760, %v15397_v2  ;;  %v38315_v19 = vand.u32 4294901760, %v15407_v3  ;;  %v41432_v2 = vand.u32 4294901760, %v38162_v10  ;;  %v41435_v10 = vand.u32 4294901760, %v38201_v31 }
 0x854   : > { %31340 = vmatprep.subr.bf16.mxu0 %v31339_v11 }
 0x856   : > { %29617 = vmatmul.mubr.f32.gmra.mrb[34].mxu0 %v38296_v12 }
 0x857   : > { %29619 = vmatprep.mubr.f32.mxu0 %v38305_v39  ;;  %31342 = vmatpush3.bf16.msra.mxu0 %v31339_v11  ;;  %v31347_v11 = vpack.c.bf16 %v38203_v57, %v38201_v31  ;;  %v26125_v31 = vld [vmem:[%s40407_s5 + $0xa8] sm:$0xff] }
 0x858   : > { %31344 = vmatprep.subr.bf16.mxu0 %v31343_v61 }
 0x85a   : > { %29620 = vmatmul.mubr.f32.gmra.mrb[36].mxu0 %v38311_v1 }
 0x85b   : > { %29622 = vmatprep.mubr.f32.mxu0 %v38315_v19 }
 0x85e   : > { %29623 = vmatmul.mubr.f32.gmra.mrb[38].mxu0 %v38319_v48 }
 0x85f   : > { %29633 = vmatprep.mubr.f32.mxu0 %v38181_v49 }
 0x862   : > { %29634 = vmatmul.mubr.f32.vlgmr.msra.gmra.mrb[32].mxu0 %v38198_v5 }
 0x863   : > { %31346 = vmatpush3.bf16.msra.mxu0 %v31343_v61  ;;  %29636 = vmatprep.mubr.f32.mxu0 %v38205_v29  ;;  %v41433_v61 = vand.u32 4294901760, %v38164_v52  ;;  %v41436_v52 = vand.u32 4294901760, %v38203_v57 }
 0x864   : > { %31348 = vmatprep.subr.bf16.mxu0 %v31347_v11 }
 0x865   : > { %v31359_v3 = vpack.c.bf16 %v41433_v61, %v41432_v2  ;;  %v16110_v2 = vand.u32 4294901760, %v26125_v31 }
 0x866   : > { %29637 = vmatmul.mubr.f32.gmra.mrb[34].mxu0 %v38214_v27 }
 0x867   : > { %29639 = vmatprep.mubr.f32.mxu0 %v38223_v14  ;;  %31350 = vmatpush3.bf16.msra.mxu0 %v31347_v11  ;;  %v31363_v11 = vpack.c.bf16 %v41436_v52, %v41435_v10  ;;  %v26127_v10 = vld [vmem:[%s40407_s5 + $0xb8] sm:$0xff] }
 0x868   : > { %31352 = vmatprep.subr.bf16.mxu0 %v38160_v41 }
 0x86a   : > { %29640 = vmatmul.mubr.f32.gmra.mrb[36].mxu0 %v38245_v17 }
 0x86b   : > { %29642 = vmatprep.mubr.f32.mxu0 %v38253_v13 }
 0x86e   : > { %29643 = vmatmul.mubr.f32.gmra.mrb[38].mxu0 %v38266_v54 }
 0x86f   : > { %29653 = vmatprep.mubr.f32.mxu0 %v38196_v60  ;;  %v26124_v60 = vld [vmem:[%s40407_s5 + $0xa0] sm:$0xff] }
 0x870   : > { %v16107_v57 = vand.u32 4294901760, %v26124_v60 }
 0x872   : > { %29654 = vmatmul.mubr.f32.vlgmr.msra.gmra.mrb[32].mxu0 %v38212_v55  ;;  %v38373_v61 = vpack.c.bf16 %v16110_v2, %v16107_v57 }
 0x873   : > { %31354 = vmatpush3.bf16.msra.mxu0 %v38160_v41  ;;  %29656 = vmatprep.mubr.f32.mxu0 %v38221_v16 }
 0x874   : > { %31356 = vmatprep.subr.bf16.mxu0 %v38193_v59 }
 0x876   : > { %29657 = vmatmul.mubr.f32.gmra.mrb[34].mxu0 %v38234_v7 }
 0x877   : > { %29659 = vmatprep.mubr.f32.mxu0 %v38251_v28  ;;  %31358 = vmatpush3.bf16.msra.mxu0 %v38193_v59 }
 0x878   : > { %31360 = vmatprep.subr.bf16.mxu0 %v31359_v3 }
 0x87a   : > { %29660 = vmatmul.mubr.f32.gmra.mrb[36].mxu0 %v38264_v8 }
 0x87b   : > { %29662 = vmatprep.mubr.f32.mxu0 %v38274_v0 }
 0x87e   : > { %29663 = vmatmul.mubr.f32.gmra.mrb[38].mxu0 %v38285_v53 }
 0x87f   : > { %29673 = vmatprep.mubr.f32.mxu0 %v41434_v35  ;;  %v38377_v35 = vsub.f32 %v26125_v31, %v16110_v2 }
 0x882   : > { %29674 = vmatmul.mubr.f32.vlgmr.msra.gmra.mrb[32].mxu0 %v38231_v6 }
 0x883   : > { %31362 = vmatpush3.bf16.msra.mxu0 %v31359_v3  ;;  %29676 = vmatprep.mubr.f32.mxu0 %v38248_v24  ;;  %v38375_v3 = vsub.f32 %v26124_v60, %v16107_v57  ;;  %v41437_v24 = vld [vmem:[#allocation126_spill] sm:$0xff] }
 0x884   : > { %31364 = vmatprep.subr.bf16.mxu0 %v31363_v11 }
 0x885   : > { %v40777_v52 = vand.u32 4294901760, %v38375_v3 }
 0x886   : > { %29677 = vmatmul.mubr.f32.gmra.mrb[34].mxu0 %v38261_v21 }
 0x887   : > { %29679 = vmatprep.mubr.f32.mxu0 %v38271_v37  ;;  %31366 = vmatpush3.bf16.msra.mxu0 %v31363_v11  ;;  %v40776_v11 = vand.u32 4294901760, %v38377_v35  ;;  %v16259_v31 = vsub.f32 %v38375_v3, %v40777_v52 }
 0x888   : > { %31368 = vmatprep.subr.bf16.mxu0 %v38160_v41 }
 0x889   : > { %v16266_v57 = vsub.f32 %v38377_v35, %v40776_v11 }
 0x88a   : > { %29680 = vmatmul.mubr.f32.gmra.mrb[36].mxu0 %v38282_v63 }
 0x88b   : > { %29682 = vmatprep.mubr.f32.mxu0 %v38292_v22  ;;  %v16267_v22 = vand.u32 4294901760, %v16266_v57 }
 0x88e   : > { %29683 = vmatmul.mubr.f32.gmra.mrb[38].mxu0 %v38301_v33  ;;  %v16260_v33 = vand.u32 4294901760, %v16259_v31  ;;  %v16076_v31 = vld [vmem:[#allocation3 + $0x82] sm:$0xff] }
 0x88f   : > { %29693 = vmatprep.mubr.f32.mxu0 %v38181_v49 }
 0x890   : > { %v31383_v11 = vpack.c.bf16 %v16267_v22, %v16260_v33 }
 0x892   : > { %29694 = vmatmul.mubr.f32.vlgmr.msra.gmra.mrb[32].mxu0 %v38198_v5 }
 0x893   : > { %31370 = vmatpush3.bf16.msra.mxu0 %v38160_v41  ;;  %29696 = vmatprep.mubr.f32.mxu0 %v38205_v29  ;;  %v26126_v41 = vld [vmem:[%s40407_s5 + $0xb0] sm:$0xff] }
 0x894   : > { %31372 = vmatprep.subr.bf16.mxu0 %v38193_v59  ;;  %v16113_v60 = vand.u32 4294901760, %v26126_v41 }
 0x896   : > { %29697 = vmatmul.mubr.f32.gmra.mrb[34].mxu0 %v38214_v27  ;;  %v38403_v63 = vsub.f32 %v26126_v41, %v16113_v60 }
 0x897   : > { %29699 = vmatprep.mubr.f32.mxu0 %v38223_v14  ;;  %31374 = vmatpush3.bf16.msra.mxu0 %v38193_v59  ;;  %v16116_v59 = vand.u32 4294901760, %v26127_v10 }
 0x898   : > { %31376 = vmatprep.subr.bf16.mxu0 %v38373_v61  ;;  %v16272_v52 = vand.u32 4294901760, %v38403_v63 }
 0x899   : > { %v38401_v2 = vpack.c.bf16 %v16116_v59, %v16113_v60  ;;  %v38405_v37 = vsub.f32 %v26127_v10, %v16116_v59  ;;  %v16104_v60 = vsel %vm11900_vm11, %v16076_v31, 0 }
 0x89a   : > { %29700 = vmatmul.mubr.f32.gmra.mrb[36].mxu0 %v38245_v17  ;;  %v16273_v41 = vsub.f32 %v38403_v63, %v16272_v52  ;;  %v38421_v59 = vand.u32 4294901760, %v16104_v60 }
 0x89b   : > { %29702 = vmatprep.mubr.f32.mxu0 %v38253_v13 }
 0x89c   : > { %v16274_v22 = vand.u32 4294901760, %v16273_v41  ;;  %v38426_v21 = vsub.f32 %v16104_v60, %v38421_v59  ;;  %v31391_v41 = vpack.c.bf16 %v38377_v35, %v38375_v3 }
 0x89e   : > { %29703 = vmatmul.mubr.f32.gmra.mrb[38].mxu0 %v38266_v54  ;;  %v38431_v31 = vand.u32 4294901760, %v38426_v21 }
 0x89f   : > { %29713 = vmatprep.mubr.f32.mxu0 %v38181_v49  ;;  %v16279_v49 = vand.u32 4294901760, %v38405_v37 }
 0x8a1   : > { %v16280_v10 = vsub.f32 %v38405_v37, %v16279_v49 }
 0x8a2   : > { %29714 = vmatmul.mubr.f32.vlgmr.msra.gmra.mrb[32].mxu0 %v38198_v5 }
 0x8a3   : > { %31378 = vmatpush3.bf16.msra.mxu0 %v38373_v61  ;;  %29716 = vmatprep.mubr.f32.mxu0 %v38205_v29  ;;  %v16281_v33 = vand.u32 4294901760, %v16280_v10  ;;  %v16902_v10 = vld [vmem:[#allocation3 + $0x30] sm:$0xff] }
 0x8a4   : > { %31380 = vmatprep.subr.bf16.mxu0 %v38401_v2 }
 0x8a5   : > { %v31387_v57 = vpack.c.bf16 %v16281_v33, %v16274_v22  ;;  %v16903_v33 = vld [vmem:[#allocation3 + $0x40] sm:$0xff] }
 0x8a6   : > { %29717 = vmatmul.mubr.f32.gmra.mrb[34].mxu0 %v38214_v27 }
 0x8a7   : > { %29719 = vmatprep.mubr.f32.mxu0 %v38223_v14  ;;  %31382 = vmatpush3.bf16.msra.mxu0 %v38401_v2 }
 0x8a8   : > { %31384 = vmatprep.subr.bf16.mxu0 %v31383_v11 }
 0x8aa   : > { %29720 = vmatmul.mubr.f32.gmra.mrb[36].mxu0 %v38245_v17 }
 0x8ab   : > { %29722 = vmatprep.mubr.f32.mxu0 %v38253_v13 }
 0x8ae   : > { %29723 = vmatmul.mubr.f32.gmra.mrb[38].mxu0 %v38266_v54 }
 0x8af   : > { %29733 = vmatprep.mubr.f32.mxu0 %v37947_v18  ;;  %v16248_v18 = vsub.f32 %v38426_v21, %v38431_v31 }
 0x8b2   : > { %29734 = vmatmul.mubr.f32.vlgmr.msra.gmra.mrb[32].mxu0 %v41437_v24 }
 0x8b3   : > { %31386 = vmatpush3.bf16.msra.mxu0 %v31383_v11  ;;  %29736 = vmatprep.mubr.f32.mxu0 %v37966_v20  ;;  %v38441_v20 = vand.u32 4294901760, %v16248_v18  ;;  %v16918_v18 = vsel %vm11900_vm11, %v16902_v10, 0 }
 0x8b4   : > { %31388 = vmatprep.subr.bf16.mxu0 %v31387_v57 }
 0x8b6   : > { %29737 = vmatmul.mubr.f32.gmra.mrb[34].mxu0 %v37975_v23  ;;  %v31395_v23 = vpack.c.bf16 %v38405_v37, %v38403_v63 }
 0x8b7   : > { %29739 = vmatprep.mubr.f32.mxu0 %v37981_v56  ;;  %31390 = vmatpush3.bf16.msra.mxu0 %v31387_v57  ;;  %v41439_v56 = vand.u32 4294901760, %v38377_v35  ;;  %v16901_v35 = vld [vmem:[#allocation3 + $0x20] sm:$0xff] }
 0x8b8   : > { %31392 = vmatprep.subr.bf16.mxu0 %v31391_v41 }
 0x8ba   : > { %29740 = vmatmul.mubr.f32.gmra.mrb[36].mxu0 %v37985_v62  ;;  %v41438_v62 = vand.u32 4294901760, %v38375_v3 }
 0x8bb   : > { %29742 = vmatprep.mubr.f32.mxu0 %v37989_v15 }
 0x8bc   : > { %v31407_v15 = vpack.c.bf16 %v41439_v56, %v41438_v62  ;;  %v16921_v62 = vsel %vm11900_vm11, %v16903_v33, 0  ;;  %v16904_v56 = vld [vmem:[#allocation3 + $0x50] sm:$0xff] }
 0x8be   : > { %29743 = vmatmul.mubr.f32.gmra.mrb[38].mxu0 %v38441_v20 }
 0x8bf   : > { %29753 = vmatprep.mubr.f32.mxu0 %v37868_v45 }
 0x8c2   : > { %29754 = vmatmul.mubr.f32.vlgmr.msra.gmra.mrb[32].mxu0 %v37875_v50 }
 0x8c3   : > { %31394 = vmatpush3.bf16.msra.mxu0 %v31391_v41  ;;  %29756 = vmatprep.mubr.f32.mxu0 %v37885_v38 }
 0x8c4   : > { %31396 = vmatprep.subr.bf16.mxu0 %v31395_v23 }
 0x8c6   : > { %29757 = vmatmul.mubr.f32.gmra.mrb[34].mxu0 %v37893_v9 }
 0x8c7   : > { %29759 = vmatprep.mubr.f32.mxu0 %v37915_v46  ;;  %31398 = vmatpush3.bf16.msra.mxu0 %v31395_v23 }
 0x8c8   : > { %31400 = vmatprep.subr.bf16.mxu0 %v38373_v61 }
 0x8ca   : > { %29760 = vmatmul.mubr.f32.gmra.mrb[36].mxu0 %v37923_v42 }
 0x8cb   : > { %29762 = vmatprep.mubr.f32.mxu0 %v37936_v30 }
 0x8ce   : > { %29763 = vmatmul.mubr.f32.gmra.mrb[38].mxu0 %v38421_v59 }
 0x8cf   : > { %29773 = vmatprep.mubr.f32.mxu0 %v37883_v25  ;;  %v31411_v25 = vpack.c.bf16 %v16279_v49, %v16272_v52  ;;  %v26131_v52 = vld [vmem:[%s40407_s5 + $0xd8] sm:$0xff] }
 0x8d0   : > { %v16948_v22 = vand.u32 4294901760, %v26131_v52 }
 0x8d2   : > { %29774 = vmatmul.mubr.f32.vlgmr.msra.gmra.mrb[32].mxu0 %v37891_v44  ;;  %v41440_v44 = vld [vmem:[#allocation105_spill] sm:$0xff] }
 0x8d3   : > { %31402 = vmatpush3.bf16.msra.mxu0 %v38373_v61  ;;  %29776 = vmatprep.mubr.f32.mxu0 %v37907_v51  ;;  %v41441_v51 = vld [vmem:[#allocation110_spill] sm:$0xff] }
 0x8d4   : > { %31404 = vmatprep.subr.bf16.mxu0 %v38401_v2 }
 0x8d6   : > { %29777 = vmatmul.mubr.f32.gmra.mrb[34].mxu0 %v37921_v26  ;;  %v41442_v26 = vld [vmem:[#allocation117_spill] sm:$0xff] }
 0x8d7   : > { %29779 = vmatprep.mubr.f32.mxu0 %v37934_v47  ;;  %31406 = vmatpush3.bf16.msra.mxu0 %v38401_v2  ;;  %v41443_v47 = vld [vmem:[#allocation115_spill] sm:$0xff] }
 0x8d8   : > { %31408 = vmatprep.subr.bf16.mxu0 %v31407_v15 }
 0x8da   : > { %29780 = vmatmul.mubr.f32.gmra.mrb[36].mxu0 %v37944_v43 }
 0x8db   : > { %29782 = vmatprep.mubr.f32.mxu0 %v37955_v4  ;;  %v41444_v4 = vld [vmem:[#allocation122_spill] sm:$0xff] }
 0x8de   : > { %29783 = vmatmul.mubr.f32.gmra.mrb[38].mxu0 %v38426_v21 }
 0x8df   : > { %29793 = vmatprep.mubr.f32.mxu0 %v37904_v34  ;;  %v26128_v34 = vld [vmem:[%s40407_s5 + $0xc0] sm:$0xff] }
 0x8e0   : > { %v16939_v43 = vand.u32 4294901760, %v26128_v34 }
 0x8e2   : > { %29794 = vmatmul.mubr.f32.vlgmr.msra.gmra.mrb[32].mxu0 %v37918_v32  ;;  %v26129_v32 = vld [vmem:[%s40407_s5 + $0xc8] sm:$0xff]  ;;  %v38492_v63 = vsub.f32 %v26128_v34, %v16939_v43 }
 0x8e3   : > { %31410 = vmatpush3.bf16.msra.mxu0 %v31407_v15  ;;  %29796 = vmatprep.mubr.f32.mxu0 %v41440_v44  ;;  %v16942_v24 = vand.u32 4294901760, %v26129_v32  ;;  %v16905_v44 = vld [vmem:[#allocation3 + $0x60] sm:$0xff] }
 0x8e4   : > { %31412 = vmatprep.subr.bf16.mxu0 %v31411_v25  ;;  %v40786_v11 = vand.u32 4294901760, %v38492_v63 }
 0x8e5   : > { %v38490_v37 = vpack.c.bf16 %v16942_v24, %v16939_v43  ;;  %v38494_v3 = vsub.f32 %v26129_v32, %v16942_v24  ;;  %v38534_v32 = vand.u32 4294901760, %v16921_v62  ;;  %v16924_v43 = vsel %vm11900_vm11, %v16904_v56, 0  ;;  %v16906_v24 = vld [vmem:[#allocation3 + $0x70] sm:$0xff] }
 0x8e6   : > { %29797 = vmatmul.mubr.f32.gmra.mrb[34].mxu0 %v41441_v51  ;;  %v17091_v57 = vsub.f32 %v38492_v63, %v40786_v11 }
 0x8e7   : > { %29799 = vmatprep.mubr.f32.mxu0 %v41442_v26  ;;  %31414 = vmatpush3.bf16.msra.mxu0 %v31411_v25  ;;  %v40784_v49 = vand.u32 4294901760, %v38494_v3  ;;  %v38525_v25 = vand.u32 4294901760, %v16918_v18 }
 0x8e8   : > { %31416 = vmatprep.subr.bf16.mxu0 %v38373_v61  ;;  %v17092_v51 = vand.u32 4294901760, %v17091_v57 }
 0x8e9   : > { %v17098_v41 = vsub.f32 %v38494_v3, %v40784_v49 }
 0x8ea   : > { %29800 = vmatmul.mubr.f32.gmra.mrb[36].mxu0 %v41443_v47 }
 0x8eb   : > { %29802 = vmatprep.mubr.f32.mxu0 %v41444_v4  ;;  %v17099_v26 = vand.u32 4294901760, %v17098_v41  ;;  %v38529_v4 = vsub.f32 %v26131_v52, %v16948_v22  ;;  %v38545_v52 = vand.u32 4294901760, %v16924_v43 }
 0x8ee   : > { %29803 = vmatmul.mubr.f32.gmra.mrb[38].mxu0 %v38431_v31 }
 0x8ef   : > { %29813 = vmatprep.mubr.f32.mxu0 %v37868_v45 }
 0x8f2   : > { %29814 = vmatmul.mubr.f32.vlgmr.msra.gmra.mrb[32].mxu0 %v37875_v50 }
 0x8f3   : > { %31418 = vmatpush3.bf16.msra.mxu0 %v38373_v61  ;;  %29816 = vmatprep.mubr.f32.mxu0 %v37885_v38  ;;  %v26130_v61 = vld [vmem:[%s40407_s5 + $0xd0] sm:$0xff] }
 0x8f4   : > { %31420 = vmatprep.subr.bf16.mxu0 %v38401_v2  ;;  %v16945_v60 = vand.u32 4294901760, %v26130_v61 }
 0x8f6   : > { %29817 = vmatmul.mubr.f32.gmra.mrb[34].mxu0 %v37893_v9  ;;  %v38523_v15 = vpack.c.bf16 %v16948_v22, %v16945_v60  ;;  %v38527_v47 = vsub.f32 %v26130_v61, %v16945_v60  ;;  %v31431_v61 = vpack.c.bf16 %v17099_v26, %v17092_v51  ;;  %v38551_v22 = vsub.f32 %v16921_v62, %v38534_v32 }
 0x8f7   : > { %29819 = vmatprep.mubr.f32.mxu0 %v37915_v46  ;;  %31422 = vmatpush3.bf16.msra.mxu0 %v38401_v2  ;;  %v16915_v2 = vsel %vm11900_vm11, %v16901_v35, 0  ;;  %v38542_v35 = vsub.f32 %v16918_v18, %v38525_v25  ;;  %v38562_v18 = vsub.f32 %v16924_v43, %v38545_v52 }
 0x8f8   : > { %31424 = vmatprep.subr.bf16.mxu0 %v38490_v37  ;;  %v38518_v23 = vand.u32 4294901760, %v16915_v2  ;;  %v40781_v10 = vand.u32 4294901760, %v38527_v47 }
 0x8f9   : > { %v40783_v57 = vand.u32 4294901760, %v38542_v35 }
 0x8fa   : > { %29820 = vmatmul.mubr.f32.gmra.mrb[36].mxu0 %v37923_v42  ;;  %v38532_v34 = vsub.f32 %v16915_v2, %v38518_v23  ;;  %v40780_v2 = vand.u32 4294901760, %v38529_v4  ;;  %v17105_v62 = vsub.f32 %v38527_v47, %v40781_v10 }
 0x8fb   : > { %29822 = vmatprep.mubr.f32.mxu0 %v37936_v30  ;;  %v17020_v43 = vsub.f32 %v38542_v35, %v40783_v57 }
 0x8fc   : > { %v40782_v60 = vand.u32 4294901760, %v38532_v34 }
 0x8fd   : > { %v17021_v57 = vand.u32 4294901760, %v17020_v43 }
 0x8fe   : > { %29823 = vmatmul.mubr.f32.gmra.mrb[38].mxu0 %v38421_v59 }
 0x8ff   : > { %29833 = vmatprep.mubr.f32.mxu0 %v37868_v45  ;;  %v16927_v45 = vsel %vm11900_vm11, %v16905_v44, 0  ;;  %v40785_v44 = vand.u32 4294901760, %v38551_v22 }
 0x900   : > { %v38553_v33 = vand.u32 4294901760, %v16927_v45 }
 0x902   : > { %29834 = vmatmul.mubr.f32.vlgmr.msra.gmra.mrb[32].mxu0 %v37875_v50  ;;  %v16908_v50 = vld [vmem:[#allocation3 + $0x90] sm:$0xff]  ;;  %v38577_v51 = vsub.f32 %v16927_v45, %v38553_v33 }
 0x903   : > { %31426 = vmatpush3.bf16.msra.mxu0 %v38490_v37  ;;  %29836 = vmatprep.mubr.f32.mxu0 %v37885_v38  ;;  %v16930_v38 = vsel %vm11900_vm11, %v16906_v24, 0  ;;  %v16936_v41 = vsel %vm11900_vm11, %v16908_v50, 0  ;;  %v17039_v24 = vand.u32 4294901760, %v38562_v18  ;;  %v17106_v50 = vand.u32 4294901760, %v17105_v62 }
 0x904   : > { %31428 = vmatprep.subr.bf16.mxu0 %v38523_v15  ;;  %v38570_v56 = vand.u32 4294901760, %v16930_v38  ;;  %v38580_v26 = vand.u32 4294901760, %v16936_v41  ;;  %v17049_v45 = vand.u32 4294901760, %v38577_v51 }
 0x905   : > { %v17040_v62 = vsub.f32 %v38562_v18, %v17039_v24 }
 0x906   : > { %29837 = vmatmul.mubr.f32.gmra.mrb[34].mxu0 %v37893_v9  ;;  %v17112_v9 = vsub.f32 %v38529_v4, %v40780_v2  ;;  %v38588_v10 = vsub.f32 %v16930_v38, %v38570_v56  ;;  %v17050_v49 = vsub.f32 %v38577_v51, %v17049_v45 }
 0x907   : > { %29839 = vmatprep.mubr.f32.mxu0 %v37915_v46  ;;  %31430 = vmatpush3.bf16.msra.mxu0 %v38523_v15  ;;  %v17010_v46 = vsub.f32 %v38532_v34, %v40782_v60  ;;  %v17041_v11 = vand.u32 4294901760, %v17040_v62  ;;  %v41448_v62 = vand.u32 4294901760, %v38532_v34 }
 0x908   : > { %31432 = vmatprep.subr.bf16.mxu0 %v31431_v61  ;;  %v17113_v2 = vand.u32 4294901760, %v17112_v9  ;;  %v17059_v9 = vand.u32 4294901760, %v38588_v10  ;;  %v17051_v43 = vand.u32 4294901760, %v17050_v49 }
 0x909   : > { %v17011_v60 = vand.u32 4294901760, %v17010_v46 }
 0x90a   : > { %29840 = vmatmul.mubr.f32.gmra.mrb[36].mxu0 %v37923_v42  ;;  %v17030_v42 = vsub.f32 %v38551_v22, %v40785_v44  ;;  %v31435_v38 = vpack.c.bf16 %v17113_v2, %v17106_v50 }
 0x90b   : > { %29842 = vmatprep.mubr.f32.mxu0 %v37936_v30  ;;  %v38596_v30 = vsub.f32 %v16936_v41, %v38580_v26  ;;  %v31439_v41 = vpack.c.bf16 %v38494_v3, %v38492_v63 }
 0x90c   : > { %v17031_v46 = vand.u32 4294901760, %v17030_v42  ;;  %v41447_v42 = vld [vmem:[#allocation125_spill] sm:$0xff] }
 0x90d   : > { %v17079_v44 = vand.u32 4294901760, %v38596_v30 }
 0x90e   : > { %29843 = vmatmul.mubr.f32.gmra.mrb[38].mxu0 %v38421_v59 }
 0x90f   : > { %29853 = vmatprep.mubr.f32.mxu0 %v17011_v60  ;;  %v17060_v60 = vsub.f32 %v38588_v10, %v17059_v9  ;;  %v17080_v2 = vsub.f32 %v38596_v30, %v17079_v44 }
 0x911   : > { %v17061_v50 = vand.u32 4294901760, %v17060_v60 }
 0x912   : > { %29854 = vmatmul.mubr.f32.vlgmr.msra.gmra.mrb[32].mxu0 %v17021_v57  ;;  %v17081_v57 = vand.u32 4294901760, %v17080_v2 }
 0x913   : > { %31434 = vmatpush3.bf16.msra.mxu0 %v31431_v61  ;;  %29856 = vmatprep.mubr.f32.mxu0 %v17031_v46  ;;  %v31443_v61 = vpack.c.bf16 %v38529_v4, %v38527_v47  ;;  %v41451_v46 = vand.u32 4294901760, %v38542_v35 }
 0x914   : > { %31436 = vmatprep.subr.bf16.mxu0 %v31435_v38 }
 0x916   : > { %29857 = vmatmul.mubr.f32.gmra.mrb[34].mxu0 %v17041_v11  ;;  %v41446_v11 = vand.u32 4294901760, %v38494_v3  ;;  %v41450_v3 = vand.u32 4294901760, %v38529_v4  ;;  %v26132_v4 = vld [vmem:[%s40407_s5 + $0xe0] sm:$0xff] }
 0x917   : > { %29859 = vmatprep.mubr.f32.mxu0 %v17051_v43  ;;  %31438 = vmatpush3.bf16.msra.mxu0 %v31435_v38 }
 0x918   : > { %31440 = vmatprep.subr.bf16.mxu0 %v31439_v41 }
 0x91a   : > { %29860 = vmatmul.mubr.f32.gmra.mrb[36].mxu0 %v17061_v50 }
 0x91b   : > { %29862 = vmatprep.mubr.f32.mxu0 %v38111_v58  ;;  %v41445_v58 = vand.u32 4294901760, %v38492_v63  ;;  %v41449_v63 = vand.u32 4294901760, %v38527_v47  ;;  %v41453_v47 = vld [vmem:[#allocation84_spill] sm:$0xff] }
 0x91d   : > { %v31455_v49 = vpack.c.bf16 %v41446_v11, %v41445_v58  ;;  %v31459_v38 = vpack.c.bf16 %v41450_v3, %v41449_v63 }
 0x91e   : > { %29863 = vmatmul.mubr.f32.gmra.mrb[38].mxu0 %v17081_v57 }
 0x91f   : > { %29873 = vmatprep.mubr.f32.mxu0 %v38518_v23 }
 0x922   : > { %29874 = vmatmul.mubr.f32.vlgmr.msra.gmra.mrb[32].mxu0 %v38525_v25 }
 0x923   : > { %31442 = vmatpush3.bf16.msra.mxu0 %v31439_v41  ;;  %29876 = vmatprep.mubr.f32.mxu0 %v38534_v32 }
 0x924   : > { %31444 = vmatprep.subr.bf16.mxu0 %v31443_v61 }
 0x926   : > { %29877 = vmatmul.mubr.f32.gmra.mrb[34].mxu0 %v38545_v52 }
 0x927   : > { %29879 = vmatprep.mubr.f32.mxu0 %v38553_v33  ;;  %31446 = vmatpush3.bf16.msra.mxu0 %v31443_v61 }
 0x928   : > { %31448 = vmatprep.subr.bf16.mxu0 %v38490_v37 }
 0x92a   : > { %29880 = vmatmul.mubr.f32.gmra.mrb[36].mxu0 %v38570_v56 }
 0x92b   : > { %29882 = vmatprep.mubr.f32.mxu0 %v38091_v36 }
 0x92e   : > { %29883 = vmatmul.mubr.f32.gmra.mrb[38].mxu0 %v38580_v26 }
 0x92f   : > { %29893 = vmatprep.mubr.f32.mxu0 %v38532_v34  ;;  %v26133_v34 = vld [vmem:[%s40407_s5 + $0xe8] sm:$0xff] }
 0x932   : > { %29894 = vmatmul.mubr.f32.vlgmr.msra.gmra.mrb[32].mxu0 %v38542_v35  ;;  %v17770_v35 = vand.u32 4294901760, %v26132_v4 }
 0x933   : > { %31450 = vmatpush3.bf16.msra.mxu0 %v38490_v37  ;;  %29896 = vmatprep.mubr.f32.mxu0 %v38551_v22 }
 0x934   : > { %31452 = vmatprep.subr.bf16.mxu0 %v38523_v15 }
 0x936   : > { %29897 = vmatmul.mubr.f32.gmra.mrb[34].mxu0 %v38562_v18  ;;  %v38662_v18 = vsub.f32 %v26132_v4, %v17770_v35  ;;  %v18563_v4 = vld [vmem:[#allocation3 + $0x22] sm:$0xff] }
 0x937   : > { %29899 = vmatprep.mubr.f32.mxu0 %v38577_v51  ;;  %31454 = vmatpush3.bf16.msra.mxu0 %v38523_v15  ;;  %v41452_v51 = vand.u32 4294901760, %v38551_v22 }
 0x938   : > { %31456 = vmatprep.subr.bf16.mxu0 %v31455_v49 }
 0x93a   : > { %29900 = vmatmul.mubr.f32.gmra.mrb[36].mxu0 %v38588_v10  ;;  %v17773_v10 = vand.u32 4294901760, %v26133_v34 }
 0x93b   : > { %29902 = vmatprep.mubr.f32.mxu0 %v41447_v42 }
 0x93c   : > { %v38660_v22 = vpack.c.bf16 %v17773_v10, %v17770_v35  ;;  %v26139_v35 = vld [vmem:[%s40407_s5 + $0x118] sm:$0xff] }
 0x93e   : > { %29903 = vmatmul.mubr.f32.gmra.mrb[38].mxu0 %v38596_v30 }
 0x93f   : > { %29913 = vmatprep.mubr.f32.mxu0 %v41448_v62 }
 0x942   : > { %29914 = vmatmul.mubr.f32.vlgmr.msra.gmra.mrb[32].mxu0 %v41451_v46 }
 0x943   : > { %31458 = vmatpush3.bf16.msra.mxu0 %v31455_v49  ;;  %29916 = vmatprep.mubr.f32.mxu0 %v41452_v51  ;;  %v17739_v49 = vld [vmem:[#allocation3 + $0x91] sm:$0xff] }
 0x944   : > { %31460 = vmatprep.subr.bf16.mxu0 %v31459_v38 }
 0x946   : > { %29917 = vmatmul.mubr.f32.gmra.mrb[34].mxu0 %v17039_v24  ;;  %v38664_v24 = vsub.f32 %v26133_v34, %v17773_v10  ;;  %v26138_v34 = vld [vmem:[%s40407_s5 + $0x110] sm:$0xff] }
 0x947   : > { %29919 = vmatprep.mubr.f32.mxu0 %v17049_v45  ;;  %31462 = vmatpush3.bf16.msra.mxu0 %v31459_v38  ;;  %v17921_v45 = vand.u32 4294901760, %v38662_v18  ;;  %v41454_v38 = vld [vmem:[#allocation120_spill] sm:$0xff] }
 0x948   : > { %31464 = vmatprep.subr.bf16.mxu0 %v38490_v37  ;;  %v17928_v30 = vand.u32 4294901760, %v38664_v24 }
 0x949   : > { %v17922_v60 = vsub.f32 %v38662_v18, %v17921_v45 }
 0x94a   : > { %29920 = vmatmul.mubr.f32.gmra.mrb[36].mxu0 %v17059_v9  ;;  %v17929_v41 = vsub.f32 %v38664_v24, %v17928_v30 }
 0x94b   : > { %29922 = vmatprep.mubr.f32.mxu0 %v41453_v47  ;;  %v17923_v2 = vand.u32 4294901760, %v17922_v60 }
 0x94c   : > { %v17930_v50 = vand.u32 4294901760, %v17929_v41 }
 0x94e   : > { %29923 = vmatmul.mubr.f32.gmra.mrb[38].mxu0 %v17079_v44  ;;  %v26135_v44 = vld [vmem:[%s40407_s5 + $0xf8] sm:$0xff]  ;;  %v31479_v58 = vpack.c.bf16 %v17930_v50, %v17923_v2 }
 0x94f   : > { %29933 = vmatprep.mubr.f32.mxu0 %v38518_v23 }
 0x952   : > { %29934 = vmatmul.mubr.f32.vlgmr.msra.gmra.mrb[32].mxu0 %v38525_v25 }
 0x953   : > { %31466 = vmatpush3.bf16.msra.mxu0 %v38490_v37  ;;  %29936 = vmatprep.mubr.f32.mxu0 %v38534_v32  ;;  %v26134_v37 = vld [vmem:[%s40407_s5 + $0xf0] sm:$0xff] }
 0x954   : > { %31468 = vmatprep.subr.bf16.mxu0 %v38523_v15  ;;  %v17776_v9 = vand.u32 4294901760, %v26134_v37 }
 0x956   : > { %29937 = vmatmul.mubr.f32.gmra.mrb[34].mxu0 %v38545_v52  ;;  %v38690_v57 = vsub.f32 %v26134_v37, %v17776_v9  ;;  %v18607_v37 = vand.u32 4294901760, %v26138_v34 }
 0x957   : > { %29939 = vmatprep.mubr.f32.mxu0 %v38553_v33  ;;  %31470 = vmatpush3.bf16.msra.mxu0 %v38523_v15  ;;  %v17779_v15 = vand.u32 4294901760, %v26135_v44 }
 0x958   : > { %31472 = vmatprep.subr.bf16.mxu0 %v38660_v22  ;;  %v17935_v11 = vand.u32 4294901760, %v38690_v57 }
 0x959   : > { %v38688_v43 = vpack.c.bf16 %v17779_v15, %v17776_v9  ;;  %v38692_v61 = vsub.f32 %v26135_v44, %v17779_v15  ;;  %v18610_v44 = vand.u32 4294901760, %v26139_v35 }
 0x95a   : > { %29940 = vmatmul.mubr.f32.gmra.mrb[36].mxu0 %v38570_v56  ;;  %v17936_v42 = vsub.f32 %v38690_v57, %v17935_v11 }
 0x95b   : > { %29942 = vmatprep.mubr.f32.mxu0 %v38091_v36  ;;  %v38798_v2 = vpack.c.bf16 %v18610_v44, %v18607_v37 }
 0x95c   : > { %v17937_v63 = vand.u32 4294901760, %v17936_v42 }
 0x95e   : > { %29943 = vmatmul.mubr.f32.gmra.mrb[38].mxu0 %v38580_v26 }
 0x95f   : > { %29953 = vmatprep.mubr.f32.mxu0 %v38518_v23  ;;  %v17942_v23 = vand.u32 4294901760, %v38692_v61 }
 0x962   : > { %29954 = vmatmul.mubr.f32.vlgmr.msra.gmra.mrb[32].mxu0 %v38525_v25  ;;  %v17767_v25 = vsel %vm11900_vm11, %v17739_v49, 0 }
 0x963   : > { %31474 = vmatpush3.bf16.msra.mxu0 %v38660_v22  ;;  %29956 = vmatprep.mubr.f32.mxu0 %v38534_v32  ;;  %v17943_v32 = vsub.f32 %v38692_v61, %v17942_v23  ;;  %v38707_v62 = vand.u32 4294901760, %v17767_v25 }
 0x964   : > { %31476 = vmatprep.subr.bf16.mxu0 %v38688_v43 }
 0x965   : > { %v17944_v3 = vand.u32 4294901760, %v17943_v32  ;;  %v18568_v32 = vld [vmem:[#allocation3 + $0x72] sm:$0xff] }
 0x966   : > { %29957 = vmatmul.mubr.f32.gmra.mrb[34].mxu0 %v38545_v52  ;;  %v17909_v52 = vsub.f32 %v17767_v25, %v38707_v62 }
 0x967   : > { %29959 = vmatprep.mubr.f32.mxu0 %v38553_v33  ;;  %31478 = vmatpush3.bf16.msra.mxu0 %v38688_v43  ;;  %v31483_v33 = vpack.c.bf16 %v17944_v3, %v17937_v63 }
 0x968   : > { %31480 = vmatprep.subr.bf16.mxu0 %v31479_v58  ;;  %v17910_v46 = vand.u32 4294901760, %v17909_v52 }
 0x96a   : > { %29960 = vmatmul.mubr.f32.gmra.mrb[36].mxu0 %v38570_v56  ;;  %v31487_v56 = vpack.c.bf16 %v38664_v24, %v38662_v18  ;;  %v18564_v18 = vld [vmem:[#allocation3 + $0x32] sm:$0xff]  ;;  %v18577_v24 = vsel %vm11900_vm11, %v18563_v4, 0 }
 0x96b   : > { %29962 = vmatprep.mubr.f32.mxu0 %v38091_v36  ;;  %v17911_v36 = vsub.f32 %v17909_v52, %v17910_v46  ;;  %v18580_v15 = vsel %vm11900_vm11, %v18564_v18, 0  ;;  %v38793_v60 = vand.u32 4294901760, %v18577_v24 }
 0x96c   : > { %v38800_v50 = vand.u32 4294901760, %v18580_v15 }
 0x96d   : > { %v38807_v49 = vsub.f32 %v18577_v24, %v38793_v60 }
 0x96e   : > { %29963 = vmatmul.mubr.f32.gmra.mrb[38].mxu0 %v38580_v26  ;;  %v38817_v63 = vsub.f32 %v18580_v15, %v38800_v50 }
 0x96f   : > { %29973 = vmatprep.mubr.f32.mxu0 %v38277_v40  ;;  %v17912_v40 = vand.u32 4294901760, %v17911_v36 }
 0x972   : > { %29974 = vmatmul.mubr.f32.vlgmr.msra.gmra.mrb[32].mxu0 %v41454_v38 }
 0x973   : > { %31482 = vmatpush3.bf16.msra.mxu0 %v31479_v58  ;;  %29976 = vmatprep.mubr.f32.mxu0 %v38296_v12  ;;  %v31491_v12 = vpack.c.bf16 %v38692_v61, %v38690_v57  ;;  %v18567_v57 = vld [vmem:[#allocation3 + $0x62] sm:$0xff] }
 0x974   : > { %31484 = vmatprep.subr.bf16.mxu0 %v31483_v33 }
 0x976   : > { %29977 = vmatmul.mubr.f32.gmra.mrb[34].mxu0 %v38305_v39  ;;  %v26137_v39 = vld [vmem:[%s40407_s5 + $0x108] sm:$0xff] }
 0x977   : > { %29979 = vmatprep.mubr.f32.mxu0 %v38311_v1  ;;  %31486 = vmatpush3.bf16.msra.mxu0 %v31483_v33 }
 0x978   : > { %31488 = vmatprep.subr.bf16.mxu0 %v31487_v56 }
 0x97a   : > { %29980 = vmatmul.mubr.f32.gmra.mrb[36].mxu0 %v38315_v19  ;;  %v31503_v19 = vpack.c.bf16 %v17928_v30, %v17921_v45  ;;  %v18565_v45 = vld [vmem:[#allocation3 + $0x42] sm:$0xff] }
 0x97b   : > { %29982 = vmatprep.mubr.f32.mxu0 %v38319_v48  ;;  %v18604_v48 = vand.u32 4294901760, %v26137_v39  ;;  %v18583_v41 = vsel %vm11900_vm11, %v18565_v45, 0 }
 0x97c   : > { %v38809_v25 = vand.u32 4294901760, %v18583_v41 }
 0x97d   : > { %v38769_v47 = vsub.f32 %v26137_v39, %v18604_v48 }
 0x97e   : > { %29983 = vmatmul.mubr.f32.gmra.mrb[38].mxu0 %v17912_v40  ;;  %v18681_v40 = vand.u32 4294901760, %v38817_v63 }
 0x97f   : > { %29993 = vmatprep.mubr.f32.mxu0 %v38198_v5 }
 0x982   : > { %29994 = vmatmul.mubr.f32.vlgmr.msra.gmra.mrb[32].mxu0 %v38205_v29 }
 0x983   : > { %31490 = vmatpush3.bf16.msra.mxu0 %v31487_v56  ;;  %29996 = vmatprep.mubr.f32.mxu0 %v38214_v27  ;;  %v38826_v56 = vsub.f32 %v18583_v41, %v38809_v25 }
 0x984   : > { %31492 = vmatprep.subr.bf16.mxu0 %v31491_v12 }
 0x986   : > { %29997 = vmatmul.mubr.f32.gmra.mrb[34].mxu0 %v38223_v14 }
 0x987   : > { %29999 = vmatprep.mubr.f32.mxu0 %v38245_v17  ;;  %31494 = vmatpush3.bf16.msra.mxu0 %v31491_v12 }
 0x988   : > { %31496 = vmatprep.subr.bf16.mxu0 %v38660_v22 }
 0x98a   : > { %30000 = vmatmul.mubr.f32.gmra.mrb[36].mxu0 %v38253_v13 }
 0x98b   : > { %30002 = vmatprep.mubr.f32.mxu0 %v38266_v54 }
 0x98e   : > { %30003 = vmatmul.mubr.f32.gmra.mrb[38].mxu0 %v38707_v62 }
 0x98f   : > { %30013 = vmatprep.mubr.f32.mxu0 %v38212_v55  ;;  %v31507_v55 = vpack.c.bf16 %v17942_v23, %v17935_v11  ;;  %v38802_v11 = vsub.f32 %v26138_v34, %v18607_v37  ;;  %v38804_v23 = vsub.f32 %v26139_v35, %v18610_v44 }
 0x991   : > { %v18766_v33 = vand.u32 4294901760, %v38802_v11  ;;  %v18773_v38 = vand.u32 4294901760, %v38804_v23 }
 0x992   : > { %30014 = vmatmul.mubr.f32.vlgmr.msra.gmra.mrb[32].mxu0 %v38221_v16  ;;  %v41455_v16 = vld [vmem:[#allocation98_spill] sm:$0xff] }
 0x993   : > { %31498 = vmatpush3.bf16.msra.mxu0 %v38660_v22  ;;  %30016 = vmatprep.mubr.f32.mxu0 %v38234_v7  ;;  %v41456_v7 = vld [vmem:[#allocation103_spill] sm:$0xff] }
 0x994   : > { %31500 = vmatprep.subr.bf16.mxu0 %v38688_v43 }
 0x996   : > { %30017 = vmatmul.mubr.f32.gmra.mrb[34].mxu0 %v38251_v28  ;;  %v41457_v28 = vld [vmem:[#allocation108_spill] sm:$0xff] }
 0x997   : > { %30019 = vmatprep.mubr.f32.mxu0 %v38264_v8  ;;  %31502 = vmatpush3.bf16.msra.mxu0 %v38688_v43  ;;  %v41458_v8 = vld [vmem:[#allocation114_spill] sm:$0xff] }
 0x998   : > { %31504 = vmatprep.subr.bf16.mxu0 %v31503_v19 }
 0x99a   : > { %30020 = vmatmul.mubr.f32.gmra.mrb[36].mxu0 %v38274_v0  ;;  %v41459_v0 = vld [vmem:[#allocation124_spill] sm:$0xff] }
 0x99b   : > { %30022 = vmatprep.mubr.f32.mxu0 %v38285_v53  ;;  %v41460_v53 = vld [vmem:[#allocation50_spill] sm:$0xff] }
 0x99e   : > { %30023 = vmatmul.mubr.f32.gmra.mrb[38].mxu0 %v17909_v52 }
 0x99f   : > { %30033 = vmatprep.mubr.f32.mxu0 %v38231_v6  ;;  %v26136_v6 = vld [vmem:[%s40407_s5 + $0x100] sm:$0xff] }
 0x9a0   : > { %v18601_v1 = vand.u32 4294901760, %v26136_v6 }
 0x9a2   : > { %30034 = vmatmul.mubr.f32.vlgmr.msra.gmra.mrb[32].mxu0 %v41455_v16  ;;  %v38765_v26 = vpack.c.bf16 %v18604_v48, %v18601_v1  ;;  %v38767_v51 = vsub.f32 %v26136_v6, %v18601_v1 }
 0x9a3   : > { %31506 = vmatpush3.bf16.msra.mxu0 %v31503_v19  ;;  %30036 = vmatprep.mubr.f32.mxu0 %v41456_v7  ;;  %v18691_v7 = vand.u32 4294901760, %v38826_v56 }
 0x9a4   : > { %31508 = vmatprep.subr.bf16.mxu0 %v31507_v55  ;;  %v18752_v10 = vand.u32 4294901760, %v38767_v51 }
 0x9a6   : > { %30037 = vmatmul.mubr.f32.gmra.mrb[34].mxu0 %v41457_v28  ;;  %v18753_v30 = vsub.f32 %v38767_v51, %v18752_v10 }
 0x9a7   : > { %30039 = vmatprep.mubr.f32.mxu0 %v41458_v8  ;;  %31510 = vmatpush3.bf16.msra.mxu0 %v31507_v55  ;;  %v18767_v55 = vsub.f32 %v38802_v11, %v18766_v33 }
 0x9a8   : > { %31512 = vmatprep.subr.bf16.mxu0 %v38660_v22  ;;  %v18754_v61 = vand.u32 4294901760, %v18753_v30 }
 0x9a9   : > { %v18768_v6 = vand.u32 4294901760, %v18767_v55 }
 0x9aa   : > { %30040 = vmatmul.mubr.f32.gmra.mrb[36].mxu0 %v41459_v0  ;;  %v18682_v0 = vsub.f32 %v38817_v63, %v18681_v40 }
 0x9ab   : > { %30042 = vmatprep.mubr.f32.mxu0 %v41460_v53 }
 0x9ac   : > { %v18683_v34 = vand.u32 4294901760, %v18682_v0 }
 0x9ae   : > { %30043 = vmatmul.mubr.f32.gmra.mrb[38].mxu0 %v17910_v46  ;;  %v18671_v46 = vand.u32 4294901760, %v38807_v49 }
 0x9af   : > { %30053 = vmatprep.mubr.f32.mxu0 %v38198_v5 }
 0x9b2   : > { %30054 = vmatmul.mubr.f32.vlgmr.msra.gmra.mrb[32].mxu0 %v38205_v29 }
 0x9b3   : > { %31514 = vmatpush3.bf16.msra.mxu0 %v38660_v22  ;;  %30056 = vmatprep.mubr.f32.mxu0 %v38214_v27  ;;  %v18759_v22 = vand.u32 4294901760, %v38769_v47 }
 0x9b4   : > { %31516 = vmatprep.subr.bf16.mxu0 %v38688_v43 }
 0x9b5   : > { %v18760_v9 = vsub.f32 %v38769_v47, %v18759_v22 }
 0x9b6   : > { %30057 = vmatmul.mubr.f32.gmra.mrb[34].mxu0 %v38223_v14 }
 0x9b7   : > { %30059 = vmatprep.mubr.f32.mxu0 %v38245_v17  ;;  %31518 = vmatpush3.bf16.msra.mxu0 %v38688_v43  ;;  %v18566_v43 = vld [vmem:[#allocation3 + $0x52] sm:$0xff]  ;;  %v18761_v58 = vand.u32 4294901760, %v18760_v9  ;;  %v31535_v9 = vpack.c.bf16 %v38769_v47, %v38767_v51  ;;  %v31555_v51 = vpack.c.bf16 %v18773_v38, %v18766_v33 }
 0x9b8   : > { %31520 = vmatprep.subr.bf16.mxu0 %v38765_v26  ;;  %v18586_v42 = vsel %vm11900_vm11, %v18566_v43, 0 }
 0x9b9   : > { %v31527_v3 = vpack.c.bf16 %v18761_v58, %v18754_v61  ;;  %v38820_v52 = vand.u32 4294901760, %v18586_v42  ;;  %v31539_v61 = vpack.c.bf16 %v38804_v23, %v38802_v11 }
 0x9ba   : > { %30060 = vmatmul.mubr.f32.gmra.mrb[36].mxu0 %v38253_v13 }
 0x9bb   : > { %30062 = vmatprep.mubr.f32.mxu0 %v38266_v54  ;;  %v38837_v19 = vsub.f32 %v18586_v42, %v38820_v52 }
 0x9bd   : > { %v18701_v53 = vand.u32 4294901760, %v38837_v19 }
 0x9be   : > { %30063 = vmatmul.mubr.f32.gmra.mrb[38].mxu0 %v38707_v62 }
 0x9bf   : > { %30073 = vmatprep.mubr.f32.mxu0 %v38198_v5  ;;  %v18589_v5 = vsel %vm11900_vm11, %v18567_v57, 0  ;;  %v18702_v35 = vsub.f32 %v38837_v19, %v18701_v53 }
 0x9c0   : > { %v38828_v36 = vand.u32 4294901760, %v18589_v5 }
 0x9c2   : > { %30074 = vmatmul.mubr.f32.vlgmr.msra.gmra.mrb[32].mxu0 %v38205_v29  ;;  %v18570_v29 = vld [vmem:[#allocation3 + $0x92] sm:$0xff]  ;;  %v38852_v28 = vsub.f32 %v18589_v5, %v38828_v36 }
 0x9c3   : > { %31522 = vmatpush3.bf16.msra.mxu0 %v38765_v26  ;;  %30076 = vmatprep.mubr.f32.mxu0 %v38214_v27  ;;  %v18592_v27 = vsel %vm11900_vm11, %v18568_v32, 0  ;;  %v18598_v12 = vsel %vm11900_vm11, %v18570_v29, 0 }
 0x9c4   : > { %31524 = vmatprep.subr.bf16.mxu0 %v38798_v2  ;;  %v38845_v16 = vand.u32 4294901760, %v18592_v27  ;;  %v38855_v8 = vand.u32 4294901760, %v18598_v12  ;;  %v18711_v4 = vand.u32 4294901760, %v38852_v28 }
 0x9c6   : > { %30077 = vmatmul.mubr.f32.gmra.mrb[34].mxu0 %v38223_v14  ;;  %v18774_v14 = vsub.f32 %v38804_v23, %v18773_v38  ;;  %v38863_v1 = vsub.f32 %v18592_v27, %v38845_v16  ;;  %v18712_v44 = vsub.f32 %v38852_v28, %v18711_v4 }
 0x9c7   : > { %30079 = vmatprep.mubr.f32.mxu0 %v38245_v17  ;;  %31526 = vmatpush3.bf16.msra.mxu0 %v38798_v2  ;;  %v18672_v17 = vsub.f32 %v38807_v49, %v18671_v46 }
 0x9c8   : > { %31528 = vmatprep.subr.bf16.mxu0 %v31527_v3  ;;  %v18775_v39 = vand.u32 4294901760, %v18774_v14  ;;  %v18721_v24 = vand.u32 4294901760, %v38863_v1  ;;  %v18713_v15 = vand.u32 4294901760, %v18712_v44  ;;  %v19454_v14 = vld [vmem:[#allocation4] sm:$0xff] }
 0x9c9   : > { %v18673_v48 = vand.u32 4294901760, %v18672_v17  ;;  %v41461_v17 = vld [vmem:[#allocation8_spill] sm:$0xff] }
 0x9ca   : > { %30080 = vmatmul.mubr.f32.gmra.mrb[36].mxu0 %v38253_v13  ;;  %v18692_v13 = vsub.f32 %v38826_v56, %v18691_v7  ;;  %v31531_v18 = vpack.c.bf16 %v18775_v39, %v18768_v6  ;;  %v18722_v30 = vsub.f32 %v38863_v1, %v18721_v24 }
 0x9cb   : > { %30082 = vmatprep.mubr.f32.mxu0 %v38266_v54  ;;  %v38871_v54 = vsub.f32 %v18598_v12, %v38855_v8 }
 0x9cc   : > { %v18693_v37 = vand.u32 4294901760, %v18692_v13  ;;  %v18723_v43 = vand.u32 4294901760, %v18722_v30 }
 0x9cd   : > { %v18741_v45 = vand.u32 4294901760, %v38871_v54 }
 0x9ce   : > { %30083 = vmatmul.mubr.f32.gmra.mrb[38].mxu0 %v38707_v62  ;;  %v18703_v62 = vand.u32 4294901760, %v18702_v35 }
 0x9cf   : > { %30093 = vmatprep.mubr.f32.mxu0 %v18673_v48  ;;  %v18742_v41 = vsub.f32 %v38871_v54, %v18741_v45 }
 0x9d1   : > { %v18743_v57 = vand.u32 4294901760, %v18742_v41 }
 0x9d2   : > { %30094 = vmatmul.mubr.f32.vlgmr.msra.gmra.mrb[32].mxu0 %v18683_v34 }
 0x9d3   : > { %31530 = vmatpush3.bf16.msra.mxu0 %v31527_v3  ;;  %30096 = vmatprep.mubr.f32.mxu0 %v18693_v37  ;;  %v41462_v37 = vld [vmem:[#allocation12_spill] sm:$0xff] }
 0x9d4   : > { %31532 = vmatprep.subr.bf16.mxu0 %v31531_v18 }
 0x9d6   : > { %30097 = vmatmul.mubr.f32.gmra.mrb[34].mxu0 %v18703_v62 }
 0x9d7   : > { %30099 = vmatprep.mubr.f32.mxu0 %v18713_v15  ;;  %31534 = vmatpush3.bf16.msra.mxu0 %v31531_v18 }
 0x9d8   : > { %31536 = vmatprep.subr.bf16.mxu0 %v31535_v9 }
 0x9da   : > { %30100 = vmatmul.mubr.f32.gmra.mrb[36].mxu0 %v18723_v43 }
 0x9db   : > { %30102 = vmatprep.mubr.f32.mxu0 %v38441_v20  ;;  %v31551_v20 = vpack.c.bf16 %v18759_v22, %v18752_v10 }
 0x9de   : > { %30103 = vmatmul.mubr.f32.gmra.mrb[38].mxu0 %v18743_v57 }
 0x9df   : > { %30113 = vmatprep.mubr.f32.mxu0 %v38793_v60 }
 0x9e2   : > { %30114 = vmatmul.mubr.f32.vlgmr.msra.gmra.mrb[32].mxu0 %v38800_v50 }
 0x9e3   : > { %31538 = vmatpush3.bf16.msra.mxu0 %v31535_v9  ;;  %30116 = vmatprep.mubr.f32.mxu0 %v38809_v25 }
 0x9e4   : > { %31540 = vmatprep.subr.bf16.mxu0 %v31539_v61 }
 0x9e6   : > { %30117 = vmatmul.mubr.f32.gmra.mrb[34].mxu0 %v38820_v52 }
 0x9e7   : > { %30119 = vmatprep.mubr.f32.mxu0 %v38828_v36  ;;  %31542 = vmatpush3.bf16.msra.mxu0 %v31539_v61 }
 0x9e8   : > { %31544 = vmatprep.subr.bf16.mxu0 %v38765_v26 }
 0x9ea   : > { %30120 = vmatmul.mubr.f32.gmra.mrb[36].mxu0 %v38845_v16 }
 0x9eb   : > { %30122 = vmatprep.mubr.f32.mxu0 %v38421_v59 }
 0x9ee   : > { %30123 = vmatmul.mubr.f32.gmra.mrb[38].mxu0 %v38855_v8 }
 0x9ef   : > { %30133 = vmatprep.mubr.f32.mxu0 %v38807_v49 }
 0x9f2   : > { %30134 = vmatmul.mubr.f32.vlgmr.msra.gmra.mrb[32].mxu0 %v38817_v63 }
 0x9f3   : > { %31546 = vmatpush3.bf16.msra.mxu0 %v38765_v26  ;;  %30136 = vmatprep.mubr.f32.mxu0 %v38826_v56 }
 0x9f4   : > { %31548 = vmatprep.subr.bf16.mxu0 %v38798_v2 }
 0x9f6   : > { %30137 = vmatmul.mubr.f32.gmra.mrb[34].mxu0 %v38837_v19 }
 0x9f7   : > { %30139 = vmatprep.mubr.f32.mxu0 %v38852_v28  ;;  %31550 = vmatpush3.bf16.msra.mxu0 %v38798_v2 }
 0x9f8   : > { %31552 = vmatprep.subr.bf16.mxu0 %v31551_v20 }
 0x9fa   : > { %30140 = vmatmul.mubr.f32.gmra.mrb[36].mxu0 %v38863_v1 }
 0x9fb   : > { %30142 = vmatprep.mubr.f32.mxu0 %v38426_v21  ;;  %v26150_v21 = vld [vmem:[%s40409_s7 + $0x20] sm:$0xff] }
 0x9fc   : > { %v19798_v47 = vand.u32 4294901760, %v26150_v21 }
 0x9fe   : > { %30143 = vmatmul.mubr.f32.gmra.mrb[38].mxu0 %v38871_v54  ;;  %v19888_v58 = vsub.f32 %v26150_v21, %v19798_v47 }
 0x9ff   : > { %30153 = vmatprep.mubr.f32.mxu0 %v18671_v46 }
 0xa00   : > { %v19889_v23 = vand.u32 4294901760, %v19888_v58 }
 0xa02   : > { %30154 = vmatmul.mubr.f32.vlgmr.msra.gmra.mrb[32].mxu0 %v18681_v40 }
 0xa03   : > { %31554 = vmatpush3.bf16.msra.mxu0 %v31551_v20  ;;  %30156 = vmatprep.mubr.f32.mxu0 %v18691_v7  ;;  %v38980_v7 = vrot.slane %v19454_v14, %v41461_v17 }
 0xa04   : > { %31556 = vmatprep.subr.bf16.mxu0 %v31555_v51 }
 0xa05   : > { %v38984_v39 = vcombine.high %v38980_v7, %v38980_v7  ;;  %v19718_v44 = vrot.slane %v38980_v7, %v41462_v37 }
 0xa06   : > { %30157 = vmatmul.mubr.f32.gmra.mrb[34].mxu0 %v18701_v53 }
 0xa07   : > { %30159 = vmatprep.mubr.f32.mxu0 %v18711_v4  ;;  %31558 = vmatpush3.bf16.msra.mxu0 %v31555_v51 }
 0xa08   : > { %31560 = vmatprep.subr.bf16.mxu0 %v38765_v26 }
 0xa0a   : > { %30160 = vmatmul.mubr.f32.gmra.mrb[36].mxu0 %v18721_v24 }
 0xa0b   : > { %30162 = vmatprep.mubr.f32.mxu0 %v38431_v31  ;;  %v26151_v31 = vld [vmem:[%s40409_s7 + $0x28] sm:$0xff] }
 0xa0c   : > { %v19801_v10 = vand.u32 4294901760, %v26151_v31 }
 0xa0e   : > { %30163 = vmatmul.mubr.f32.gmra.mrb[38].mxu0 %v18741_v45  ;;  %v19895_v11 = vsub.f32 %v26151_v31, %v19801_v10  ;;  %v19722_v45 = vrot.slane %v38984_v39, %v41462_v37 }
 0xa0f   : > { %30173 = vmatprep.mubr.f32.mxu0 %v38793_v60 }
 0xa10   : > { %v19896_v49 = vand.u32 4294901760, %v19895_v11  ;;  %v38966_v56 = vpack.c.bf16 %v19895_v11, %v19888_v58  ;;  %v19779_v21 = vsel %vm3586_vm4, %v19722_v45, %v19718_v44 }
 0xa12   : > { %30174 = vmatmul.mubr.f32.vlgmr.msra.gmra.mrb[32].mxu0 %v38800_v50  ;;  %v19897_v42 = vsub.f32 %v19895_v11, %v19896_v49  ;;  %v38972_v19 = vpack.c.bf16 %v19896_v49, %v19889_v23 }
 0xa13   : > { %31562 = vmatpush3.bf16.msra.mxu0 %v38765_v26  ;;  %30176 = vmatprep.mubr.f32.mxu0 %v38809_v25  ;;  %v26152_v26 = vld [vmem:[%s40409_s7 + $0x30] sm:$0xff] }
 0xa14   : > { %31564 = vmatprep.subr.bf16.mxu0 %v38798_v2  ;;  %v19804_v22 = vand.u32 4294901760, %v26152_v26  ;;  %v19898_v32 = vand.u32 4294901760, %v19897_v42 }
 0xa16   : > { %30177 = vmatmul.mubr.f32.gmra.mrb[34].mxu0 %v38820_v52  ;;  %v19902_v3 = vsub.f32 %v26152_v26, %v19804_v22 }
 0xa17   : > { %30179 = vmatprep.mubr.f32.mxu0 %v38828_v36  ;;  %31566 = vmatpush3.bf16.msra.mxu0 %v38798_v2  ;;  %v38955_v2 = vpack.c.bf16 %v19801_v10, %v19798_v47 }
 0xa18   : > { %v19903_v33 = vand.u32 4294901760, %v19902_v3 }
 0xa19   : > { %31568 = vmatprep.subr.bf16.mxu1 %v38955_v2 }
 0xa1a   : > { %30180 = vmatmul.mubr.f32.gmra.mrb[36].mxu0 %v38845_v16  ;;  %31570 = vmatpush3.bf16.msra.mxu1 %v38955_v2  ;;  %v19904_v29 = vsub.f32 %v19902_v3, %v19903_v33 }
 0xa1b   : > { %30182 = vmatprep.mubr.f32.mxu0 %v38421_v59 }
 0xa1e   : > { %30183 = vmatmul.mubr.f32.gmra.mrb[38].mxu0 %v38855_v8 }
 0xa1f   : > { %30193 = vmatprep.mubr.f32.mxu0 %v38793_v60 }
 0xa22   : > { %30194 = vmatmul.mubr.f32.vlgmr.msra.gmra.mrb[32].mxu0 %v38800_v50 }
 0xa23   : > { %30196 = vmatprep.mubr.f32.mxu0 %v38809_v25  ;;  %v19890_v25 = vsub.f32 %v19888_v58, %v19889_v23 }
 0xa25   : > { %v19891_v5 = vand.u32 4294901760, %v19890_v25 }
 0xa26   : > { %30197 = vmatmul.mubr.f32.gmra.mrb[34].mxu0 %v38820_v52 }
 0xa27   : > { %30199 = vmatprep.mubr.f32.mxu0 %v38828_v36  ;;  %v38963_v63 = vpack.c.bf16 %v19898_v32, %v19891_v5  ;;  %v19905_v36 = vand.u32 4294901760, %v19904_v29 }
 0xa2a   : > { %30200 = vmatmul.mubr.f32.gmra.mrb[36].mxu0 %v38845_v16  ;;  %v26140_v16 = vld [vmem:[%s40408_s6] ss:$0 sm:$0xff] }
 0xa2b   : > { %30202 = vmatprep.mubr.f32.mxu0 %v38421_v59  ;;  %v26153_v59 = vld [vmem:[%s40409_s7 + $0x38] sm:$0xff] }
 0xa2c   : > { %v19807_v60 = vand.u32 4294901760, %v26153_v59 }
 0xa2e   : > { %30203 = vmatmul.mubr.f32.gmra.mrb[38].mxu0 %v38855_v8  ;;  %v38957_v50 = vpack.c.bf16 %v19807_v60, %v19804_v22  ;;  %v19909_v52 = vsub.f32 %v26153_v59, %v19807_v60  ;;  %v19490_v8 = vcombine.high %v19454_v14, %v19454_v14 }
 0xa30   : > { %31572 = vmatprep.subr.bf16.mxu1 %v38957_v50  ;;  %v19910_v38 = vand.u32 4294901760, %v19909_v52  ;;  %v38970_v12 = vpack.c.bf16 %v19909_v52, %v19902_v3  ;;  %v38987_v4 = vrot.slane %v19490_v8, %v41461_v17 }
 0xa31   : > { %31574 = vmatpush3.bf16.msra.mxu1 %v38957_v50 }
 0xa32   : > { %31576 = vmatprep.subr.bf16.mxu1 %v38963_v63  ;;  %v19911_v46 = vsub.f32 %v19909_v52, %v19910_v38  ;;  %v38974_v55 = vpack.c.bf16 %v19910_v38, %v19903_v33  ;;  %v38997_v15 = vcombine.high %v38987_v4, %v38987_v4  ;;  %v19726_v61 = vrot.slane %v38987_v4, %v41462_v37 }
 0xa34   : > { %v19912_v27 = vand.u32 4294901760, %v19911_v46  ;;  %v19730_v10 = vrot.slane %v38997_v15, %v41462_v37  ;;  %v19780_v58 = vsel %vm3588_vm5, %v19726_v61, %v19779_v21 }
 0xa36   : > { %v38968_v40 = vpack.c.bf16 %v19912_v27, %v19905_v36  ;;  %v19781_v3 = vsel %vm3590_vm6, %v19730_v10, %v19780_v58 }
 0xaf5   : > { %v30195_v28 = vpop.f32.mrb[32].mxu0 }
 0xaf6   : > { %v19402_v0 = vadd.f32 %v30195_v28, %v26140_v16  ;;  %v19340_v53 = vpop.f32.mrb[33].mxu0 }
 0xaf7   : > { %v19401_v6 = vadd.f32 %v26140_v16, %v19340_v53 }
 0xaf8   : > { %v19410_v1 = vmul.f32 0.2, %v19402_v0 }
 0xaf9   : > { %v19409_v48 = vmul.f32 0.2, %v19401_v6  ;;  %v30198_v13 = vpop.f32.mrb[34].mxu0 }
 0xafa   : > { %v19418_v54 = vmax.f32 %v19402_v0, %v19410_v1  ;;  %v19404_v34 = vadd.f32 %v30198_v13, %v26140_v16  ;;  %v19352_v35 = vpop.f32.mrb[35].mxu0 }
 0xafb   : > { %v19417_v18 = vmax.f32 %v19401_v6, %v19409_v48  ;;  %v19403_v24 = vadd.f32 %v26140_v16, %v19352_v35 }
 0xafc   : > { %19447 = vst.msk [vmem:[#allocation4 + $0x21] sm:$0xff] %vm11900_vm11, %v19418_v54  ;;  %v19412_v62 = vmul.f32 0.2, %v19404_v34 }
 0xafd   : > { %19446 = vst.msk [vmem:[#allocation4 + $0x11] sm:$0xff] %vm11900_vm11, %v19417_v18  ;;  %v19411_v30 = vmul.f32 0.2, %v19403_v24  ;;  %v30201_v9 = vpop.f32.mrb[36].mxu0 }
 0xafe   : > { %v19420_v41 = vmax.f32 %v19404_v34, %v19412_v62  ;;  %v19406_v43 = vadd.f32 %v30201_v9, %v26140_v16  ;;  %v19364_v57 = vpop.f32.mrb[37].mxu0 }
 0xaff   : > { %v19419_v20 = vmax.f32 %v19403_v24, %v19411_v30  ;;  %v19405_v51 = vadd.f32 %v26140_v16, %v19364_v57 }
 0xb00   : > { %19449 = vst.msk [vmem:[#allocation4 + $0x41] sm:$0xff] %vm11900_vm11, %v19420_v41  ;;  %v19414_v31 = vmul.f32 0.2, %v19406_v43 }
 0xb01   : > { %19448 = vst.msk [vmem:[#allocation4 + $0x31] sm:$0xff] %vm11900_vm11, %v19419_v20  ;;  %v19413_v26 = vmul.f32 0.2, %v19405_v51  ;;  %v30204_v47 = vpop.f32.mrb[38].mxu0 }
 0xb02   : > { %v19422_v59 = vmax.f32 %v19406_v43, %v19414_v31  ;;  %v19408_v22 = vadd.f32 %v30204_v47, %v26140_v16  ;;  %v19376_v60 = vpop.f32.mrb[39].mxu0 }
 0xb03   : > { %v19421_v11 = vmax.f32 %v19405_v51, %v19413_v26  ;;  %v19407_v23 = vadd.f32 %v26140_v16, %v19376_v60  ;;  %v19458_v49 = vld [vmem:[#allocation4 + $0x20] sm:$0xff] }
 0xb04   : > { %19451 = vst.msk [vmem:[#allocation4 + $0x61] sm:$0xff] %vm11900_vm11, %v19422_v59  ;;  %v19416_v25 = vmul.f32 0.2, %v19408_v22  ;;  %v19538_v42 = vcombine.high %v19458_v49, %v19458_v49  ;;  %v39009_v5 = vrot.slane %v19458_v49, %v41461_v17 }
 0xb05   : > { %19450 = vst.msk [vmem:[#allocation4 + $0x51] sm:$0xff] %vm11900_vm11, %v19421_v11  ;;  %v19415_v32 = vmul.f32 0.2, %v19407_v23 }
 0xb06   : > { %v19424_v52 = vmax.f32 %v19408_v22, %v19416_v25  ;;  %v39014_v33 = vrot.slane %v19538_v42, %v41461_v17  ;;  %v39018_v38 = vcombine.high %v39009_v5, %v39009_v5  ;;  %v39022_v29 = vrot.slane %v39009_v5, %v41462_v37 }
 0xb07   : > { %v19423_v46 = vmax.f32 %v19407_v23, %v19415_v32  ;;  %v19462_v36 = vld [vmem:[#allocation4 + $0x40] sm:$0xff] }
 0xb08   : > { %41463 = vst [vmem:[#allocation129_spill] sm:$0xff] %v39022_v29  ;;  %19453 = vst.msk [vmem:[#allocation4 + $0x81] sm:$0xff] %vm11900_vm11, %v19424_v52  ;;  %v39027_v27 = vcombine.high %v39014_v33, %v39014_v33  ;;  %v39031_v14 = vrot.slane %v39018_v38, %v41462_v37  ;;  %v39035_v16 = vrot.slane %v39014_v33, %v41462_v37 }
 0xb09   : > { %v19782_v28 = vsel %vm3592_vm7, %v39022_v29, %v19781_v3  ;;  %19452 = vst.msk [vmem:[#allocation4 + $0x71] sm:$0xff] %vm11900_vm11, %v19423_v46  ;;  %v19586_v8 = vcombine.high %v19462_v36, %v19462_v36  ;;  %v19593_v0 = vrot.slane %v19462_v36, %v41461_v17  ;;  %v41475_v46 = vld [vmem:[#allocation68_spill] sm:$0xff] }
 0xb0a   : > { %41464 = vst [vmem:[#allocation85_spill] sm:$0xff] %v39031_v14  ;;  %41465 = vst [vmem:[#allocation71_spill] sm:$0xff] %v39035_v16  ;;  %v39043_v53 = vrot.slane %v39027_v27, %v41462_v37  ;;  %v19783_v6 = vsel %vm3594_vm8, %v39031_v14, %v19782_v28  ;;  %v20328_v36 = vrot.slane %v38980_v7, %v41475_v46 }
 0xb0b   : > { %v19784_v1 = vsel %vm3596_vm9, %v39035_v16, %v19783_v6  ;;  %v19466_v48 = vld [vmem:[#allocation4 + $0x60] sm:$0xff]  ;;  %v19600_v13 = vrot.slane %v19586_v8, %v41461_v17  ;;  %v19601_v54 = vcombine.high %v19593_v0, %v19593_v0  ;;  %v39054_v24 = vrot.slane %v19593_v0, %v41462_v37 }
 0xb0c   : > { %41466 = vst [vmem:[#allocation73_spill] sm:$0xff] %v39043_v53  ;;  %v19785_v34 = vsel %vm3598_vm10, %v39043_v53, %v19784_v1  ;;  %v19634_v35 = vcombine.high %v19466_v48, %v19466_v48  ;;  %v19641_v18 = vrot.slane %v19466_v48, %v41461_v17  ;;  %v39113_v28 = vrot.slane %v38984_v39, %v41475_v46 }
 0xb0d   : > { %41467 = vst [vmem:[#allocation78_spill] sm:$0xff] %v39054_v24  ;;  %v19793_v44 = vsel %vm11900_vm11, %v19785_v34, 0  ;;  %v19602_v45 = vcombine.high %v19600_v13, %v19600_v13  ;;  %v39058_v62 = vrot.slane %v19601_v54, %v41462_v37  ;;  %v39061_v30 = vrot.slane %v19600_v13, %v41462_v37 }
 0xb0e   : > { %v39063_v9 = vand.u32 4294901760, %v19793_v44  ;;  %v39066_v41 = vrot.slane %v19634_v35, %v41461_v17  ;;  %v19649_v43 = vcombine.high %v19641_v18, %v19641_v18  ;;  %v39072_v61 = vrot.slane %v19641_v18, %v41462_v37 }
 0xb0f   : > { %41468 = vst [vmem:[#allocation51_spill] sm:$0xff] %v39058_v62  ;;  %41469 = vst [vmem:[#allocation89_spill] sm:$0xff] %v39061_v30  ;;  %v39069_v57 = vrot.slane %v19602_v45, %v41462_v37  ;;  %v19786_v20 = vsel %vm3586_vm4, %v39058_v62, %v39054_v24  ;;  %v39117_v1 = vrot.slane %v38987_v4, %v41475_v46 }
 0xb10   : > { %41471 = vst [vmem:[#allocation91_spill] sm:$0xff] %v39072_v61  ;;  %v19867_v51 = vsub.f32 %v19793_v44, %v39063_v9  ;;  %v39080_v21 = vcombine.high %v39066_v41, %v39066_v41  ;;  %v39083_v31 = vrot.slane %v19649_v43, %v41462_v37  ;;  %v39087_v26 = vrot.slane %v39066_v41, %v41462_v37 }
 0xb11   : > { %41470 = vst [vmem:[#allocation86_spill] sm:$0xff] %v39069_v57  ;;  %v19787_v47 = vsel %vm3588_vm5, %v39061_v30, %v19786_v20  ;;  %v20389_v48 = vsel %vm3586_vm4, %v39113_v28, %v20328_v36  ;;  %v39125_v7 = vrot.slane %v38997_v15, %v41475_v46  ;;  %v39131_v4 = vrot.slane %v19601_v54, %v41475_v46 }
 0xb12   : > { %41472 = vst [vmem:[#allocation79_spill] sm:$0xff] %v39083_v31  ;;  %41473 = vst [vmem:[#allocation90_spill] sm:$0xff] %v39087_v26  ;;  %v19868_v10 = vand.u32 4294901760, %v19867_v51  ;;  %v39093_v59 = vrot.slane %v39080_v21, %v41462_v37  ;;  %v19788_v22 = vsel %vm3590_vm6, %v39069_v57, %v19787_v47  ;;  %v20390_v39 = vsel %vm3588_vm5, %v39117_v1, %v20389_v48 }
 0xb13   : > { %v19789_v60 = vsel %vm3592_vm7, %v39072_v61, %v19788_v22  ;;  %41476 = vst [vmem:[#allocation92_spill] sm:$0xff] %v39131_v4  ;;  %v39135_v34 = vrot.slane %v39009_v5, %v41475_v46  ;;  %v20391_v15 = vsel %vm3590_vm6, %v39125_v7, %v20390_v39  ;;  %v39144_v35 = vrot.slane %v19600_v13, %v41475_v46 }
 0xb14   : > { %41474 = vst [vmem:[#allocation80_spill] sm:$0xff] %v39093_v59  ;;  %v19869_v58 = vsub.f32 %v19867_v51, %v19868_v10  ;;  %v19790_v11 = vsel %vm3594_vm8, %v39083_v31, %v19789_v60  ;;  %v39152_v5 = vrot.slane %v39018_v38, %v41475_v46  ;;  %v39166_v38 = vrot.slane %v39014_v33, %v41475_v46 }
 0xb15   : > { %v19791_v23 = vsel %vm3596_vm9, %v39087_v26, %v19790_v11  ;;  %41478 = vst [vmem:[#allocation106_spill] sm:$0xff] %v39144_v35  ;;  %v39171_v20 = vrot.slane %v19641_v18, %v41475_v46  ;;  %v39207_v60 = vrot.slane %v39080_v21, %v41475_v46  ;;  %v19709_v21 = vld [vmem:[%s40409_s7 + $0x18] sm:$0xff] }
 0xb16   : > { %v19870_v49 = vand.u32 4294901760, %v19869_v58  ;;  %v19792_v25 = vsel %vm3598_vm10, %v39093_v59, %v19791_v23  ;;  %v20417_v36 = vand.u32 4294901760, %v19709_v21 }
 0xb17   : > { %v19795_v42 = vsel %vm11900_vm11, %v19792_v25, 0 }
 0xb18   : > { %30213 = vmatprep.mubr.f32.mxu1 %v19870_v49  ;;  %v39106_v32 = vand.u32 4294901760, %v19795_v42  ;;  %v19708_v49 = vld [vmem:[%s40409_s7 + $0x10] sm:$0xff] }
 0xb1a   : > { %v19877_v3 = vsub.f32 %v19795_v42, %v39106_v32 }
 0xb1c   : > { %v19878_v52 = vand.u32 4294901760, %v19877_v3 }
 0xb1e   : > { %v19879_v8 = vsub.f32 %v19877_v3, %v19878_v52 }
 0xb20   : > { %v19880_v6 = vand.u32 4294901760, %v19879_v8 }
 0xb22   : > { %30214 = vmatmul.mubr.f32.vlgmr.msra.gmra.mrb[14].mxu1 %v19880_v6 }
 0xb23   : > { %31578 = vmatpush3.bf16.msra.mxu1 %v38963_v63  ;;  %30224 = vmatprep.mubr.f32.mxu1 %v39063_v9  ;;  %v39138_v63 = vrot.slane %v19593_v0, %v41475_v46  ;;  %v39158_v0 = vrot.slane %v19602_v45, %v41475_v46 }
 0xb24   : > { %31580 = vmatprep.subr.bf16.mxu1 %v38968_v40 }
 0xb25   : > { %41477 = vst [vmem:[#allocation95_spill] sm:$0xff] %v39138_v63  ;;  %v20396_v54 = vsel %vm3586_vm4, %v39131_v4, %v39138_v63  ;;  %41479 = vst [vmem:[#allocation101_spill] sm:$0xff] %v39158_v0 }
 0xb26   : > { %v20397_v13 = vsel %vm3588_vm5, %v39144_v35, %v20396_v54  ;;  %v39242_v54 = vsub.f32 %v19709_v21, %v20417_v36 }
 0xb27   : > { %31582 = vmatpush3.bf16.msra.mxu1 %v38968_v40  ;;  %v20392_v40 = vsel %vm3592_vm7, %v39135_v34, %v20391_v15  ;;  %v20398_v45 = vsel %vm3590_vm6, %v39158_v0, %v20397_v13 }
 0xb28   : > { %31584 = vmatprep.subr.bf16.mxu1 %v38966_v56  ;;  %v20393_v44 = vsel %vm3594_vm8, %v39152_v5, %v20392_v40  ;;  %v20399_v18 = vsel %vm3592_vm7, %v39171_v20, %v20398_v45 }
 0xb29   : > { %v20394_v33 = vsel %vm3596_vm9, %v39166_v38, %v20393_v44 }
 0xb2a   : > { %30225 = vmatmul.mubr.f32.vlgmr.msra.gmra.mrb[14].mxu1 %v39106_v32 }
 0xb2b   : > { %31586 = vmatpush3.bf16.msra.mxu1 %v38966_v56  ;;  %30235 = vmatprep.mubr.f32.mxu1 %v19867_v51  ;;  %v39178_v56 = vrot.slane %v39027_v27, %v41475_v46  ;;  %v39184_v51 = vrot.slane %v19649_v43, %v41475_v46  ;;  %v39193_v27 = vrot.slane %v39066_v41, %v41475_v46  ;;  %v19706_v43 = vld [vmem:[%s40409_s7] sm:$0xff] }
 0xb2c   : > { %31588 = vmatprep.subr.bf16.mxu1 %v38970_v12  ;;  %v20408_v41 = vand.u32 4294901760, %v19706_v43 }
 0xb2d   : > { %41480 = vst [vmem:[#allocation88_spill] sm:$0xff] %v39178_v56  ;;  %41481 = vst [vmem:[#allocation87_spill] sm:$0xff] %v39193_v27  ;;  %v20400_v47 = vsel %vm3594_vm8, %v39184_v51, %v20399_v18 }
 0xb2e   : > { %v20401_v58 = vsel %vm3596_vm9, %v39193_v27, %v20400_v47  ;;  %v39225_v42 = vsub.f32 %v19706_v43, %v20408_v41 }
 0xb2f   : > { %31590 = vmatpush3.bf16.msra.mxu1 %v38970_v12  ;;  %v20395_v12 = vsel %vm3598_vm10, %v39178_v56, %v20394_v33  ;;  %v20402_v25 = vsel %vm3598_vm10, %v39207_v60, %v20401_v58 }
 0xb30   : > { %31592 = vmatprep.subr.bf16.mxu1 %v38955_v2  ;;  %v20403_v22 = vsel %vm11900_vm11, %v20395_v12, 0  ;;  %v20499_v48 = vand.u32 4294901760, %v39225_v42 }
 0xb31   : > { %v39213_v23 = vand.u32 4294901760, %v20403_v22 }
 0xb32   : > { %30236 = vmatmul.mubr.f32.vlgmr.msra.gmra.mrb[14].mxu1 %v19877_v3  ;;  %v20414_v3 = vand.u32 4294901760, %v19708_v49  ;;  %v20500_v13 = vsub.f32 %v39225_v42, %v20499_v48 }
 0xb33   : > { %31594 = vmatpush3.bf16.msra.mxu1 %v38955_v2  ;;  %30246 = vmatprep.mubr.f32.mxu1 %v19868_v10  ;;  %v19707_v10 = vld [vmem:[%s40409_s7 + $0x8] sm:$0xff]  ;;  %v39231_v6 = vsub.f32 %v20403_v22, %v39213_v23 }
 0xb34   : > { %31596 = vmatprep.subr.bf16.mxu1 %v38957_v50  ;;  %v20411_v11 = vand.u32 4294901760, %v19707_v10  ;;  %v39240_v15 = vsub.f32 %v19708_v49, %v20414_v3  ;;  %v39266_v18 = vpack.c.bf16 %v20417_v36, %v20414_v3  ;;  %v20501_v12 = vand.u32 4294901760, %v20500_v13  ;;  %v26141_v3 = vld.sshfl [vmem:[#allocation4 + $0x8] sm:$0x3 pattern:$0x76325410] }
 0xb35   : > { %v20478_v40 = vand.u32 4294901760, %v39231_v6  ;;  %v20943_v36 = vrot.slane %v26141_v3, %v41475_v46  ;;  %v26155_v3 = vld [vmem:[%s40409_s7 + $0x48] sm:$0xff] }
 0xb36   : > { %v39228_v8 = vsub.f32 %v19707_v10, %v20411_v11  ;;  %v20513_v33 = vand.u32 4294901760, %v39240_v15 }
 0xb37   : > { %31598 = vmatpush3.bf16.msra.mxu1 %v38957_v50 }
 0xb38   : > { %31600 = vmatprep.subr.bf16.mxu1 %v38972_v19  ;;  %v20514_v10 = vsub.f32 %v39240_v15, %v20513_v33 }
 0xb3a   : > { %30247 = vmatmul.mubr.f32.vlgmr.msra.gmra.mrb[14].mxu1 %v19878_v52  ;;  %v20405_v52 = vsel %vm11900_vm11, %v20402_v25, 0 }
 0xb3b   : > { %31602 = vmatpush3.bf16.msra.mxu1 %v38972_v19  ;;  %30257 = vmatprep.mubr.f32.mxu1 %v39063_v9  ;;  %v20506_v19 = vand.u32 4294901760, %v39228_v8  ;;  %v39238_v39 = vand.u32 4294901760, %v20405_v52 }
 0xb3c   : > { %31604 = vmatprep.subr.bf16.mxu1 %v38974_v55 }
 0xb3d   : > { %v20507_v44 = vsub.f32 %v39228_v8, %v20506_v19  ;;  %v39258_v45 = vsub.f32 %v20405_v52, %v39238_v39  ;;  %v31631_v52 = vpack.c.bf16 %v39228_v8, %v39225_v42 }
 0xb3f   : > { %31606 = vmatpush3.bf16.msra.mxu1 %v38974_v55  ;;  %v39248_v55 = vpack.c.bf16 %v20411_v11, %v20408_v41  ;;  %v20508_v43 = vand.u32 4294901760, %v20507_v44  ;;  %v20488_v47 = vand.u32 4294901760, %v39258_v45  ;;  %v20515_v11 = vand.u32 4294901760, %v20514_v10 }
 0xb40   : > { %31608 = vmatprep.subr.bf16.mxu1 %v38955_v2 }
 0xb41   : > { %v20489_v58 = vsub.f32 %v39258_v45, %v20488_v47 }
 0xb42   : > { %30258 = vmatmul.mubr.f32.vlgmr.msra.gmra.mrb[14].mxu1 %v39106_v32 }
 0xb43   : > { %31610 = vmatpush3.bf16.msra.mxu1 %v38955_v2  ;;  %30268 = vmatprep.mubr.f32.mxu1 %v39063_v9  ;;  %v20520_v2 = vand.u32 4294901760, %v39242_v54  ;;  %v20479_v9 = vsub.f32 %v39231_v6, %v20478_v40  ;;  %v20490_v21 = vand.u32 4294901760, %v20489_v58 }
 0xb44   : > { %31612 = vmatprep.subr.bf16.mxu1 %v38957_v50 }
 0xb45   : > { %v20521_v22 = vsub.f32 %v39242_v54, %v20520_v2  ;;  %v20480_v41 = vand.u32 4294901760, %v20479_v9  ;;  %v26145_v9 = vld.sshfl [vmem:[#allocation4 + $0x48] sm:$0x3 pattern:$0x76325410] }
 0xb47   : > { %31614 = vmatpush3.bf16.msra.mxu1 %v38957_v50  ;;  %v31623_v50 = vpack.c.bf16 %v20508_v43, %v20501_v12  ;;  %v20522_v49 = vand.u32 4294901760, %v20521_v22  ;;  %v39305_v43 = vrot.slane %v26145_v9, %v41475_v46  ;;  %v26143_v22 = vld.sshfl [vmem:[#allocation4 + $0x28] sm:$0x3 pattern:$0x76325410] }
 0xb48   : > { %31616 = vmatprep.subr.bf16.mxu1 %v39248_v55  ;;  %v39315_v58 = vrot.slane %v26143_v22, %v41475_v46 }
 0xb49   : > { %v31627_v25 = vpack.c.bf16 %v20522_v49, %v20515_v11  ;;  %41482 = vst [vmem:[#allocation107_spill] sm:$0xff] %v39305_v43 }
 0xb4a   : > { %30269 = vmatmul.mubr.f32.vlgmr.msra.gmra.mrb[14].mxu1 %v39106_v32  ;;  %v20956_v32 = vsel %vm3586_vm4, %v39117_v1, %v39113_v28  ;;  %v31635_v28 = vpack.c.bf16 %v39242_v54, %v39240_v15  ;;  %v20963_v1 = vsel %vm3586_vm4, %v39144_v35, %v39131_v4  ;;  %41483 = vst [vmem:[#allocation94_spill] sm:$0xff] %v39315_v58  ;;  %v26160_v4 = vld [vmem:[%s40409_s7 + $0x70] sm:$0xff] }
 0xb4b   : > { %31618 = vmatpush3.bf16.msra.mxu1 %v39248_v55  ;;  %30279 = vmatprep.mubr.f32.mxu1 %v20480_v41  ;;  %v20957_v13 = vsel %vm3588_vm5, %v39125_v7, %v20956_v32  ;;  %v20964_v7 = vsel %vm3588_vm5, %v39158_v0, %v20963_v1 }
 0xb4c   : > { %31620 = vmatprep.subr.bf16.mxu1 %v39266_v18  ;;  %v20958_v44 = vsel %vm3590_vm6, %v20943_v36, %v20957_v13  ;;  %v20965_v41 = vsel %vm3590_vm6, %v39305_v43, %v20964_v7  ;;  %v20978_v36 = vand.u32 4294901760, %v26155_v3  ;;  %v26156_v13 = vld [vmem:[%s40409_s7 + $0x50] sm:$0xff] }
 0xb4d   : > { %v20959_v12 = vsel %vm3592_vm7, %v39152_v5, %v20958_v44  ;;  %v20966_v11 = vsel %vm3592_vm7, %v39184_v51, %v20965_v41  ;;  %v26157_v44 = vld [vmem:[%s40409_s7 + $0x58] sm:$0xff]  ;;  %v19456_v41 = vld [vmem:[#allocation4 + $0x10] sm:$0xff] }
 0xb4e   : > { %v20960_v10 = vsel %vm3594_vm8, %v39166_v38, %v20959_v12 }
 0xb4f   : > { %31622 = vmatpush3.bf16.msra.mxu1 %v39266_v18 }
 0xb50   : > { %31624 = vmatprep.subr.bf16.mxu1 %v31623_v50 }
 0xb52   : > { %30280 = vmatmul.mubr.f32.vlgmr.msra.gmra.mrb[14].mxu1 %v20490_v21  ;;  %v31647_v21 = vpack.c.bf16 %v20506_v19, %v20499_v48  ;;  %v31651_v48 = vpack.c.bf16 %v20520_v2, %v20513_v33  ;;  %v39364_v33 = vsub.f32 %v26155_v3, %v20978_v36  ;;  %v20981_v2 = vand.u32 4294901760, %v26156_v13 }
 0xb53   : > { %31626 = vmatpush3.bf16.msra.mxu1 %v31623_v50  ;;  %30290 = vmatprep.mubr.f32.mxu1 %v39213_v23  ;;  %v20961_v50 = vsel %vm3596_vm9, %v39178_v56, %v20960_v10  ;;  %v39401_v3 = vrot.slane %v19456_v41, %v41461_v17 }
 0xb54   : > { %31628 = vmatprep.subr.bf16.mxu1 %v31627_v25  ;;  %v20962_v49 = vsel %vm3598_vm10, %v39315_v58, %v20961_v50  ;;  %v39375_v7 = vsub.f32 %v26156_v13, %v20981_v2  ;;  %v41488_v16 = vand.u32 4294901760, %v39364_v33 }
 0xb55   : > { %v20970_v32 = vsel %vm11900_vm11, %v20962_v49, 0 }
 0xb57   : > { %31630 = vmatpush3.bf16.msra.mxu1 %v31627_v25  ;;  %v26154_v25 = vld [vmem:[%s40409_s7 + $0x40] sm:$0xff] }
 0xb58   : > { %31632 = vmatprep.subr.bf16.mxu1 %v31631_v52  ;;  %v20975_v42 = vand.u32 4294901760, %v26154_v25 }
 0xb5a   : > { %30291 = vmatmul.mubr.f32.vlgmr.msra.gmra.mrb[14].mxu1 %v39238_v39  ;;  %v39362_v54 = vsub.f32 %v26154_v25, %v20975_v42  ;;  %v39390_v49 = vpack.c.bf16 %v20978_v36, %v20975_v42  ;;  %v40789_v25 = vand.u32 4294901760, %v39375_v7 }
 0xb5b   : > { %31634 = vmatpush3.bf16.msra.mxu1 %v31631_v52  ;;  %30301 = vmatprep.mubr.f32.mxu1 %v39231_v6  ;;  %v20967_v6 = vsel %vm3594_vm8, %v39193_v27, %v20966_v11  ;;  %v39349_v52 = vand.u32 4294901760, %v20970_v32 }
 0xb5c   : > { %31636 = vmatprep.subr.bf16.mxu1 %v31635_v28  ;;  %v20968_v8 = vsel %vm3596_vm9, %v39207_v60, %v20967_v6 }
 0xb5d   : > { %v39367_v1 = vsub.f32 %v20970_v32, %v39349_v52  ;;  %v19514_v32 = vcombine.high %v19456_v41, %v19456_v41 }
 0xb5f   : > { %31638 = vmatpush3.bf16.msra.mxu1 %v31635_v28  ;;  %v20984_v28 = vand.u32 4294901760, %v26157_v44  ;;  %v40792_v22 = vand.u32 4294901760, %v39367_v1 }
 0xb60   : > { %31640 = vmatprep.subr.bf16.mxu1 %v39248_v55 }
 0xb61   : > { %v39377_v10 = vsub.f32 %v26157_v44, %v20984_v28  ;;  %v39405_v42 = vpack.c.bf16 %v20984_v28, %v20981_v2  ;;  %v19464_v44 = vld [vmem:[#allocation4 + $0x50] sm:$0xff]  ;;  %v39421_v2 = vrot.slane %v19514_v32, %v41461_v17 }
 0xb62   : > { %30302 = vmatmul.mubr.f32.vlgmr.msra.gmra.mrb[14].mxu1 %v39258_v45  ;;  %v40791_v45 = vand.u32 4294901760, %v39362_v54 }
 0xb63   : > { %31642 = vmatpush3.bf16.msra.mxu1 %v39248_v55  ;;  %30312 = vmatprep.mubr.f32.mxu1 %v20478_v40  ;;  %v26147_v40 = vld.sshfl [vmem:[#allocation4 + $0x68] sm:$0x3 pattern:$0x76325410]  ;;  %v31683_v43 = vpack.c.bf16 %v39377_v10, %v39375_v7  ;;  %v41492_v29 = vand.u32 4294901760, %v39377_v10 }
 0xb64   : > { %31644 = vmatprep.subr.bf16.mxu1 %v39266_v18  ;;  %v39347_v19 = vrot.slane %v26147_v40, %v41475_v46  ;;  %v21067_v50 = vsub.f32 %v39362_v54, %v40791_v45 }
 0xb66   : > { %v20969_v15 = vsel %vm3598_vm10, %v39347_v19, %v20968_v8  ;;  %v21068_v6 = vand.u32 4294901760, %v21067_v50  ;;  %v21081_v8 = vsub.f32 %v39375_v7, %v40789_v25  ;;  %v39428_v50 = vrot.slane %v19464_v44, %v41461_v17 }
 0xb67   : > { %31646 = vmatpush3.bf16.msra.mxu1 %v39266_v18  ;;  %v20972_v9 = vsel %vm11900_vm11, %v20969_v15, 0 }
 0xb68   : > { %31648 = vmatprep.subr.bf16.mxu1 %v31647_v21  ;;  %v39373_v12 = vand.u32 4294901760, %v20972_v9 }
 0xb6a   : > { %30313 = vmatmul.mubr.f32.vlgmr.msra.gmra.mrb[14].mxu1 %v20488_v47  ;;  %v40790_v47 = vand.u32 4294901760, %v39364_v33 }
 0xb6b   : > { %31650 = vmatpush3.bf16.msra.mxu1 %v31647_v21  ;;  %30323 = vmatprep.mubr.f32.mxu1 %v39213_v23  ;;  %v39393_v21 = vsub.f32 %v20972_v9, %v39373_v12  ;;  %v21082_v9 = vand.u32 4294901760, %v21081_v8 }
 0xb6c   : > { %31652 = vmatprep.subr.bf16.mxu1 %v31651_v48  ;;  %v21074_v11 = vsub.f32 %v39364_v33, %v40790_v47  ;;  %v21544_v47 = vrot.slane %v39428_v50, %v41475_v46 }
 0xb6d   : > { %v40787_v36 = vand.u32 4294901760, %v39393_v21 }
 0xb6e   : > { %v21075_v40 = vand.u32 4294901760, %v21074_v11  ;;  %v19460_v11 = vld [vmem:[#allocation4 + $0x30] sm:$0xff] }
 0xb6f   : > { %31654 = vmatpush3.bf16.msra.mxu1 %v31651_v48  ;;  %v21056_v28 = vsub.f32 %v39393_v21, %v40787_v36 }
 0xb70   : > { %31656 = vmatprep.subr.bf16.mxu1 %v39248_v55  ;;  %v31671_v15 = vpack.c.bf16 %v21075_v40, %v21068_v6  ;;  %v39437_v6 = vcombine.high %v39421_v2, %v39421_v2  ;;  %v21512_v40 = vrot.slane %v39401_v3, %v41475_v46 }
 0xb71   : > { %v21057_v32 = vand.u32 4294901760, %v21056_v28  ;;  %v19562_v28 = vcombine.high %v19460_v11, %v19460_v11 }
 0xb72   : > { %30324 = vmatmul.mubr.f32.vlgmr.msra.gmra.mrb[14].mxu1 %v39238_v39 }
 0xb73   : > { %31658 = vmatpush3.bf16.msra.mxu1 %v39248_v55  ;;  %30334 = vmatprep.mubr.f32.mxu1 %v39213_v23  ;;  %v40788_v55 = vand.u32 4294901760, %v39377_v10  ;;  %v21046_v23 = vsub.f32 %v39367_v1, %v40792_v22 }
 0xb74   : > { %31660 = vmatprep.subr.bf16.mxu1 %v39266_v18 }
 0xb75   : > { %v21088_v48 = vsub.f32 %v39377_v10, %v40788_v55  ;;  %v21047_v13 = vand.u32 4294901760, %v21046_v23  ;;  %v19610_v23 = vcombine.high %v19464_v44, %v19464_v44  ;;  %v39450_v44 = vrot.slane %v19460_v11, %v41461_v17  ;;  %v19468_v11 = vld [vmem:[#allocation4 + $0x70] sm:$0xff] }
 0xb76   : > { %v39494_v58 = vrot.slane %v19468_v11, %v41461_v17  ;;  %v19658_v57 = vcombine.high %v19468_v11, %v19468_v11  ;;  %v19470_v11 = vld [vmem:[#allocation4 + $0x80] sm:$0xff] }
 0xb77   : > { %31662 = vmatpush3.bf16.msra.mxu1 %v39266_v18  ;;  %v39416_v18 = vcombine.high %v39401_v3, %v39401_v3  ;;  %v21089_v41 = vand.u32 4294901760, %v21088_v48  ;;  %v39443_v48 = vrot.slane %v39421_v2, %v41475_v46  ;;  %v39455_v55 = vrot.slane %v19610_v23, %v41461_v17 }
 0xb78   : > { %31664 = vmatprep.subr.bf16.mxu1 %v39390_v49  ;;  %v21528_v23 = vrot.slane %v39450_v44, %v41475_v46  ;;  %v39528_v24 = vrot.slane %v19658_v57, %v41461_v17  ;;  %v19682_v53 = vcombine.high %v19470_v11, %v19470_v11  ;;  %v39545_v61 = vrot.slane %v19470_v11, %v41461_v17 }
 0xb79   : > { %v31675_v8 = vpack.c.bf16 %v21089_v41, %v21082_v9  ;;  %v39460_v9 = vrot.slane %v39437_v6, %v41475_v46  ;;  %v31679_v41 = vpack.c.bf16 %v39364_v33, %v39362_v54  ;;  %v39489_v22 = vrot.slane %v39455_v55, %v41475_v46 }
 0xb7a   : > { %30335 = vmatmul.mubr.f32.vlgmr.msra.gmra.mrb[14].mxu1 %v39238_v39  ;;  %v39432_v39 = vrot.slane %v39416_v18, %v41475_v46  ;;  %41484 = vst [vmem:[#allocation100_spill] sm:$0xff] %v39545_v61  ;;  %v39562_v11 = vrot.slane %v19682_v53, %v41461_v17 }
 0xb7b   : > { %31666 = vmatpush3.bf16.msra.mxu1 %v39390_v49  ;;  %30345 = vmatprep.mubr.f32.mxu1 %v21047_v13  ;;  %v39447_v13 = vcombine.high %v39428_v50, %v39428_v50 }
 0xb7c   : > { %31668 = vmatprep.subr.bf16.mxu1 %v39405_v42  ;;  %v21573_v36 = vsel %vm3586_vm4, %v39432_v39, %v21512_v40  ;;  %41486 = vst [vmem:[#allocation116_spill] sm:$0xff] %v39562_v11 }
 0xb7d   : > { %v21574_v25 = vsel %vm3588_vm5, %v39443_v48, %v21573_v36  ;;  %v39468_v40 = vrot.slane %v39447_v13, %v41475_v46  ;;  %v39483_v36 = vrot.slane %v19562_v28, %v41461_v17  ;;  %v39579_v17 = vcombine.high %v39545_v61, %v39545_v61 }
 0xb7e   : > { %v21575_v45 = vsel %vm3590_vm6, %v39460_v9, %v21574_v25 }
 0xb7f   : > { %31670 = vmatpush3.bf16.msra.mxu1 %v39405_v42  ;;  %v21576_v25 = vsel %vm3592_vm7, %v21528_v23, %v21575_v45  ;;  %v39511_v62 = vcombine.high %v39483_v36, %v39483_v36  ;;  %v39517_v59 = vrot.slane %v39483_v36, %v41475_v46  ;;  %v39521_v45 = vcombine.high %v39494_v58, %v39494_v58 }
 0xb80   : > { %31672 = vmatprep.subr.bf16.mxu1 %v31671_v15  ;;  %v21560_v23 = vrot.slane %v39494_v58, %v41475_v46  ;;  %41489 = vst [vmem:[#allocation119_spill] sm:$0xff] %v39579_v17  ;;  %v39607_v61 = vrot.slane %v39579_v17, %v41475_v46 }
 0xb81   : > { %v39534_v26 = vrot.slane %v39511_v62, %v41475_v46  ;;  %v39541_v31 = vrot.slane %v39521_v45, %v41475_v46 }
 0xb82   : > { %30346 = vmatmul.mubr.f32.vlgmr.msra.gmra.mrb[14].mxu1 %v21057_v32  ;;  %v39478_v32 = vcombine.high %v39455_v55, %v39455_v55 }
 0xb83   : > { %31674 = vmatpush3.bf16.msra.mxu1 %v31671_v15  ;;  %30356 = vmatprep.mubr.f32.mxu1 %v39349_v52  ;;  %v39472_v15 = vcombine.high %v39450_v44, %v39450_v44 }
 0xb84   : > { %31676 = vmatprep.subr.bf16.mxu1 %v31675_v8  ;;  %v39506_v30 = vrot.slane %v39478_v32, %v41475_v46 }
 0xb85   : > { %v39500_v28 = vrot.slane %v39472_v15, %v41475_v46 }
 0xb87   : > { %31678 = vmatpush3.bf16.msra.mxu1 %v31675_v8  ;;  %v21580_v8 = vsel %vm3586_vm4, %v39468_v40, %v21544_v47 }
 0xb88   : > { %31680 = vmatprep.subr.bf16.mxu1 %v31679_v41  ;;  %v21581_v47 = vsel %vm3588_vm5, %v39489_v22, %v21580_v8 }
 0xb89   : > { %v21582_v8 = vsel %vm3590_vm6, %v39506_v30, %v21581_v47  ;;  %v41485_v47 = vand.u32 4294901760, %v39367_v1 }
 0xb8a   : > { %30357 = vmatmul.mubr.f32.vlgmr.msra.gmra.mrb[14].mxu1 %v39373_v12  ;;  %v21583_v57 = vsel %vm3592_vm7, %v21560_v23, %v21582_v8  ;;  %v39559_v23 = vrot.slane %v39528_v24, %v41475_v46  ;;  %v41487_v8 = vand.u32 4294901760, %v39362_v54 }
 0xb8b   : > { %31682 = vmatpush3.bf16.msra.mxu1 %v31679_v41  ;;  %30367 = vmatprep.mubr.f32.mxu1 %v39367_v1  ;;  %v21577_v41 = vsel %vm3594_vm8, %v39500_v28, %v21576_v25  ;;  %v26158_v1 = vld [vmem:[%s40409_s7 + $0x60] sm:$0xff] }
 0xb8c   : > { %31684 = vmatprep.subr.bf16.mxu1 %v31683_v43  ;;  %v21578_v25 = vsel %vm3596_vm9, %v39517_v59, %v21577_v41  ;;  %v31695_v14 = vpack.c.bf16 %v41488_v16, %v41487_v8  ;;  %v21592_v54 = vand.u32 4294901760, %v26158_v1  ;;  %v41491_v8 = vand.u32 4294901760, %v39375_v7 }
 0xb8d   : > { %v21579_v41 = vsel %vm3598_vm10, %v39534_v26, %v21578_v25  ;;  %v21584_v25 = vsel %vm3594_vm8, %v39541_v31, %v21583_v57  ;;  %v39591_v57 = vcombine.high %v39562_v11, %v39562_v11  ;;  %v24461_v7 = vsel %vm3586_vm4, %v39193_v27, %v39184_v51 }
 0xb8e   : > { %v21587_v53 = vsel %vm11900_vm11, %v21579_v41, 0  ;;  %v21585_v33 = vsel %vm3596_vm9, %v39559_v23, %v21584_v25  ;;  %v31699_v41 = vpack.c.bf16 %v41492_v29, %v41491_v8  ;;  %v26161_v25 = vld [vmem:[%s40409_s7 + $0x78] sm:$0xff]  ;;  %v41493_v29 = vand.u32 4294901760, %v39393_v21 }
 0xb8f   : > { %31686 = vmatpush3.bf16.msra.mxu1 %v31683_v43  ;;  %v39550_v43 = vcombine.high %v39528_v24, %v39528_v24  ;;  %41490 = vst [vmem:[#allocation111_spill] sm:$0xff] %v39591_v57  ;;  %v39597_v35 = vand.u32 4294901760, %v21587_v53  ;;  %v39618_v8 = vrot.slane %v39562_v11, %v41475_v46  ;;  %v39621_v63 = vsub.f32 %v26158_v1, %v21592_v54 }
 0xb90   : > { %31688 = vmatprep.subr.bf16.mxu1 %v39390_v49  ;;  %v39625_v17 = vrot.slane %v39591_v57, %v41475_v46  ;;  %v21601_v27 = vand.u32 4294901760, %v26161_v25 }
 0xb91   : > { %v39584_v16 = vrot.slane %v39550_v43, %v41475_v46 }
 0xb92   : > { %30368 = vmatmul.mubr.f32.vlgmr.msra.gmra.mrb[14].mxu1 %v39393_v21  ;;  %41494 = vst [vmem:[#allocation93_spill] sm:$0xff] %v39625_v17  ;;  %v24462_v21 = vsel %vm3588_vm5, %v39207_v60, %v24461_v7  ;;  %v40822_v7 = vand.u32 4294901760, %v39621_v63 }
 0xb93   : > { %31690 = vmatpush3.bf16.msra.mxu1 %v39390_v49  ;;  %30378 = vmatprep.mubr.f32.mxu1 %v41485_v47  ;;  %v26159_v47 = vld [vmem:[%s40409_s7 + $0x68] sm:$0xff]  ;;  %v21586_v10 = vsel %vm3598_vm10, %v39584_v16, %v21585_v33  ;;  %v24463_v11 = vsel %vm3590_vm6, %v39347_v19, %v24462_v21  ;;  %v39652_v21 = vsub.f32 %v26161_v25, %v21601_v27 }
 0xb94   : > { %31692 = vmatprep.subr.bf16.mxu1 %v39405_v42  ;;  %v21595_v0 = vand.u32 4294901760, %v26159_v47  ;;  %v21589_v1 = vsel %vm11900_vm11, %v21586_v10, 0  ;;  %v24464_v57 = vsel %vm3592_vm7, %v39607_v61, %v24463_v11 }
 0xb95   : > { %v24465_v56 = vsel %vm3594_vm8, %v39618_v8, %v24464_v57  ;;  %v21684_v57 = vsub.f32 %v39621_v63, %v40822_v7 }
 0xb96   : > { %v39629_v33 = vsub.f32 %v26159_v47, %v21595_v0  ;;  %v39644_v47 = vsel %vm3596_vm9, %v39625_v17, %v24465_v56  ;;  %v39658_v56 = vpack.c.bf16 %v21595_v0, %v21592_v54 }
 0xb97   : > { %31694 = vmatpush3.bf16.msra.mxu1 %v39405_v42  ;;  %41495 = vst [vmem:[#allocation97_spill] sm:$0xff] %v39644_v47  ;;  %v21685_v54 = vand.u32 4294901760, %v21684_v57 }
 0xb98   : > { %31696 = vmatprep.subr.bf16.mxu1 %v31695_v14  ;;  %v40823_v19 = vand.u32 4294901760, %v39629_v33 }
 0xb9a   : > { %30379 = vmatmul.mubr.f32.vlgmr.msra.gmra.mrb[14].mxu1 %v41493_v29  ;;  %v21598_v29 = vand.u32 4294901760, %v26160_v4 }
 0xb9b   : > { %31698 = vmatpush3.bf16.msra.mxu1 %v31695_v14  ;;  %30389 = vmatprep.mubr.f32.mxu1 %v39349_v52  ;;  %v39634_v14 = vsub.f32 %v21587_v53, %v39597_v35  ;;  %v39648_v53 = vand.u32 4294901760, %v21589_v1 }
 0xb9c   : > { %31700 = vmatprep.subr.bf16.mxu1 %v31699_v41  ;;  %v39650_v10 = vsub.f32 %v26160_v4, %v21598_v29  ;;  %v21691_v4 = vsub.f32 %v39629_v33, %v40823_v19 }
 0xb9d   : > { %v21662_v11 = vand.u32 4294901760, %v39634_v14 }
 0xb9e   : > { %v21697_v25 = vand.u32 4294901760, %v39650_v10  ;;  %v21692_v7 = vand.u32 4294901760, %v21691_v4  ;;  %v22133_v4 = vrot.slane %v39416_v18, %v41462_v37  ;;  %v22141_v18 = vrot.slane %v39437_v6, %v41462_v37 }
 0xb9f   : > { %31702 = vmatpush3.bf16.msra.mxu1 %v31699_v41  ;;  %v39668_v41 = vsub.f32 %v21589_v1, %v39648_v53  ;;  %v21663_v0 = vsub.f32 %v39634_v14, %v21662_v11  ;;  %v22169_v6 = vrot.slane %v39455_v55, %v41462_v37 }
 0xba0   : > { %31704 = vmatprep.subr.bf16.mxu1 %v39390_v49  ;;  %v21698_v1 = vsub.f32 %v39650_v10, %v21697_v25 }
 0xba1   : > { %v21672_v19 = vand.u32 4294901760, %v39668_v41  ;;  %v21664_v17 = vand.u32 4294901760, %v21663_v0 }
 0xba2   : > { %30390 = vmatmul.mubr.f32.vlgmr.msra.gmra.mrb[14].mxu1 %v39373_v12 }
 0xba3   : > { %31706 = vmatpush3.bf16.msra.mxu1 %v39390_v49  ;;  %30400 = vmatprep.mubr.f32.mxu1 %v39349_v52  ;;  %v21704_v49 = vand.u32 4294901760, %v39652_v21  ;;  %v39676_v52 = vpack.c.bf16 %v21601_v27, %v21598_v29  ;;  %v31719_v27 = vpack.c.bf16 %v21692_v7, %v21685_v54  ;;  %v21699_v29 = vand.u32 4294901760, %v21698_v1 }
 0xba4   : > { %31708 = vmatprep.subr.bf16.mxu1 %v39405_v42  ;;  %v22137_v7 = vrot.slane %v39421_v2, %v41462_v37  ;;  %v22165_v1 = vrot.slane %v39447_v13, %v41462_v37  ;;  %v22145_v2 = vrot.slane %v39450_v44, %v41462_v37  ;;  %v22149_v13 = vrot.slane %v39472_v15, %v41462_v37 }
 0xba5   : > { %v21705_v47 = vsub.f32 %v39652_v21, %v21704_v49  ;;  %v22177_v15 = vrot.slane %v39494_v58, %v41462_v37 }
 0xba7   : > { %31710 = vmatpush3.bf16.msra.mxu1 %v39405_v42  ;;  %v21673_v42 = vsub.f32 %v39668_v41, %v21672_v19  ;;  %v21706_v57 = vand.u32 4294901760, %v21705_v47  ;;  %v31727_v47 = vpack.c.bf16 %v39629_v33, %v39621_v63 }
 0xba8   : > { %31712 = vmatprep.subr.bf16.mxu1 %v39658_v56 }
 0xba9   : > { %v21674_v0 = vand.u32 4294901760, %v21673_v42 }
 0xbaa   : > { %30401 = vmatmul.mubr.f32.vlgmr.msra.gmra.mrb[14].mxu1 %v39373_v12  ;;  %v22129_v12 = vrot.slane %v39401_v3, %v41462_v37 }
 0xbab   : > { %31714 = vmatpush3.bf16.msra.mxu1 %v39658_v56  ;;  %30411 = vmatprep.mubr.f32.mxu1 %v21664_v17  ;;  %v31723_v17 = vpack.c.bf16 %v21706_v57, %v21699_v29  ;;  %v31731_v29 = vpack.c.bf16 %v39652_v21, %v39650_v10 }
 0xbac   : > { %31716 = vmatprep.subr.bf16.mxu1 %v39676_v52  ;;  %v22190_v54 = vsel %vm3586_vm4, %v22133_v4, %v22129_v12  ;;  %v22153_v4 = vrot.slane %v39483_v36, %v41462_v37 }
 0xbad   : > { %v22191_v3 = vsel %vm3588_vm5, %v22137_v7, %v22190_v54  ;;  %v22181_v7 = vrot.slane %v39521_v45, %v41462_v37  ;;  %v41496_v54 = vand.u32 4294901760, %v39621_v63  ;;  %v41497_v45 = vand.u32 4294901760, %v39629_v33 }
 0xbae   : > { %v22192_v42 = vsel %vm3590_vm6, %v22141_v18, %v22191_v3 }
 0xbaf   : > { %31718 = vmatpush3.bf16.msra.mxu1 %v39676_v52  ;;  %v22193_v44 = vsel %vm3592_vm7, %v22145_v2, %v22192_v42  ;;  %v31743_v18 = vpack.c.bf16 %v41497_v45, %v41496_v54  ;;  %v26164_v42 = vld [vmem:[%s40409_s7 + $0x90] sm:$0xff] }
 0xbb0   : > { %31720 = vmatprep.subr.bf16.mxu1 %v31719_v27  ;;  %v22194_v12 = vsel %vm3594_vm8, %v22149_v13, %v22193_v44  ;;  %v22215_v21 = vand.u32 4294901760, %v26164_v42 }
 0xbb2   : > { %30412 = vmatmul.mubr.f32.vlgmr.msra.gmra.mrb[14].mxu1 %v21674_v0  ;;  %v39792_v44 = vsub.f32 %v26164_v42, %v22215_v21  ;;  %v26146_v42 = vld.sshfl [vmem:[#allocation4 + $0x58] sm:$0x3 pattern:$0x76325410] }
 0xbb3   : > { %31722 = vmatpush3.bf16.msra.mxu1 %v31719_v27  ;;  %30422 = vmatprep.mubr.f32.mxu1 %v39597_v35  ;;  %v22161_v27 = vrot.slane %v39428_v50, %v41462_v37  ;;  %v22173_v50 = vrot.slane %v39478_v32, %v41462_v37  ;;  %v22157_v32 = vrot.slane %v39511_v62, %v41462_v37 }
 0xbb4   : > { %31724 = vmatprep.subr.bf16.mxu1 %v31723_v17  ;;  %v22185_v62 = vrot.slane %v39528_v24, %v41462_v37  ;;  %v22189_v24 = vrot.slane %v39550_v43, %v41462_v37  ;;  %v26165_v43 = vld [vmem:[%s40409_s7 + $0x98] sm:$0xff] }
 0xbb5   : > { %v22197_v57 = vsel %vm3586_vm4, %v22165_v1, %v22161_v27  ;;  %v31747_v1 = vpack.c.bf16 %v21704_v49, %v21697_v25  ;;  %v22218_v25 = vand.u32 4294901760, %v26165_v43 }
 0xbb6   : > { %v22198_v55 = vsel %vm3588_vm5, %v22169_v6, %v22197_v57 }
 0xbb7   : > { %31726 = vmatpush3.bf16.msra.mxu1 %v31723_v17  ;;  %v22199_v0 = vsel %vm3590_vm6, %v22173_v50, %v22198_v55  ;;  %v22195_v17 = vsel %vm3596_vm9, %v22153_v4, %v22194_v12  ;;  %v39794_v50 = vsub.f32 %v26165_v43, %v22218_v25 }
 0xbb8   : > { %31728 = vmatprep.subr.bf16.mxu1 %v31727_v47  ;;  %v22200_v36 = vsel %vm3592_vm7, %v22177_v15, %v22199_v0  ;;  %v22196_v58 = vsel %vm3598_vm10, %v22157_v32, %v22195_v17  ;;  %v22314_v32 = vand.u32 4294901760, %v39792_v44  ;;  %v39818_v17 = vpack.c.bf16 %v22218_v25, %v22215_v21  ;;  %v26144_v21 = vld.sshfl [vmem:[#allocation4 + $0x38] sm:$0x3 pattern:$0x76325410] }
 0xbb9   : > { %v22201_v3 = vsel %vm3594_vm8, %v22181_v7, %v22200_v36  ;;  %v22750_v25 = vrot.slane %v26144_v21, %v41475_v46 }
 0xbba   : > { %30423 = vmatmul.mubr.f32.vlgmr.msra.gmra.mrb[14].mxu1 %v39648_v53  ;;  %v22202_v33 = vsel %vm3596_vm9, %v22185_v62, %v22201_v3  ;;  %v22315_v62 = vsub.f32 %v39792_v44, %v22314_v32 }
 0xbbb   : > { %31730 = vmatpush3.bf16.msra.mxu1 %v31727_v47  ;;  %30433 = vmatprep.mubr.f32.mxu1 %v39634_v14  ;;  %v26162_v47 = vld [vmem:[%s40409_s7 + $0x80] sm:$0xff]  ;;  %v26163_v14 = vld [vmem:[%s40409_s7 + $0x88] sm:$0xff]  ;;  %v22203_v6 = vsel %vm3598_vm10, %v22189_v24, %v22202_v33 }
 0xbbc   : > { %31732 = vmatprep.subr.bf16.mxu1 %v31731_v29  ;;  %v22209_v63 = vand.u32 4294901760, %v26162_v47  ;;  %v22212_v2 = vand.u32 4294901760, %v26163_v14  ;;  %v22206_v57 = vsel %vm11900_vm11, %v22203_v6, 0  ;;  %v22754_v6 = vrot.slane %v26146_v42, %v41475_v46 }
 0xbbd   : > { %v39790_v13 = vand.u32 4294901760, %v22206_v57  ;;  %v26142_v24 = vld.sshfl [vmem:[#allocation4 + $0x18] sm:$0x3 pattern:$0x76325410] }
 0xbbe   : > { %v39779_v10 = vsub.f32 %v26162_v47, %v22209_v63  ;;  %v39781_v49 = vsub.f32 %v26163_v14, %v22212_v2  ;;  %v39800_v4 = vpack.c.bf16 %v22212_v2, %v22209_v63  ;;  %v22316_v47 = vand.u32 4294901760, %v22315_v62 }
 0xbbf   : > { %31734 = vmatpush3.bf16.msra.mxu1 %v31731_v29  ;;  %v39810_v0 = vsub.f32 %v22206_v57, %v39790_v13 }
 0xbc0   : > { %31736 = vmatprep.subr.bf16.mxu1 %v39658_v56  ;;  %v31775_v63 = vpack.c.bf16 %v39781_v49, %v39779_v10 }
 0xbc2   : > { %30434 = vmatmul.mubr.f32.vlgmr.msra.gmra.mrb[14].mxu1 %v39668_v41  ;;  %v22307_v41 = vand.u32 4294901760, %v39781_v49 }
 0xbc3   : > { %31738 = vmatpush3.bf16.msra.mxu1 %v39658_v56  ;;  %30444 = vmatprep.mubr.f32.mxu1 %v21662_v11  ;;  %v22204_v11 = vsel %vm11900_vm11, %v22196_v58, 0  ;;  %v22289_v58 = vand.u32 4294901760, %v39810_v0 }
 0xbc4   : > { %31740 = vmatprep.subr.bf16.mxu1 %v39676_v52  ;;  %v39767_v27 = vand.u32 4294901760, %v22204_v11  ;;  %v22308_v15 = vsub.f32 %v39781_v49, %v22307_v41 }
 0xbc6   : > { %v39784_v29 = vsub.f32 %v22204_v11, %v39767_v27  ;;  %v22309_v36 = vand.u32 4294901760, %v22308_v15  ;;  %v26168_v15 = vld [vmem:[%s40409_s7 + $0xb0] sm:$0xff] }
 0xbc7   : > { %31742 = vmatpush3.bf16.msra.mxu1 %v39676_v52 }
 0xbc8   : > { %31744 = vmatprep.subr.bf16.mxu1 %v31743_v18  ;;  %v22279_v55 = vand.u32 4294901760, %v39784_v29 }
 0xbca   : > { %30445 = vmatmul.mubr.f32.vlgmr.msra.gmra.mrb[14].mxu1 %v21672_v19  ;;  %v22300_v19 = vand.u32 4294901760, %v39779_v10 }
 0xbcb   : > { %31746 = vmatpush3.bf16.msra.mxu1 %v31743_v18  ;;  %30455 = vmatprep.mubr.f32.mxu1 %v39597_v35  ;;  %v22290_v18 = vsub.f32 %v39810_v0, %v22289_v58 }
 0xbcc   : > { %31748 = vmatprep.subr.bf16.mxu1 %v31747_v1  ;;  %v22301_v12 = vsub.f32 %v39779_v10, %v22300_v19 }
 0xbcd   : > { %v22291_v14 = vand.u32 4294901760, %v22290_v18 }
 0xbce   : > { %v22302_v7 = vand.u32 4294901760, %v22301_v12  ;;  %v26166_v12 = vld [vmem:[%s40409_s7 + $0xa0] sm:$0xff] }
 0xbcf   : > { %31750 = vmatpush3.bf16.msra.mxu1 %v31747_v1  ;;  %v22746_v1 = vrot.slane %v26142_v24, %v41475_v46 }
 0xbd0   : > { %31752 = vmatprep.subr.bf16.mxu1 %v39658_v56 }
 0xbd2   : > { %30456 = vmatmul.mubr.f32.vlgmr.msra.gmra.mrb[14].mxu1 %v39648_v53 }
 0xbd3   : > { %31754 = vmatpush3.bf16.msra.mxu1 %v39658_v56  ;;  %30466 = vmatprep.mubr.f32.mxu1 %v39597_v35  ;;  %v22321_v56 = vand.u32 4294901760, %v39794_v50  ;;  %v22280_v35 = vsub.f32 %v39784_v29, %v22279_v55 }
 0xbd4   : > { %31756 = vmatprep.subr.bf16.mxu1 %v39676_v52 }
 0xbd5   : > { %v22322_v54 = vsub.f32 %v39794_v50, %v22321_v56  ;;  %v22281_v45 = vand.u32 4294901760, %v22280_v35  ;;  %v31795_v49 = vpack.c.bf16 %v22321_v56, %v22314_v32 }
 0xbd7   : > { %31758 = vmatpush3.bf16.msra.mxu1 %v39676_v52  ;;  %v31767_v52 = vpack.c.bf16 %v22309_v36, %v22302_v7  ;;  %v22323_v3 = vand.u32 4294901760, %v22322_v54 }
 0xbd8   : > { %31760 = vmatprep.subr.bf16.mxu1 %v39800_v4 }
 0xbd9   : > { %v31771_v11 = vpack.c.bf16 %v22323_v3, %v22316_v47 }
 0xbda   : > { %30467 = vmatmul.mubr.f32.vlgmr.msra.gmra.mrb[14].mxu1 %v39648_v53  ;;  %v22759_v53 = vsel %vm3586_vm4, %v39443_v48, %v39432_v39  ;;  %v22766_v39 = vsel %vm3586_vm4, %v39489_v22, %v39468_v40  ;;  %v31779_v48 = vpack.c.bf16 %v39794_v50, %v39792_v44  ;;  %v22784_v44 = vand.u32 4294901760, %v26168_v15 }
 0xbdb   : > { %31762 = vmatpush3.bf16.msra.mxu1 %v39800_v4  ;;  %30477 = vmatprep.mubr.f32.mxu1 %v22281_v45  ;;  %v22760_v33 = vsel %vm3588_vm5, %v39460_v9, %v22759_v53  ;;  %v22767_v9 = vsel %vm3588_vm5, %v39506_v30, %v22766_v39 }
 0xbdc   : > { %31764 = vmatprep.subr.bf16.mxu1 %v39818_v17  ;;  %v22761_v2 = vsel %vm3590_vm6, %v22746_v1, %v22760_v33  ;;  %v22768_v40 = vsel %vm3590_vm6, %v22754_v6, %v22767_v9  ;;  %v39918_v45 = vsub.f32 %v26168_v15, %v22784_v44 }
 0xbdd   : > { %v22762_v43 = vsel %vm3592_vm7, %v39500_v28, %v22761_v2  ;;  %v22769_v30 = vsel %vm3592_vm7, %v39541_v31, %v22768_v40  ;;  %v31791_v31 = vpack.c.bf16 %v22307_v41, %v22300_v19  ;;  %v22778_v19 = vand.u32 4294901760, %v26166_v12 }
 0xbde   : > { %v22763_v22 = vsel %vm3594_vm8, %v39517_v59, %v22762_v43  ;;  %v22770_v57 = vsel %vm3594_vm8, %v39559_v23, %v22769_v30  ;;  %v22883_v53 = vand.u32 4294901760, %v39918_v45  ;;  %v41498_v30 = vld [vmem:[#allocation88_spill] sm:$0xff] }
 0xbdf   : > { %31766 = vmatpush3.bf16.msra.mxu1 %v39818_v17  ;;  %v22764_v28 = vsel %vm3596_vm9, %v39534_v26, %v22763_v22  ;;  %v26148_v26 = vld.sshfl [vmem:[#allocation4 + $0x78] sm:$0x3 pattern:$0x76325410]  ;;  %v22771_v23 = vsel %vm3596_vm9, %v39584_v16, %v22770_v57  ;;  %v26169_v16 = vld [vmem:[%s40409_s7 + $0xb8] sm:$0xff]  ;;  %v39905_v32 = vsub.f32 %v26166_v12, %v22778_v19 }
 0xbe0   : > { %31768 = vmatprep.subr.bf16.mxu1 %v31767_v52  ;;  %v22765_v59 = vsel %vm3598_vm10, %v22750_v25, %v22764_v28  ;;  %v22758_v10 = vrot.slane %v26148_v26, %v41475_v46  ;;  %v22787_v50 = vand.u32 4294901760, %v26169_v16  ;;  %v22884_v2 = vsub.f32 %v39918_v45, %v22883_v53 }
 0xbe1   : > { %v23335_v28 = vsel %vm3586_vm4, %v39184_v51, %v39171_v20  ;;  %v41501_v20 = vld [vmem:[#allocation100_spill] sm:$0xff] }
 0xbe2   : > { %30478 = vmatmul.mubr.f32.vlgmr.msra.gmra.mrb[14].mxu1 %v22291_v14  ;;  %v22772_v7 = vsel %vm3598_vm10, %v22758_v10, %v22771_v23  ;;  %v39942_v24 = vpack.c.bf16 %v22787_v50, %v22784_v44  ;;  %v22885_v43 = vand.u32 4294901760, %v22884_v2  ;;  %v23315_v51 = vrot.slane %v41501_v20, %v41475_v46  ;;  %v41503_v10 = vld [vmem:[#allocation106_spill] sm:$0xff] }
 0xbe3   : > { %31770 = vmatpush3.bf16.msra.mxu1 %v31767_v52  ;;  %30488 = vmatprep.mubr.f32.mxu1 %v39767_v27  ;;  %v22775_v36 = vsel %vm11900_vm11, %v22772_v7, 0  ;;  %v39920_v52 = vsub.f32 %v26169_v16, %v22787_v50  ;;  %v26170_v16 = vld [vmem:[%s40409_s7 + $0xc0] sm:$0xff] }
 0xbe4   : > { %31772 = vmatprep.subr.bf16.mxu1 %v31771_v11  ;;  %v39913_v54 = vand.u32 4294901760, %v22775_v36 }
 0xbe6   : > { %v39929_v3 = vsub.f32 %v22775_v36, %v39913_v54  ;;  %v41505_v36 = vld [vmem:[#allocation93_spill] sm:$0xff] }
 0xbe7   : > { %31774 = vmatpush3.bf16.msra.mxu1 %v31771_v11 }
 0xbe8   : > { %31776 = vmatprep.subr.bf16.mxu1 %v31775_v63 }
 0xbea   : > { %30489 = vmatmul.mubr.f32.vlgmr.msra.gmra.mrb[14].mxu1 %v39790_v13 }
 0xbeb   : > { %31778 = vmatpush3.bf16.msra.mxu1 %v31775_v63  ;;  %30499 = vmatprep.mubr.f32.mxu1 %v39784_v29  ;;  %v26167_v29 = vld [vmem:[%s40409_s7 + $0xa8] sm:$0xff]  ;;  %v22858_v63 = vand.u32 4294901760, %v39929_v3 }
 0xbec   : > { %31780 = vmatprep.subr.bf16.mxu1 %v31779_v48  ;;  %v22781_v41 = vand.u32 4294901760, %v26167_v29 }
 0xbed   : > { %v22859_v42 = vsub.f32 %v39929_v3, %v22858_v63 }
 0xbee   : > { %v39907_v56 = vsub.f32 %v26167_v29, %v22781_v41  ;;  %v39926_v47 = vpack.c.bf16 %v22781_v41, %v22778_v19  ;;  %v41502_v29 = vld [vmem:[#allocation92_spill] sm:$0xff] }
 0xbef   : > { %31782 = vmatpush3.bf16.msra.mxu1 %v31779_v48  ;;  %v22860_v6 = vand.u32 4294901760, %v22859_v42 }
 0xbf0   : > { %31784 = vmatprep.subr.bf16.mxu1 %v39800_v4  ;;  %v31823_v40 = vpack.c.bf16 %v39907_v56, %v39905_v32 }
 0xbf2   : > { %30500 = vmatmul.mubr.f32.vlgmr.msra.gmra.mrb[14].mxu1 %v39810_v0  ;;  %v22869_v0 = vand.u32 4294901760, %v39905_v32 }
 0xbf3   : > { %31786 = vmatpush3.bf16.msra.mxu1 %v39800_v4  ;;  %30510 = vmatprep.mubr.f32.mxu1 %v22279_v55  ;;  %v22773_v55 = vsel %vm11900_vm11, %v22765_v59, 0  ;;  %v41499_v59 = vld [vmem:[#allocation87_spill] sm:$0xff] }
 0xbf4   : > { %31788 = vmatprep.subr.bf16.mxu1 %v39818_v17  ;;  %v39896_v35 = vand.u32 4294901760, %v22773_v55  ;;  %v22870_v14 = vsub.f32 %v39905_v32, %v22869_v0  ;;  %v23336_v57 = vsel %vm3588_vm5, %v41499_v59, %v23335_v28  ;;  %v23347_v32 = vand.u32 4294901760, %v26170_v16 }
 0xbf5   : > { %v23337_v12 = vsel %vm3590_vm6, %v39207_v60, %v23336_v57  ;;  %v41504_v60 = vld [vmem:[#allocation101_spill] sm:$0xff] }
 0xbf6   : > { %v39911_v62 = vsub.f32 %v22773_v55, %v39896_v35  ;;  %v22871_v33 = vand.u32 4294901760, %v22870_v14  ;;  %v23338_v23 = vsel %vm3592_vm7, %v23315_v51, %v23337_v12  ;;  %v40021_v14 = vsub.f32 %v26170_v16, %v23347_v32  ;;  %v41508_v12 = vld [vmem:[#allocation71_spill] sm:$0xff] }
 0xbf7   : > { %31790 = vmatpush3.bf16.msra.mxu1 %v39818_v17  ;;  %v23339_v19 = vsel %vm3594_vm8, %v39607_v61, %v23338_v23  ;;  %v26171_v61 = vld [vmem:[%s40409_s7 + $0xc8] sm:$0xff] }
 0xbf8   : > { %31792 = vmatprep.subr.bf16.mxu1 %v31791_v31  ;;  %v22848_v18 = vand.u32 4294901760, %v39911_v62  ;;  %v23340_v7 = vsel %vm3596_vm9, %v39618_v8, %v23339_v19  ;;  %v26173_v8 = vld [vmem:[%s40409_s7 + $0xd8] sm:$0xff]  ;;  %v41509_v23 = vld [vmem:[#allocation91_spill] sm:$0xff] }
 0xbfa   : > { %30511 = vmatmul.mubr.f32.vlgmr.msra.gmra.mrb[14].mxu1 %v22289_v58  ;;  %v22876_v58 = vand.u32 4294901760, %v39907_v56 }
 0xbfb   : > { %31794 = vmatpush3.bf16.msra.mxu1 %v31791_v31  ;;  %30521 = vmatprep.mubr.f32.mxu1 %v39767_v27  ;;  %v41500_v31 = vld [vmem:[#allocation95_spill] sm:$0xff] }
 0xbfc   : > { %31796 = vmatprep.subr.bf16.mxu1 %v31795_v49  ;;  %v22877_v11 = vsub.f32 %v39907_v56, %v22876_v58  ;;  %v31839_v15 = vpack.c.bf16 %v22876_v58, %v22869_v0  ;;  %v23350_v56 = vand.u32 4294901760, %v26171_v61  ;;  %v26172_v58 = vld [vmem:[%s40409_s7 + $0xd0] sm:$0xff] }
 0xbfe   : > { %v22878_v1 = vand.u32 4294901760, %v22877_v11  ;;  %v40023_v11 = vsub.f32 %v26171_v61, %v23350_v56  ;;  %v40041_v2 = vpack.c.bf16 %v23350_v56, %v23347_v32  ;;  %v41512_v61 = vld [vmem:[#allocation90_spill] sm:$0xff]  ;;  %v23884_v32 = vrot.slane %v41501_v20, %v41462_v37  ;;  %v41514_v56 = vld [vmem:[#allocation80_spill] sm:$0xff] }
 0xbff   : > { %31798 = vmatpush3.bf16.msra.mxu1 %v31795_v49  ;;  %v41518_v20 = vld [vmem:[#allocation116_spill] sm:$0xff] }
 0xc00   : > { %31800 = vmatprep.subr.bf16.mxu1 %v39800_v4  ;;  %v31871_v51 = vpack.c.bf16 %v40023_v11, %v40021_v14 }
 0xc02   : > { %30522 = vmatmul.mubr.f32.vlgmr.msra.gmra.mrb[14].mxu1 %v39790_v13 }
 0xc03   : > { %31802 = vmatpush3.bf16.msra.mxu1 %v39800_v4  ;;  %30532 = vmatprep.mubr.f32.mxu1 %v39767_v27  ;;  %v22890_v4 = vand.u32 4294901760, %v39920_v52  ;;  %v22849_v27 = vsub.f32 %v39911_v62, %v22848_v18 }
 0xc04   : > { %31804 = vmatprep.subr.bf16.mxu1 %v39818_v17 }
 0xc05   : > { %v22891_v39 = vsub.f32 %v39920_v52, %v22890_v4  ;;  %v22850_v48 = vand.u32 4294901760, %v22849_v27  ;;  %v31843_v50 = vpack.c.bf16 %v22890_v4, %v22883_v53  ;;  %v23445_v27 = vand.u32 4294901760, %v40023_v11 }
 0xc07   : > { %31806 = vmatpush3.bf16.msra.mxu1 %v39818_v17  ;;  %v31815_v17 = vpack.c.bf16 %v22878_v1, %v22871_v33  ;;  %v22892_v9 = vand.u32 4294901760, %v22891_v39 }
 0xc08   : > { %31808 = vmatprep.subr.bf16.mxu1 %v39926_v47 }
 0xc09   : > { %v31819_v22 = vpack.c.bf16 %v22892_v9, %v22885_v43 }
 0xc0a   : > { %30533 = vmatmul.mubr.f32.vlgmr.msra.gmra.mrb[14].mxu1 %v39790_v13  ;;  %v23328_v13 = vsel %vm3586_vm4, %v39152_v5, %v39135_v34  ;;  %v31827_v34 = vpack.c.bf16 %v39920_v52, %v39918_v45  ;;  %v23353_v52 = vand.u32 4294901760, %v26172_v58 }
 0xc0b   : > { %31810 = vmatpush3.bf16.msra.mxu1 %v39926_v47  ;;  %30543 = vmatprep.mubr.f32.mxu1 %v22850_v48  ;;  %v23329_v21 = vsel %vm3588_vm5, %v39166_v38, %v23328_v13 }
 0xc0c   : > { %31812 = vmatprep.subr.bf16.mxu1 %v39942_v24  ;;  %v23330_v25 = vsel %vm3590_vm6, %v41498_v30, %v23329_v21 }
 0xc0d   : > { %v23331_v26 = vsel %vm3592_vm7, %v41500_v31, %v23330_v25  ;;  %v41506_v31 = vld [vmem:[#allocation129_spill] sm:$0xff] }
 0xc0e   : > { %v23332_v55 = vsel %vm3594_vm8, %v41502_v29, %v23331_v26  ;;  %v41507_v26 = vld [vmem:[#allocation85_spill] sm:$0xff] }
 0xc0f   : > { %31814 = vmatpush3.bf16.msra.mxu1 %v39942_v24  ;;  %v23333_v49 = vsel %vm3596_vm9, %v41503_v10, %v23332_v55 }
 0xc10   : > { %31816 = vmatprep.subr.bf16.mxu1 %v31815_v17  ;;  %v23334_v41 = vsel %vm3598_vm10, %v41504_v60, %v23333_v49  ;;  %v41510_v49 = vld [vmem:[#allocation79_spill] sm:$0xff] }
 0xc11   : > { %v23342_v44 = vsel %vm11900_vm11, %v23334_v41, 0  ;;  %v23904_v19 = vsel %vm3586_vm4, %v41510_v49, %v41509_v23  ;;  %v41511_v41 = vld [vmem:[#allocation73_spill] sm:$0xff] }
 0xc12   : > { %30544 = vmatmul.mubr.f32.vlgmr.msra.gmra.mrb[14].mxu1 %v22860_v6  ;;  %v40009_v0 = vand.u32 4294901760, %v23342_v44 }
 0xc13   : > { %31818 = vmatpush3.bf16.msra.mxu1 %v31815_v17  ;;  %30554 = vmatprep.mubr.f32.mxu1 %v39896_v35  ;;  %v23446_v17 = vsub.f32 %v40023_v11, %v23445_v27 }
 0xc14   : > { %31820 = vmatprep.subr.bf16.mxu1 %v31819_v22  ;;  %v40026_v53 = vsub.f32 %v23342_v44, %v40009_v0  ;;  %v41513_v44 = vld [vmem:[#allocation78_spill] sm:$0xff] }
 0xc16   : > { %v23417_v1 = vand.u32 4294901760, %v40026_v53 }
 0xc17   : > { %31822 = vmatpush3.bf16.msra.mxu1 %v31819_v22  ;;  %v23447_v22 = vand.u32 4294901760, %v23446_v17  ;;  %v23892_v17 = vrot.slane %v41518_v20, %v41462_v37  ;;  %v41522_v20 = vld [vmem:[#allocation107_spill] sm:$0xff] }
 0xc18   : > { %31824 = vmatprep.subr.bf16.mxu1 %v31823_v40 }
 0xc1a   : > { %30555 = vmatmul.mubr.f32.vlgmr.msra.gmra.mrb[14].mxu1 %v39913_v54 }
 0xc1b   : > { %31826 = vmatpush3.bf16.msra.mxu1 %v31823_v40  ;;  %30565 = vmatprep.mubr.f32.mxu1 %v39911_v62  ;;  %v23341_v62 = vsel %vm3598_vm10, %v41505_v36, %v23340_v7  ;;  %v23905_v7 = vsel %vm3588_vm5, %v41512_v61, %v23904_v19 }
 0xc1c   : > { %31828 = vmatprep.subr.bf16.mxu1 %v31827_v34  ;;  %v23344_v45 = vsel %vm11900_vm11, %v23341_v62, 0  ;;  %v23906_v36 = vsel %vm3590_vm6, %v41514_v56, %v23905_v7  ;;  %v41515_v62 = vld [vmem:[#allocation51_spill] sm:$0xff] }
 0xc1d   : > { %v40028_v4 = vand.u32 4294901760, %v23344_v45 }
 0xc1f   : > { %31830 = vmatpush3.bf16.msra.mxu1 %v31827_v34  ;;  %v40044_v39 = vsub.f32 %v23344_v45, %v40028_v4 }
 0xc20   : > { %31832 = vmatprep.subr.bf16.mxu1 %v39926_v47 }
 0xc21   : > { %v23427_v9 = vand.u32 4294901760, %v40044_v39 }
 0xc22   : > { %30566 = vmatmul.mubr.f32.vlgmr.msra.gmra.mrb[14].mxu1 %v39929_v3  ;;  %v23438_v3 = vand.u32 4294901760, %v40021_v14 }
 0xc23   : > { %31834 = vmatpush3.bf16.msra.mxu1 %v39926_v47  ;;  %30576 = vmatprep.mubr.f32.mxu1 %v22848_v18  ;;  %v23356_v18 = vand.u32 4294901760, %v26173_v8  ;;  %v23428_v28 = vsub.f32 %v40044_v39, %v23427_v9 }
 0xc24   : > { %31836 = vmatprep.subr.bf16.mxu1 %v39942_v24  ;;  %v23439_v48 = vsub.f32 %v40021_v14, %v23438_v3 }
 0xc25   : > { %v40035_v33 = vsub.f32 %v26173_v8, %v23356_v18  ;;  %v40059_v43 = vpack.c.bf16 %v23356_v18, %v23353_v52  ;;  %v23429_v59 = vand.u32 4294901760, %v23428_v28  ;;  %v41516_v8 = vld [vmem:[#allocation119_spill] sm:$0xff]  ;;  %v41517_v18 = vld [vmem:[#allocation89_spill] sm:$0xff] }
 0xc26   : > { %v23440_v6 = vand.u32 4294901760, %v23439_v48  ;;  %v23888_v45 = vrot.slane %v41516_v8, %v41462_v37  ;;  %v24454_v8 = vsel %vm3586_vm4, %v39166_v38, %v39152_v5 }
 0xc27   : > { %31838 = vmatpush3.bf16.msra.mxu1 %v39942_v24 }
 0xc28   : > { %31840 = vmatprep.subr.bf16.mxu1 %v31839_v15 }
 0xc2a   : > { %30577 = vmatmul.mubr.f32.vlgmr.msra.gmra.mrb[14].mxu1 %v22858_v63  ;;  %v40033_v63 = vsub.f32 %v26172_v58, %v23353_v52  ;;  %v23907_v52 = vsel %vm3592_vm7, %v23884_v32, %v23906_v36 }
 0xc2b   : > { %31842 = vmatpush3.bf16.msra.mxu1 %v31839_v15  ;;  %30587 = vmatprep.mubr.f32.mxu1 %v39896_v35 }
 0xc2c   : > { %31844 = vmatprep.subr.bf16.mxu1 %v31843_v50  ;;  %v23452_v42 = vand.u32 4294901760, %v40033_v63  ;;  %v31875_v16 = vpack.c.bf16 %v40035_v33, %v40033_v63 }
 0xc2e   : > { %v23453_v13 = vsub.f32 %v40033_v63, %v23452_v42 }
 0xc2f   : > { %31846 = vmatpush3.bf16.msra.mxu1 %v31843_v50 }
 0xc30   : > { %31848 = vmatprep.subr.bf16.mxu1 %v39926_v47  ;;  %v23454_v25 = vand.u32 4294901760, %v23453_v13  ;;  %v31887_v13 = vpack.c.bf16 %v23445_v27, %v23438_v3 }
 0xc32   : > { %30588 = vmatmul.mubr.f32.vlgmr.msra.gmra.mrb[14].mxu1 %v39913_v54 }
 0xc33   : > { %31850 = vmatpush3.bf16.msra.mxu1 %v39926_v47  ;;  %30598 = vmatprep.mubr.f32.mxu1 %v39896_v35  ;;  %v23459_v47 = vand.u32 4294901760, %v40035_v33  ;;  %v23418_v35 = vsub.f32 %v40026_v53, %v23417_v1 }
 0xc34   : > { %31852 = vmatprep.subr.bf16.mxu1 %v39942_v24 }
 0xc35   : > { %v23460_v40 = vsub.f32 %v40035_v33, %v23459_v47  ;;  %v23419_v21 = vand.u32 4294901760, %v23418_v35  ;;  %v23908_v35 = vsel %vm3594_vm8, %v23888_v45, %v23907_v52  ;;  %v24455_v45 = vsel %vm3588_vm5, %v41498_v30, %v24454_v8  ;;  %v41521_v52 = vld [vmem:[#allocation94_spill] sm:$0xff]  ;;  %v25028_v8 = vld [vmem:[%s40411_s9 + $0x10] sm:$0xff] }
 0xc37   : > { %31854 = vmatpush3.bf16.msra.mxu1 %v39942_v24  ;;  %v31863_v24 = vpack.c.bf16 %v23447_v22, %v23440_v6  ;;  %v23461_v34 = vand.u32 4294901760, %v23460_v40  ;;  %v41519_v6 = vld [vmem:[#allocation86_spill] sm:$0xff]  ;;  %v41520_v40 = vld [vmem:[#allocation111_spill] sm:$0xff] }
 0xc38   : > { %31856 = vmatprep.subr.bf16.mxu1 %v40041_v2 }
 0xc39   : > { %v31867_v57 = vpack.c.bf16 %v23461_v34, %v23454_v25  ;;  %v26176_v25 = vld [vmem:[%s40409_s7 + $0xf0] sm:$0xff]  ;;  %v26177_v34 = vld [vmem:[%s40409_s7 + $0xf8] sm:$0xff] }
 0xc3a   : > { %30599 = vmatmul.mubr.f32.vlgmr.msra.gmra.mrb[14].mxu1 %v39913_v54  ;;  %v23897_v54 = vsel %vm3586_vm4, %v41507_v26, %v41506_v31  ;;  %v23922_v33 = vand.u32 4294901760, %v26176_v25 }
 0xc3b   : > { %31858 = vmatpush3.bf16.msra.mxu1 %v40041_v2  ;;  %30609 = vmatprep.mubr.f32.mxu1 %v23419_v21  ;;  %v23898_v55 = vsel %vm3588_vm5, %v41508_v12, %v23897_v54  ;;  %v23896_v21 = vrot.slane %v41520_v40, %v41462_v37  ;;  %v31891_v37 = vpack.c.bf16 %v23459_v47, %v23452_v42  ;;  %v23925_v42 = vand.u32 4294901760, %v26177_v34 }
 0xc3c   : > { %31860 = vmatprep.subr.bf16.mxu1 %v40059_v43  ;;  %v23899_v15 = vsel %vm3590_vm6, %v41511_v41, %v23898_v55  ;;  %v40163_v26 = vsub.f32 %v26176_v25, %v23922_v33 }
 0xc3d   : > { %v23900_v50 = vsel %vm3592_vm7, %v41513_v44, %v23899_v15  ;;  %v40165_v54 = vsub.f32 %v26177_v34, %v23925_v42 }
 0xc3e   : > { %v23901_v58 = vsel %vm3594_vm8, %v41515_v62, %v23900_v50  ;;  %v24021_v19 = vand.u32 4294901760, %v40163_v26 }
 0xc3f   : > { %31862 = vmatpush3.bf16.msra.mxu1 %v40059_v43  ;;  %v23902_v48 = vsel %vm3596_vm9, %v41517_v18, %v23901_v58  ;;  %v24028_v41 = vand.u32 4294901760, %v40165_v54  ;;  %v24456_v18 = vsel %vm3590_vm6, %v41521_v52, %v24455_v45 }
 0xc40   : > { %31864 = vmatprep.subr.bf16.mxu1 %v31863_v24  ;;  %v23903_v22 = vsel %vm3598_vm10, %v41519_v6, %v23902_v48  ;;  %v24022_v7 = vsub.f32 %v40163_v26, %v24021_v19  ;;  %v31923_v48 = vpack.c.bf16 %v40165_v54, %v40163_v26  ;;  %v24457_v5 = vsel %vm3592_vm7, %v41502_v29, %v24456_v18  ;;  %v25029_v18 = vld [vmem:[%s40411_s9 + $0x18] sm:$0xff] }
 0xc41   : > { %v23911_v28 = vsel %vm11900_vm11, %v23903_v22, 0  ;;  %v24029_v44 = vsub.f32 %v40165_v54, %v24028_v41  ;;  %v24458_v38 = vsel %vm3594_vm8, %v41503_v10, %v24457_v5  ;;  %v41524_v5 = vmov 0.0  }
 0xc42   : > { %30610 = vmatmul.mubr.f32.vlgmr.msra.gmra.mrb[14].mxu1 %v23429_v59  ;;  %v40139_v27 = vand.u32 4294901760, %v23911_v28  ;;  %v24023_v56 = vand.u32 4294901760, %v24022_v7  ;;  %v24459_v30 = vsel %vm3596_vm9, %v41504_v60, %v24458_v38  ;;  %v26179_v60 = vld [vmem:[%s40409_s7 + $0x108] sm:$0xff]  ;;  %30807 = vmatprep.mubr.msk.f32.mxu0 %vm33364_vm13, %v41524_v5  ;;  %v25044_v38 = vand.u32 4294901760, %v25029_v18 }
 0xc43   : > { %31866 = vmatpush3.bf16.msra.mxu1 %v31863_v24  ;;  %30620 = vmatprep.mubr.f32.mxu1 %v40009_v0  ;;  %v26174_v24 = vld [vmem:[%s40409_s7 + $0xe0] sm:$0xff]  ;;  %v24030_v36 = vand.u32 4294901760, %v24029_v44  ;;  %v24460_v29 = vsel %vm3598_vm10, %v41522_v20, %v24459_v30 }
 0xc44   : > { %31868 = vmatprep.subr.bf16.mxu1 %v31867_v57  ;;  %v23916_v14 = vand.u32 4294901760, %v26174_v24  ;;  %v24468_v6 = vsel %vm11900_vm11, %v24460_v29, 0 }
 0xc45   : > { %v31915_v58 = vpack.c.bf16 %v24030_v36, %v24023_v56 }
 0xc46   : > { %v40151_v47 = vsub.f32 %v26174_v24, %v23916_v14  ;;  %v41523_v24 = vld [vmem:[#allocation97_spill] sm:$0xff] }
 0xc47   : > { %31870 = vmatpush3.bf16.msra.mxu1 %v31867_v57  ;;  %v40156_v57 = vsub.f32 %v23911_v28, %v40139_v27  ;;  %v26180_v28 = vld [vmem:[%s40409_s7 + $0x110] sm:$0xff] }
 0xc48   : > { %31872 = vmatprep.subr.bf16.mxu1 %v31871_v51 }
 0xc4a   : > { %30621 = vmatmul.mubr.f32.vlgmr.msra.gmra.mrb[14].mxu1 %v40028_v4 }
 0xc4b   : > { %31874 = vmatpush3.bf16.msra.mxu1 %v31871_v51  ;;  %30631 = vmatprep.mubr.f32.mxu1 %v40026_v53  ;;  %v26175_v53 = vld [vmem:[%s40409_s7 + $0xe8] sm:$0xff]  ;;  %v23986_v51 = vand.u32 4294901760, %v40156_v57 }
 0xc4c   : > { %31876 = vmatprep.subr.bf16.mxu1 %v31875_v16  ;;  %v23919_v11 = vand.u32 4294901760, %v26175_v53 }
 0xc4e   : > { %v40153_v59 = vsub.f32 %v26175_v53, %v23919_v11  ;;  %v40171_v12 = vpack.c.bf16 %v23919_v11, %v23916_v14  ;;  %v24479_v11 = vand.u32 4294901760, %v26180_v28 }
 0xc4f   : > { %31878 = vmatpush3.bf16.msra.mxu1 %v31875_v16 }
 0xc50   : > { %31880 = vmatprep.subr.bf16.mxu1 %v40041_v2 }
 0xc52   : > { %30632 = vmatmul.mubr.f32.vlgmr.msra.gmra.mrb[14].mxu1 %v40044_v39  ;;  %v24007_v39 = vand.u32 4294901760, %v40151_v47 }
 0xc53   : > { %31882 = vmatpush3.bf16.msra.mxu1 %v40041_v2  ;;  %30642 = vmatprep.mubr.f32.mxu1 %v23417_v1  ;;  %v23909_v1 = vsel %vm3596_vm9, %v23892_v17, %v23908_v35  ;;  %v26149_v17 = vld.sshfl [vmem:[#allocation4 + $0x88] sm:$0x3 pattern:$0x76325410]  ;;  %v26178_v35 = vld [vmem:[%s40409_s7 + $0x100] sm:$0xff] }
 0xc54   : > { %31884 = vmatprep.subr.bf16.mxu1 %v40059_v43  ;;  %v23910_v3 = vsel %vm3598_vm10, %v23896_v21, %v23909_v1  ;;  %v24008_v23 = vsub.f32 %v40151_v47, %v24007_v39  ;;  %v24453_v22 = vrot.slane %v26149_v17, %v41475_v46  ;;  %v24473_v40 = vand.u32 4294901760, %v26178_v35 }
 0xc55   : > { %v23913_v63 = vsel %vm11900_vm11, %v23910_v3, 0  ;;  %v24476_v21 = vand.u32 4294901760, %v26179_v60  ;;  %v40235_v1 = vand.u32 4294901760, %v24468_v6 }
 0xc56   : > { %v40158_v31 = vand.u32 4294901760, %v23913_v63  ;;  %v24009_v16 = vand.u32 4294901760, %v24008_v23  ;;  %v24467_v53 = vsel %vm3598_vm10, %v24453_v22, %v41523_v24  ;;  %v24563_v25 = vsub.f32 %v26178_v35, %v24473_v40 }
 0xc57   : > { %31886 = vmatpush3.bf16.msra.mxu1 %v40059_v43  ;;  %v24470_v14 = vsel %vm11900_vm11, %v24467_v53, 0  ;;  %v24570_v34 = vsub.f32 %v26179_v60, %v24476_v21 }
 0xc58   : > { %31888 = vmatprep.subr.bf16.mxu1 %v31887_v13  ;;  %v40174_v55 = vsub.f32 %v23913_v63, %v40158_v31  ;;  %v24542_v63 = vsub.f32 %v24468_v6, %v40235_v1 }
 0xc5a   : > { %30643 = vmatmul.mubr.f32.vlgmr.msra.gmra.mrb[14].mxu1 %v23427_v9  ;;  %v24014_v9 = vand.u32 4294901760, %v40153_v59  ;;  %v23996_v15 = vand.u32 4294901760, %v40174_v55 }
 0xc5b   : > { %31890 = vmatpush3.bf16.msra.mxu1 %v31887_v13  ;;  %30653 = vmatprep.mubr.f32.mxu1 %v40009_v0  ;;  %v31939_v13 = vpack.c.bf16 %v24028_v41, %v24021_v19 }
 0xc5c   : > { %31892 = vmatprep.subr.bf16.mxu1 %v31891_v37  ;;  %v24015_v49 = vsub.f32 %v40153_v59, %v24014_v9  ;;  %v23997_v32 = vsub.f32 %v40174_v55, %v23996_v15  ;;  %v31935_v10 = vpack.c.bf16 %v24014_v9, %v24007_v39  ;;  %v24543_v39 = vand.u32 4294901760, %v24542_v63 }
 0xc5d   : > { %v31951_v9 = vpack.c.bf16 %v24476_v21, %v24473_v40 }
 0xc5e   : > { %v24016_v61 = vand.u32 4294901760, %v24015_v49  ;;  %v23998_v62 = vand.u32 4294901760, %v23997_v32  ;;  %v24544_v49 = vsub.f32 %v24542_v63, %v24543_v39  ;;  %v31967_v32 = vpack.c.bf16 %v24570_v34, %v24563_v25 }
 0xc5f   : > { %31894 = vmatpush3.bf16.msra.mxu1 %v31891_v37  ;;  %v26181_v37 = vld [vmem:[%s40409_s7 + $0x118] sm:$0xff] }
 0xc60   : > { %31896 = vmatprep.subr.bf16.mxu1 %v40041_v2  ;;  %v24482_v3 = vand.u32 4294901760, %v26181_v37 }
 0xc62   : > { %30654 = vmatmul.mubr.f32.vlgmr.msra.gmra.mrb[14].mxu1 %v40028_v4  ;;  %v31955_v19 = vpack.c.bf16 %v24482_v3, %v24479_v11 }
 0xc63   : > { %31898 = vmatpush3.bf16.msra.mxu1 %v40041_v2  ;;  %30664 = vmatprep.mubr.f32.mxu1 %v40009_v0  ;;  %v23987_v2 = vsub.f32 %v40156_v57, %v23986_v51  ;;  %v40185_v0 = vpack.c.bf16 %v23925_v42, %v23922_v33  ;;  %v40246_v33 = vand.u32 4294901760, %v24470_v14  ;;  %v24564_v42 = vand.u32 4294901760, %v24563_v25 }
 0xc64   : > { %31900 = vmatprep.subr.bf16.mxu1 %v40059_v43 }
 0xc65   : > { %v23988_v50 = vand.u32 4294901760, %v23987_v2  ;;  %v24552_v26 = vsub.f32 %v24470_v14, %v40246_v33  ;;  %v24565_v54 = vsub.f32 %v24563_v25, %v24564_v42 }
 0xc67   : > { %31902 = vmatpush3.bf16.msra.mxu1 %v40059_v43  ;;  %v31911_v43 = vpack.c.bf16 %v24016_v61, %v24009_v16  ;;  %v24553_v41 = vand.u32 4294901760, %v24552_v26  ;;  %v24566_v2 = vand.u32 4294901760, %v24565_v54 }
 0xc68   : > { %31904 = vmatprep.subr.bf16.mxu1 %v40171_v12 }
 0xc69   : > { %v24554_v7 = vsub.f32 %v24552_v26, %v24553_v41 }
 0xc6a   : > { %30665 = vmatmul.mubr.f32.vlgmr.msra.gmra.mrb[14].mxu1 %v40028_v4  ;;  %v31919_v4 = vpack.c.bf16 %v40153_v59, %v40151_v47  ;;  %v24571_v47 = vand.u32 4294901760, %v24570_v34  ;;  %v24577_v59 = vsub.f32 %v26180_v28, %v24479_v11 }
 0xc6b   : > { %31906 = vmatpush3.bf16.msra.mxu1 %v40171_v12  ;;  %30675 = vmatprep.mubr.f32.mxu1 %v23988_v50 }
 0xc6c   : > { %31908 = vmatprep.subr.bf16.mxu1 %v40185_v0  ;;  %v31983_v56 = vpack.c.bf16 %v24571_v47, %v24564_v42  ;;  %v26182_v42 = vld [vmem:[%s40410_s8] ss:$0 sm:$0xff] }
 0xc6f   : > { %31910 = vmatpush3.bf16.msra.mxu1 %v40185_v0 }
 0xc70   : > { %31912 = vmatprep.subr.bf16.mxu1 %v31911_v43 }
 0xc72   : > { %30676 = vmatmul.mubr.f32.vlgmr.msra.gmra.mrb[14].mxu1 %v23998_v62  ;;  %v25026_v62 = vld [vmem:[%s40411_s9] sm:$0xff] }
 0xc73   : > { %31914 = vmatpush3.bf16.msra.mxu1 %v31911_v43  ;;  %30686 = vmatprep.mubr.f32.mxu1 %v40139_v27  ;;  %v25035_v45 = vand.u32 4294901760, %v25026_v62 }
 0xc74   : > { %31916 = vmatprep.subr.bf16.mxu1 %v31915_v58 }
 0xc75   : > { %v25115_v20 = vsub.f32 %v25026_v62, %v25035_v45 }
 0xc77   : > { %31918 = vmatpush3.bf16.msra.mxu1 %v31915_v58  ;;  %v25027_v58 = vld [vmem:[%s40411_s9 + $0x8] sm:$0xff]  ;;  %v25116_v60 = vand.u32 4294901760, %v25115_v20 }
 0xc78   : > { %31920 = vmatprep.subr.bf16.mxu1 %v31919_v4  ;;  %v25038_v52 = vand.u32 4294901760, %v25027_v58 }
 0xc79   : > { %v25117_v22 = vsub.f32 %v25115_v20, %v25116_v60 }
 0xc7a   : > { %30687 = vmatmul.mubr.f32.vlgmr.msra.gmra.mrb[14].mxu1 %v40158_v31  ;;  %v40277_v30 = vpack.c.bf16 %v25038_v52, %v25035_v45  ;;  %v25122_v29 = vsub.f32 %v25027_v58, %v25038_v52 }
 0xc7b   : > { %31922 = vmatpush3.bf16.msra.mxu1 %v31919_v4  ;;  %30697 = vmatprep.mubr.f32.mxu1 %v40156_v57  ;;  %v24584_v57 = vsub.f32 %v26181_v37, %v24482_v3  ;;  %v33363_v4 = vmov 0.0|0.0   ;;  %v25118_v24 = vand.u32 4294901760, %v25117_v22 }
 0xc7c   : > { %31924 = vmatprep.subr.bf16.mxu1 %v31923_v48  ;;  %31999 = vmatprep.subr.bf16.mxu0 %v33363_v4  ;;  %v25123_v6 = vand.u32 4294901760, %v25122_v29  ;;  %v32012_v25 = vpack.c.bf16 %v25122_v29, %v25115_v20 }
 0xc7d   : > { %v24585_v23 = vand.u32 4294901760, %v24584_v57  ;;  %32001 = vmatpush3.bf16.msra.mxu0 %v40277_v30 }
 0xc7e   : > { %32002 = vmatprep.subr.bf16.mxu0 %v33363_v4 }
 0xc7f   : > { %31926 = vmatpush3.bf16.msra.mxu1 %v31923_v48  ;;  %v24586_v16 = vsub.f32 %v24584_v57, %v24585_v23  ;;  %v25041_v48 = vand.u32 4294901760, %v25028_v8 }
 0xc80   : > { %31928 = vmatprep.subr.bf16.mxu1 %v40171_v12 }
 0xc81   : > { %v24587_v50 = vand.u32 4294901760, %v24586_v16  ;;  %v25129_v17 = vsub.f32 %v25028_v8, %v25041_v48  ;;  %v40280_v35 = vpack.c.bf16 %v25044_v38, %v25041_v48 }
 0xc82   : > { %30698 = vmatmul.mubr.f32.vlgmr.msra.gmra.mrb[14].mxu1 %v40174_v55  ;;  %v24578_v55 = vand.u32 4294901760, %v24577_v59 }
 0xc83   : > { %31930 = vmatpush3.bf16.msra.mxu1 %v40171_v12  ;;  %30708 = vmatprep.mubr.f32.mxu1 %v23986_v51  ;;  %v24572_v51 = vsub.f32 %v24570_v34, %v24571_v47  ;;  %v25130_v40 = vand.u32 4294901760, %v25129_v17 }
 0xc84   : > { %31932 = vmatprep.subr.bf16.mxu1 %v40185_v0  ;;  %v31987_v36 = vpack.c.bf16 %v24585_v23, %v24578_v55  ;;  %32004 = vmatpush3.bf16.msra.mxu0 %v40280_v35 }
 0xc85   : > { %32005 = vmatprep.subr.bf16.mxu0 %v33363_v4 }
 0xc87   : > { %31934 = vmatpush3.bf16.msra.mxu1 %v40185_v0 }
 0xc88   : > { %31936 = vmatprep.subr.bf16.mxu1 %v31935_v10 }
 0xc8a   : > { %30709 = vmatmul.mubr.f32.vlgmr.msra.gmra.mrb[14].mxu1 %v23996_v15  ;;  %v24573_v15 = vand.u32 4294901760, %v24572_v51 }
 0xc8b   : > { %31938 = vmatpush3.bf16.msra.mxu1 %v31935_v10  ;;  %30719 = vmatprep.mubr.f32.mxu1 %v40139_v27  ;;  %v25136_v10 = vsub.f32 %v25029_v18, %v25044_v38 }
 0xc8c   : > { %31940 = vmatprep.subr.bf16.mxu1 %v31939_v13  ;;  %v31959_v61 = vpack.c.bf16 %v24573_v15, %v24566_v2 }
 0xc8d   : > { %v25137_v21 = vand.u32 4294901760, %v25136_v10  ;;  %v32015_v34 = vpack.c.bf16 %v25136_v10, %v25129_v17 }
 0xc8f   : > { %31942 = vmatpush3.bf16.msra.mxu1 %v31939_v13  ;;  %v25124_v13 = vsub.f32 %v25122_v29, %v25123_v6  ;;  %v25138_v28 = vsub.f32 %v25136_v10, %v25137_v21 }
 0xc90   : > { %31944 = vmatprep.subr.bf16.mxu1 %v40171_v12 }
 0xc91   : > { %v25125_v53 = vand.u32 4294901760, %v25124_v13  ;;  %v25139_v11 = vand.u32 4294901760, %v25138_v28 }
 0xc92   : > { %30720 = vmatmul.mubr.f32.vlgmr.msra.gmra.mrb[14].mxu1 %v40158_v31 }
 0xc93   : > { %31946 = vmatpush3.bf16.msra.mxu1 %v40171_v12  ;;  %30730 = vmatprep.mubr.f32.mxu1 %v40139_v27  ;;  %v24579_v12 = vsub.f32 %v24577_v59, %v24578_v55  ;;  %v24545_v27 = vand.u32 4294901760, %v24544_v49  ;;  %v32006_v37 = vpack.c.bf16 %v25125_v53, %v25118_v24 }
 0xc94   : > { %31948 = vmatprep.subr.bf16.mxu1 %v40185_v0 }
 0xc95   : > { %v24580_v44 = vand.u32 4294901760, %v24579_v12 }
 0xc97   : > { %31950 = vmatpush3.bf16.msra.mxu1 %v40185_v0  ;;  %v24555_v0 = vand.u32 4294901760, %v24554_v7  ;;  %v31963_v43 = vpack.c.bf16 %v24587_v50, %v24580_v44 }
 0xc98   : > { %31952 = vmatprep.subr.bf16.mxu1 %v31951_v9 }
 0xc9a   : > { %30731 = vmatmul.mubr.f32.vlgmr.msra.gmra.mrb[14].mxu1 %v40158_v31  ;;  %v31971_v31 = vpack.c.bf16 %v24584_v57, %v24577_v59 }
 0xc9b   : > { %31954 = vmatpush3.bf16.msra.mxu1 %v31951_v9  ;;  %30741 = vmatprep.mubr.f32.mxu1 %v24545_v27 }
 0xc9c   : > { %31956 = vmatprep.subr.bf16.mxu1 %v31955_v19 }
 0xc9f   : > { %31958 = vmatpush3.bf16.msra.mxu1 %v31955_v19 }
 0xca0   : > { %31960 = vmatprep.subr.bf16.mxu1 %v31959_v61 }
 0xca2   : > { %30742 = vmatmul.mubr.f32.vlgmr.msra.gmra.mrb[14].mxu1 %v24555_v0 }
 0xca3   : > { %31962 = vmatpush3.bf16.msra.mxu1 %v31959_v61  ;;  %30752 = vmatprep.mubr.f32.mxu1 %v40235_v1 }
 0xca4   : > { %31964 = vmatprep.subr.bf16.mxu1 %v31963_v43 }
 0xca7   : > { %31966 = vmatpush3.bf16.msra.mxu1 %v31963_v43 }
 0xca8   : > { %31968 = vmatprep.subr.bf16.mxu1 %v31967_v32 }
 0xcaa   : > { %30753 = vmatmul.mubr.f32.vlgmr.msra.gmra.mrb[14].mxu1 %v40246_v33 }
 0xcab   : > { %31970 = vmatpush3.bf16.msra.mxu1 %v31967_v32  ;;  %30763 = vmatprep.mubr.f32.mxu1 %v24542_v63  ;;  %v32024_v63 = vpack.c.bf16 %v25123_v6, %v25116_v60  ;;  %v25520_v32 = vld [vmem:[%s40413_s11] sm:$0xf] }
 0xcac   : > { %31972 = vmatprep.subr.bf16.mxu1 %v31971_v31 }
 0xcaf   : > { %31974 = vmatpush3.bf16.msra.mxu1 %v31971_v31  ;;  %v25528_v31 = vsel %vm25526_vm14, %v25520_v32, 0 }
 0xcb0   : > { %31976 = vmatprep.subr.bf16.mxu1 %v31951_v9 }
 0xcb2   : > { %30764 = vmatmul.mubr.f32.vlgmr.msra.gmra.mrb[14].mxu1 %v24552_v26 }
 0xcb3   : > { %31978 = vmatpush3.bf16.msra.mxu1 %v31951_v9  ;;  %30774 = vmatprep.mubr.f32.mxu1 %v24543_v39 }
 0xcb4   : > { %31980 = vmatprep.subr.bf16.mxu1 %v31955_v19 }
 0xcb7   : > { %31982 = vmatpush3.bf16.msra.mxu1 %v31955_v19 }
 0xcb8   : > { %31984 = vmatprep.subr.bf16.mxu1 %v31983_v56 }
 0xcba   : > { %30775 = vmatmul.mubr.f32.vlgmr.msra.gmra.mrb[14].mxu1 %v24553_v41 }
 0xcbb   : > { %31986 = vmatpush3.bf16.msra.mxu1 %v31983_v56  ;;  %30785 = vmatprep.mubr.f32.mxu1 %v40235_v1  ;;  %v25531_v56 = vand.u32 4294901760, %v25528_v31 }
 0xcbc   : > { %31988 = vmatprep.subr.bf16.mxu1 %v31987_v36 }
 0xcbf   : > { %31990 = vmatpush3.bf16.msra.mxu1 %v31987_v36  ;;  %v25030_v36 = vld [vmem:[%s40412_s10] sm:$0x1] }
 0xcc0   : > { %31992 = vmatprep.subr.bf16.mxu1 %v31951_v9 }
 0xcc2   : > { %30786 = vmatmul.mubr.f32.vlgmr.msra.gmra.mrb[14].mxu1 %v40246_v33 }
 0xcc3   : > { %31994 = vmatpush3.bf16.msra.mxu1 %v31951_v9  ;;  %30796 = vmatprep.mubr.f32.mxu1 %v40235_v1  ;;  %v25131_v1 = vsub.f32 %v25129_v17, %v25130_v40 }
 0xcc4   : > { %31996 = vmatprep.subr.bf16.mxu1 %v31955_v19 }
 0xcc5   : > { %v25132_v14 = vand.u32 4294901760, %v25131_v1 }
 0xcc7   : > { %31998 = vmatpush3.bf16.msra.mxu1 %v31955_v19  ;;  %v32009_v3 = vpack.c.bf16 %v25139_v11, %v25132_v14 }
 0xcca   : > { %30797 = vmatmul.mubr.f32.vlgmr.msra.gmra.mrb[14].mxu1 %v40246_v33  ;;  %v32027_v33 = vpack.c.bf16 %v25137_v21, %v25130_v40 }
 0xd9d   : > { %v30798_v47 = vpop.f32.mrb[14].mxu1 }
 0xd9e   : > { %v25010_v59 = vadd.f32 %v30798_v47, %v26182_v42  ;;  %v24990_v57 = vpop.f32.mrb[15].mxu1 }
 0xd9f   : > { %v25009_v39 = vadd.f32 %v26182_v42, %v24990_v57 }
 0xda0   : > { %v25012_v9 = vmul.f32 0.2, %v25010_v59 }
 0xda1   : > { %v25011_v26 = vmul.f32 0.2, %v25009_v39 }
 0xda2   : > { %v40288_v54 = vmax.f32 %v25010_v59, %v25012_v9 }
 0xda3   : > { %v40290_v51 = vmax.f32 %v25009_v39, %v25011_v26 }
 0xda4   : > { %v25016_v55 = vsel %vm11900_vm11, %v40288_v54, 0.0 }
 0xda5   : > { %v25015_v23 = vsel %vm11900_vm11, %v40290_v51, 0.0 }
 0xda6   : > { %v25017_v49 = vadd.f32 %v25016_v55, %v25015_v23 }
 0xda8   : > { %v25018_v19 = vrot.slane %v25017_v49, 4 }
 0xdaa   : > { %v25019_v41 = vadd.f32 %v25018_v19, %v25017_v49 }
 0xdac   : > { %v25020_v2 = vrot.slane %v25019_v41, 2 }
 0xdae   : > { %v25021_v15 = vadd.f32 %v25020_v2, %v25019_v41 }
 0xdb0   : > { %v25022_v12 = vrot.slane %v25021_v15, 1 }
 0xdb2   : > { %v25023_v16 = vadd.f32 %v25022_v12, %v25021_v15 }
 0xdb4   : > { %v25025_v27 = vmul.f32 0.0625, %v25023_v16 }
 0xdb6   : > { %v25032_v61 = vsel %vm11900_vm11, %v25025_v27, 0 }
 0xdb7   : > { %v25103_v7 = vand.u32 4294901760, %v25032_v61 }
 0xdb9   : > { %v25104_v44 = vsub.f32 %v25032_v61, %v25103_v7 }
 0xdbb   : > { %v25105_v50 = vand.u32 4294901760, %v25104_v44 }
 0xdbd   : > { %v25106_v0 = vsub.f32 %v25104_v44, %v25105_v50 }
 0xdbf   : > { %v25107_v43 = vand.u32 4294901760, %v25106_v0 }
 0xdc1   : > { %30808 = vmatmul.mubr.f32.vlgmr.msra.gmra.mrb[40].mxu0 %v25107_v43 }
 0xdc2   : > { %32007 = vmatpush3.bf16.msra.mxu0 %v32006_v37  ;;  %30818 = vmatprep.mubr.msk.f32.mxu0 %vm33364_vm13, %v41524_v5 }
 0xdc3   : > { %32008 = vmatprep.subr.bf16.mxu0 %v33363_v4 }
 0xdc6   : > { %32010 = vmatpush3.bf16.msra.mxu0 %v32009_v3 }
 0xdc7   : > { %32011 = vmatprep.subr.bf16.mxu0 %v33363_v4 }
 0xdc9   : > { %30819 = vmatmul.mubr.f32.vlgmr.msra.gmra.mrb[40].mxu0 %v25103_v7 }
 0xdca   : > { %32013 = vmatpush3.bf16.msra.mxu0 %v32012_v25  ;;  %30829 = vmatprep.mubr.msk.f32.mxu0 %vm33364_vm13, %v41524_v5 }
 0xdcb   : > { %32014 = vmatprep.subr.bf16.mxu0 %v33363_v4 }
 0xdce   : > { %32016 = vmatpush3.bf16.msra.mxu0 %v32015_v34 }
 0xdcf   : > { %32017 = vmatprep.subr.bf16.mxu0 %v33363_v4 }
 0xdd1   : > { %30830 = vmatmul.mubr.f32.vlgmr.msra.gmra.mrb[40].mxu0 %v25104_v44 }
 0xdd2   : > { %32019 = vmatpush3.bf16.msra.mxu0 %v40277_v30  ;;  %30840 = vmatprep.mubr.msk.f32.mxu0 %vm33364_vm13, %v41524_v5 }
 0xdd3   : > { %32020 = vmatprep.subr.bf16.mxu0 %v33363_v4 }
 0xdd6   : > { %32022 = vmatpush3.bf16.msra.mxu0 %v40280_v35 }
 0xdd7   : > { %32023 = vmatprep.subr.bf16.mxu0 %v33363_v4 }
 0xdd9   : > { %30841 = vmatmul.mubr.f32.vlgmr.msra.gmra.mrb[40].mxu0 %v25105_v50 }
 0xdda   : > { %32025 = vmatpush3.bf16.msra.mxu0 %v32024_v63  ;;  %30851 = vmatprep.mubr.msk.f32.mxu0 %vm33364_vm13, %v41524_v5 }
 0xddb   : > { %32026 = vmatprep.subr.bf16.mxu0 %v33363_v4 }
 0xdde   : > { %32028 = vmatpush3.bf16.msra.mxu0 %v32027_v33 }
 0xddf   : > { %32029 = vmatprep.subr.bf16.mxu0 %v33363_v4 }
 0xde1   : > { %30852 = vmatmul.mubr.f32.vlgmr.msra.gmra.mrb[40].mxu0 %v25103_v7 }
 0xde2   : > { %32031 = vmatpush3.bf16.msra.mxu0 %v40277_v30  ;;  %30862 = vmatprep.mubr.msk.f32.mxu0 %vm33364_vm13, %v41524_v5 }
 0xde3   : > { %32032 = vmatprep.subr.bf16.mxu0 %v33363_v4  ;;  %v25608_v4 = vsub.f32 %v25528_v31, %v25531_v56 }
 0xde5   : > { %v25609_v18 = vand.u32 4294901760, %v25608_v4 }
 0xde6   : > { %32034 = vmatpush3.bf16.msra.mxu0 %v40280_v35  ;;  %v25521_v35 = vld [vmem:[%s40414_s12] sm:$0x1] }
 0xde7   : > { %30865 = vmatprep.subr.mxu0 %v41524_v5  ;;  %v25610_v30 = vsub.f32 %v25608_v4, %v25609_v18 }
 0xde9   : > { %30863 = vmatmul.mubr.f32.vlgmr.msra.gmra.mrb[40].mxu0 %v25103_v7  ;;  %v25611_v17 = vand.u32 4294901760, %v25610_v30 }
 0xdea   : > { %30867 = vmatprep.mubr.msk.f32.mxu0 %vm33364_vm13, %v41524_v5  ;;  %30866 = vmatpush3.msra.mxu0 %v25531_v56 }
 0xdeb   : > { %30870 = vmatprep.subr.mxu0 %v41524_v5 }
 0xebc   : > { %v25515_v62 = vpop.f32.mrb[40].mxu0 }
 0xebd   : > { %v32075_v58 = vadd.f32 %v25515_v62, %v25030_v36  ;;  %v30864_v8 = vpop.f32.mrb[41].mxu0 }
 0xebf   : > { %v25519_v45 = vmax.f32 %v32075_v58, 0.0 }
 0xec1   : > { %v25524_v52 = vsel %vm25522_vm15, %v25519_v45, 0 }
 0xec2   : > { %v25596_v48 = vand.u32 4294901760, %v25524_v52 }
 0xec4   : > { %v25597_v38 = vsub.f32 %v25524_v52, %v25596_v48 }
 0xec6   : > { %v25598_v20 = vand.u32 4294901760, %v25597_v38 }
 0xec8   : > { %v25599_v29 = vsub.f32 %v25597_v38, %v25598_v20 }
 0xeca   : > { %v25600_v10 = vand.u32 4294901760, %v25599_v29 }
 0xecc   : > { %30868 = vmatmul.mubr.f32.vlgmr.msra.gmra.mrb[42].mxu0 %v25600_v10 }
 0xecd   : > { %30871 = vmatpush3.msra.mxu0 %v25611_v17  ;;  %30872 = vmatprep.mubr.msk.f32.mxu0 %vm33364_vm13, %v41524_v5 }
 0xece   : > { %30875 = vmatprep.subr.mxu0 %v41524_v5 }
 0xed4   : > { %30873 = vmatmul.mubr.f32.vlgmr.msra.gmra.mrb[42].mxu0 %v25596_v48 }
 0xed5   : > { %30876 = vmatpush3.msra.mxu0 %v25608_v4  ;;  %30877 = vmatprep.mubr.msk.f32.mxu0 %vm33364_vm13, %v41524_v5 }
 0xed6   : > { %30880 = vmatprep.subr.mxu0 %v41524_v5 }
 0xedc   : > { %30878 = vmatmul.mubr.f32.vlgmr.msra.gmra.mrb[42].mxu0 %v25597_v38 }
 0xedd   : > { %30881 = vmatpush3.msra.mxu0 %v25531_v56  ;;  %30882 = vmatprep.mubr.msk.f32.mxu0 %vm33364_vm13, %v41524_v5 }
 0xede   : > { %30885 = vmatprep.subr.mxu0 %v41524_v5 }
 0xee4   : > { %30883 = vmatmul.mubr.f32.vlgmr.msra.gmra.mrb[42].mxu0 %v25598_v20 }
 0xee5   : > { %30886 = vmatpush3.msra.mxu0 %v25609_v18  ;;  %30887 = vmatprep.mubr.msk.f32.mxu0 %vm33364_vm13, %v41524_v5 }
 0xee6   : > { %30890 = vmatprep.subr.mxu0 %v41524_v5 }
 0xeec   : > { %30888 = vmatmul.mubr.f32.vlgmr.msra.gmra.mrb[42].mxu0 %v25596_v48 }
 0xeed   : > { %30891 = vmatpush3.msra.mxu0 %v25531_v56  ;;  %30892 = vmatprep.mubr.msk.f32.mxu0 %vm33364_vm13, %v41524_v5 }
 0xef4   : > { %30893 = vmatmul.mubr.f32.vlgmr.msra.gmra.mrb[42].mxu0 %v25596_v48 }
 0xfc7   : > { %v25972_v60 = vpop.f32.mrb[42].mxu0 }
 0xfc8   : > { %v32076_v6 = vadd.f32 %v25972_v60, %v25521_v35  ;;  %v30894_v22 = vpop.f32.mrb[43].mxu0 }
 0xfca   : > { %v26183_v13 = vmul.f32 -1.442695, %v32076_v6 }
 0xfcc   : > { %33293 = vpow2.f32 %v26183_v13 }
 0xfd6   : > { %v33294_v40 = vpop.eup %33293 }
 0xfd7   : > { %v25979_v21 = vadd.f32 1.0, %v33294_v40 }
 0xfd9   : > { %33295 = vrcp.f32 %v25979_v21 }
 0xfe3   : > { %v33296_v5 = vpop.eup %33295 }
 0xfe4   : > { %v25985_v24 = vrot.slane %v33296_v5, %v41475_v46 }
 0xfe6   : > { %v25986_v53 = vmul.f32 %v25985_v24, %v40290_v51  ;;  %v25987_v1 = vmul.f32 %v25985_v24, %v40288_v54 }
 0xfe8   : > { %25988 = vst.msk [vmem:[%s433_s15] sm:$0xff] %vm11900_vm11, %v25986_v53  ;;  %25989 = vst.msk [vmem:[%s433_s15 + $0x8] sm:$0xff] %vm11900_vm11, %v25987_v1 }
 0xfe9   : > { %33310 = shalt.err (!%p33307_p3)
}
 0xfea   : > { %s33311_s23 = scalar_lea.hbm %s40353_s22, 256  ;;  %s33315_s30 = scalar_lea.hbm %s40415_s13, 512 }
 0xfeb   : > { %p33312_p4 = scmp.ne.s32.totalorder %s40353_s22, %s33311_s23  ;;  %p33316_p9 = scmp.lt.u32.totalorder %s40353_s22, %s40415_s13 }
 0xfec   : > { %p33317_p10 = scmp.lt.u32.totalorder %s33315_s30, %s33311_s23  ;;  %p33319_p12 = scmp.lt.u32.totalorder %s33311_s23, %s40353_s22 }
 0xfed   : > { %p33313_p7 = pnand %p33312_p4, %p33476_p5 }
 0xfee   : > { %p33318_p11 = por %p33317_p10, %p33316_p9 }
 0xfef   : > { %p33314_p8 = pneg %p33313_p7 }
 0xff0   : > { %p33320_p13 = por %p33319_p12, %p33318_p11 }
 0xff2   : > { %p33321_p0 = pnand %p33320_p13, %p33314_p8 }
 0xff4   : > { %33324 = shalt.err (!%p33321_p0)
}
 0xff5   : > { %s33366_s24 = smov 128   ;;  %s33367_s21 = smov 8  }
 0xff6   : > { %33205 = dma.vmem_to_hbm [thread:$0]  (%p33476_p5), %s40355_s16, 256, %s40353_s22, %s40361_s29, %s33366_s24, %s33366_s24, %s33367_s21  }
 0xff7 PF: > { %p33211_p1 = scmp.ge.s32.totalorder %s33359_s28, 2  ;;  %s26019_s0 = sand.u32 1, %s33347_s25  }
 0xff8   : > { %s26020_s1 = scalar_lea.sflag [#allocation6], %s26019_s0 }
 0xff9   : > { %p33208_p2 = pnand %p33211_p1, %p33480_p6 }
 0xffb   : > { %33342 = dma.done.wait (!%p33208_p2), %s26020_s1, 256  }
 0xffc   : > { %33344 = vsyncadd (!%p33208_p2), %s26020_s1, 4294967040  ;;  %p23_p3 = scmp.ge.s32.totalorder %s33463_s14, 4   ;;  %s41525_s25 = smov %s33351_s26 }
 0xffd   : > { %s41526_s26 = smov %s33355_s27  ;;  %s41527_s27 = smov %s33474_s17 }
 0xffe   : > { %s41528_s28 = smov %s33463_s14  ;;  %25 = sbr.rel (!%p23_p3) target bundleno = 6 (0x6), region = 135 }
0x1005   :  { %26025 = vsyncpa [#allocation6], 1 }
0x1006   :  { %26027 = vsyncpa [#allocation6 + $0x1], 1 }

</bundles_post_ra>
